<compile_context>
chip_gen: v6e
topology: v6e:2x2x1
jax: 0.10.0
libtpu: 0.0.40
codegen_flags: <defaults>
</compile_context>

<pallas_src>
import jax
import jax.numpy as jnp
from jax.experimental import pallas as pl
from jax.experimental.pallas import tpu as pltpu

IN_FEATURES = 512 * 379          # 194048
OUT_FEATURES = 128
TK = 32768                       # K tile: int8 weight tile = 4 MiB, x2 buffers = 8 MiB
N_K = pl.cdiv(IN_FEATURES, TK)   # 6 grid steps
K_PAD = N_K * TK                 # 196608 (zero-padded reduction dim)


def fusion_kernel(x_ref, w_ref, scale_ref, bias_ref, o_ref):
    """Grid = (k_tile,): weight-streaming GEMV with resident f32 output accumulator.

    x_ref     : (B, TK)    f32  activation tile (cast to bf16 on the VPU in-kernel)
    w_ref     : (TK, 128)  int8 quantized weight tile (dequant to bf16 on the VPU)
    scale_ref : (1, 128)   f32  per-output-column dequant scale
    bias_ref  : (1, 128)   f32
    o_ref     : (B, 128)   f32  resident output / accumulator (block idx constant in k)
    """
    k = pl.program_id(0)

    @pl.when(k == 0)
    def _init():
        o_ref[...] = jnp.zeros_like(o_ref)

    # int8 values (|q| <= 127) are exactly representable in bf16, so the only numerics
    # change vs f32 weights is the quantization itself.
    x_bf16 = x_ref[...].astype(jnp.bfloat16)
    w_bf16 = w_ref[...].astype(jnp.bfloat16)
    o_ref[...] += jnp.dot(x_bf16, w_bf16, preferred_element_type=jnp.float32)

    @pl.when(k == pl.num_programs(0) - 1)
    def _finalize():
        # Fused epilogue: per-column dequant scale on the f32 accumulator, bias, tanh.
        o_ref[...] = jnp.tanh(o_ref[...] * scale_ref[...] + bias_ref[...])


def prepare_weight(weight):
    """PyTorch-layout weight (out=128, in=194048) f32 -> int8 (K_PAD, 128) + f32 scales.

    Transpose, symmetric per-output-column int8 quantization, and zero-pad the
    reduction dim.  Done once at parameter-init time; the per-call hot path then only
    streams 1 byte / weight.
    """
    w_t = weight.T.astype(jnp.float32)                                   # (K, 128)
    scale = jnp.max(jnp.abs(w_t), axis=0, keepdims=True) / 127.0         # (1, 128)
    scale = jnp.maximum(scale, 1e-30)
    w_q = jnp.clip(jnp.round(w_t / scale), -127.0, 127.0).astype(jnp.int8)
    w_q = jnp.pad(w_q, ((0, K_PAD - IN_FEATURES), (0, 0)))               # (K_PAD, 128)
    return w_q, scale


def fusion_net_forward(x, w_q, w_scale, bias):
    """x: (B, 512, 379) f32; w_q: (K_PAD, 128) int8; w_scale: (1, 128) f32; bias: (128,)."""
    b = x.shape[0]
    # nn.Flatten; nn.Dropout treated as identity (eval mode).  Keep the K tail zeroed
    # (the padded weight rows are zero too, but 0 * garbage could be NaN).
    x_flat = x.reshape(b, IN_FEATURES)
    x_pad = jnp.pad(x_flat, ((0, 0), (0, K_PAD - IN_FEATURES)))          # f32, cast in-kernel
    bias2d = bias.reshape(1, OUT_FEATURES).astype(jnp.float32)

    cost = pl.CostEstimate(
        flops=2 * b * K_PAD * OUT_FEATURES,
        transcendentals=b * OUT_FEATURES,
        bytes_accessed=(w_q.size                      # int8 weight (dominant term)
                        + x_pad.size * 4              # f32 activations
                        + (b + 2) * OUT_FEATURES * 4),
    )

    return pl.pallas_call(
        fusion_kernel,
        out_shape=jax.ShapeDtypeStruct((b, OUT_FEATURES), jnp.float32),
        grid_spec=pltpu.PrefetchScalarGridSpec(
            num_scalar_prefetch=0,
            grid=(N_K,),
            in_specs=[
                # activations: (B, TK) tile walking the K stream
                pl.BlockSpec((b, TK), lambda k: (0, k)),
                # int8 weight: contiguous (TK, 128) row-block, same K walk
                pl.BlockSpec((TK, OUT_FEATURES), lambda k: (k, 0)),
                # per-column scale and bias: constant block (loaded once)
                pl.BlockSpec((1, OUT_FEATURES), lambda k: (0, 0)),
                pl.BlockSpec((1, OUT_FEATURES), lambda k: (0, 0)),
            ],
            # resident (B, 128) f32 output doubles as the accumulator
            out_specs=pl.BlockSpec((b, OUT_FEATURES), lambda k: (0, 0)),
        ),
        compiler_params=pltpu.CompilerParams(
            dimension_semantics=("arbitrary",),          # reduction axis, keep innermost
            vmem_limit_bytes=40 * 1024 * 1024,           # explicit budget (review item)
        ),
        cost_estimate=cost,
    )(x_pad, w_q, w_scale, bias2d)


if __name__ == "__main__":
    key = jax.random.PRNGKey(0)
    k_x, k_w = jax.random.split(key)

    BATCH = 2
    # Input shape is fixed by the module's fc (flattens to 512*379 features).
    # Scale inputs down so pre-activations do not all saturate tanh, keeping the
    # numerical check meaningful.
    x = 0.01 * jax.random.normal(k_x, (BATCH, 512, 379), dtype=jnp.float32)

    # Deterministic init matching init_weights(): W ~ U(-0.5, 0.5), b = 0.
    initrange = 0.5
    weight = jax.random.uniform(
        k_w, (OUT_FEATURES, IN_FEATURES), jnp.float32,
        minval=-initrange, maxval=initrange,
    )
    bias = jnp.zeros((OUT_FEATURES,), jnp.float32)

    # One-time parameter prep (transpose + int8 quantization + K padding).
    w_q, w_scale = prepare_weight(weight)

    out = fusion_net_forward(x, w_q, w_scale, bias)
    out = jax.block_until_ready(out)
    assert out.shape == (BATCH, OUT_FEATURES)

    # (1) Kernel-correctness check against a pure-JAX reference built from the SAME
    #     quantized operands (bf16-rounded x, dequantized int8 weight) — only
    #     accumulation-order noise remains, so the tolerance is tight.
    x_bf32 = x.reshape(BATCH, IN_FEATURES).astype(jnp.bfloat16).astype(jnp.float32)
    w_deq = w_q[:IN_FEATURES].astype(jnp.float32) * w_scale            # (K, 128)
    ref_q = jnp.tanh(x_bf32 @ w_deq + bias[None, :])
    assert jnp.allclose(out, ref_q, atol=5e-3, rtol=0), "kernel mismatch vs quantized ref"

    # (2) End-to-end numerics sanity vs the full-f32 PyTorch-equivalent forward; the
    #     loose tolerance absorbs the bf16 activation rounding + int8 weight quant.
    ref_f32 = jnp.tanh(x.reshape(BATCH, IN_FEATURES) @ weight.T + bias[None, :])
    assert jnp.allclose(out, ref_f32, atol=4e-2, rtol=0), "mismatch vs f32 reference"

    print("KERNEL_OK")
</pallas_src>

<mosaic_0001>
module attributes {stable_mosaic.version = 11 : i64} {
  func.func @fusion_kernel(%arg0: i32, %arg1: memref<2x32768xf32, #tpu.memory_space<vmem>>, %arg2: memref<32768x128xi8, #tpu.memory_space<vmem>>, %arg3: memref<1x128xf32, #tpu.memory_space<vmem>>, %arg4: memref<1x128xf32, #tpu.memory_space<vmem>>, %arg5: memref<2x128xf32, #tpu.memory_space<vmem>>) attributes {dimension_semantics = [#tpu.dimension_semantics<arbitrary>], iteration_bounds = array<i64: 6>, scalar_prefetch = 0 : i64, scratch_operands = 0 : i64, tpu.core_type = #tpu.core_type<tc>, window_params = [{transform_indices = @transform_0, window_bounds = array<i64: 2, 32768>}, {transform_indices = @transform_1, window_bounds = array<i64: 32768, 128>}, {pipeline_mode = #tpu.pipeline_mode<synchronous>, transform_indices = @transform_2, window_bounds = array<i64: 1, 128>}, {pipeline_mode = #tpu.pipeline_mode<synchronous>, transform_indices = @transform_3, window_bounds = array<i64: 1, 128>}, {pipeline_mode = #tpu.pipeline_mode<synchronous>, transform_indices = @transform_4, window_bounds = array<i64: 2, 128>}]} {
    %c0_i32 = arith.constant 0 : i32
    %0 = arith.cmpi eq, %arg0, %c0_i32 : i32
    %1 = arith.extui %0 : i1 to i32
    %c0_i32_0 = arith.constant 0 : i32
    %2 = arith.cmpi ne, %1, %c0_i32_0 : i32
    scf.if %2 {
      %cst_9 = arith.constant 0.000000e+00 : f32
      %14 = vector.broadcast %cst_9 : f32 to vector<2x128xf32>
      %c0_10 = arith.constant 0 : index
      %c0_11 = arith.constant 0 : index
      %15 = vector.load %arg5[%c0_10, %c0_11] : memref<2x128xf32, #tpu.memory_space<vmem>>, vector<2x128xf32>
      tpu.vector_store %arg5[%c0_10, %c0_11], %14 {strides = array<i32>} : memref<2x128xf32, #tpu.memory_space<vmem>>, vector<2x128xf32>,
    } else {
    }
    %c0 = arith.constant 0 : index
    %c0_1 = arith.constant 0 : index
    %3 = vector.load %arg1[%c0, %c0_1] : memref<2x32768xf32, #tpu.memory_space<vmem>>, vector<2x32768xf32>
    %4 = arith.truncf %3 : vector<2x32768xf32> to vector<2x32768xbf16>
    %c0_2 = arith.constant 0 : index
    %c0_3 = arith.constant 0 : index
    %5 = vector.load %arg2[%c0_2, %c0_3] : memref<32768x128xi8, #tpu.memory_space<vmem>>, vector<32768x128xi8>
    %6 = arith.sitofp %5 : vector<32768x128xi8> to vector<32768x128xbf16>
    %c0_4 = arith.constant 0 : index
    %c0_5 = arith.constant 0 : index
    %7 = vector.load %arg5[%c0_4, %c0_5] : memref<2x128xf32, #tpu.memory_space<vmem>>, vector<2x128xf32>
    %cst = arith.constant dense<0.000000e+00> : vector<2x128xf32>
    %8 = tpu.matmul %4, %6, %cst {dimension_numbers = #tpu.dot_dimension_numbers<[1], [0], [0], [1], [0, 0, 1, 1], [], []>} : vector<2x32768xbf16>, vector<32768x128xbf16>, vector<2x128xf32> -> vector<2x128xf32>
    %9 = arith.addf %7, %8 : vector<2x128xf32>
    %c0_6 = arith.constant 0 : index
    %c0_7 = arith.constant 0 : index
    %10 = vector.load %arg5[%c0_6, %c0_7] : memref<2x128xf32, #tpu.memory_space<vmem>>, vector<2x128xf32>
    tpu.vector_store %arg5[%c0_6, %c0_7], %9 {strides = array<i32>} : memref<2x128xf32, #tpu.memory_space<vmem>>, vector<2x128xf32>,
    %c5_i32 = arith.constant 5 : i32
    %11 = arith.cmpi eq, %arg0, %c5_i32 : i32
    %12 = arith.extui %11 : i1 to i32
    %c0_i32_8 = arith.constant 0 : i32
    %13 = arith.cmpi ne, %12, %c0_i32_8 : i32
    scf.if %13 {
      %c0_9 = arith.constant 0 : index
      %c0_10 = arith.constant 0 : index
      %14 = vector.load %arg5[%c0_9, %c0_10] : memref<2x128xf32, #tpu.memory_space<vmem>>, vector<2x128xf32>
      %c0_11 = arith.constant 0 : index
      %c0_12 = arith.constant 0 : index
      %15 = vector.load %arg3[%c0_11, %c0_12] : memref<1x128xf32, #tpu.memory_space<vmem>>, vector<1x128xf32>
      %16 = vector.broadcast %15 : vector<1x128xf32> to vector<2x128xf32>
      %17 = arith.mulf %14, %16 : vector<2x128xf32>
      %c0_13 = arith.constant 0 : index
      %c0_14 = arith.constant 0 : index
      %18 = vector.load %arg4[%c0_13, %c0_14] : memref<1x128xf32, #tpu.memory_space<vmem>>, vector<1x128xf32>
      %19 = vector.broadcast %18 : vector<1x128xf32> to vector<2x128xf32>
      %20 = arith.addf %17, %19 : vector<2x128xf32>
      %21 = math.tanh %20 : vector<2x128xf32>
      %c0_15 = arith.constant 0 : index
      %c0_16 = arith.constant 0 : index
      %22 = vector.load %arg5[%c0_15, %c0_16] : memref<2x128xf32, #tpu.memory_space<vmem>>, vector<2x128xf32>
      tpu.vector_store %arg5[%c0_15, %c0_16], %21 {strides = array<i32>} : memref<2x128xf32, #tpu.memory_space<vmem>>, vector<2x128xf32>,
    } else {
    }
    return
  }
  func.func @transform_0(%arg0: i32) -> (i32, i32) {
    %c0_i32 = arith.constant 0 : i32
    %c0_i32_0 = arith.constant 0 : i32
    return %c0_i32, %arg0 : i32, i32
  }
  func.func @transform_1(%arg0: i32) -> (i32, i32) {
    %c0_i32 = arith.constant 0 : i32
    %c0_i32_0 = arith.constant 0 : i32
    return %arg0, %c0_i32 : i32, i32
  }
  func.func @transform_2(%arg0: i32) -> (i32, i32) {
    %c0_i32 = arith.constant 0 : i32
    %c0_i32_0 = arith.constant 0 : i32
    %c0_i32_1 = arith.constant 0 : i32
    return %c0_i32, %c0_i32_0 : i32, i32
  }
  func.func @transform_3(%arg0: i32) -> (i32, i32) {
    %c0_i32 = arith.constant 0 : i32
    %c0_i32_0 = arith.constant 0 : i32
    %c0_i32_1 = arith.constant 0 : i32
    return %c0_i32, %c0_i32_0 : i32, i32
  }
  func.func @transform_4(%arg0: i32) -> (i32, i32) {
    %c0_i32 = arith.constant 0 : i32
    %c0_i32_0 = arith.constant 0 : i32
    %c0_i32_1 = arith.constant 0 : i32
    return %c0_i32, %c0_i32_0 : i32, i32
  }
}

</mosaic_0001>

<bundles_post_ra>
// kernel: tpu_custom_call.1
= control target key start
LH: loop header
LB: loop body
LE: loop exit
PB: predicated region body
PF: predicated region fallthrough
CT: control target
= control target key end

     0   :  { %9 = vsyncpa [#allocation3], 0  ;;  %s15873_s0 = inlined_call_operand.hbm [shape: f32[2,196608], index: 0, kind: input, shape index: {}]   ;;  %s15874_s1 = inlined_call_operand.hbm [shape: s8[196608,128], index: 1, kind: input, shape index: {}]   ;;  %s15875_s2 = inlined_call_operand.hbm [shape: f32[1,128], index: 2, kind: input, shape index: {}]   ;;  %s15876_s3 = inlined_call_operand.hbm [shape: f32[1,128], index: 3, kind: input, shape index: {}]   ;;  %s15877_s4 = inlined_call_operand.hbm [shape: f32[2,128], index: 4, kind: output, shape index: {}]  }
   0x1   :  { %11 = vsyncpa [#allocation3 + $0x1], 0 }
   0x2   :  { %12 = vsyncpa [#allocation6], 0 }
   0x3   :  { %14 = vsyncpa [#allocation6 + $0x1], 0 }
   0x4   :  { %15 = vsyncpa [#allocation9], 0 }
   0x5   :  { %16 = vsyncpa [#allocation4], 0  ;;  %s13522_s15 = smov 0   ;;  %s13524_s16 = smov 0  }
   0x6   :  { %s13526_s17 = smov 0   ;;  %s13528_s18 = smov 0  }
   0x7 LB: > { %s13541_s19 = sadd.s32 4294967295, %s13486_s18   ;;  %p42_p0 = scmp.ne.s32.totalorder %s13478_s16, %s13474_s15  ;;  %s13486_s18 = sphi %s13528_s18, %s15895_s18   ;;  %s13482_s17 = sphi %s13526_s17, %s15894_s17   ;;  %s13478_s16 = sphi %s13524_s16, %s15893_s16   ;;  %s13474_s15 = sphi %s13522_s15, %s15892_s15  }
   0x8   : > { %p15878_p1 = scmp.eq.s32.totalorder %s13541_s19, 0  ;;  %p10321_p2 = scmp.ge.s32.totalorder %s13486_s18, 1 }
   0x9   : > { %p142_p3 = scmp.lt.s32.totalorder %s13486_s18, 7  ;;  %s13488_s22 = smov [#allocation7]  }
   0xa   : > { %p13550_p5 = por %p15878_p1, %p42_p0  ;;  %s155_s23 = sshll.u32 %s13488_s22, 4  ;;  %s156_s23 = int_to_ptr.vmem [resolvable:$true] %s155_s23 }
   0xb   : > { %p13554_p6 = pnand %p10321_p2, %p142_p3  ;;  %s13489_s24 = smov [#allocation8]  }
   0xc   : > { %s15881_s20 = scalar_select %p13550_p5, 1, 0 }
   0xd   : > { %s15882_s21 = scalar_select %p13554_p6, 1, 0 }
   0xe   : > { %p13178_p7 = pneg %p13554_p6  ;;  %s166_s25 = sshll.u32 %s13489_s24, 4  ;;  %s167_s25 = int_to_ptr.vmem [resolvable:$true] %s166_s25 }
   0xf   : > { %s13567_s27 = sadd.s32 1, %s13486_s18   ;;  %s13315_s29 = scalar_lea.vmem %s156_s23, 16 }
  0x10   : > { %p13562_p8 = pnand %p13178_p7, %p15878_p1  ;;  %s26_s28 = ssub.s32 %s13486_s18, %s13567_s27 }
  0x11   : > { %p13316_p10 = scmp.ne.s32.totalorder %s156_s23, %s13315_s29  ;;  %s13322_s30 = scalar_lea.vmem %s156_s23, 32 }
  0x12   : > { %p13306_p9 = pneg %p13562_p8  ;;  %p13323_p13 = scmp.lt.s32.totalorder %s156_s23, %s156_s23 }
  0x13   : > { %p13324_p0 = scmp.lt.s32.totalorder %s13322_s30, %s13315_s29 }
  0x14   : > { %p13318_p11 = pnand %p13316_p10, %p13306_p9 }
  0x15   : > { %p13325_p2 = por %p13324_p0, %p13323_p13 }
  0x16   : > { %p13319_p12 = pneg %p13318_p11 }
  0x18   : > { %p13326_p3 = pnand %p13325_p2, %p13319_p12 }
  0x1a   : > { %13329 = shalt.err (!%p13326_p3)
}
  0x1b   : > { %13181 = dma.hbm_to_vmem [thread:$0]  (!%p13562_p8), %s15875_s2, 16, %s156_s23, [#allocation6]  }
  0x1c   : > { %s13341_s7 = scalar_lea.vmem %s167_s25, 16  ;;  %s13348_s8 = scalar_lea.vmem %s167_s25, 32 }
  0x1d   : > { %p13342_p7 = scmp.ne.s32.totalorder %s167_s25, %s13341_s7  ;;  %p13349_p11 = scmp.lt.s32.totalorder %s167_s25, %s167_s25 }
  0x1e   : > { %p13350_p1 = scmp.lt.s32.totalorder %s13348_s8, %s13341_s7 }
  0x1f   : > { %p13344_p4 = pnand %p13342_p7, %p13306_p9 }
  0x20   : > { %p13351_p5 = por %p13350_p1, %p13349_p11 }
  0x21   : > { %p13345_p10 = pneg %p13344_p4 }
  0x23   : > { %p13352_p13 = pnand %p13351_p5, %p13345_p10 }
  0x25   : > { %13355 = shalt.err (!%p13352_p13)
}
  0x26   : > { %13184 = dma.hbm_to_vmem [thread:$0]  (!%p13562_p8), %s15876_s3, 16, %s167_s25, [#allocation9]  }
  0x27   : > { %p27_p4 = scmp.eq.s32.totalorder %s26_s28, 0  ;;  %s29_s11 = sadd.s32 1, %s13482_s17 }
  0x28   : > { %p36_p9 = scmp.ne.s32.totalorder %s13482_s17, %s13478_s16  ;;  %p37_p1 = scmp.eq.s32.totalorder %s13486_s18, 0 }
  0x29   : > { %s13594_s12 = scalar_select %p27_p4, %s13482_s17, %s29_s11  }
  0x2a   : > { %p38_p5 = por %p37_p1, %p36_p9  ;;  %p13194_p12 = scmp.lt.s32.totalorder %s13486_s18, 6 }
  0x2b   : > { %s13598_s13 = sand.u32 1, %s13482_s17   ;;  %s10344_s14 = sshll.u32 %s13486_s18, 13 }
  0x2c   : > { %s10325_s15 = sshll.u32 %s13598_s13, 9  ;;  %s13605_s24 = scalar_lea.hbm %s15873_s0, %s10344_s14 }
  0x2d   : > { %s181_s25 = scalar_lea.vmem [#allocation2], %s10325_s15  ;;  %p13607_p8 = pnand %p13194_p12, %p38_p5 }
  0x2e   : > { %s189_s26 = sshll.u32 %s181_s25, 4  ;;  %s10328_s29 = sshll.u32 %s13598_s13, 13  ;;  %s190_s26 = int_to_ptr.vmem [resolvable:$true] %s189_s26 }
  0x2f   : > { %s178_s30 = scalar_lea.sflag [#allocation3], %s13598_s13  ;;  %s13356_s5 = scalar_lea.hbm %s13605_s24, 8192 }
  0x30   : > { %p13357_p0 = scmp.ne.s32.totalorder %s13605_s24, %s13356_s5  ;;  %p13358_p2 = pneg %p13607_p8 }
  0x31   : > { %s13361_s8 = scalar_lea.hbm %s15873_s0, 49152  ;;  %p13362_p10 = scmp.lt.s32.totalorder %s13605_s24, %s15873_s0 }
  0x32   : > { %p13359_p3 = pnand %p13358_p2, %p13357_p0  ;;  %p13363_p11 = scmp.lt.s32.totalorder %s13361_s8, %s13356_s5 }
  0x34   : > { %p13360_p7 = pneg %p13359_p3  ;;  %p13364_p13 = por %p13363_p11, %p13362_p10 }
  0x36   : > { %p13365_p4 = pnand %p13364_p13, %p13360_p7 }
  0x38   : > { %13368 = shalt.err (!%p13365_p4)
}
  0x39   : > { %s13369_s11 = scalar_lea.vmem %s190_s26, 8192  ;;  %s13490_s13 = smov [#allocation2]  }
  0x3a   : > { %p13370_p9 = scmp.ne.s32.totalorder %s190_s26, %s13369_s11  ;;  %s13374_s14 = sshll.u32 %s13490_s13, 4  ;;  %s13375_s14 = int_to_ptr.vmem [resolvable:$false] %s13374_s14 }
  0x3b   : > { %s13376_s15 = scalar_lea.vmem %s13375_s14, 16384  ;;  %p13377_p12 = scmp.lt.s32.totalorder %s190_s26, %s13375_s14 }
  0x3c   : > { %p13372_p1 = pnand %p13370_p9, %p13358_p2  ;;  %p13378_p0 = scmp.lt.s32.totalorder %s13376_s15, %s13369_s11 }
  0x3e   : > { %p13373_p5 = pneg %p13372_p1  ;;  %p13379_p3 = por %p13378_p0, %p13377_p12 }
  0x40   : > { %p13380_p6 = pnand %p13379_p3, %p13373_p5 }
  0x42   : > { %13383 = shalt.err (!%p13380_p6)
}
  0x43   : > { %13188 = dma.hbm_to_vmem [thread:$0]  (!%p13607_p8), %s13605_s24, 8192, %s190_s26, %s178_s30  }
  0x44   : > { %s200_s22 = scalar_lea.vmem [#allocation5], %s10328_s29  ;;  %s196_s25 = sand.u32 1, %s13486_s18  }
  0x45   : > { %s207_s23 = sshll.u32 %s200_s22, 4  ;;  %s10345_s5 = sshll.u32 %s13486_s18, 17  ;;  %s13634_s23 = int_to_ptr.vmem [resolvable:$true] %s207_s23 }
  0x46   : > { %s13640_s8 = scalar_lea.hbm %s15874_s1, %s10345_s5  ;;  %s13642_s9 = scalar_lea.sflag [#allocation6], %s196_s25 }
  0x47   : > { %s13384_s10 = scalar_lea.hbm %s13640_s8, 131072  ;;  %s13389_s18 = scalar_lea.hbm %s15874_s1, 786432 }
  0x48   : > { %p13385_p6 = scmp.ne.s32.totalorder %s13640_s8, %s13384_s10  ;;  %p13390_p11 = scmp.lt.s32.totalorder %s13640_s8, %s15874_s1 }
  0x49   : > { %p13391_p13 = scmp.lt.s32.totalorder %s13389_s18, %s13384_s10 }
  0x4a   : > { %p13387_p7 = pnand %p13385_p6, %p13358_p2 }
  0x4b   : > { %p13392_p4 = por %p13391_p13, %p13390_p11 }
  0x4c   : > { %p13388_p10 = pneg %p13387_p7 }
  0x4e   : > { %p13393_p9 = pnand %p13392_p4, %p13388_p10 }
  0x50   : > { %13396 = shalt.err (!%p13393_p9)
}
  0x51   : > { %s13397_s11 = scalar_lea.vmem %s13634_s23, 131072  ;;  %s13491_s13 = smov [#allocation5]  }
  0x52   : > { %p13398_p1 = scmp.ne.s32.totalorder %s13634_s23, %s13397_s11  ;;  %s13402_s14 = sshll.u32 %s13491_s13, 4  ;;  %s13403_s14 = int_to_ptr.vmem [resolvable:$false] %s13402_s14 }
  0x53   : > { %s13404_s15 = scalar_lea.vmem %s13403_s14, 262144  ;;  %p13405_p0 = scmp.lt.s32.totalorder %s13634_s23, %s13403_s14 }
  0x54   : > { %p13400_p5 = pnand %p13398_p1, %p13358_p2  ;;  %p13406_p3 = scmp.lt.s32.totalorder %s13404_s15, %s13397_s11 }
  0x56   : > { %p13401_p12 = pneg %p13400_p5  ;;  %p13407_p6 = por %p13406_p3, %p13405_p0 }
  0x58   : > { %p13408_p7 = pnand %p13407_p6, %p13401_p12 }
  0x5a   : > { %13411 = shalt.err (!%p13408_p7)
}
  0x5b   : > { %s13492_s22 = smov 128   ;;  %s13493_s25 = smov 8  }
  0x5c   : > { %13191 = dma.hbm_to_vmem [thread:$0]  (!%p13607_p8), %s13640_s8, 131072, %s13634_s23, %s13642_s9, %s13492_s22, %s13492_s22, %s13493_s25  }
  0x5d   : > { %p15885_p2 = scmp.ne.s32.totalorder %s15882_s21, 0 }
  0x5e   : > { %s221_s5 = sand.u32 (!%p15885_p2), 1, %s13478_s16   ;;  %p15886_p10 = scmp.ne.s32.totalorder (!%p15885_p2), %s15881_s20, 0 }
  0x5f   : > { %219 = sbr.rel (%p15885_p2) target bundleno = 2416 (0x970), region = 36  ;;  %s10332_s6 = sshll.u32 (!%p15885_p2), %s221_s5, 9 }
  0x60   : > { %s222_s7 = scalar_lea.sflag (!%p15885_p2), [#allocation3], %s221_s5  ;;  %s13670_s10 = scalar_lea.vmem (!%p15885_p2), [#allocation2], %s10332_s6 }
  0x64   : > { %13453 = dma.done.wait (%p15886_p10), %s222_s7, 8192  }
  0x65   : > { %13455 = vsyncadd (%p15886_p10), %s222_s7, 4294959104  ;;  %s230_s24 = sand.u32 1, %s13541_s19   ;;  %s10333_s28 = sshll.u32 %s221_s5, 13 }
  0x66   : > { %s231_s23 = scalar_lea.sflag [#allocation6], %s230_s24  ;;  %s13677_s8 = scalar_lea.vmem [#allocation5], %s10333_s28 }
  0x67   : > { %13457 = dma.done.wait (%p15886_p10), %s231_s23, 131072  }
  0x68   : > { %13459 = vsyncadd (%p15886_p10), %s231_s23, 4294836224  ;;  %p15887_p8 = scmp.eq.s32.totalorder %s13541_s19, 0 }
  0x6a   : > { %13461 = dma.done.wait (%p15887_p8), [#allocation6], 16   ;;  %p15888_p11 = pmov %p15887_p8 }
  0x6b   : > { %p15889_p13 = pmov %p15887_p8 }
  0x6c   : > { %13463 = vsyncadd (%p15888_p11), [#allocation6], 4294967280 }
  0x6d   : > { %13465 = dma.done.wait (%p15889_p13), [#allocation9], 16   ;;  %p15890_p4 = pmov %p15887_p8 }
  0x6e   : > { %p15891_p9 = scmp.ne.s32.totalorder %s13541_s19, 0 }
  0x6f   : > { %13467 = vsyncadd (%p15890_p4), [#allocation9], 4294967280 }
  0x70   : > { %273 = sbr.rel (%p15891_p9) target bundleno = 119 (0x77), region = 56 }
  0x75   : > { %v13494_v0 = vmov 0.0  }
  0x76   : > { %274 = vst [vmem:[#allocation10] sm:$0x3] %v13494_v0 }
  0x77 PF: > { %v2010_v1 = vld [vmem:[%s13677_s8 + $0x38] sm:$0xff]  ;;  %v2009_v11 = vld [vmem:[%s13677_s8 + $0x30] sm:$0xff]  ;;  %v407_v19 = vlaneseq  ;;  %v275_v22 = vld [vmem:[%s13670_s10] sm:$0xff]  ;;  %v13495_v25 = vmov 1983009808   ;;  %p10337_p1 = scmp.ne.s32.totalorder %s13541_s19, 5 }
  0x78   : > { %v2018_v2 = vld [vmem:[%s13677_s8 + $0x78] sm:$0xff]  ;;  %v3041_v4 = vunpack.c.l.s8.bf16 %v2010_v1  ;;  %v3042_v5 = vunpack.c.h.s8.bf16 %v2010_v1  ;;  %v2017_v12 = vld [vmem:[%s13677_s8 + $0x70] sm:$0xff]  ;;  %v3040_v15 = vunpack.c.h.s8.bf16 %v2009_v11  ;;  %v3039_v23 = vunpack.c.l.s8.bf16 %v2009_v11  ;;  %v2008_v28 = vld [vmem:[%s13677_s8 + $0x28] sm:$0xff] }
  0x79   : > { %v2006_v3 = vld [vmem:[%s13677_s8 + $0x18] sm:$0xff]  ;;  %v3057_v6 = vunpack.c.l.s8.bf16 %v2018_v2  ;;  %v3058_v7 = vunpack.c.h.s8.bf16 %v2018_v2  ;;  %v3056_v16 = vunpack.c.h.s8.bf16 %v2017_v12  ;;  %v2005_v17 = vld [vmem:[%s13677_s8 + $0x10] sm:$0xff]  ;;  %v3055_v24 = vunpack.c.l.s8.bf16 %v2017_v12  ;;  %v2016_v29 = vld [vmem:[%s13677_s8 + $0x68] sm:$0xff] }
  0x7a   : > { %v2014_v8 = vld [vmem:[%s13677_s8 + $0x58] sm:$0xff]  ;;  %v3034_v9 = vunpack.c.h.s8.bf16 %v2006_v3  ;;  %10346 = vmatprep.subr.bf16.mxu0 %v3042_v5  ;;  %v3033_v13 = vunpack.c.l.s8.bf16 %v2006_v3  ;;  %v2013_v18 = vld [vmem:[%s13677_s8 + $0x50] sm:$0xff]  ;;  %v3032_v20 = vunpack.c.h.s8.bf16 %v2005_v17  ;;  %v405_v26 = vunpack.c.l.s4 %v13495_v25  ;;  %v2004_v36 = vld [vmem:[%s13677_s8 + $0x8] sm:$0xff] }
  0x7b   : > { %v3050_v10 = vunpack.c.h.s8.bf16 %v2014_v8  ;;  %10368 = vmatprep.subr.bf16.mxu1 %v3058_v7  ;;  %v3049_v14 = vunpack.c.l.s8.bf16 %v2014_v8  ;;  %v3048_v21 = vunpack.c.h.s8.bf16 %v2013_v18  ;;  %v408_v27 = vshrl.u32 %v407_v19, 7  ;;  %v2012_v37 = vld [vmem:[%s13677_s8 + $0x48] sm:$0xff]  ;;  %v2007_v47 = vld [vmem:[%s13677_s8 + $0x20] sm:$0xff]  ;;  %v2026_v63 = vld [vmem:[%s13677_s8 + $0xb8] sm:$0xff] }
  0x7c   : > { %10347 = vmatpush3.bf16.msra.mxu0 %v3034_v9  ;;  %v406_v30 = vunpack.c.0.s8 %v405_v26  ;;  %v403_v31 = vcombine.high %v275_v22, %v275_v22  ;;  %v3031_v32 = vunpack.c.l.s8.bf16 %v2005_v17  ;;  %v3047_v33 = vunpack.c.l.s8.bf16 %v2013_v18  ;;  %v2015_v48 = vld [vmem:[%s13677_s8 + $0x60] sm:$0xff]  ;;  %v276_v51 = vld [vmem:[%s13670_s10 + $0x8] sm:$0xff]  ;;  %v2034_v0 = vld [vmem:[%s13677_s8 + $0xf8] sm:$0xff] }
  0x7d   : > { %10369 = vmatpush3.bf16.msra.mxu1 %v3050_v10  ;;  %10348 = vmatprep.subr.bf16.mxu0 %v3041_v4  ;;  %v3038_v34 = vunpack.c.h.s8.bf16 %v2008_v28  ;;  %v3054_v35 = vunpack.c.h.s8.bf16 %v2016_v29  ;;  %v3030_v41 = vunpack.c.h.s8.bf16 %v2004_v36  ;;  %v3046_v42 = vunpack.c.h.s8.bf16 %v2012_v37  ;;  %v2003_v56 = vld [vmem:[%s13677_s8] sm:$0xff]  ;;  %v2022_v7 = vld [vmem:[%s13677_s8 + $0x98] sm:$0xff]  ;;  %v2025_v17 = vld [vmem:[%s13677_s8 + $0xb0] sm:$0xff] }
  0x7e   : > { %10370 = vmatprep.subr.bf16.mxu1 %v3057_v6  ;;  %v13706_v38 = vsub.s32 %v406_v30, %v408_v27  ;;  %v3037_v43 = vunpack.c.l.s8.bf16 %v2008_v28  ;;  %v3053_v44 = vunpack.c.l.s8.bf16 %v2016_v29  ;;  %v3029_v52 = vunpack.c.l.s8.bf16 %v2004_v36  ;;  %v2011_v57 = vld [vmem:[%s13677_s8 + $0x40] sm:$0xff]  ;;  %v2030_v8 = vld [vmem:[%s13677_s8 + $0xd8] sm:$0xff]  ;;  %v2033_v18 = vld [vmem:[%s13677_s8 + $0xf0] sm:$0xff] }
  0x7f   : > { %v3045_v53 = vunpack.c.l.s8.bf16 %v2012_v37  ;;  %v3036_v54 = vunpack.c.h.s8.bf16 %v2007_v47  ;;  %v3052_v55 = vunpack.c.h.s8.bf16 %v2015_v48  ;;  %v420_v58 = vcombine.high %v276_v51, %v276_v51  ;;  %v2021_v25 = vld [vmem:[%s13677_s8 + $0x90] sm:$0xff]  ;;  %v2020_v37 = vld [vmem:[%s13677_s8 + $0x88] sm:$0xff] }
  0x80   : > { %10349 = vmatpush3.bf16.msra.mxu0 %v3033_v13  ;;  %v13709_v39 = vrot.slane %v275_v22, %v13706_v38  ;;  %v13712_v40 = vrot.slane %v403_v31, %v13706_v38  ;;  %v3028_v59 = vunpack.c.h.s8.bf16 %v2003_v56  ;;  %v3044_v60 = vunpack.c.h.s8.bf16 %v2011_v57  ;;  %v2029_v26 = vld [vmem:[%s13677_s8 + $0xd0] sm:$0xff]  ;;  %v2024_v31 = vld [vmem:[%s13677_s8 + $0xa8] sm:$0xff] }
  0x81   : > { %10371 = vmatpush3.bf16.msra.mxu1 %v3049_v14  ;;  %10350 = vmatprep.subr.bf16.mxu0 %v3040_v15  ;;  %v3035_v61 = vunpack.c.l.s8.bf16 %v2007_v47  ;;  %v3051_v62 = vunpack.c.l.s8.bf16 %v2015_v48  ;;  %v13726_v1 = vrot.slane %v276_v51, %v13706_v38  ;;  %v13729_v2 = vrot.slane %v420_v58, %v13706_v38  ;;  %v2019_v51 = vld [vmem:[%s13677_s8 + $0x80] sm:$0xff]  ;;  %v2042_v58 = vld [vmem:[%s13677_s8 + $0x138] sm:$0xff] }
  0x82   : > { %10372 = vmatprep.subr.bf16.mxu1 %v3056_v16  ;;  %v418_v45 = vcombine.high %v13709_v39, %v13709_v39  ;;  %v419_v46 = vcombine.high %v13712_v40, %v13712_v40  ;;  %v3027_v3 = vunpack.c.l.s8.bf16 %v2003_v56  ;;  %v3043_v4 = vunpack.c.l.s8.bf16 %v2011_v57 }
  0x83   : > { %v3074_v5 = vunpack.c.h.s8.bf16 %v2026_v63  ;;  %v3090_v6 = vunpack.c.h.s8.bf16 %v2034_v0  ;;  %v435_v9 = vcombine.high %v13726_v1, %v13726_v1  ;;  %v436_v10 = vcombine.high %v13729_v2, %v13729_v2 }
  0x84   : > { %10351 = vmatpush3.bf16.msra.mxu0 %v3032_v20  ;;  %v1748_v49 = vpack.c.bf16 %v418_v45, %v418_v45  ;;  %v1750_v50 = vpack.c.bf16 %v419_v46, %v419_v46  ;;  %v1747_v11 = vpack.c.bf16 %v13709_v39, %v13709_v39  ;;  %v1749_v12 = vpack.c.bf16 %v13712_v40, %v13712_v40  ;;  %v2028_v39 = vld [vmem:[%s13677_s8 + $0xc8] sm:$0xff]  ;;  %v2031_v45 = vld [vmem:[%s13677_s8 + $0xe0] sm:$0xff]  ;;  %v277_v46 = vld [vmem:[%s13670_s10 + $0x10] sm:$0xff] }
  0x85   : > { %10373 = vmatpush3.bf16.msra.mxu1 %v3048_v21  ;;  %10352 = vmatprep.subr.bf16.mxu0 %v3039_v23  ;;  %v3066_v13 = vunpack.c.h.s8.bf16 %v2022_v7  ;;  %v3082_v14 = vunpack.c.h.s8.bf16 %v2030_v8  ;;  %v3073_v15 = vunpack.c.l.s8.bf16 %v2026_v63  ;;  %v3089_v16 = vunpack.c.l.s8.bf16 %v2034_v0 }
  0x86   : > { %10374 = vmatprep.subr.bf16.mxu1 %v3055_v24  ;;  %5108 = vmatprep.mubr.bf16.mxu0 %v1748_v49  ;;  %v1752_v19 = vpack.c.bf16 %v435_v9, %v435_v9  ;;  %v1754_v20 = vpack.c.bf16 %v436_v10, %v436_v10  ;;  %v3065_v21 = vunpack.c.l.s8.bf16 %v2022_v7  ;;  %v3081_v22 = vunpack.c.l.s8.bf16 %v2030_v8 }
  0x87   : > { %5148 = vmatprep.mubr.bf16.mxu1 %v1750_v50  ;;  %v3072_v23 = vunpack.c.h.s8.bf16 %v2025_v17  ;;  %v3088_v24 = vunpack.c.h.s8.bf16 %v2033_v18  ;;  %v3064_v27 = vunpack.c.h.s8.bf16 %v2021_v25  ;;  %v3080_v28 = vunpack.c.h.s8.bf16 %v2029_v26 }
  0x88   : > { %10353 = vmatpush3.bf16.msra.mxu0 %v3031_v32  ;;  %v3071_v29 = vunpack.c.l.s8.bf16 %v2025_v17  ;;  %v3087_v30 = vunpack.c.l.s8.bf16 %v2033_v18  ;;  %v2032_v32 = vld [vmem:[%s13677_s8 + $0xe8] sm:$0xff]  ;;  %v3062_v40 = vunpack.c.h.s8.bf16 %v2020_v37  ;;  %v3061_v47 = vunpack.c.l.s8.bf16 %v2020_v37 }
  0x89   : > { %10375 = vmatpush3.bf16.msra.mxu1 %v3047_v33  ;;  %10354 = vmatprep.subr.bf16.mxu0 %v3038_v34  ;;  %v3063_v33 = vunpack.c.l.s8.bf16 %v2021_v25  ;;  %v3079_v34 = vunpack.c.l.s8.bf16 %v2029_v26  ;;  %v3086_v36 = vunpack.c.h.s8.bf16 %v2032_v32  ;;  %v3077_v48 = vunpack.c.l.s8.bf16 %v2028_v39  ;;  %v2040_v26 = vld [vmem:[%s13677_s8 + $0x128] sm:$0xff] }
  0x8a   : > { %10376 = vmatprep.subr.bf16.mxu1 %v3054_v35  ;;  %v3070_v35 = vunpack.c.h.s8.bf16 %v2024_v31  ;;  %v3084_v50 = vunpack.c.h.s8.bf16 %v2031_v45  ;;  %v3083_v57 = vunpack.c.l.s8.bf16 %v2031_v45  ;;  %v3106_v0 = vunpack.c.h.s8.bf16 %v2042_v58 }
  0x8b   : > { %v1751_v8 = vpack.c.bf16 %v13726_v1, %v13726_v1  ;;  %v1753_v9 = vpack.c.bf16 %v13729_v2, %v13729_v2 }
  0x8c   : > { %10355 = vmatpush3.bf16.msra.mxu0 %v3030_v41  ;;  %v3078_v41 = vunpack.c.h.s8.bf16 %v2028_v39  ;;  %v2039_v39 = vld [vmem:[%s13677_s8 + $0x120] sm:$0xff] }
  0x8d   : > { %10377 = vmatpush3.bf16.msra.mxu1 %v3046_v42  ;;  %10356 = vmatprep.subr.bf16.mxu0 %v3037_v43  ;;  %v3069_v42 = vunpack.c.l.s8.bf16 %v2024_v31  ;;  %v3085_v43 = vunpack.c.l.s8.bf16 %v2032_v32  ;;  %v2036_v32 = vld [vmem:[%s13677_s8 + $0x108] sm:$0xff] }
  0x8e   : > { %10378 = vmatprep.subr.bf16.mxu1 %v3053_v44  ;;  %v2023_v44 = vld [vmem:[%s13677_s8 + $0xa0] sm:$0xff] }
  0x8f   : > { %v3068_v49 = vunpack.c.h.s8.bf16 %v2023_v44  ;;  %v3067_v56 = vunpack.c.l.s8.bf16 %v2023_v44  ;;  %v3100_v44 = vunpack.c.h.s8.bf16 %v2039_v39 }
  0x90   : > { %10357 = vmatpush3.bf16.msra.mxu0 %v3029_v52  ;;  %v2027_v52 = vld [vmem:[%s13677_s8 + $0xc0] sm:$0xff] }
  0x91   : > { %10379 = vmatpush3.bf16.msra.mxu1 %v3045_v53  ;;  %10358 = vmatprep.subr.bf16.mxu0 %v3036_v54  ;;  %v437_v53 = vcombine.high %v277_v46, %v277_v46  ;;  %v3060_v54 = vunpack.c.h.s8.bf16 %v2019_v51  ;;  %v3075_v63 = vunpack.c.l.s8.bf16 %v2027_v52 }
  0x92   : > { %10380 = vmatprep.subr.bf16.mxu1 %v3052_v55  ;;  %v3076_v55 = vunpack.c.h.s8.bf16 %v2027_v52 }
  0x94   : > { %10359 = vmatpush3.bf16.msra.mxu0 %v3028_v59  ;;  %v2050_v59 = vld [vmem:[%s13677_s8 + $0x178] sm:$0xff] }
  0x95   : > { %10381 = vmatpush3.bf16.msra.mxu1 %v3044_v60  ;;  %10360 = vmatprep.subr.bf16.mxu0 %v3035_v61  ;;  %v13757_v60 = vrot.slane %v277_v46, %v13706_v38  ;;  %v13760_v61 = vrot.slane %v437_v53, %v13706_v38  ;;  %v2035_v46 = vld [vmem:[%s13677_s8 + $0x100] sm:$0xff]  ;;  %v2058_v53 = vld [vmem:[%s13677_s8 + $0x1b8] sm:$0xff] }
  0x96   : > { %10382 = vmatprep.subr.bf16.mxu1 %v3051_v62  ;;  %v3059_v62 = vunpack.c.l.s8.bf16 %v2019_v51  ;;  %v3099_v51 = vunpack.c.l.s8.bf16 %v2039_v39 }
  0x97   : > { %v453_v7 = vcombine.high %v13760_v61, %v13760_v61 }
  0x98   : > { %10361 = vmatpush3.bf16.msra.mxu0 %v3027_v3  ;;  %v3122_v3 = vunpack.c.h.s8.bf16 %v2050_v59 }
  0x99   : > { %10383 = vmatpush3.bf16.msra.mxu1 %v3043_v4  ;;  %10390 = vmatprep.subr.bf16.mxu0 %v3074_v5  ;;  %v2038_v4 = vld [vmem:[%s13677_s8 + $0x118] sm:$0xff]  ;;  %v1758_v17 = vpack.c.bf16 %v453_v7, %v453_v7 }
  0x9a   : > { %10412 = vmatprep.subr.bf16.mxu1 %v3090_v6  ;;  %v2046_v5 = vld [vmem:[%s13677_s8 + $0x158] sm:$0xff]  ;;  %v452_v6 = vcombine.high %v13757_v60, %v13757_v60  ;;  %v3098_v10 = vunpack.c.h.s8.bf16 %v2038_v4  ;;  %v3097_v1 = vunpack.c.l.s8.bf16 %v2038_v4 }
  0x9b   : > { %5109 = vmatmul.mubr.bf16.vlgmr.msra.gmra.mxu0 %v1747_v11  ;;  %v3114_v11 = vunpack.c.h.s8.bf16 %v2046_v5  ;;  %v3113_v2 = vunpack.c.l.s8.bf16 %v2046_v5  ;;  %v1755_v5 = vpack.c.bf16 %v13757_v60, %v13757_v60 }
  0x9c   : > { %5149 = vmatmul.mubr.bf16.vlgmr.msra.gmra.mxu1 %v1749_v12  ;;  %10391 = vmatpush3.bf16.msra.mxu0 %v3066_v13  ;;  %v3105_v12 = vunpack.c.l.s8.bf16 %v2042_v58  ;;  %v3121_v13 = vunpack.c.l.s8.bf16 %v2050_v59  ;;  %v3138_v59 = vunpack.c.h.s8.bf16 %v2058_v53 }
  0x9d   : > { %10413 = vmatpush3.bf16.msra.mxu1 %v3082_v14  ;;  %10392 = vmatprep.subr.bf16.mxu0 %v3073_v15  ;;  %v2041_v14 = vld [vmem:[%s13677_s8 + $0x130] sm:$0xff] }
  0x9e   : > { %10414 = vmatprep.subr.bf16.mxu1 %v3089_v16  ;;  %5188 = vmatprep.mubr.bf16.mxu0 %v1752_v19  ;;  %v2049_v15 = vld [vmem:[%s13677_s8 + $0x170] sm:$0xff]  ;;  %v1756_v16 = vpack.c.bf16 %v452_v6, %v452_v6  ;;  %v3104_v18 = vunpack.c.h.s8.bf16 %v2041_v14  ;;  %v1757_v6 = vpack.c.bf16 %v13760_v61, %v13760_v61 }
  0x9f   : > { %5228 = vmatprep.mubr.bf16.mxu1 %v1754_v20  ;;  %v3120_v19 = vunpack.c.h.s8.bf16 %v2049_v15  ;;  %v2037_v20 = vld [vmem:[%s13677_s8 + $0x110] sm:$0xff]  ;;  %v3119_v25 = vunpack.c.l.s8.bf16 %v2049_v15 }
  0xa0   : > { %10393 = vmatpush3.bf16.msra.mxu0 %v3065_v21  ;;  %v2045_v21 = vld [vmem:[%s13677_s8 + $0x150] sm:$0xff] }
  0xa1   : > { %10415 = vmatpush3.bf16.msra.mxu1 %v3081_v22  ;;  %10394 = vmatprep.subr.bf16.mxu0 %v3072_v23  ;;  %v3096_v22 = vunpack.c.h.s8.bf16 %v2037_v20  ;;  %v3112_v23 = vunpack.c.h.s8.bf16 %v2045_v21 }
  0xa2   : > { %10416 = vmatprep.subr.bf16.mxu1 %v3088_v24  ;;  %v3103_v24 = vunpack.c.l.s8.bf16 %v2041_v14 }
  0xa4   : > { %10395 = vmatpush3.bf16.msra.mxu0 %v3064_v27  ;;  %v2048_v27 = vld [vmem:[%s13677_s8 + $0x168] sm:$0xff] }
  0xa5   : > { %10417 = vmatpush3.bf16.msra.mxu1 %v3080_v28  ;;  %10396 = vmatprep.subr.bf16.mxu0 %v3071_v29  ;;  %v3095_v28 = vunpack.c.l.s8.bf16 %v2037_v20  ;;  %v3111_v29 = vunpack.c.l.s8.bf16 %v2045_v21  ;;  %v3118_v31 = vunpack.c.h.s8.bf16 %v2048_v27  ;;  %v3117_v37 = vunpack.c.l.s8.bf16 %v2048_v27  ;;  %v2056_v21 = vld [vmem:[%s13677_s8 + $0x1a8] sm:$0xff] }
  0xa6   : > { %10418 = vmatprep.subr.bf16.mxu1 %v3087_v30  ;;  %v3102_v30 = vunpack.c.h.s8.bf16 %v2040_v26  ;;  %v2052_v27 = vld [vmem:[%s13677_s8 + $0x188] sm:$0xff] }
  0xa8   : > { %10397 = vmatpush3.bf16.msra.mxu0 %v3063_v33  ;;  %v2044_v33 = vld [vmem:[%s13677_s8 + $0x148] sm:$0xff] }
  0xa9   : > { %10419 = vmatpush3.bf16.msra.mxu1 %v3079_v34  ;;  %10398 = vmatprep.subr.bf16.mxu0 %v3070_v35  ;;  %v3094_v34 = vunpack.c.h.s8.bf16 %v2036_v32  ;;  %v3110_v35 = vunpack.c.h.s8.bf16 %v2044_v33 }
  0xaa   : > { %10420 = vmatprep.subr.bf16.mxu1 %v3086_v36  ;;  %v3101_v36 = vunpack.c.l.s8.bf16 %v2040_v26 }
  0xac   : > { %10399 = vmatpush3.bf16.msra.mxu0 %v3062_v40  ;;  %v2047_v40 = vld [vmem:[%s13677_s8 + $0x160] sm:$0xff] }
  0xad   : > { %10421 = vmatpush3.bf16.msra.mxu1 %v3078_v41  ;;  %10400 = vmatprep.subr.bf16.mxu0 %v3069_v42  ;;  %v278_v41 = vld [vmem:[%s13670_s10 + $0x18] sm:$0xff]  ;;  %v3093_v42 = vunpack.c.l.s8.bf16 %v2036_v32  ;;  %v3116_v45 = vunpack.c.h.s8.bf16 %v2047_v40  ;;  %v3115_v52 = vunpack.c.l.s8.bf16 %v2047_v40 }
  0xae   : > { %10422 = vmatprep.subr.bf16.mxu1 %v3085_v43  ;;  %v3109_v43 = vunpack.c.l.s8.bf16 %v2044_v33  ;;  %v2055_v33 = vld [vmem:[%s13677_s8 + $0x1a0] sm:$0xff] }
  0xaf   : > { %v3132_v39 = vunpack.c.h.s8.bf16 %v2055_v33 }
  0xb0   : > { %10401 = vmatpush3.bf16.msra.mxu0 %v3061_v47  ;;  %v2043_v47 = vld [vmem:[%s13677_s8 + $0x140] sm:$0xff] }
  0xb1   : > { %10423 = vmatpush3.bf16.msra.mxu1 %v3077_v48  ;;  %10402 = vmatprep.subr.bf16.mxu0 %v3068_v49  ;;  %v454_v48 = vcombine.high %v278_v41, %v278_v41  ;;  %v3092_v49 = vunpack.c.h.s8.bf16 %v2035_v46  ;;  %v3107_v58 = vunpack.c.l.s8.bf16 %v2043_v47 }
  0xb2   : > { %10424 = vmatprep.subr.bf16.mxu1 %v3084_v50  ;;  %v3108_v50 = vunpack.c.h.s8.bf16 %v2043_v47 }
  0xb4   : > { %10403 = vmatpush3.bf16.msra.mxu0 %v3060_v54  ;;  %v2066_v54 = vld [vmem:[%s13677_s8 + $0x1f8] sm:$0xff] }
  0xb5   : > { %10425 = vmatpush3.bf16.msra.mxu1 %v3076_v55  ;;  %10404 = vmatprep.subr.bf16.mxu0 %v3067_v56  ;;  %v13788_v55 = vrot.slane %v278_v41, %v13706_v38  ;;  %v13791_v56 = vrot.slane %v454_v48, %v13706_v38  ;;  %v2051_v41 = vld [vmem:[%s13677_s8 + $0x180] sm:$0xff]  ;;  %v2074_v48 = vld [vmem:[%s13677_s8 + $0x238] sm:$0xff] }
  0xb6   : > { %10426 = vmatprep.subr.bf16.mxu1 %v3083_v57  ;;  %v3091_v57 = vunpack.c.l.s8.bf16 %v2035_v46  ;;  %v3131_v46 = vunpack.c.l.s8.bf16 %v2055_v33 }
  0xb7   : > { %v470_v4 = vcombine.high %v13791_v56, %v13791_v56 }
  0xb8   : > { %10405 = vmatpush3.bf16.msra.mxu0 %v3059_v62  ;;  %v3154_v62 = vunpack.c.h.s8.bf16 %v2066_v54 }
  0xb9   : > { %10427 = vmatpush3.bf16.msra.mxu1 %v3075_v63  ;;  %10434 = vmatprep.subr.bf16.mxu0 %v3106_v0  ;;  %v2054_v63 = vld [vmem:[%s13677_s8 + $0x198] sm:$0xff]  ;;  %v1762_v14 = vpack.c.bf16 %v470_v4, %v470_v4 }
  0xba   : > { %10456 = vmatprep.subr.bf16.mxu1 %v3122_v3  ;;  %v2062_v0 = vld [vmem:[%s13677_s8 + $0x1d8] sm:$0xff]  ;;  %v469_v3 = vcombine.high %v13788_v55, %v13788_v55  ;;  %v3130_v7 = vunpack.c.h.s8.bf16 %v2054_v63  ;;  %v3129_v60 = vunpack.c.l.s8.bf16 %v2054_v63 }
  0xbb   : > { %5189 = vmatmul.mubr.bf16.vlgmr.msra.gmra.mxu0 %v1751_v8  ;;  %v3146_v8 = vunpack.c.h.s8.bf16 %v2062_v0  ;;  %v3145_v61 = vunpack.c.l.s8.bf16 %v2062_v0  ;;  %v1759_v0 = vpack.c.bf16 %v13788_v55, %v13788_v55 }
  0xbc   : > { %5229 = vmatmul.mubr.bf16.vlgmr.msra.gmra.mxu1 %v1753_v9  ;;  %10435 = vmatpush3.bf16.msra.mxu0 %v3098_v10  ;;  %v3137_v9 = vunpack.c.l.s8.bf16 %v2058_v53  ;;  %v3153_v10 = vunpack.c.l.s8.bf16 %v2066_v54  ;;  %v3170_v54 = vunpack.c.h.s8.bf16 %v2074_v48 }
  0xbd   : > { %10457 = vmatpush3.bf16.msra.mxu1 %v3114_v11  ;;  %10436 = vmatprep.subr.bf16.mxu0 %v3105_v12  ;;  %v2057_v11 = vld [vmem:[%s13677_s8 + $0x1b0] sm:$0xff] }
  0xbe   : > { %10458 = vmatprep.subr.bf16.mxu1 %v3121_v13  ;;  %5268 = vmatprep.mubr.bf16.mxu0 %v1756_v16  ;;  %v2065_v12 = vld [vmem:[%s13677_s8 + $0x1f0] sm:$0xff]  ;;  %v1760_v13 = vpack.c.bf16 %v469_v3, %v469_v3  ;;  %v3136_v15 = vunpack.c.h.s8.bf16 %v2057_v11  ;;  %v1761_v3 = vpack.c.bf16 %v13791_v56, %v13791_v56 }
  0xbf   : > { %5308 = vmatprep.mubr.bf16.mxu1 %v1758_v17  ;;  %v3152_v16 = vunpack.c.h.s8.bf16 %v2065_v12  ;;  %v2053_v17 = vld [vmem:[%s13677_s8 + $0x190] sm:$0xff]  ;;  %v3151_v20 = vunpack.c.l.s8.bf16 %v2065_v12 }
  0xc0   : > { %10437 = vmatpush3.bf16.msra.mxu0 %v3097_v1  ;;  %v2061_v1 = vld [vmem:[%s13677_s8 + $0x1d0] sm:$0xff] }
  0xc1   : > { %10459 = vmatpush3.bf16.msra.mxu1 %v3113_v2  ;;  %10438 = vmatprep.subr.bf16.mxu0 %v3104_v18  ;;  %v3128_v2 = vunpack.c.h.s8.bf16 %v2053_v17  ;;  %v3144_v18 = vunpack.c.h.s8.bf16 %v2061_v1 }
  0xc2   : > { %10460 = vmatprep.subr.bf16.mxu1 %v3120_v19  ;;  %v3135_v19 = vunpack.c.l.s8.bf16 %v2057_v11 }
  0xc4   : > { %10439 = vmatpush3.bf16.msra.mxu0 %v3096_v22  ;;  %v2064_v22 = vld [vmem:[%s13677_s8 + $0x1e8] sm:$0xff] }
  0xc5   : > { %10461 = vmatpush3.bf16.msra.mxu1 %v3112_v23  ;;  %10440 = vmatprep.subr.bf16.mxu0 %v3103_v24  ;;  %v3127_v23 = vunpack.c.l.s8.bf16 %v2053_v17  ;;  %v3143_v24 = vunpack.c.l.s8.bf16 %v2061_v1  ;;  %v3150_v26 = vunpack.c.h.s8.bf16 %v2064_v22  ;;  %v3149_v32 = vunpack.c.l.s8.bf16 %v2064_v22  ;;  %v2072_v1 = vld [vmem:[%s13677_s8 + $0x228] sm:$0xff] }
  0xc6   : > { %10462 = vmatprep.subr.bf16.mxu1 %v3119_v25  ;;  %v3134_v25 = vunpack.c.h.s8.bf16 %v2056_v21  ;;  %v2068_v22 = vld [vmem:[%s13677_s8 + $0x208] sm:$0xff] }
  0xc8   : > { %10441 = vmatpush3.bf16.msra.mxu0 %v3095_v28  ;;  %v2060_v28 = vld [vmem:[%s13677_s8 + $0x1c8] sm:$0xff] }
  0xc9   : > { %10463 = vmatpush3.bf16.msra.mxu1 %v3111_v29  ;;  %10442 = vmatprep.subr.bf16.mxu0 %v3102_v30  ;;  %v3126_v29 = vunpack.c.h.s8.bf16 %v2052_v27  ;;  %v3142_v30 = vunpack.c.h.s8.bf16 %v2060_v28 }
  0xca   : > { %10464 = vmatprep.subr.bf16.mxu1 %v3118_v31  ;;  %v3133_v31 = vunpack.c.l.s8.bf16 %v2056_v21 }
  0xcc   : > { %10443 = vmatpush3.bf16.msra.mxu0 %v3094_v34  ;;  %v2063_v34 = vld [vmem:[%s13677_s8 + $0x1e0] sm:$0xff] }
  0xcd   : > { %10465 = vmatpush3.bf16.msra.mxu1 %v3110_v35  ;;  %10444 = vmatprep.subr.bf16.mxu0 %v3101_v36  ;;  %v279_v35 = vld [vmem:[%s13670_s10 + $0x20] sm:$0xff]  ;;  %v3125_v36 = vunpack.c.l.s8.bf16 %v2052_v27  ;;  %v3148_v40 = vunpack.c.h.s8.bf16 %v2063_v34  ;;  %v3147_v47 = vunpack.c.l.s8.bf16 %v2063_v34 }
  0xce   : > { %10466 = vmatprep.subr.bf16.mxu1 %v3117_v37  ;;  %v3141_v37 = vunpack.c.l.s8.bf16 %v2060_v28  ;;  %v2071_v28 = vld [vmem:[%s13677_s8 + $0x220] sm:$0xff] }
  0xcf   : > { %v3164_v33 = vunpack.c.h.s8.bf16 %v2071_v28 }
  0xd0   : > { %10445 = vmatpush3.bf16.msra.mxu0 %v3093_v42  ;;  %v2059_v42 = vld [vmem:[%s13677_s8 + $0x1c0] sm:$0xff] }
  0xd1   : > { %10467 = vmatpush3.bf16.msra.mxu1 %v3109_v43  ;;  %10446 = vmatprep.subr.bf16.mxu0 %v3100_v44  ;;  %v471_v43 = vcombine.high %v279_v35, %v279_v35  ;;  %v3124_v44 = vunpack.c.h.s8.bf16 %v2051_v41  ;;  %v3139_v53 = vunpack.c.l.s8.bf16 %v2059_v42 }
  0xd2   : > { %10468 = vmatprep.subr.bf16.mxu1 %v3116_v45  ;;  %v3140_v45 = vunpack.c.h.s8.bf16 %v2059_v42 }
  0xd4   : > { %10447 = vmatpush3.bf16.msra.mxu0 %v3092_v49  ;;  %v2082_v49 = vld [vmem:[%s13677_s8 + $0x278] sm:$0xff] }
  0xd5   : > { %10469 = vmatpush3.bf16.msra.mxu1 %v3108_v50  ;;  %10448 = vmatprep.subr.bf16.mxu0 %v3099_v51  ;;  %v13819_v50 = vrot.slane %v279_v35, %v13706_v38  ;;  %v13822_v51 = vrot.slane %v471_v43, %v13706_v38  ;;  %v2067_v35 = vld [vmem:[%s13677_s8 + $0x200] sm:$0xff]  ;;  %v2090_v43 = vld [vmem:[%s13677_s8 + $0x2b8] sm:$0xff] }
  0xd6   : > { %10470 = vmatprep.subr.bf16.mxu1 %v3115_v52  ;;  %v3123_v52 = vunpack.c.l.s8.bf16 %v2051_v41  ;;  %v3163_v41 = vunpack.c.l.s8.bf16 %v2071_v28 }
  0xd7   : > { %v487_v63 = vcombine.high %v13822_v51, %v13822_v51 }
  0xd8   : > { %10449 = vmatpush3.bf16.msra.mxu0 %v3091_v57  ;;  %v3186_v57 = vunpack.c.h.s8.bf16 %v2082_v49 }
  0xd9   : > { %10471 = vmatpush3.bf16.msra.mxu1 %v3107_v58  ;;  %10478 = vmatprep.subr.bf16.mxu0 %v3138_v59  ;;  %v2070_v58 = vld [vmem:[%s13677_s8 + $0x218] sm:$0xff]  ;;  %v1766_v11 = vpack.c.bf16 %v487_v63, %v487_v63 }
  0xda   : > { %10500 = vmatprep.subr.bf16.mxu1 %v3154_v62  ;;  %v2078_v59 = vld [vmem:[%s13677_s8 + $0x258] sm:$0xff]  ;;  %v486_v62 = vcombine.high %v13819_v50, %v13819_v50  ;;  %v3162_v4 = vunpack.c.h.s8.bf16 %v2070_v58  ;;  %v3161_v55 = vunpack.c.l.s8.bf16 %v2070_v58 }
  0xdb   : > { %5269 = vmatmul.mubr.bf16.vlgmr.msra.gmra.mxu0 %v1755_v5  ;;  %v3178_v5 = vunpack.c.h.s8.bf16 %v2078_v59  ;;  %v3177_v56 = vunpack.c.l.s8.bf16 %v2078_v59  ;;  %v1763_v59 = vpack.c.bf16 %v13819_v50, %v13819_v50 }
  0xdc   : > { %5309 = vmatmul.mubr.bf16.vlgmr.msra.gmra.mxu1 %v1757_v6  ;;  %10479 = vmatpush3.bf16.msra.mxu0 %v3130_v7  ;;  %v3169_v6 = vunpack.c.l.s8.bf16 %v2074_v48  ;;  %v3185_v7 = vunpack.c.l.s8.bf16 %v2082_v49  ;;  %v3202_v49 = vunpack.c.h.s8.bf16 %v2090_v43 }
  0xdd   : > { %10501 = vmatpush3.bf16.msra.mxu1 %v3146_v8  ;;  %10480 = vmatprep.subr.bf16.mxu0 %v3137_v9  ;;  %v2073_v8 = vld [vmem:[%s13677_s8 + $0x230] sm:$0xff] }
  0xde   : > { %10502 = vmatprep.subr.bf16.mxu1 %v3153_v10  ;;  %5348 = vmatprep.mubr.bf16.mxu0 %v1760_v13  ;;  %v2081_v9 = vld [vmem:[%s13677_s8 + $0x270] sm:$0xff]  ;;  %v1764_v10 = vpack.c.bf16 %v486_v62, %v486_v62  ;;  %v3168_v12 = vunpack.c.h.s8.bf16 %v2073_v8  ;;  %v1765_v62 = vpack.c.bf16 %v13822_v51, %v13822_v51 }
  0xdf   : > { %5388 = vmatprep.mubr.bf16.mxu1 %v1762_v14  ;;  %v3184_v13 = vunpack.c.h.s8.bf16 %v2081_v9  ;;  %v2069_v14 = vld [vmem:[%s13677_s8 + $0x210] sm:$0xff]  ;;  %v3183_v17 = vunpack.c.l.s8.bf16 %v2081_v9 }
  0xe0   : > { %10481 = vmatpush3.bf16.msra.mxu0 %v3129_v60  ;;  %v2077_v60 = vld [vmem:[%s13677_s8 + $0x250] sm:$0xff] }
  0xe1   : > { %10503 = vmatpush3.bf16.msra.mxu1 %v3145_v61  ;;  %10482 = vmatprep.subr.bf16.mxu0 %v3136_v15  ;;  %v3160_v61 = vunpack.c.h.s8.bf16 %v2069_v14  ;;  %v3176_v15 = vunpack.c.h.s8.bf16 %v2077_v60 }
  0xe2   : > { %10504 = vmatprep.subr.bf16.mxu1 %v3152_v16  ;;  %v3167_v16 = vunpack.c.l.s8.bf16 %v2073_v8 }
  0xe4   : > { %10483 = vmatpush3.bf16.msra.mxu0 %v3128_v2  ;;  %v2080_v2 = vld [vmem:[%s13677_s8 + $0x268] sm:$0xff] }
  0xe5   : > { %10505 = vmatpush3.bf16.msra.mxu1 %v3144_v18  ;;  %10484 = vmatprep.subr.bf16.mxu0 %v3135_v19  ;;  %v3159_v18 = vunpack.c.l.s8.bf16 %v2069_v14  ;;  %v3175_v19 = vunpack.c.l.s8.bf16 %v2077_v60  ;;  %v3182_v21 = vunpack.c.h.s8.bf16 %v2080_v2  ;;  %v3181_v27 = vunpack.c.l.s8.bf16 %v2080_v2  ;;  %v2088_v60 = vld [vmem:[%s13677_s8 + $0x2a8] sm:$0xff] }
  0xe6   : > { %10506 = vmatprep.subr.bf16.mxu1 %v3151_v20  ;;  %v3166_v20 = vunpack.c.h.s8.bf16 %v2072_v1  ;;  %v2084_v2 = vld [vmem:[%s13677_s8 + $0x288] sm:$0xff] }
  0xe8   : > { %10485 = vmatpush3.bf16.msra.mxu0 %v3127_v23  ;;  %v2076_v23 = vld [vmem:[%s13677_s8 + $0x248] sm:$0xff] }
  0xe9   : > { %10507 = vmatpush3.bf16.msra.mxu1 %v3143_v24  ;;  %10486 = vmatprep.subr.bf16.mxu0 %v3134_v25  ;;  %v3158_v24 = vunpack.c.h.s8.bf16 %v2068_v22  ;;  %v3174_v25 = vunpack.c.h.s8.bf16 %v2076_v23 }
  0xea   : > { %10508 = vmatprep.subr.bf16.mxu1 %v3150_v26  ;;  %v3165_v26 = vunpack.c.l.s8.bf16 %v2072_v1 }
  0xec   : > { %10487 = vmatpush3.bf16.msra.mxu0 %v3126_v29  ;;  %v2079_v29 = vld [vmem:[%s13677_s8 + $0x260] sm:$0xff] }
  0xed   : > { %10509 = vmatpush3.bf16.msra.mxu1 %v3142_v30  ;;  %10488 = vmatprep.subr.bf16.mxu0 %v3133_v31  ;;  %v280_v30 = vld [vmem:[%s13670_s10 + $0x28] sm:$0xff]  ;;  %v3157_v31 = vunpack.c.l.s8.bf16 %v2068_v22  ;;  %v3180_v34 = vunpack.c.h.s8.bf16 %v2079_v29  ;;  %v3179_v42 = vunpack.c.l.s8.bf16 %v2079_v29 }
  0xee   : > { %10510 = vmatprep.subr.bf16.mxu1 %v3149_v32  ;;  %v3173_v32 = vunpack.c.l.s8.bf16 %v2076_v23  ;;  %v2087_v23 = vld [vmem:[%s13677_s8 + $0x2a0] sm:$0xff] }
  0xef   : > { %v3196_v28 = vunpack.c.h.s8.bf16 %v2087_v23 }
  0xf0   : > { %10489 = vmatpush3.bf16.msra.mxu0 %v3125_v36  ;;  %v2075_v36 = vld [vmem:[%s13677_s8 + $0x240] sm:$0xff] }
  0xf1   : > { %10511 = vmatpush3.bf16.msra.mxu1 %v3141_v37  ;;  %10490 = vmatprep.subr.bf16.mxu0 %v3132_v39  ;;  %v488_v37 = vcombine.high %v280_v30, %v280_v30  ;;  %v3156_v39 = vunpack.c.h.s8.bf16 %v2067_v35  ;;  %v3171_v48 = vunpack.c.l.s8.bf16 %v2075_v36 }
  0xf2   : > { %10512 = vmatprep.subr.bf16.mxu1 %v3148_v40  ;;  %v3172_v40 = vunpack.c.h.s8.bf16 %v2075_v36 }
  0xf4   : > { %10491 = vmatpush3.bf16.msra.mxu0 %v3124_v44  ;;  %v2098_v44 = vld [vmem:[%s13677_s8 + $0x2f8] sm:$0xff] }
  0xf5   : > { %10513 = vmatpush3.bf16.msra.mxu1 %v3140_v45  ;;  %10492 = vmatprep.subr.bf16.mxu0 %v3131_v46  ;;  %v13850_v45 = vrot.slane %v280_v30, %v13706_v38  ;;  %v13853_v46 = vrot.slane %v488_v37, %v13706_v38  ;;  %v2083_v30 = vld [vmem:[%s13677_s8 + $0x280] sm:$0xff]  ;;  %v2106_v37 = vld [vmem:[%s13677_s8 + $0x338] sm:$0xff] }
  0xf6   : > { %10514 = vmatprep.subr.bf16.mxu1 %v3147_v47  ;;  %v3155_v47 = vunpack.c.l.s8.bf16 %v2067_v35  ;;  %v3195_v35 = vunpack.c.l.s8.bf16 %v2087_v23 }
  0xf7   : > { %v504_v58 = vcombine.high %v13853_v46, %v13853_v46 }
  0xf8   : > { %10493 = vmatpush3.bf16.msra.mxu0 %v3123_v52  ;;  %v3218_v52 = vunpack.c.h.s8.bf16 %v2098_v44 }
  0xf9   : > { %10515 = vmatpush3.bf16.msra.mxu1 %v3139_v53  ;;  %10522 = vmatprep.subr.bf16.mxu0 %v3170_v54  ;;  %v2086_v53 = vld [vmem:[%s13677_s8 + $0x298] sm:$0xff]  ;;  %v1770_v8 = vpack.c.bf16 %v504_v58, %v504_v58 }
  0xfa   : > { %10544 = vmatprep.subr.bf16.mxu1 %v3186_v57  ;;  %v2094_v54 = vld [vmem:[%s13677_s8 + $0x2d8] sm:$0xff]  ;;  %v503_v57 = vcombine.high %v13850_v45, %v13850_v45  ;;  %v3194_v63 = vunpack.c.h.s8.bf16 %v2086_v53  ;;  %v3193_v50 = vunpack.c.l.s8.bf16 %v2086_v53 }
  0xfb   : > { %5349 = vmatmul.mubr.bf16.vlgmr.msra.gmra.mxu0 %v1759_v0  ;;  %v3210_v0 = vunpack.c.h.s8.bf16 %v2094_v54  ;;  %v3209_v51 = vunpack.c.l.s8.bf16 %v2094_v54  ;;  %v1767_v54 = vpack.c.bf16 %v13850_v45, %v13850_v45 }
  0xfc   : > { %5389 = vmatmul.mubr.bf16.vlgmr.msra.gmra.mxu1 %v1761_v3  ;;  %10523 = vmatpush3.bf16.msra.mxu0 %v3162_v4  ;;  %v3201_v3 = vunpack.c.l.s8.bf16 %v2090_v43  ;;  %v3217_v4 = vunpack.c.l.s8.bf16 %v2098_v44  ;;  %v3234_v44 = vunpack.c.h.s8.bf16 %v2106_v37 }
  0xfd   : > { %10545 = vmatpush3.bf16.msra.mxu1 %v3178_v5  ;;  %10524 = vmatprep.subr.bf16.mxu0 %v3169_v6  ;;  %v2089_v5 = vld [vmem:[%s13677_s8 + $0x2b0] sm:$0xff] }
  0xfe   : > { %10546 = vmatprep.subr.bf16.mxu1 %v3185_v7  ;;  %5428 = vmatprep.mubr.bf16.mxu0 %v1764_v10  ;;  %v2097_v6 = vld [vmem:[%s13677_s8 + $0x2f0] sm:$0xff]  ;;  %v1768_v7 = vpack.c.bf16 %v503_v57, %v503_v57  ;;  %v3200_v9 = vunpack.c.h.s8.bf16 %v2089_v5  ;;  %v1769_v57 = vpack.c.bf16 %v13853_v46, %v13853_v46 }
  0xff   : > { %5468 = vmatprep.mubr.bf16.mxu1 %v1766_v11  ;;  %v3216_v10 = vunpack.c.h.s8.bf16 %v2097_v6  ;;  %v2085_v11 = vld [vmem:[%s13677_s8 + $0x290] sm:$0xff]  ;;  %v3215_v14 = vunpack.c.l.s8.bf16 %v2097_v6 }
 0x100   : > { %10525 = vmatpush3.bf16.msra.mxu0 %v3161_v55  ;;  %v2093_v55 = vld [vmem:[%s13677_s8 + $0x2d0] sm:$0xff] }
 0x101   : > { %10547 = vmatpush3.bf16.msra.mxu1 %v3177_v56  ;;  %10526 = vmatprep.subr.bf16.mxu0 %v3168_v12  ;;  %v3192_v56 = vunpack.c.h.s8.bf16 %v2085_v11  ;;  %v3208_v12 = vunpack.c.h.s8.bf16 %v2093_v55 }
 0x102   : > { %10548 = vmatprep.subr.bf16.mxu1 %v3184_v13  ;;  %v3199_v13 = vunpack.c.l.s8.bf16 %v2089_v5 }
 0x104   : > { %10527 = vmatpush3.bf16.msra.mxu0 %v3160_v61  ;;  %v2096_v61 = vld [vmem:[%s13677_s8 + $0x2e8] sm:$0xff] }
 0x105   : > { %10549 = vmatpush3.bf16.msra.mxu1 %v3176_v15  ;;  %10528 = vmatprep.subr.bf16.mxu0 %v3167_v16  ;;  %v3191_v15 = vunpack.c.l.s8.bf16 %v2085_v11  ;;  %v3207_v16 = vunpack.c.l.s8.bf16 %v2093_v55  ;;  %v3214_v1 = vunpack.c.h.s8.bf16 %v2096_v61  ;;  %v3213_v22 = vunpack.c.l.s8.bf16 %v2096_v61  ;;  %v2104_v55 = vld [vmem:[%s13677_s8 + $0x328] sm:$0xff] }
 0x106   : > { %10550 = vmatprep.subr.bf16.mxu1 %v3183_v17  ;;  %v3198_v17 = vunpack.c.h.s8.bf16 %v2088_v60  ;;  %v2100_v61 = vld [vmem:[%s13677_s8 + $0x308] sm:$0xff] }
 0x108   : > { %10529 = vmatpush3.bf16.msra.mxu0 %v3159_v18  ;;  %v2092_v18 = vld [vmem:[%s13677_s8 + $0x2c8] sm:$0xff] }
 0x109   : > { %10551 = vmatpush3.bf16.msra.mxu1 %v3175_v19  ;;  %10530 = vmatprep.subr.bf16.mxu0 %v3166_v20  ;;  %v3190_v19 = vunpack.c.h.s8.bf16 %v2084_v2  ;;  %v3206_v20 = vunpack.c.h.s8.bf16 %v2092_v18 }
 0x10a   : > { %10552 = vmatprep.subr.bf16.mxu1 %v3182_v21  ;;  %v3197_v21 = vunpack.c.l.s8.bf16 %v2088_v60 }
 0x10c   : > { %10531 = vmatpush3.bf16.msra.mxu0 %v3158_v24  ;;  %v2095_v24 = vld [vmem:[%s13677_s8 + $0x2e0] sm:$0xff] }
 0x10d   : > { %10553 = vmatpush3.bf16.msra.mxu1 %v3174_v25  ;;  %10532 = vmatprep.subr.bf16.mxu0 %v3165_v26  ;;  %v281_v25 = vld [vmem:[%s13670_s10 + $0x30] sm:$0xff]  ;;  %v3189_v26 = vunpack.c.l.s8.bf16 %v2084_v2  ;;  %v3212_v29 = vunpack.c.h.s8.bf16 %v2095_v24  ;;  %v3211_v36 = vunpack.c.l.s8.bf16 %v2095_v24 }
 0x10e   : > { %10554 = vmatprep.subr.bf16.mxu1 %v3181_v27  ;;  %v3205_v27 = vunpack.c.l.s8.bf16 %v2092_v18  ;;  %v2103_v18 = vld [vmem:[%s13677_s8 + $0x320] sm:$0xff] }
 0x10f   : > { %v3228_v23 = vunpack.c.h.s8.bf16 %v2103_v18 }
 0x110   : > { %10533 = vmatpush3.bf16.msra.mxu0 %v3157_v31  ;;  %v2091_v31 = vld [vmem:[%s13677_s8 + $0x2c0] sm:$0xff] }
 0x111   : > { %10555 = vmatpush3.bf16.msra.mxu1 %v3173_v32  ;;  %10534 = vmatprep.subr.bf16.mxu0 %v3164_v33  ;;  %v505_v32 = vcombine.high %v281_v25, %v281_v25  ;;  %v3188_v33 = vunpack.c.h.s8.bf16 %v2083_v30  ;;  %v3203_v43 = vunpack.c.l.s8.bf16 %v2091_v31 }
 0x112   : > { %10556 = vmatprep.subr.bf16.mxu1 %v3180_v34  ;;  %v3204_v34 = vunpack.c.h.s8.bf16 %v2091_v31 }
 0x114   : > { %10535 = vmatpush3.bf16.msra.mxu0 %v3156_v39  ;;  %v2114_v39 = vld [vmem:[%s13677_s8 + $0x378] sm:$0xff] }
 0x115   : > { %10557 = vmatpush3.bf16.msra.mxu1 %v3172_v40  ;;  %10536 = vmatprep.subr.bf16.mxu0 %v3163_v41  ;;  %v13881_v40 = vrot.slane %v281_v25, %v13706_v38  ;;  %v13884_v41 = vrot.slane %v505_v32, %v13706_v38  ;;  %v2099_v25 = vld [vmem:[%s13677_s8 + $0x300] sm:$0xff]  ;;  %v2122_v32 = vld [vmem:[%s13677_s8 + $0x3b8] sm:$0xff] }
 0x116   : > { %10558 = vmatprep.subr.bf16.mxu1 %v3179_v42  ;;  %v3187_v42 = vunpack.c.l.s8.bf16 %v2083_v30  ;;  %v3227_v30 = vunpack.c.l.s8.bf16 %v2103_v18  ;;  %v2116_v18 = vld [vmem:[%s13677_s8 + $0x388] sm:$0xff] }
 0x117   : > { %v521_v53 = vcombine.high %v13884_v41, %v13884_v41 }
 0x118   : > { %10537 = vmatpush3.bf16.msra.mxu0 %v3155_v47  ;;  %v3250_v47 = vunpack.c.h.s8.bf16 %v2114_v39 }
 0x119   : > { %10559 = vmatpush3.bf16.msra.mxu1 %v3171_v48  ;;  %10566 = vmatprep.subr.bf16.mxu0 %v3202_v49  ;;  %v2102_v48 = vld [vmem:[%s13677_s8 + $0x318] sm:$0xff]  ;;  %v1774_v5 = vpack.c.bf16 %v521_v53, %v521_v53 }
 0x11a   : > { %10588 = vmatprep.subr.bf16.mxu1 %v3218_v52  ;;  %v2110_v49 = vld [vmem:[%s13677_s8 + $0x358] sm:$0xff]  ;;  %v520_v52 = vcombine.high %v13881_v40, %v13881_v40  ;;  %v3226_v58 = vunpack.c.h.s8.bf16 %v2102_v48  ;;  %v3225_v45 = vunpack.c.l.s8.bf16 %v2102_v48 }
 0x11b   : > { %5429 = vmatmul.mubr.bf16.vlgmr.msra.gmra.mxu0 %v1763_v59  ;;  %v3242_v59 = vunpack.c.h.s8.bf16 %v2110_v49  ;;  %v3241_v46 = vunpack.c.l.s8.bf16 %v2110_v49  ;;  %v1771_v49 = vpack.c.bf16 %v13881_v40, %v13881_v40 }
 0x11c   : > { %5469 = vmatmul.mubr.bf16.vlgmr.msra.gmra.mxu1 %v1765_v62  ;;  %10567 = vmatpush3.bf16.msra.mxu0 %v3194_v63  ;;  %v3233_v62 = vunpack.c.l.s8.bf16 %v2106_v37  ;;  %v3249_v63 = vunpack.c.l.s8.bf16 %v2114_v39  ;;  %v3266_v39 = vunpack.c.h.s8.bf16 %v2122_v32 }
 0x11d   : > { %10589 = vmatpush3.bf16.msra.mxu1 %v3210_v0  ;;  %10568 = vmatprep.subr.bf16.mxu0 %v3201_v3  ;;  %v2105_v0 = vld [vmem:[%s13677_s8 + $0x330] sm:$0xff] }
 0x11e   : > { %10590 = vmatprep.subr.bf16.mxu1 %v3217_v4  ;;  %5508 = vmatprep.mubr.bf16.mxu0 %v1768_v7  ;;  %v2113_v3 = vld [vmem:[%s13677_s8 + $0x370] sm:$0xff]  ;;  %v1772_v4 = vpack.c.bf16 %v520_v52, %v520_v52  ;;  %v3232_v6 = vunpack.c.h.s8.bf16 %v2105_v0  ;;  %v1773_v52 = vpack.c.bf16 %v13884_v41, %v13884_v41 }
 0x11f   : > { %5548 = vmatprep.mubr.bf16.mxu1 %v1770_v8  ;;  %v3248_v7 = vunpack.c.h.s8.bf16 %v2113_v3  ;;  %v2101_v8 = vld [vmem:[%s13677_s8 + $0x310] sm:$0xff]  ;;  %v3247_v11 = vunpack.c.l.s8.bf16 %v2113_v3 }
 0x120   : > { %10569 = vmatpush3.bf16.msra.mxu0 %v3193_v50  ;;  %v2109_v50 = vld [vmem:[%s13677_s8 + $0x350] sm:$0xff] }
 0x121   : > { %10591 = vmatpush3.bf16.msra.mxu1 %v3209_v51  ;;  %10570 = vmatprep.subr.bf16.mxu0 %v3200_v9  ;;  %v3224_v51 = vunpack.c.h.s8.bf16 %v2101_v8  ;;  %v3240_v9 = vunpack.c.h.s8.bf16 %v2109_v50 }
 0x122   : > { %10592 = vmatprep.subr.bf16.mxu1 %v3216_v10  ;;  %v3231_v10 = vunpack.c.l.s8.bf16 %v2105_v0 }
 0x124   : > { %10571 = vmatpush3.bf16.msra.mxu0 %v3192_v56  ;;  %v2112_v56 = vld [vmem:[%s13677_s8 + $0x368] sm:$0xff] }
 0x125   : > { %10593 = vmatpush3.bf16.msra.mxu1 %v3208_v12  ;;  %10572 = vmatprep.subr.bf16.mxu0 %v3199_v13  ;;  %v3223_v12 = vunpack.c.l.s8.bf16 %v2101_v8  ;;  %v3239_v13 = vunpack.c.l.s8.bf16 %v2109_v50  ;;  %v3246_v60 = vunpack.c.h.s8.bf16 %v2112_v56  ;;  %v3245_v2 = vunpack.c.l.s8.bf16 %v2112_v56  ;;  %v2125_v8 = vld [vmem:[%s13677_s8 + $0x3d0] sm:$0xff] }
 0x126   : > { %10594 = vmatprep.subr.bf16.mxu1 %v3215_v14  ;;  %v3230_v14 = vunpack.c.h.s8.bf16 %v2104_v55  ;;  %v3272_v56 = vunpack.c.h.s8.bf16 %v2125_v8 }
 0x128   : > { %10573 = vmatpush3.bf16.msra.mxu0 %v3191_v15  ;;  %v2108_v15 = vld [vmem:[%s13677_s8 + $0x348] sm:$0xff] }
 0x129   : > { %10595 = vmatpush3.bf16.msra.mxu1 %v3207_v16  ;;  %10574 = vmatprep.subr.bf16.mxu0 %v3198_v17  ;;  %v3222_v16 = vunpack.c.h.s8.bf16 %v2100_v61  ;;  %v3238_v17 = vunpack.c.h.s8.bf16 %v2108_v15 }
 0x12a   : > { %10596 = vmatprep.subr.bf16.mxu1 %v3214_v1  ;;  %v3229_v1 = vunpack.c.l.s8.bf16 %v2104_v55 }
 0x12c   : > { %10575 = vmatpush3.bf16.msra.mxu0 %v3190_v19  ;;  %v2111_v19 = vld [vmem:[%s13677_s8 + $0x360] sm:$0xff] }
 0x12d   : > { %10597 = vmatpush3.bf16.msra.mxu1 %v3206_v20  ;;  %10576 = vmatprep.subr.bf16.mxu0 %v3197_v21  ;;  %v282_v20 = vld [vmem:[%s13670_s10 + $0x38] sm:$0xff]  ;;  %v3221_v21 = vunpack.c.l.s8.bf16 %v2100_v61  ;;  %v3244_v24 = vunpack.c.h.s8.bf16 %v2111_v19  ;;  %v3243_v31 = vunpack.c.l.s8.bf16 %v2111_v19  ;;  %v2120_v61 = vld [vmem:[%s13677_s8 + $0x3a8] sm:$0xff] }
 0x12e   : > { %10598 = vmatprep.subr.bf16.mxu1 %v3213_v22  ;;  %v3237_v22 = vunpack.c.l.s8.bf16 %v2108_v15  ;;  %v2128_v15 = vld [vmem:[%s13677_s8 + $0x3e8] sm:$0xff] }
 0x12f   : > { %v2124_v19 = vld [vmem:[%s13677_s8 + $0x3c8] sm:$0xff] }
 0x130   : > { %10577 = vmatpush3.bf16.msra.mxu0 %v3189_v26  ;;  %v2107_v26 = vld [vmem:[%s13677_s8 + $0x340] sm:$0xff] }
 0x131   : > { %10599 = vmatpush3.bf16.msra.mxu1 %v3205_v27  ;;  %10578 = vmatprep.subr.bf16.mxu0 %v3196_v28  ;;  %v522_v27 = vcombine.high %v282_v20, %v282_v20  ;;  %v3220_v28 = vunpack.c.h.s8.bf16 %v2099_v25  ;;  %v3235_v37 = vunpack.c.l.s8.bf16 %v2107_v26 }
 0x132   : > { %10600 = vmatprep.subr.bf16.mxu1 %v3212_v29  ;;  %v3236_v29 = vunpack.c.h.s8.bf16 %v2107_v26  ;;  %v283_v26 = vld [vmem:[%s13670_s10 + $0x40] sm:$0xff] }
 0x134   : > { %10579 = vmatpush3.bf16.msra.mxu0 %v3188_v33  ;;  %v2130_v33 = vld [vmem:[%s13677_s8 + $0x3f8] sm:$0xff] }
 0x135   : > { %10601 = vmatpush3.bf16.msra.mxu1 %v3204_v34  ;;  %10580 = vmatprep.subr.bf16.mxu0 %v3195_v35  ;;  %v13912_v34 = vrot.slane %v282_v20, %v13706_v38  ;;  %v13915_v35 = vrot.slane %v522_v27, %v13706_v38  ;;  %v3254_v20 = vunpack.c.h.s8.bf16 %v2116_v18  ;;  %v3253_v27 = vunpack.c.l.s8.bf16 %v2116_v18 }
 0x136   : > { %10602 = vmatprep.subr.bf16.mxu1 %v3211_v36  ;;  %v3219_v36 = vunpack.c.l.s8.bf16 %v2099_v25  ;;  %v2127_v25 = vld [vmem:[%s13677_s8 + $0x3e0] sm:$0xff] }
 0x137   : > { %v538_v48 = vcombine.high %v13915_v35, %v13915_v35 }
 0x138   : > { %10581 = vmatpush3.bf16.msra.mxu0 %v3187_v42  ;;  %v3282_v42 = vunpack.c.h.s8.bf16 %v2130_v33 }
 0x139   : > { %10603 = vmatpush3.bf16.msra.mxu1 %v3203_v43  ;;  %10610 = vmatprep.subr.bf16.mxu0 %v3234_v44  ;;  %v2118_v43 = vld [vmem:[%s13677_s8 + $0x398] sm:$0xff]  ;;  %v1778_v0 = vpack.c.bf16 %v538_v48, %v538_v48 }
 0x13a   : > { %10632 = vmatprep.subr.bf16.mxu1 %v3250_v47  ;;  %v2126_v44 = vld [vmem:[%s13677_s8 + $0x3d8] sm:$0xff]  ;;  %v537_v47 = vcombine.high %v13912_v34, %v13912_v34  ;;  %v3258_v53 = vunpack.c.h.s8.bf16 %v2118_v43  ;;  %v3257_v40 = vunpack.c.l.s8.bf16 %v2118_v43 }
 0x13b   : > { %5509 = vmatmul.mubr.bf16.vlgmr.msra.gmra.mxu0 %v1767_v54  ;;  %v3274_v54 = vunpack.c.h.s8.bf16 %v2126_v44  ;;  %v3273_v41 = vunpack.c.l.s8.bf16 %v2126_v44  ;;  %v2138_v43 = vld [vmem:[%s13677_s8 + $0x438] sm:$0xff] }
 0x13c   : > { %5549 = vmatmul.mubr.bf16.vlgmr.msra.gmra.mxu1 %v1769_v57  ;;  %10611 = vmatpush3.bf16.msra.mxu0 %v3226_v58  ;;  %v3265_v57 = vunpack.c.l.s8.bf16 %v2122_v32  ;;  %v3281_v58 = vunpack.c.l.s8.bf16 %v2130_v33  ;;  %v2123_v32 = vld [vmem:[%s13677_s8 + $0x3c0] sm:$0xff]  ;;  %v539_v33 = vcombine.high %v283_v26, %v283_v26  ;;  %v2146_v44 = vld [vmem:[%s13677_s8 + $0x478] sm:$0xff] }
 0x13d   : > { %10633 = vmatpush3.bf16.msra.mxu1 %v3242_v59  ;;  %10612 = vmatprep.subr.bf16.mxu0 %v3233_v62  ;;  %v2121_v59 = vld [vmem:[%s13677_s8 + $0x3b0] sm:$0xff] }
 0x13e   : > { %10634 = vmatprep.subr.bf16.mxu1 %v3249_v63  ;;  %5588 = vmatprep.mubr.bf16.mxu0 %v1772_v4  ;;  %v2129_v62 = vld [vmem:[%s13677_s8 + $0x3f0] sm:$0xff]  ;;  %v1776_v63 = vpack.c.bf16 %v537_v47, %v537_v47  ;;  %v13945_v47 = vrot.slane %v283_v26, %v13706_v38  ;;  %v13948_v48 = vrot.slane %v539_v33, %v13706_v38  ;;  %v2140_v26 = vld [vmem:[%s13677_s8 + $0x448] sm:$0xff] }
 0x13f   : > { %5628 = vmatprep.mubr.bf16.mxu1 %v1774_v5  ;;  %v284_v33 = vld [vmem:[%s13670_s10 + $0x48] sm:$0xff] }
 0x140   : > { %10613 = vmatpush3.bf16.msra.mxu0 %v3225_v45 }
 0x141   : > { %10635 = vmatpush3.bf16.msra.mxu1 %v3241_v46  ;;  %10614 = vmatprep.subr.bf16.mxu0 %v3232_v6  ;;  %v3264_v46 = vunpack.c.h.s8.bf16 %v2121_v59  ;;  %v3280_v6 = vunpack.c.h.s8.bf16 %v2129_v62 }
 0x142   : > { %10636 = vmatprep.subr.bf16.mxu1 %v3248_v7  ;;  %v2117_v7 = vld [vmem:[%s13677_s8 + $0x390] sm:$0xff] }
 0x143   : > { %v3256_v55 = vunpack.c.h.s8.bf16 %v2117_v7 }
 0x144   : > { %10615 = vmatpush3.bf16.msra.mxu0 %v3224_v51 }
 0x145   : > { %10637 = vmatpush3.bf16.msra.mxu1 %v3240_v9  ;;  %10616 = vmatprep.subr.bf16.mxu0 %v3231_v10 }
 0x146   : > { %10638 = vmatprep.subr.bf16.mxu1 %v3247_v11 }
 0x148   : > { %10617 = vmatpush3.bf16.msra.mxu0 %v3223_v12 }
 0x149   : > { %10639 = vmatpush3.bf16.msra.mxu1 %v3239_v13  ;;  %10618 = vmatprep.subr.bf16.mxu0 %v3230_v14  ;;  %v3263_v14 = vunpack.c.l.s8.bf16 %v2121_v59  ;;  %v554_v59 = vcombine.high %v13945_v47, %v13945_v47 }
 0x14a   : > { %10640 = vmatprep.subr.bf16.mxu1 %v3246_v60  ;;  %v3279_v60 = vunpack.c.l.s8.bf16 %v2129_v62  ;;  %v555_v62 = vcombine.high %v13948_v48, %v13948_v48 }
 0x14c   : > { %10619 = vmatpush3.bf16.msra.mxu0 %v3222_v16  ;;  %v3255_v16 = vunpack.c.l.s8.bf16 %v2117_v7 }
 0x14d   : > { %10641 = vmatpush3.bf16.msra.mxu1 %v3238_v17  ;;  %10620 = vmatprep.subr.bf16.mxu0 %v3229_v1  ;;  %v3271_v17 = vunpack.c.l.s8.bf16 %v2125_v8  ;;  %v3262_v1 = vunpack.c.h.s8.bf16 %v2120_v61 }
 0x14e   : > { %10642 = vmatprep.subr.bf16.mxu1 %v3245_v2  ;;  %v3278_v2 = vunpack.c.h.s8.bf16 %v2128_v15 }
 0x150   : > { %10621 = vmatpush3.bf16.msra.mxu0 %v3221_v21  ;;  %v3270_v21 = vunpack.c.h.s8.bf16 %v2124_v19 }
 0x151   : > { %10643 = vmatpush3.bf16.msra.mxu1 %v3237_v22  ;;  %10622 = vmatprep.subr.bf16.mxu0 %v3228_v23  ;;  %v3261_v22 = vunpack.c.l.s8.bf16 %v2120_v61  ;;  %v3277_v23 = vunpack.c.l.s8.bf16 %v2128_v15 }
 0x152   : > { %10644 = vmatprep.subr.bf16.mxu1 %v3244_v24  ;;  %v2119_v24 = vld [vmem:[%s13677_s8 + $0x3a0] sm:$0xff] }
 0x154   : > { %10623 = vmatpush3.bf16.msra.mxu0 %v3220_v28  ;;  %v3269_v28 = vunpack.c.l.s8.bf16 %v2124_v19 }
 0x155   : > { %10645 = vmatpush3.bf16.msra.mxu1 %v3236_v29  ;;  %10624 = vmatprep.subr.bf16.mxu0 %v3227_v30  ;;  %v3260_v29 = vunpack.c.h.s8.bf16 %v2119_v24  ;;  %v3276_v30 = vunpack.c.h.s8.bf16 %v2127_v25 }
 0x156   : > { %10646 = vmatprep.subr.bf16.mxu1 %v3243_v31  ;;  %v2115_v31 = vld [vmem:[%s13677_s8 + $0x380] sm:$0xff] }
 0x158   : > { %10625 = vmatpush3.bf16.msra.mxu0 %v3219_v36  ;;  %v3252_v36 = vunpack.c.h.s8.bf16 %v2115_v31 }
 0x159   : > { %10647 = vmatpush3.bf16.msra.mxu1 %v3235_v37  ;;  %10654 = vmatprep.subr.bf16.mxu0 %v3266_v39  ;;  %v3268_v37 = vunpack.c.h.s8.bf16 %v2123_v32  ;;  %v3259_v39 = vunpack.c.l.s8.bf16 %v2119_v24 }
 0x15a   : > { %10676 = vmatprep.subr.bf16.mxu1 %v3282_v42  ;;  %v3275_v42 = vunpack.c.l.s8.bf16 %v2127_v25  ;;  %v2132_v25 = vld [vmem:[%s13677_s8 + $0x408] sm:$0xff] }
 0x15b   : > { %v10362_v3 = vpop.f32.mrf.mxu0  ;;  %5589 = vmatmul.mubr.bf16.vlgmr.msra.gmra.mxu0 %v1771_v49  ;;  %v3251_v49 = vunpack.c.l.s8.bf16 %v2115_v31  ;;  %v2135_v31 = vld [vmem:[%s13677_s8 + $0x420] sm:$0xff] }
 0x15c   : > { %v10384_v4 = vpop.f32.mrf.mxu1  ;;  %5629 = vmatmul.mubr.bf16.vlgmr.msra.gmra.mxu1 %v1773_v52  ;;  %10655 = vmatpush3.bf16.msra.mxu0 %v3258_v53  ;;  %v3267_v52 = vunpack.c.l.s8.bf16 %v2123_v32  ;;  %v3298_v53 = vunpack.c.h.s8.bf16 %v2138_v43  ;;  %v2143_v32 = vld [vmem:[%s13677_s8 + $0x460] sm:$0xff] }
 0x15d   : > { %10677 = vmatpush3.bf16.msra.mxu1 %v3274_v54  ;;  %v10363_v5 = vpop.f32.mrf.mxu0  ;;  %10656 = vmatprep.subr.bf16.mxu0 %v3265_v57  ;;  %v3314_v54 = vunpack.c.h.s8.bf16 %v2146_v44  ;;  %v2134_v57 = vld [vmem:[%s13677_s8 + $0x418] sm:$0xff] }
 0x15e   : > { %v10385_v45 = vpop.f32.mrf.mxu1  ;;  %10678 = vmatprep.subr.bf16.mxu1 %v3281_v58  ;;  %v10364_v50 = vadd.f32 %v10363_v5, %v10362_v3  ;;  %5668 = vmatprep.mubr.bf16.mxu0 %v1776_v63  ;;  %v2142_v58 = vld [vmem:[%s13677_s8 + $0x458] sm:$0xff]  ;;  %v1775_v63 = vpack.c.bf16 %v13912_v34, %v13912_v34  ;;  %v3290_v3 = vunpack.c.h.s8.bf16 %v2134_v57  ;;  %v2137_v5 = vld [vmem:[%s13677_s8 + $0x430] sm:$0xff]  ;;  %v3289_v34 = vunpack.c.l.s8.bf16 %v2134_v57 }
 0x15f   : > { %v10386_v51 = vadd.f32 %v10385_v45, %v10384_v4  ;;  %5708 = vmatprep.mubr.bf16.mxu1 %v1778_v0  ;;  %v10365_v9 = vpop.f32.mrf.mxu0  ;;  %v1777_v0 = vpack.c.bf16 %v13915_v35, %v13915_v35  ;;  %v3306_v4 = vunpack.c.h.s8.bf16 %v2142_v58  ;;  %v2145_v45 = vld [vmem:[%s13677_s8 + $0x470] sm:$0xff]  ;;  %v3305_v35 = vunpack.c.l.s8.bf16 %v2142_v58  ;;  %v2154_v58 = vld [vmem:[%s13677_s8 + $0x4b8] sm:$0xff] }
 0x160   : > { %v10387_v10 = vpop.f32.mrf.mxu1  ;;  %10657 = vmatpush3.bf16.msra.mxu0 %v3257_v40  ;;  %v3297_v40 = vunpack.c.l.s8.bf16 %v2138_v43  ;;  %v3296_v9 = vunpack.c.h.s8.bf16 %v2137_v5  ;;  %v3311_v18 = vunpack.c.l.s8.bf16 %v2145_v45  ;;  %v2131_v43 = vld [vmem:[%s13677_s8 + $0x400] sm:$0xff]  ;;  %v3307_v57 = vunpack.c.l.s8.bf16 %v2143_v32 }
 0x161   : > { %v13931_v11 = vadd.f32 %v10386_v51, %v10364_v50  ;;  %10679 = vmatpush3.bf16.msra.mxu1 %v3273_v41  ;;  %v10366_v12 = vpop.f32.mrf.mxu0  ;;  %10658 = vmatprep.subr.bf16.mxu0 %v3264_v46  ;;  %v3313_v41 = vunpack.c.l.s8.bf16 %v2146_v44  ;;  %v1780_v46 = vpack.c.bf16 %v554_v59, %v554_v59  ;;  %v3312_v10 = vunpack.c.h.s8.bf16 %v2145_v45  ;;  %v2139_v44 = vld [vmem:[%s13677_s8 + $0x440] sm:$0xff]  ;;  %v2162_v59 = vld [vmem:[%s13677_s8 + $0x4f8] sm:$0xff] }
 0x162   : > { %v10388_v13 = vpop.f32.mrf.mxu1  ;;  %10680 = vmatprep.subr.bf16.mxu1 %v3280_v6  ;;  %v1782_v6 = vpack.c.bf16 %v555_v62, %v555_v62  ;;  %v13979_v62 = vrot.slane %v284_v33, %v13706_v38 }
 0x164   : > { %10659 = vmatpush3.bf16.msra.mxu0 %v3256_v55  ;;  %v2133_v55 = vld [vmem:[%s13677_s8 + $0x410] sm:$0xff]  ;;  %v571_v45 = vcombine.high %v13979_v62, %v13979_v62 }
 0x165   : > { %10681 = vmatpush3.bf16.msra.mxu1 %v3272_v56  ;;  %10660 = vmatprep.subr.bf16.mxu0 %v3263_v14  ;;  %v2141_v56 = vld [vmem:[%s13677_s8 + $0x450] sm:$0xff]  ;;  %v3288_v15 = vunpack.c.h.s8.bf16 %v2133_v55 }
 0x166   : > { %10682 = vmatprep.subr.bf16.mxu1 %v3279_v60 }
 0x168   : > { %10661 = vmatpush3.bf16.msra.mxu0 %v3255_v16  ;;  %v3304_v16 = vunpack.c.h.s8.bf16 %v2141_v56 }
 0x169   : > { %10683 = vmatpush3.bf16.msra.mxu1 %v3271_v17  ;;  %10662 = vmatprep.subr.bf16.mxu0 %v3262_v1 }
 0x16a   : > { %10684 = vmatprep.subr.bf16.mxu1 %v3278_v2  ;;  %v3295_v2 = vunpack.c.l.s8.bf16 %v2137_v5  ;;  %v2158_v5 = vld [vmem:[%s13677_s8 + $0x4d8] sm:$0xff] }
 0x16c   : > { %10663 = vmatpush3.bf16.msra.mxu0 %v3254_v20  ;;  %v2136_v20 = vld [vmem:[%s13677_s8 + $0x428] sm:$0xff] }
 0x16d   : > { %10685 = vmatpush3.bf16.msra.mxu1 %v3270_v21  ;;  %10664 = vmatprep.subr.bf16.mxu0 %v3261_v22  ;;  %v2144_v21 = vld [vmem:[%s13677_s8 + $0x468] sm:$0xff]  ;;  %v3287_v22 = vunpack.c.l.s8.bf16 %v2133_v55 }
 0x16e   : > { %10686 = vmatprep.subr.bf16.mxu1 %v3277_v23  ;;  %v3294_v23 = vunpack.c.h.s8.bf16 %v2136_v20  ;;  %v3310_v24 = vunpack.c.h.s8.bf16 %v2144_v21 }
 0x170   : > { %10665 = vmatpush3.bf16.msra.mxu0 %v3253_v27  ;;  %v3286_v27 = vunpack.c.h.s8.bf16 %v2132_v25 }
 0x171   : > { %10687 = vmatpush3.bf16.msra.mxu1 %v3269_v28  ;;  %10666 = vmatprep.subr.bf16.mxu0 %v3260_v29  ;;  %v3302_v28 = vunpack.c.h.s8.bf16 %v2140_v26  ;;  %v3293_v29 = vunpack.c.l.s8.bf16 %v2136_v20 }
 0x172   : > { %10688 = vmatprep.subr.bf16.mxu1 %v3276_v30  ;;  %v3309_v30 = vunpack.c.l.s8.bf16 %v2144_v21 }
 0x174   : > { %10667 = vmatpush3.bf16.msra.mxu0 %v3252_v36  ;;  %v3285_v36 = vunpack.c.l.s8.bf16 %v2132_v25 }
 0x175   : > { %10689 = vmatpush3.bf16.msra.mxu1 %v3268_v37  ;;  %10668 = vmatprep.subr.bf16.mxu0 %v3259_v39  ;;  %v3301_v37 = vunpack.c.l.s8.bf16 %v2140_v26  ;;  %v3292_v39 = vunpack.c.h.s8.bf16 %v2135_v31 }
 0x176   : > { %10690 = vmatprep.subr.bf16.mxu1 %v3275_v42  ;;  %v3308_v42 = vunpack.c.h.s8.bf16 %v2143_v32  ;;  %v2148_v32 = vld [vmem:[%s13677_s8 + $0x488] sm:$0xff] }
 0x178   : > { %10669 = vmatpush3.bf16.msra.mxu0 %v3251_v49  ;;  %v556_v49 = vcombine.high %v284_v33, %v284_v33  ;;  %v2156_v33 = vld [vmem:[%s13677_s8 + $0x4c8] sm:$0xff] }
 0x179   : > { %10691 = vmatpush3.bf16.msra.mxu1 %v3267_v52  ;;  %10698 = vmatprep.subr.bf16.mxu0 %v3298_v53  ;;  %v3284_v52 = vunpack.c.h.s8.bf16 %v2131_v43  ;;  %v3300_v53 = vunpack.c.h.s8.bf16 %v2139_v44 }
 0x17a   : > { %10720 = vmatprep.subr.bf16.mxu1 %v3314_v54  ;;  %v3291_v54 = vunpack.c.l.s8.bf16 %v2135_v31 }
 0x17b   : > { %v10406_v7 = vpop.f32.mrf.mxu0  ;;  %5669 = vmatmul.mubr.bf16.vlgmr.msra.gmra.mxu0 %v1775_v63  ;;  %v13982_v63 = vrot.slane %v556_v49, %v13706_v38  ;;  %v285_v49 = vld [vmem:[%s13670_s10 + $0x50] sm:$0xff] }
 0x17c   : > { %v10428_v8 = vpop.f32.mrf.mxu1  ;;  %5709 = vmatmul.mubr.bf16.vlgmr.msra.gmra.mxu1 %v1777_v0  ;;  %10699 = vmatpush3.bf16.msra.mxu0 %v3290_v3  ;;  %v3283_v0 = vunpack.c.l.s8.bf16 %v2131_v43  ;;  %v3299_v3 = vunpack.c.l.s8.bf16 %v2139_v44  ;;  %v2151_v43 = vld [vmem:[%s13677_s8 + $0x4a0] sm:$0xff] }
 0x17d   : > { %10721 = vmatpush3.bf16.msra.mxu1 %v3306_v4  ;;  %v10407_v50 = vpop.f32.mrf.mxu0  ;;  %10700 = vmatprep.subr.bf16.mxu0 %v3297_v40  ;;  %v3330_v4 = vunpack.c.h.s8.bf16 %v2154_v58  ;;  %v3346_v40 = vunpack.c.h.s8.bf16 %v2162_v59  ;;  %v2159_v44 = vld [vmem:[%s13677_s8 + $0x4e0] sm:$0xff] }
 0x17e   : > { %v10429_v51 = vpop.f32.mrf.mxu1  ;;  %10722 = vmatprep.subr.bf16.mxu1 %v3313_v41  ;;  %v10408_v12 = vadd.f32 %v10407_v50, %v10406_v7  ;;  %5748 = vmatprep.mubr.bf16.mxu0 %v1780_v46  ;;  %v2150_v41 = vld [vmem:[%s13677_s8 + $0x498] sm:$0xff]  ;;  %v572_v46 = vcombine.high %v13982_v63, %v13982_v63  ;;  %v1781_v7 = vpack.c.bf16 %v13948_v48, %v13948_v48  ;;  %v3345_v50 = vunpack.c.l.s8.bf16 %v2162_v59  ;;  %v2155_v59 = vld [vmem:[%s13677_s8 + $0x4c0] sm:$0xff] }
 0x17f   : > { %v10430_v13 = vadd.f32 %v10429_v51, %v10428_v8  ;;  %5788 = vmatprep.mubr.bf16.mxu1 %v1782_v6  ;;  %v10409_v14 = vpop.f32.mrf.mxu0  ;;  %v1779_v6 = vpack.c.bf16 %v13945_v47, %v13945_v47  ;;  %v3322_v8 = vunpack.c.h.s8.bf16 %v2150_v41  ;;  %v2153_v51 = vld [vmem:[%s13677_s8 + $0x4b0] sm:$0xff]  ;;  %v3321_v47 = vunpack.c.l.s8.bf16 %v2150_v41 }
 0x180   : > { %v10431_v60 = vpop.f32.mrf.mxu1  ;;  %v5191_v61 = vadd.f32 %v10408_v12, %v13931_v11  ;;  %10701 = vmatpush3.bf16.msra.mxu0 %v3289_v34  ;;  %v3303_v11 = vunpack.c.l.s8.bf16 %v2141_v56  ;;  %v3338_v34 = vunpack.c.h.s8.bf16 %v2158_v5  ;;  %v1786_v55 = vpack.c.bf16 %v572_v46, %v572_v46 }
 0x181   : > { %10723 = vmatpush3.bf16.msra.mxu1 %v3305_v35  ;;  %v10410_v17 = vpop.f32.mrf.mxu0  ;;  %10702 = vmatprep.subr.bf16.mxu0 %v3296_v9  ;;  %v3329_v35 = vunpack.c.l.s8.bf16 %v2154_v58  ;;  %v2161_v9 = vld [vmem:[%s13677_s8 + $0x4f0] sm:$0xff]  ;;  %v3337_v48 = vunpack.c.l.s8.bf16 %v2158_v5  ;;  %v3328_v60 = vunpack.c.h.s8.bf16 %v2153_v51  ;;  %v2147_v58 = vld [vmem:[%s13677_s8 + $0x480] sm:$0xff]  ;;  %v3339_v41 = vunpack.c.l.s8.bf16 %v2159_v44  ;;  %v2170_v5 = vld [vmem:[%s13677_s8 + $0x538] sm:$0xff] }
 0x182   : > { %v10432_v1 = vpop.f32.mrf.mxu1  ;;  %10724 = vmatprep.subr.bf16.mxu1 %v3312_v10  ;;  %v13965_v19 = vadd.f32 %v10430_v13, %v5191_v61  ;;  %v1784_v10 = vpack.c.bf16 %v571_v45, %v571_v45  ;;  %v3344_v61 = vunpack.c.h.s8.bf16 %v2161_v9  ;;  %v3343_v25 = vunpack.c.l.s8.bf16 %v2161_v9  ;;  %v2178_v45 = vld [vmem:[%s13677_s8 + $0x578] sm:$0xff] }
 0x183   : > { %v14013_v46 = vrot.slane %v285_v49, %v13706_v38 }
 0x184   : > { %10703 = vmatpush3.bf16.msra.mxu0 %v3288_v15  ;;  %v2149_v15 = vld [vmem:[%s13677_s8 + $0x490] sm:$0xff] }
 0x185   : > { %10725 = vmatpush3.bf16.msra.mxu1 %v3304_v16  ;;  %10704 = vmatprep.subr.bf16.mxu0 %v3295_v2  ;;  %v2157_v16 = vld [vmem:[%s13677_s8 + $0x4d0] sm:$0xff]  ;;  %v3320_v21 = vunpack.c.h.s8.bf16 %v2149_v15  ;;  %v588_v9 = vcombine.high %v14013_v46, %v14013_v46 }
 0x186   : > { %10726 = vmatprep.subr.bf16.mxu1 %v3311_v18 }
 0x188   : > { %10705 = vmatpush3.bf16.msra.mxu0 %v3287_v22  ;;  %v3336_v22 = vunpack.c.h.s8.bf16 %v2157_v16 }
 0x189   : > { %10727 = vmatpush3.bf16.msra.mxu1 %v3303_v11  ;;  %10706 = vmatprep.subr.bf16.mxu0 %v3294_v23 }
 0x18a   : > { %10728 = vmatprep.subr.bf16.mxu1 %v3310_v24  ;;  %v3327_v24 = vunpack.c.l.s8.bf16 %v2153_v51  ;;  %v2174_v51 = vld [vmem:[%s13677_s8 + $0x558] sm:$0xff] }
 0x18c   : > { %10707 = vmatpush3.bf16.msra.mxu0 %v3286_v27  ;;  %v2152_v27 = vld [vmem:[%s13677_s8 + $0x4a8] sm:$0xff] }
 0x18d   : > { %10729 = vmatpush3.bf16.msra.mxu1 %v3302_v28  ;;  %10708 = vmatprep.subr.bf16.mxu0 %v3293_v29  ;;  %v2160_v28 = vld [vmem:[%s13677_s8 + $0x4e8] sm:$0xff]  ;;  %v3319_v29 = vunpack.c.l.s8.bf16 %v2149_v15 }
 0x18e   : > { %10730 = vmatprep.subr.bf16.mxu1 %v3309_v30  ;;  %v3326_v30 = vunpack.c.h.s8.bf16 %v2152_v27  ;;  %v3342_v31 = vunpack.c.h.s8.bf16 %v2160_v28 }
 0x190   : > { %10709 = vmatpush3.bf16.msra.mxu0 %v3285_v36  ;;  %v3318_v36 = vunpack.c.h.s8.bf16 %v2148_v32 }
 0x191   : > { %10731 = vmatpush3.bf16.msra.mxu1 %v3301_v37  ;;  %10710 = vmatprep.subr.bf16.mxu0 %v3292_v39  ;;  %v3334_v37 = vunpack.c.h.s8.bf16 %v2156_v33  ;;  %v3325_v39 = vunpack.c.l.s8.bf16 %v2152_v27 }
 0x192   : > { %10732 = vmatprep.subr.bf16.mxu1 %v3308_v42  ;;  %v3341_v42 = vunpack.c.l.s8.bf16 %v2160_v28 }
 0x194   : > { %10711 = vmatpush3.bf16.msra.mxu0 %v3284_v52  ;;  %v3317_v52 = vunpack.c.l.s8.bf16 %v2148_v32 }
 0x195   : > { %10733 = vmatpush3.bf16.msra.mxu1 %v3300_v53  ;;  %10712 = vmatprep.subr.bf16.mxu0 %v3291_v54  ;;  %v3333_v53 = vunpack.c.l.s8.bf16 %v2156_v33  ;;  %v3324_v54 = vunpack.c.h.s8.bf16 %v2151_v43 }
 0x196   : > { %10734 = vmatprep.subr.bf16.mxu1 %v3307_v57  ;;  %v3340_v57 = vunpack.c.h.s8.bf16 %v2159_v44  ;;  %v2164_v44 = vld [vmem:[%s13677_s8 + $0x508] sm:$0xff] }
 0x198   : > { %10713 = vmatpush3.bf16.msra.mxu0 %v3283_v0  ;;  %v573_v0 = vcombine.high %v285_v49, %v285_v49  ;;  %v2172_v49 = vld [vmem:[%s13677_s8 + $0x548] sm:$0xff] }
 0x199   : > { %10735 = vmatpush3.bf16.msra.mxu1 %v3299_v3  ;;  %10742 = vmatprep.subr.bf16.mxu0 %v3330_v4  ;;  %v3316_v3 = vunpack.c.h.s8.bf16 %v2147_v58  ;;  %v3332_v4 = vunpack.c.h.s8.bf16 %v2155_v59 }
 0x19a   : > { %10764 = vmatprep.subr.bf16.mxu1 %v3346_v40  ;;  %v3323_v40 = vunpack.c.l.s8.bf16 %v2151_v43 }
 0x19b   : > { %v10450_v56 = vpop.f32.mrf.mxu0  ;;  %5749 = vmatmul.mubr.bf16.vlgmr.msra.gmra.mxu0 %v1779_v6  ;;  %v14016_v6 = vrot.slane %v573_v0, %v13706_v38  ;;  %v286_v0 = vld [vmem:[%s13670_s10 + $0x58] sm:$0xff] }
 0x19c   : > { %v10472_v12 = vpop.f32.mrf.mxu1  ;;  %5789 = vmatmul.mubr.bf16.vlgmr.msra.gmra.mxu1 %v1781_v7  ;;  %10743 = vmatpush3.bf16.msra.mxu0 %v3322_v8  ;;  %v3315_v7 = vunpack.c.l.s8.bf16 %v2147_v58  ;;  %v3331_v8 = vunpack.c.l.s8.bf16 %v2155_v59  ;;  %v2167_v58 = vld [vmem:[%s13677_s8 + $0x520] sm:$0xff] }
 0x19d   : > { %10765 = vmatpush3.bf16.msra.mxu1 %v3338_v34  ;;  %v10451_v13 = vpop.f32.mrf.mxu0  ;;  %10744 = vmatprep.subr.bf16.mxu0 %v3329_v35  ;;  %v3362_v34 = vunpack.c.h.s8.bf16 %v2170_v5  ;;  %v3378_v35 = vunpack.c.h.s8.bf16 %v2178_v45  ;;  %v2175_v59 = vld [vmem:[%s13677_s8 + $0x560] sm:$0xff] }
 0x19e   : > { %v10473_v14 = vpop.f32.mrf.mxu1  ;;  %10766 = vmatprep.subr.bf16.mxu1 %v3345_v50  ;;  %v10452_v17 = vadd.f32 %v10451_v13, %v10450_v56  ;;  %5828 = vmatprep.mubr.bf16.mxu0 %v1784_v10  ;;  %v2166_v50 = vld [vmem:[%s13677_s8 + $0x518] sm:$0xff]  ;;  %v589_v10 = vcombine.high %v14016_v6, %v14016_v6  ;;  %v1785_v56 = vpack.c.bf16 %v13982_v63, %v13982_v63  ;;  %v3377_v13 = vunpack.c.l.s8.bf16 %v2178_v45  ;;  %v2171_v45 = vld [vmem:[%s13677_s8 + $0x540] sm:$0xff] }
 0x19f   : > { %v10474_v1 = vadd.f32 %v10473_v14, %v10472_v12  ;;  %5868 = vmatprep.mubr.bf16.mxu1 %v1786_v55  ;;  %v10453_v2 = vpop.f32.mrf.mxu0  ;;  %v1783_v55 = vpack.c.bf16 %v13979_v62, %v13979_v62  ;;  %v3354_v12 = vunpack.c.h.s8.bf16 %v2166_v50  ;;  %v2169_v14 = vld [vmem:[%s13677_s8 + $0x530] sm:$0xff]  ;;  %v3353_v62 = vunpack.c.l.s8.bf16 %v2166_v50 }
 0x1a0   : > { %v10475_v18 = vpop.f32.mrf.mxu1  ;;  %v5271_v20 = vadd.f32 %v10452_v17, %v13965_v19  ;;  %10745 = vmatpush3.bf16.msra.mxu0 %v3321_v47  ;;  %v3335_v19 = vunpack.c.l.s8.bf16 %v2157_v16  ;;  %v3370_v47 = vunpack.c.h.s8.bf16 %v2174_v51  ;;  %v1790_v15 = vpack.c.bf16 %v589_v10, %v589_v10 }
 0x1a1   : > { %10767 = vmatpush3.bf16.msra.mxu1 %v3337_v48  ;;  %v10454_v11 = vpop.f32.mrf.mxu0  ;;  %10746 = vmatprep.subr.bf16.mxu0 %v3328_v60  ;;  %v3361_v48 = vunpack.c.l.s8.bf16 %v2170_v5  ;;  %v2177_v60 = vld [vmem:[%s13677_s8 + $0x570] sm:$0xff]  ;;  %v3369_v63 = vunpack.c.l.s8.bf16 %v2174_v51  ;;  %v3360_v18 = vunpack.c.h.s8.bf16 %v2169_v14  ;;  %v2163_v5 = vld [vmem:[%s13677_s8 + $0x500] sm:$0xff]  ;;  %v3371_v50 = vunpack.c.l.s8.bf16 %v2175_v59  ;;  %v2186_v51 = vld [vmem:[%s13677_s8 + $0x5b8] sm:$0xff] }
 0x1a2   : > { %v10476_v23 = vpop.f32.mrf.mxu1  ;;  %10768 = vmatprep.subr.bf16.mxu1 %v3344_v61  ;;  %v13999_v26 = vadd.f32 %v10474_v1, %v5271_v20  ;;  %v1788_v61 = vpack.c.bf16 %v588_v9, %v588_v9  ;;  %v3376_v20 = vunpack.c.h.s8.bf16 %v2177_v60  ;;  %v3375_v32 = vunpack.c.l.s8.bf16 %v2177_v60  ;;  %v2194_v9 = vld [vmem:[%s13677_s8 + $0x5f8] sm:$0xff] }
 0x1a3   : > { %v14047_v10 = vrot.slane %v286_v0, %v13706_v38 }
 0x1a4   : > { %10747 = vmatpush3.bf16.msra.mxu0 %v3320_v21  ;;  %v2165_v21 = vld [vmem:[%s13677_s8 + $0x510] sm:$0xff] }
 0x1a5   : > { %10769 = vmatpush3.bf16.msra.mxu1 %v3336_v22  ;;  %10748 = vmatprep.subr.bf16.mxu0 %v3327_v24  ;;  %v2173_v22 = vld [vmem:[%s13677_s8 + $0x550] sm:$0xff]  ;;  %v3352_v28 = vunpack.c.h.s8.bf16 %v2165_v21  ;;  %v605_v60 = vcombine.high %v14047_v10, %v14047_v10 }
 0x1a6   : > { %10770 = vmatprep.subr.bf16.mxu1 %v3343_v25 }
 0x1a8   : > { %10749 = vmatpush3.bf16.msra.mxu0 %v3319_v29  ;;  %v3368_v29 = vunpack.c.h.s8.bf16 %v2173_v22 }
 0x1a9   : > { %10771 = vmatpush3.bf16.msra.mxu1 %v3335_v19  ;;  %10750 = vmatprep.subr.bf16.mxu0 %v3326_v30 }
 0x1aa   : > { %10772 = vmatprep.subr.bf16.mxu1 %v3342_v31  ;;  %v3359_v31 = vunpack.c.l.s8.bf16 %v2169_v14  ;;  %v2190_v14 = vld [vmem:[%s13677_s8 + $0x5d8] sm:$0xff] }
 0x1ac   : > { %10751 = vmatpush3.bf16.msra.mxu0 %v3318_v36  ;;  %v2168_v36 = vld [vmem:[%s13677_s8 + $0x528] sm:$0xff] }
 0x1ad   : > { %10773 = vmatpush3.bf16.msra.mxu1 %v3334_v37  ;;  %10752 = vmatprep.subr.bf16.mxu0 %v3325_v39  ;;  %v2176_v37 = vld [vmem:[%s13677_s8 + $0x568] sm:$0xff]  ;;  %v3351_v39 = vunpack.c.l.s8.bf16 %v2165_v21 }
 0x1ae   : > { %10774 = vmatprep.subr.bf16.mxu1 %v3341_v42  ;;  %v3358_v42 = vunpack.c.h.s8.bf16 %v2168_v36  ;;  %v3374_v43 = vunpack.c.h.s8.bf16 %v2176_v37 }
 0x1b0   : > { %10753 = vmatpush3.bf16.msra.mxu0 %v3317_v52  ;;  %v3350_v52 = vunpack.c.h.s8.bf16 %v2164_v44 }
 0x1b1   : > { %10775 = vmatpush3.bf16.msra.mxu1 %v3333_v53  ;;  %10754 = vmatprep.subr.bf16.mxu0 %v3324_v54  ;;  %v3366_v53 = vunpack.c.h.s8.bf16 %v2172_v49  ;;  %v3357_v54 = vunpack.c.l.s8.bf16 %v2168_v36 }
 0x1b2   : > { %10776 = vmatprep.subr.bf16.mxu1 %v3340_v57  ;;  %v3373_v57 = vunpack.c.l.s8.bf16 %v2176_v37 }
 0x1b4   : > { %10755 = vmatpush3.bf16.msra.mxu0 %v3316_v3  ;;  %v3349_v3 = vunpack.c.l.s8.bf16 %v2164_v44 }
 0x1b5   : > { %10777 = vmatpush3.bf16.msra.mxu1 %v3332_v4  ;;  %10756 = vmatprep.subr.bf16.mxu0 %v3323_v40  ;;  %v3365_v4 = vunpack.c.l.s8.bf16 %v2172_v49  ;;  %v3356_v40 = vunpack.c.h.s8.bf16 %v2167_v58 }
 0x1b6   : > { %10778 = vmatprep.subr.bf16.mxu1 %v3339_v41  ;;  %v3372_v41 = vunpack.c.h.s8.bf16 %v2175_v59  ;;  %v2180_v59 = vld [vmem:[%s13677_s8 + $0x588] sm:$0xff] }
 0x1b8   : > { %10757 = vmatpush3.bf16.msra.mxu0 %v3315_v7  ;;  %v590_v7 = vcombine.high %v286_v0, %v286_v0  ;;  %v2188_v0 = vld [vmem:[%s13677_s8 + $0x5c8] sm:$0xff] }
 0x1b9   : > { %10779 = vmatpush3.bf16.msra.mxu1 %v3331_v8  ;;  %10786 = vmatprep.subr.bf16.mxu0 %v3362_v34  ;;  %v3348_v8 = vunpack.c.h.s8.bf16 %v2163_v5  ;;  %v3364_v34 = vunpack.c.h.s8.bf16 %v2171_v45 }
 0x1ba   : > { %10808 = vmatprep.subr.bf16.mxu1 %v3378_v35  ;;  %v3355_v35 = vunpack.c.l.s8.bf16 %v2167_v58 }
 0x1bb   : > { %v10494_v16 = vpop.f32.mrf.mxu0  ;;  %5829 = vmatmul.mubr.bf16.vlgmr.msra.gmra.mxu0 %v1783_v55  ;;  %v14050_v55 = vrot.slane %v590_v7, %v13706_v38  ;;  %v287_v7 = vld [vmem:[%s13670_s10 + $0x60] sm:$0xff] }
 0x1bc   : > { %v10516_v17 = vpop.f32.mrf.mxu1  ;;  %5869 = vmatmul.mubr.bf16.vlgmr.msra.gmra.mxu1 %v1785_v56  ;;  %10787 = vmatpush3.bf16.msra.mxu0 %v3354_v12  ;;  %v3347_v56 = vunpack.c.l.s8.bf16 %v2163_v5  ;;  %v3363_v12 = vunpack.c.l.s8.bf16 %v2171_v45  ;;  %v2183_v5 = vld [vmem:[%s13677_s8 + $0x5a0] sm:$0xff] }
 0x1bd   : > { %10809 = vmatpush3.bf16.msra.mxu1 %v3370_v47  ;;  %v10495_v1 = vpop.f32.mrf.mxu0  ;;  %10788 = vmatprep.subr.bf16.mxu0 %v3361_v48  ;;  %v3394_v47 = vunpack.c.h.s8.bf16 %v2186_v51  ;;  %v3410_v48 = vunpack.c.h.s8.bf16 %v2194_v9  ;;  %v2191_v45 = vld [vmem:[%s13677_s8 + $0x5e0] sm:$0xff] }
 0x1be   : > { %v10517_v2 = vpop.f32.mrf.mxu1  ;;  %10810 = vmatprep.subr.bf16.mxu1 %v3377_v13  ;;  %v10496_v11 = vadd.f32 %v10495_v1, %v10494_v16  ;;  %5908 = vmatprep.mubr.bf16.mxu0 %v1788_v61  ;;  %v2182_v13 = vld [vmem:[%s13677_s8 + $0x598] sm:$0xff]  ;;  %v606_v61 = vcombine.high %v14050_v55, %v14050_v55  ;;  %v1789_v16 = vpack.c.bf16 %v14016_v6, %v14016_v6  ;;  %v3409_v1 = vunpack.c.l.s8.bf16 %v2194_v9  ;;  %v2187_v9 = vld [vmem:[%s13677_s8 + $0x5c0] sm:$0xff] }
 0x1bf   : > { %v10518_v23 = vadd.f32 %v10517_v2, %v10516_v17  ;;  %5948 = vmatprep.mubr.bf16.mxu1 %v1790_v15  ;;  %v10497_v24 = vpop.f32.mrf.mxu0  ;;  %v1787_v15 = vpack.c.bf16 %v14013_v46, %v14013_v46  ;;  %v3386_v17 = vunpack.c.h.s8.bf16 %v2182_v13  ;;  %v2185_v2 = vld [vmem:[%s13677_s8 + $0x5b0] sm:$0xff]  ;;  %v3385_v46 = vunpack.c.l.s8.bf16 %v2182_v13 }
 0x1c0   : > { %v10519_v25 = vpop.f32.mrf.mxu1  ;;  %v5351_v27 = vadd.f32 %v10496_v11, %v13999_v26  ;;  %10789 = vmatpush3.bf16.msra.mxu0 %v3353_v62  ;;  %v3367_v26 = vunpack.c.l.s8.bf16 %v2173_v22  ;;  %v3402_v62 = vunpack.c.h.s8.bf16 %v2190_v14  ;;  %v1794_v21 = vpack.c.bf16 %v606_v61, %v606_v61 }
 0x1c1   : > { %10811 = vmatpush3.bf16.msra.mxu1 %v3369_v63  ;;  %v10498_v19 = vpop.f32.mrf.mxu0  ;;  %10790 = vmatprep.subr.bf16.mxu0 %v3360_v18  ;;  %v3393_v63 = vunpack.c.l.s8.bf16 %v2186_v51  ;;  %v2193_v18 = vld [vmem:[%s13677_s8 + $0x5f0] sm:$0xff]  ;;  %v3401_v6 = vunpack.c.l.s8.bf16 %v2190_v14  ;;  %v3392_v25 = vunpack.c.h.s8.bf16 %v2185_v2  ;;  %v2179_v51 = vld [vmem:[%s13677_s8 + $0x580] sm:$0xff]  ;;  %v3403_v13 = vunpack.c.l.s8.bf16 %v2191_v45  ;;  %v2202_v14 = vld [vmem:[%s13677_s8 + $0x638] sm:$0xff] }
 0x1c2   : > { %v10520_v30 = vpop.f32.mrf.mxu1  ;;  %10812 = vmatprep.subr.bf16.mxu1 %v3376_v20  ;;  %v14033_v33 = vadd.f32 %v10518_v23, %v5351_v27  ;;  %v1792_v20 = vpack.c.bf16 %v605_v60, %v605_v60  ;;  %v3408_v27 = vunpack.c.h.s8.bf16 %v2193_v18  ;;  %v3407_v44 = vunpack.c.l.s8.bf16 %v2193_v18  ;;  %v2210_v60 = vld [vmem:[%s13677_s8 + $0x678] sm:$0xff] }
 0x1c3   : > { %v14081_v61 = vrot.slane %v287_v7, %v13706_v38 }
 0x1c4   : > { %10791 = vmatpush3.bf16.msra.mxu0 %v3352_v28  ;;  %v2181_v28 = vld [vmem:[%s13677_s8 + $0x590] sm:$0xff] }
 0x1c5   : > { %10813 = vmatpush3.bf16.msra.mxu1 %v3368_v29  ;;  %10792 = vmatprep.subr.bf16.mxu0 %v3359_v31  ;;  %v2189_v29 = vld [vmem:[%s13677_s8 + $0x5d0] sm:$0xff]  ;;  %v3384_v37 = vunpack.c.h.s8.bf16 %v2181_v28  ;;  %v622_v18 = vcombine.high %v14081_v61, %v14081_v61 }
 0x1c6   : > { %10814 = vmatprep.subr.bf16.mxu1 %v3375_v32 }
 0x1c8   : > { %10793 = vmatpush3.bf16.msra.mxu0 %v3351_v39  ;;  %v3400_v39 = vunpack.c.h.s8.bf16 %v2189_v29 }
 0x1c9   : > { %10815 = vmatpush3.bf16.msra.mxu1 %v3367_v26  ;;  %10794 = vmatprep.subr.bf16.mxu0 %v3358_v42 }
 0x1ca   : > { %10816 = vmatprep.subr.bf16.mxu1 %v3374_v43  ;;  %v3391_v43 = vunpack.c.l.s8.bf16 %v2185_v2  ;;  %v2206_v2 = vld [vmem:[%s13677_s8 + $0x658] sm:$0xff] }
 0x1cc   : > { %10795 = vmatpush3.bf16.msra.mxu0 %v3350_v52  ;;  %v2184_v52 = vld [vmem:[%s13677_s8 + $0x5a8] sm:$0xff] }
 0x1cd   : > { %10817 = vmatpush3.bf16.msra.mxu1 %v3366_v53  ;;  %10796 = vmatprep.subr.bf16.mxu0 %v3357_v54  ;;  %v2192_v53 = vld [vmem:[%s13677_s8 + $0x5e8] sm:$0xff]  ;;  %v3383_v54 = vunpack.c.l.s8.bf16 %v2181_v28 }
 0x1ce   : > { %10818 = vmatprep.subr.bf16.mxu1 %v3373_v57  ;;  %v3390_v57 = vunpack.c.h.s8.bf16 %v2184_v52  ;;  %v3406_v58 = vunpack.c.h.s8.bf16 %v2192_v53 }
 0x1d0   : > { %10797 = vmatpush3.bf16.msra.mxu0 %v3349_v3  ;;  %v3382_v3 = vunpack.c.h.s8.bf16 %v2180_v59 }
 0x1d1   : > { %10819 = vmatpush3.bf16.msra.mxu1 %v3365_v4  ;;  %10798 = vmatprep.subr.bf16.mxu0 %v3356_v40  ;;  %v3398_v4 = vunpack.c.h.s8.bf16 %v2188_v0  ;;  %v3389_v40 = vunpack.c.l.s8.bf16 %v2184_v52 }
 0x1d2   : > { %10820 = vmatprep.subr.bf16.mxu1 %v3372_v41  ;;  %v3405_v41 = vunpack.c.l.s8.bf16 %v2192_v53 }
 0x1d4   : > { %10799 = vmatpush3.bf16.msra.mxu0 %v3348_v8  ;;  %v3381_v8 = vunpack.c.l.s8.bf16 %v2180_v59 }
 0x1d5   : > { %10821 = vmatpush3.bf16.msra.mxu1 %v3364_v34  ;;  %10800 = vmatprep.subr.bf16.mxu0 %v3355_v35  ;;  %v3397_v34 = vunpack.c.l.s8.bf16 %v2188_v0  ;;  %v3388_v35 = vunpack.c.h.s8.bf16 %v2183_v5 }
 0x1d6   : > { %10822 = vmatprep.subr.bf16.mxu1 %v3371_v50  ;;  %v3404_v50 = vunpack.c.h.s8.bf16 %v2191_v45  ;;  %v2196_v45 = vld [vmem:[%s13677_s8 + $0x608] sm:$0xff] }
 0x1d8   : > { %10801 = vmatpush3.bf16.msra.mxu0 %v3347_v56  ;;  %v607_v56 = vcombine.high %v287_v7, %v287_v7  ;;  %v2204_v7 = vld [vmem:[%s13677_s8 + $0x648] sm:$0xff] }
 0x1d9   : > { %10823 = vmatpush3.bf16.msra.mxu1 %v3363_v12  ;;  %10830 = vmatprep.subr.bf16.mxu0 %v3394_v47  ;;  %v3380_v12 = vunpack.c.h.s8.bf16 %v2179_v51  ;;  %v3396_v47 = vunpack.c.h.s8.bf16 %v2187_v9 }
 0x1da   : > { %10852 = vmatprep.subr.bf16.mxu1 %v3410_v48  ;;  %v3387_v48 = vunpack.c.l.s8.bf16 %v2183_v5 }
 0x1db   : > { %v10538_v22 = vpop.f32.mrf.mxu0  ;;  %5909 = vmatmul.mubr.bf16.vlgmr.msra.gmra.mxu0 %v1787_v15  ;;  %v14084_v15 = vrot.slane %v607_v56, %v13706_v38  ;;  %v288_v56 = vld [vmem:[%s13670_s10 + $0x68] sm:$0xff] }
 0x1dc   : > { %v10560_v11 = vpop.f32.mrf.mxu1  ;;  %5949 = vmatmul.mubr.bf16.vlgmr.msra.gmra.mxu1 %v1789_v16  ;;  %10831 = vmatpush3.bf16.msra.mxu0 %v3386_v17  ;;  %v3379_v16 = vunpack.c.l.s8.bf16 %v2179_v51  ;;  %v3395_v17 = vunpack.c.l.s8.bf16 %v2187_v9  ;;  %v2199_v51 = vld [vmem:[%s13677_s8 + $0x620] sm:$0xff] }
 0x1dd   : > { %10853 = vmatpush3.bf16.msra.mxu1 %v3402_v62  ;;  %v10539_v23 = vpop.f32.mrf.mxu0  ;;  %10832 = vmatprep.subr.bf16.mxu0 %v3393_v63  ;;  %v3426_v62 = vunpack.c.h.s8.bf16 %v2202_v14  ;;  %v3442_v63 = vunpack.c.h.s8.bf16 %v2210_v60  ;;  %v2207_v9 = vld [vmem:[%s13677_s8 + $0x660] sm:$0xff] }
 0x1de   : > { %v10561_v24 = vpop.f32.mrf.mxu1  ;;  %10854 = vmatprep.subr.bf16.mxu1 %v3409_v1  ;;  %v10540_v19 = vadd.f32 %v10539_v23, %v10538_v22  ;;  %5988 = vmatprep.mubr.bf16.mxu0 %v1792_v20  ;;  %v2198_v1 = vld [vmem:[%s13677_s8 + $0x618] sm:$0xff]  ;;  %v623_v20 = vcombine.high %v14084_v15, %v14084_v15  ;;  %v1793_v22 = vpack.c.bf16 %v14050_v55, %v14050_v55  ;;  %v3441_v23 = vunpack.c.l.s8.bf16 %v2210_v60  ;;  %v2203_v60 = vld [vmem:[%s13677_s8 + $0x640] sm:$0xff] }
 0x1df   : > { %v10562_v30 = vadd.f32 %v10561_v24, %v10560_v11  ;;  %6028 = vmatprep.mubr.bf16.mxu1 %v1794_v21  ;;  %v10541_v31 = vpop.f32.mrf.mxu0  ;;  %v1791_v21 = vpack.c.bf16 %v14047_v10, %v14047_v10  ;;  %v3418_v11 = vunpack.c.h.s8.bf16 %v2198_v1  ;;  %v2201_v24 = vld [vmem:[%s13677_s8 + $0x630] sm:$0xff]  ;;  %v3417_v10 = vunpack.c.l.s8.bf16 %v2198_v1 }
 0x1e0   : > { %v10563_v32 = vpop.f32.mrf.mxu1  ;;  %v5431_v36 = vadd.f32 %v10540_v19, %v14033_v33  ;;  %10833 = vmatpush3.bf16.msra.mxu0 %v3385_v46  ;;  %v3399_v33 = vunpack.c.l.s8.bf16 %v2189_v29  ;;  %v3434_v46 = vunpack.c.h.s8.bf16 %v2206_v2  ;;  %v1798_v28 = vpack.c.bf16 %v623_v20, %v623_v20 }
 0x1e1   : > { %10855 = vmatpush3.bf16.msra.mxu1 %v3401_v6  ;;  %v10542_v26 = vpop.f32.mrf.mxu0  ;;  %10834 = vmatprep.subr.bf16.mxu0 %v3392_v25  ;;  %v3425_v6 = vunpack.c.l.s8.bf16 %v2202_v14  ;;  %v2209_v25 = vld [vmem:[%s13677_s8 + $0x670] sm:$0xff]  ;;  %v3433_v55 = vunpack.c.l.s8.bf16 %v2206_v2  ;;  %v3424_v32 = vunpack.c.h.s8.bf16 %v2201_v24  ;;  %v2195_v14 = vld [vmem:[%s13677_s8 + $0x600] sm:$0xff]  ;;  %v3435_v1 = vunpack.c.l.s8.bf16 %v2207_v9  ;;  %v2218_v2 = vld [vmem:[%s13677_s8 + $0x6b8] sm:$0xff] }
 0x1e2   : > { %v10564_v42 = vpop.f32.mrf.mxu1  ;;  %10856 = vmatprep.subr.bf16.mxu1 %v3408_v27  ;;  %v14067_v49 = vadd.f32 %v10562_v30, %v5431_v36  ;;  %v1796_v27 = vpack.c.bf16 %v622_v18, %v622_v18  ;;  %v3440_v36 = vunpack.c.h.s8.bf16 %v2209_v25  ;;  %v3439_v59 = vunpack.c.l.s8.bf16 %v2209_v25  ;;  %v2226_v18 = vld [vmem:[%s13677_s8 + $0x6f8] sm:$0xff] }
 0x1e3   : > { %v14115_v20 = vrot.slane %v288_v56, %v13706_v38 }
 0x1e4   : > { %10835 = vmatpush3.bf16.msra.mxu0 %v3384_v37  ;;  %v2197_v37 = vld [vmem:[%s13677_s8 + $0x610] sm:$0xff] }
 0x1e5   : > { %10857 = vmatpush3.bf16.msra.mxu1 %v3400_v39  ;;  %10836 = vmatprep.subr.bf16.mxu0 %v3391_v43  ;;  %v2205_v39 = vld [vmem:[%s13677_s8 + $0x650] sm:$0xff]  ;;  %v3416_v53 = vunpack.c.h.s8.bf16 %v2197_v37  ;;  %v639_v25 = vcombine.high %v14115_v20, %v14115_v20 }
 0x1e6   : > { %10858 = vmatprep.subr.bf16.mxu1 %v3407_v44 }
 0x1e8   : > { %10837 = vmatpush3.bf16.msra.mxu0 %v3383_v54  ;;  %v3432_v54 = vunpack.c.h.s8.bf16 %v2205_v39 }
 0x1e9   : > { %10859 = vmatpush3.bf16.msra.mxu1 %v3399_v33  ;;  %10838 = vmatprep.subr.bf16.mxu0 %v3390_v57 }
 0x1ea   : > { %10860 = vmatprep.subr.bf16.mxu1 %v3406_v58  ;;  %v3423_v58 = vunpack.c.l.s8.bf16 %v2201_v24  ;;  %v2222_v24 = vld [vmem:[%s13677_s8 + $0x6d8] sm:$0xff] }
 0x1ec   : > { %10839 = vmatpush3.bf16.msra.mxu0 %v3382_v3  ;;  %v2200_v3 = vld [vmem:[%s13677_s8 + $0x628] sm:$0xff] }
 0x1ed   : > { %10861 = vmatpush3.bf16.msra.mxu1 %v3398_v4  ;;  %10840 = vmatprep.subr.bf16.mxu0 %v3389_v40  ;;  %v2208_v4 = vld [vmem:[%s13677_s8 + $0x668] sm:$0xff]  ;;  %v3415_v40 = vunpack.c.l.s8.bf16 %v2197_v37 }
 0x1ee   : > { %10862 = vmatprep.subr.bf16.mxu1 %v3405_v41  ;;  %v3422_v41 = vunpack.c.h.s8.bf16 %v2200_v3  ;;  %v3438_v5 = vunpack.c.h.s8.bf16 %v2208_v4 }
 0x1f0   : > { %10841 = vmatpush3.bf16.msra.mxu0 %v3381_v8  ;;  %v3414_v8 = vunpack.c.h.s8.bf16 %v2196_v45 }
 0x1f1   : > { %10863 = vmatpush3.bf16.msra.mxu1 %v3397_v34  ;;  %10842 = vmatprep.subr.bf16.mxu0 %v3388_v35  ;;  %v3430_v34 = vunpack.c.h.s8.bf16 %v2204_v7  ;;  %v3421_v35 = vunpack.c.l.s8.bf16 %v2200_v3 }
 0x1f2   : > { %10864 = vmatprep.subr.bf16.mxu1 %v3404_v50  ;;  %v3437_v50 = vunpack.c.l.s8.bf16 %v2208_v4 }
 0x1f4   : > { %10843 = vmatpush3.bf16.msra.mxu0 %v3380_v12  ;;  %v3413_v12 = vunpack.c.l.s8.bf16 %v2196_v45 }
 0x1f5   : > { %10865 = vmatpush3.bf16.msra.mxu1 %v3396_v47  ;;  %10844 = vmatprep.subr.bf16.mxu0 %v3387_v48  ;;  %v3429_v47 = vunpack.c.l.s8.bf16 %v2204_v7  ;;  %v3420_v48 = vunpack.c.h.s8.bf16 %v2199_v51 }
 0x1f6   : > { %10866 = vmatprep.subr.bf16.mxu1 %v3403_v13  ;;  %v3436_v13 = vunpack.c.h.s8.bf16 %v2207_v9  ;;  %v2212_v9 = vld [vmem:[%s13677_s8 + $0x688] sm:$0xff] }
 0x1f8   : > { %10845 = vmatpush3.bf16.msra.mxu0 %v3379_v16  ;;  %v624_v16 = vcombine.high %v288_v56, %v288_v56  ;;  %v2220_v56 = vld [vmem:[%s13677_s8 + $0x6c8] sm:$0xff] }
 0x1f9   : > { %10867 = vmatpush3.bf16.msra.mxu1 %v3395_v17  ;;  %10874 = vmatprep.subr.bf16.mxu0 %v3426_v62  ;;  %v3412_v17 = vunpack.c.h.s8.bf16 %v2195_v14  ;;  %v3428_v62 = vunpack.c.h.s8.bf16 %v2203_v60 }
 0x1fa   : > { %10896 = vmatprep.subr.bf16.mxu1 %v3442_v63  ;;  %v3419_v63 = vunpack.c.l.s8.bf16 %v2199_v51 }
 0x1fb   : > { %v10582_v29 = vpop.f32.mrf.mxu0  ;;  %5989 = vmatmul.mubr.bf16.vlgmr.msra.gmra.mxu0 %v1791_v21  ;;  %v14118_v21 = vrot.slane %v624_v16, %v13706_v38  ;;  %v289_v16 = vld [vmem:[%s13670_s10 + $0x70] sm:$0xff] }
 0x1fc   : > { %v10604_v19 = vpop.f32.mrf.mxu1  ;;  %6029 = vmatmul.mubr.bf16.vlgmr.msra.gmra.mxu1 %v1793_v22  ;;  %10875 = vmatpush3.bf16.msra.mxu0 %v3418_v11  ;;  %v3411_v22 = vunpack.c.l.s8.bf16 %v2195_v14  ;;  %v3427_v11 = vunpack.c.l.s8.bf16 %v2203_v60  ;;  %v2215_v14 = vld [vmem:[%s13677_s8 + $0x6a0] sm:$0xff] }
 0x1fd   : > { %10897 = vmatpush3.bf16.msra.mxu1 %v3434_v46  ;;  %v10583_v30 = vpop.f32.mrf.mxu0  ;;  %10876 = vmatprep.subr.bf16.mxu0 %v3425_v6  ;;  %v3458_v46 = vunpack.c.h.s8.bf16 %v2218_v2  ;;  %v3474_v6 = vunpack.c.h.s8.bf16 %v2226_v18  ;;  %v2223_v60 = vld [vmem:[%s13677_s8 + $0x6e0] sm:$0xff] }
 0x1fe   : > { %v10605_v31 = vpop.f32.mrf.mxu1  ;;  %10898 = vmatprep.subr.bf16.mxu1 %v3441_v23  ;;  %v10584_v26 = vadd.f32 %v10583_v30, %v10582_v29  ;;  %6068 = vmatprep.mubr.bf16.mxu0 %v1796_v27  ;;  %v2214_v23 = vld [vmem:[%s13677_s8 + $0x698] sm:$0xff]  ;;  %v640_v27 = vcombine.high %v14118_v21, %v14118_v21  ;;  %v1797_v29 = vpack.c.bf16 %v14084_v15, %v14084_v15  ;;  %v3473_v30 = vunpack.c.l.s8.bf16 %v2226_v18  ;;  %v2219_v18 = vld [vmem:[%s13677_s8 + $0x6c0] sm:$0xff] }
 0x1ff   : > { %v10606_v42 = vadd.f32 %v10605_v31, %v10604_v19  ;;  %6108 = vmatprep.mubr.bf16.mxu1 %v1798_v28  ;;  %v10585_v43 = vpop.f32.mrf.mxu0  ;;  %v1795_v28 = vpack.c.bf16 %v14081_v61, %v14081_v61  ;;  %v3450_v19 = vunpack.c.h.s8.bf16 %v2214_v23  ;;  %v2217_v31 = vld [vmem:[%s13677_s8 + $0x6b0] sm:$0xff]  ;;  %v3449_v61 = vunpack.c.l.s8.bf16 %v2214_v23 }
 0x200   : > { %v10607_v44 = vpop.f32.mrf.mxu1  ;;  %v5511_v52 = vadd.f32 %v10584_v26, %v14067_v49  ;;  %10877 = vmatpush3.bf16.msra.mxu0 %v3417_v10  ;;  %v3431_v49 = vunpack.c.l.s8.bf16 %v2205_v39  ;;  %v3466_v10 = vunpack.c.h.s8.bf16 %v2222_v24  ;;  %v1802_v37 = vpack.c.bf16 %v640_v27, %v640_v27 }
 0x201   : > { %10899 = vmatpush3.bf16.msra.mxu1 %v3433_v55  ;;  %v10586_v33 = vpop.f32.mrf.mxu0  ;;  %10878 = vmatprep.subr.bf16.mxu0 %v3424_v32  ;;  %v3457_v55 = vunpack.c.l.s8.bf16 %v2218_v2  ;;  %v2225_v32 = vld [vmem:[%s13677_s8 + $0x6f0] sm:$0xff]  ;;  %v3465_v15 = vunpack.c.l.s8.bf16 %v2222_v24  ;;  %v3456_v44 = vunpack.c.h.s8.bf16 %v2217_v31  ;;  %v2211_v2 = vld [vmem:[%s13677_s8 + $0x680] sm:$0xff]  ;;  %v3467_v23 = vunpack.c.l.s8.bf16 %v2223_v60  ;;  %v2234_v24 = vld [vmem:[%s13677_s8 + $0x738] sm:$0xff] }
 0x202   : > { %v10608_v57 = vpop.f32.mrf.mxu1  ;;  %10900 = vmatprep.subr.bf16.mxu1 %v3440_v36  ;;  %v14101_v0 = vadd.f32 %v10606_v42, %v5511_v52  ;;  %v1800_v36 = vpack.c.bf16 %v639_v25, %v639_v25  ;;  %v3472_v52 = vunpack.c.h.s8.bf16 %v2225_v32  ;;  %v3471_v45 = vunpack.c.l.s8.bf16 %v2225_v32  ;;  %v2242_v25 = vld [vmem:[%s13677_s8 + $0x778] sm:$0xff] }
 0x203   : > { %v14149_v27 = vrot.slane %v289_v16, %v13706_v38 }
 0x204   : > { %10879 = vmatpush3.bf16.msra.mxu0 %v3416_v53  ;;  %v2213_v53 = vld [vmem:[%s13677_s8 + $0x690] sm:$0xff] }
 0x205   : > { %10901 = vmatpush3.bf16.msra.mxu1 %v3432_v54  ;;  %10880 = vmatprep.subr.bf16.mxu0 %v3423_v58  ;;  %v2221_v54 = vld [vmem:[%s13677_s8 + $0x6d0] sm:$0xff]  ;;  %v3448_v4 = vunpack.c.h.s8.bf16 %v2213_v53  ;;  %v656_v32 = vcombine.high %v14149_v27, %v14149_v27 }
 0x206   : > { %10902 = vmatprep.subr.bf16.mxu1 %v3439_v59 }
 0x208   : > { %10881 = vmatpush3.bf16.msra.mxu0 %v3415_v40  ;;  %v3464_v40 = vunpack.c.h.s8.bf16 %v2221_v54 }
 0x209   : > { %10903 = vmatpush3.bf16.msra.mxu1 %v3431_v49  ;;  %10882 = vmatprep.subr.bf16.mxu0 %v3422_v41 }
 0x20a   : > { %10904 = vmatprep.subr.bf16.mxu1 %v3438_v5  ;;  %v3455_v5 = vunpack.c.l.s8.bf16 %v2217_v31  ;;  %v2238_v31 = vld [vmem:[%s13677_s8 + $0x758] sm:$0xff] }
 0x20c   : > { %10883 = vmatpush3.bf16.msra.mxu0 %v3414_v8  ;;  %v2216_v8 = vld [vmem:[%s13677_s8 + $0x6a8] sm:$0xff] }
 0x20d   : > { %10905 = vmatpush3.bf16.msra.mxu1 %v3430_v34  ;;  %10884 = vmatprep.subr.bf16.mxu0 %v3421_v35  ;;  %v2224_v34 = vld [vmem:[%s13677_s8 + $0x6e8] sm:$0xff]  ;;  %v3447_v35 = vunpack.c.l.s8.bf16 %v2213_v53 }
 0x20e   : > { %10906 = vmatprep.subr.bf16.mxu1 %v3437_v50  ;;  %v3454_v50 = vunpack.c.h.s8.bf16 %v2216_v8  ;;  %v3470_v51 = vunpack.c.h.s8.bf16 %v2224_v34 }
 0x210   : > { %10885 = vmatpush3.bf16.msra.mxu0 %v3413_v12  ;;  %v3446_v12 = vunpack.c.h.s8.bf16 %v2212_v9 }
 0x211   : > { %10907 = vmatpush3.bf16.msra.mxu1 %v3429_v47  ;;  %10886 = vmatprep.subr.bf16.mxu0 %v3420_v48  ;;  %v3462_v47 = vunpack.c.h.s8.bf16 %v2220_v56  ;;  %v3453_v48 = vunpack.c.l.s8.bf16 %v2216_v8 }
 0x212   : > { %10908 = vmatprep.subr.bf16.mxu1 %v3436_v13  ;;  %v3469_v13 = vunpack.c.l.s8.bf16 %v2224_v34 }
 0x214   : > { %10887 = vmatpush3.bf16.msra.mxu0 %v3412_v17  ;;  %v3445_v17 = vunpack.c.l.s8.bf16 %v2212_v9 }
 0x215   : > { %10909 = vmatpush3.bf16.msra.mxu1 %v3428_v62  ;;  %10888 = vmatprep.subr.bf16.mxu0 %v3419_v63  ;;  %v3461_v62 = vunpack.c.l.s8.bf16 %v2220_v56  ;;  %v3452_v63 = vunpack.c.h.s8.bf16 %v2215_v14 }
 0x216   : > { %10910 = vmatprep.subr.bf16.mxu1 %v3435_v1  ;;  %v3468_v1 = vunpack.c.h.s8.bf16 %v2223_v60  ;;  %v2228_v60 = vld [vmem:[%s13677_s8 + $0x708] sm:$0xff] }
 0x218   : > { %10889 = vmatpush3.bf16.msra.mxu0 %v3411_v22  ;;  %v641_v22 = vcombine.high %v289_v16, %v289_v16  ;;  %v2236_v16 = vld [vmem:[%s13677_s8 + $0x748] sm:$0xff] }
 0x219   : > { %10911 = vmatpush3.bf16.msra.mxu1 %v3427_v11  ;;  %10918 = vmatprep.subr.bf16.mxu0 %v3458_v46  ;;  %v3444_v11 = vunpack.c.h.s8.bf16 %v2211_v2  ;;  %v3460_v46 = vunpack.c.h.s8.bf16 %v2219_v18 }
 0x21a   : > { %10940 = vmatprep.subr.bf16.mxu1 %v3474_v6  ;;  %v3451_v6 = vunpack.c.l.s8.bf16 %v2215_v14 }
 0x21b   : > { %v10626_v39 = vpop.f32.mrf.mxu0  ;;  %6069 = vmatmul.mubr.bf16.vlgmr.msra.gmra.mxu0 %v1795_v28  ;;  %v14152_v28 = vrot.slane %v641_v22, %v13706_v38  ;;  %v290_v22 = vld [vmem:[%s13670_s10 + $0x78] sm:$0xff] }
 0x21c   : > { %v10648_v26 = vpop.f32.mrf.mxu1  ;;  %6109 = vmatmul.mubr.bf16.vlgmr.msra.gmra.mxu1 %v1797_v29  ;;  %10919 = vmatpush3.bf16.msra.mxu0 %v3450_v19  ;;  %v3443_v29 = vunpack.c.l.s8.bf16 %v2211_v2  ;;  %v3459_v19 = vunpack.c.l.s8.bf16 %v2219_v18  ;;  %v2231_v2 = vld [vmem:[%s13677_s8 + $0x720] sm:$0xff] }
 0x21d   : > { %10941 = vmatpush3.bf16.msra.mxu1 %v3466_v10  ;;  %v10627_v42 = vpop.f32.mrf.mxu0  ;;  %10920 = vmatprep.subr.bf16.mxu0 %v3457_v55  ;;  %v3490_v10 = vunpack.c.h.s8.bf16 %v2234_v24  ;;  %v3506_v55 = vunpack.c.h.s8.bf16 %v2242_v25  ;;  %v2239_v18 = vld [vmem:[%s13677_s8 + $0x760] sm:$0xff] }
 0x21e   : > { %v10649_v43 = vpop.f32.mrf.mxu1  ;;  %10942 = vmatprep.subr.bf16.mxu1 %v3473_v30  ;;  %v10628_v33 = vadd.f32 %v10627_v42, %v10626_v39  ;;  %6148 = vmatprep.mubr.bf16.mxu0 %v1800_v36  ;;  %v2230_v30 = vld [vmem:[%s13677_s8 + $0x718] sm:$0xff]  ;;  %v657_v36 = vcombine.high %v14152_v28, %v14152_v28  ;;  %v1801_v39 = vpack.c.bf16 %v14118_v21, %v14118_v21  ;;  %v3505_v42 = vunpack.c.l.s8.bf16 %v2242_v25  ;;  %v2235_v25 = vld [vmem:[%s13677_s8 + $0x740] sm:$0xff] }
 0x21f   : > { %v10650_v57 = vadd.f32 %v10649_v43, %v10648_v26  ;;  %6188 = vmatprep.mubr.bf16.mxu1 %v1802_v37  ;;  %v10629_v58 = vpop.f32.mrf.mxu0  ;;  %v1799_v37 = vpack.c.bf16 %v14115_v20, %v14115_v20  ;;  %v3482_v26 = vunpack.c.h.s8.bf16 %v2230_v30  ;;  %v2233_v43 = vld [vmem:[%s13677_s8 + $0x730] sm:$0xff]  ;;  %v3481_v20 = vunpack.c.l.s8.bf16 %v2230_v30 }
 0x220   : > { %v10651_v59 = vpop.f32.mrf.mxu1  ;;  %v5591_v3 = vadd.f32 %v10628_v33, %v14101_v0  ;;  %10921 = vmatpush3.bf16.msra.mxu0 %v3449_v61  ;;  %v3463_v0 = vunpack.c.l.s8.bf16 %v2221_v54  ;;  %v3498_v61 = vunpack.c.h.s8.bf16 %v2238_v31  ;;  %v1806_v53 = vpack.c.bf16 %v657_v36, %v657_v36 }
 0x221   : > { %10943 = vmatpush3.bf16.msra.mxu1 %v3465_v15  ;;  %v10630_v49 = vpop.f32.mrf.mxu0  ;;  %10922 = vmatprep.subr.bf16.mxu0 %v3456_v44  ;;  %v3489_v15 = vunpack.c.l.s8.bf16 %v2234_v24  ;;  %v2241_v44 = vld [vmem:[%s13677_s8 + $0x770] sm:$0xff]  ;;  %v3497_v21 = vunpack.c.l.s8.bf16 %v2238_v31  ;;  %v3488_v59 = vunpack.c.h.s8.bf16 %v2233_v43  ;;  %v2227_v24 = vld [vmem:[%s13677_s8 + $0x700] sm:$0xff]  ;;  %v3499_v30 = vunpack.c.l.s8.bf16 %v2239_v18  ;;  %v2250_v31 = vld [vmem:[%s13677_s8 + $0x7b8] sm:$0xff] }
 0x222   : > { %v10652_v41 = vpop.f32.mrf.mxu1  ;;  %10944 = vmatprep.subr.bf16.mxu1 %v3472_v52  ;;  %v14135_v7 = vadd.f32 %v10650_v57, %v5591_v3  ;;  %v1804_v52 = vpack.c.bf16 %v656_v32, %v656_v32  ;;  %v3504_v3 = vunpack.c.h.s8.bf16 %v2241_v44  ;;  %v3503_v9 = vunpack.c.l.s8.bf16 %v2241_v44  ;;  %v2258_v32 = vld [vmem:[%s13677_s8 + $0x7f8] sm:$0xff] }
 0x223   : > { %v14183_v36 = vrot.slane %v290_v22, %v13706_v38 }
 0x224   : > { %10923 = vmatpush3.bf16.msra.mxu0 %v3448_v4  ;;  %v2229_v4 = vld [vmem:[%s13677_s8 + $0x710] sm:$0xff] }
 0x225   : > { %10945 = vmatpush3.bf16.msra.mxu1 %v3464_v40  ;;  %10924 = vmatprep.subr.bf16.mxu0 %v3455_v5  ;;  %v2237_v40 = vld [vmem:[%s13677_s8 + $0x750] sm:$0xff]  ;;  %v3480_v34 = vunpack.c.h.s8.bf16 %v2229_v4  ;;  %v673_v44 = vcombine.high %v14183_v36, %v14183_v36 }
 0x226   : > { %10946 = vmatprep.subr.bf16.mxu1 %v3471_v45 }
 0x228   : > { %10925 = vmatpush3.bf16.msra.mxu0 %v3447_v35  ;;  %v3496_v35 = vunpack.c.h.s8.bf16 %v2237_v40 }
 0x229   : > { %10947 = vmatpush3.bf16.msra.mxu1 %v3463_v0  ;;  %10926 = vmatprep.subr.bf16.mxu0 %v3454_v50 }
 0x22a   : > { %10948 = vmatprep.subr.bf16.mxu1 %v3470_v51  ;;  %v3487_v51 = vunpack.c.l.s8.bf16 %v2233_v43  ;;  %v2254_v43 = vld [vmem:[%s13677_s8 + $0x7d8] sm:$0xff] }
 0x22c   : > { %10927 = vmatpush3.bf16.msra.mxu0 %v3446_v12  ;;  %v2232_v12 = vld [vmem:[%s13677_s8 + $0x728] sm:$0xff] }
 0x22d   : > { %10949 = vmatpush3.bf16.msra.mxu1 %v3462_v47  ;;  %10928 = vmatprep.subr.bf16.mxu0 %v3453_v48  ;;  %v2240_v47 = vld [vmem:[%s13677_s8 + $0x768] sm:$0xff]  ;;  %v3479_v48 = vunpack.c.l.s8.bf16 %v2229_v4 }
 0x22e   : > { %10950 = vmatprep.subr.bf16.mxu1 %v3469_v13  ;;  %v3486_v13 = vunpack.c.h.s8.bf16 %v2232_v12  ;;  %v3502_v14 = vunpack.c.h.s8.bf16 %v2240_v47 }
 0x230   : > { %10929 = vmatpush3.bf16.msra.mxu0 %v3445_v17  ;;  %v3478_v17 = vunpack.c.h.s8.bf16 %v2228_v60 }
 0x231   : > { %10951 = vmatpush3.bf16.msra.mxu1 %v3461_v62  ;;  %10930 = vmatprep.subr.bf16.mxu0 %v3452_v63  ;;  %v3494_v62 = vunpack.c.h.s8.bf16 %v2236_v16  ;;  %v3485_v63 = vunpack.c.l.s8.bf16 %v2232_v12 }
 0x232   : > { %10952 = vmatprep.subr.bf16.mxu1 %v3468_v1  ;;  %v3501_v1 = vunpack.c.l.s8.bf16 %v2240_v47 }
 0x234   : > { %10931 = vmatpush3.bf16.msra.mxu0 %v3444_v11  ;;  %v3477_v11 = vunpack.c.l.s8.bf16 %v2228_v60 }
 0x235   : > { %10953 = vmatpush3.bf16.msra.mxu1 %v3460_v46  ;;  %10932 = vmatprep.subr.bf16.mxu0 %v3451_v6  ;;  %v3493_v46 = vunpack.c.l.s8.bf16 %v2236_v16  ;;  %v3484_v6 = vunpack.c.h.s8.bf16 %v2231_v2 }
 0x236   : > { %10954 = vmatprep.subr.bf16.mxu1 %v3467_v23  ;;  %v3500_v23 = vunpack.c.h.s8.bf16 %v2239_v18  ;;  %v2244_v18 = vld [vmem:[%s13677_s8 + $0x788] sm:$0xff] }
 0x238   : > { %10933 = vmatpush3.bf16.msra.mxu0 %v3443_v29  ;;  %v658_v29 = vcombine.high %v290_v22, %v290_v22  ;;  %v2252_v22 = vld [vmem:[%s13677_s8 + $0x7c8] sm:$0xff] }
 0x239   : > { %10955 = vmatpush3.bf16.msra.mxu1 %v3459_v19  ;;  %10962 = vmatprep.subr.bf16.mxu0 %v3490_v10  ;;  %v3476_v19 = vunpack.c.h.s8.bf16 %v2227_v24  ;;  %v3492_v10 = vunpack.c.h.s8.bf16 %v2235_v25 }
 0x23a   : > { %10984 = vmatprep.subr.bf16.mxu1 %v3506_v55  ;;  %v3483_v55 = vunpack.c.l.s8.bf16 %v2231_v2 }
 0x23b   : > { %v10670_v54 = vpop.f32.mrf.mxu0  ;;  %6149 = vmatmul.mubr.bf16.vlgmr.msra.gmra.mxu0 %v1799_v37  ;;  %v14186_v37 = vrot.slane %v658_v29, %v13706_v38  ;;  %v291_v29 = vld [vmem:[%s13670_s10 + $0x80] sm:$0xff] }
 0x23c   : > { %v10692_v33 = vpop.f32.mrf.mxu1  ;;  %6189 = vmatmul.mubr.bf16.vlgmr.msra.gmra.mxu1 %v1801_v39  ;;  %10963 = vmatpush3.bf16.msra.mxu0 %v3482_v26  ;;  %v3475_v39 = vunpack.c.l.s8.bf16 %v2227_v24  ;;  %v3491_v26 = vunpack.c.l.s8.bf16 %v2235_v25  ;;  %v2247_v24 = vld [vmem:[%s13677_s8 + $0x7a0] sm:$0xff] }
 0x23d   : > { %10985 = vmatpush3.bf16.msra.mxu1 %v3498_v61  ;;  %v10671_v57 = vpop.f32.mrf.mxu0  ;;  %10964 = vmatprep.subr.bf16.mxu0 %v3489_v15  ;;  %v3522_v61 = vunpack.c.h.s8.bf16 %v2250_v31  ;;  %v3538_v15 = vunpack.c.h.s8.bf16 %v2258_v32  ;;  %v2255_v25 = vld [vmem:[%s13677_s8 + $0x7e0] sm:$0xff] }
 0x23e   : > { %v10693_v58 = vpop.f32.mrf.mxu1  ;;  %10986 = vmatprep.subr.bf16.mxu1 %v3505_v42  ;;  %v10672_v49 = vadd.f32 %v10671_v57, %v10670_v54  ;;  %6228 = vmatprep.mubr.bf16.mxu0 %v1804_v52  ;;  %v2246_v42 = vld [vmem:[%s13677_s8 + $0x798] sm:$0xff]  ;;  %v674_v52 = vcombine.high %v14186_v37, %v14186_v37  ;;  %v1805_v54 = vpack.c.bf16 %v14152_v28, %v14152_v28  ;;  %v3537_v57 = vunpack.c.l.s8.bf16 %v2258_v32  ;;  %v2251_v32 = vld [vmem:[%s13677_s8 + $0x7c0] sm:$0xff] }
 0x23f   : > { %v10694_v41 = vadd.f32 %v10693_v58, %v10692_v33  ;;  %6268 = vmatprep.mubr.bf16.mxu1 %v1806_v53  ;;  %v10673_v5 = vpop.f32.mrf.mxu0  ;;  %v1803_v53 = vpack.c.bf16 %v14149_v27, %v14149_v27  ;;  %v3514_v33 = vunpack.c.h.s8.bf16 %v2246_v42  ;;  %v2249_v58 = vld [vmem:[%s13677_s8 + $0x7b0] sm:$0xff]  ;;  %v3513_v27 = vunpack.c.l.s8.bf16 %v2246_v42 }
 0x240   : > { %v10695_v45 = vpop.f32.mrf.mxu1  ;;  %v5671_v8 = vadd.f32 %v10672_v49, %v14135_v7  ;;  %10965 = vmatpush3.bf16.msra.mxu0 %v3481_v20  ;;  %v3495_v7 = vunpack.c.l.s8.bf16 %v2237_v40  ;;  %v3530_v20 = vunpack.c.h.s8.bf16 %v2254_v43  ;;  %v1810_v4 = vpack.c.bf16 %v674_v52, %v674_v52 }
 0x241   : > { %10987 = vmatpush3.bf16.msra.mxu1 %v3497_v21  ;;  %v10674_v0 = vpop.f32.mrf.mxu0  ;;  %10966 = vmatprep.subr.bf16.mxu0 %v3488_v59  ;;  %v3521_v21 = vunpack.c.l.s8.bf16 %v2250_v31  ;;  %v2257_v59 = vld [vmem:[%s13677_s8 + $0x7f0] sm:$0xff]  ;;  %v3529_v28 = vunpack.c.l.s8.bf16 %v2254_v43  ;;  %v3520_v45 = vunpack.c.h.s8.bf16 %v2249_v58  ;;  %v2243_v31 = vld [vmem:[%s13677_s8 + $0x780] sm:$0xff]  ;;  %v3531_v42 = vunpack.c.l.s8.bf16 %v2255_v25  ;;  %v2266_v43 = vld [vmem:[%s13677_s8 + $0x838] sm:$0xff] }
 0x242   : > { %v10696_v50 = vpop.f32.mrf.mxu1  ;;  %10988 = vmatprep.subr.bf16.mxu1 %v3504_v3  ;;  %v14169_v56 = vadd.f32 %v10694_v41, %v5671_v8  ;;  %v1808_v3 = vpack.c.bf16 %v673_v44, %v673_v44  ;;  %v3536_v8 = vunpack.c.h.s8.bf16 %v2257_v59  ;;  %v3535_v60 = vunpack.c.l.s8.bf16 %v2257_v59  ;;  %v2274_v44 = vld [vmem:[%s13677_s8 + $0x878] sm:$0xff] }
 0x243   : > { %v14217_v52 = vrot.slane %v291_v29, %v13706_v38 }
 0x244   : > { %10967 = vmatpush3.bf16.msra.mxu0 %v3480_v34  ;;  %v2245_v34 = vld [vmem:[%s13677_s8 + $0x790] sm:$0xff] }
 0x245   : > { %10989 = vmatpush3.bf16.msra.mxu1 %v3496_v35  ;;  %10968 = vmatprep.subr.bf16.mxu0 %v3487_v51  ;;  %v2253_v35 = vld [vmem:[%s13677_s8 + $0x7d0] sm:$0xff]  ;;  %v3512_v47 = vunpack.c.h.s8.bf16 %v2245_v34  ;;  %v690_v59 = vcombine.high %v14217_v52, %v14217_v52 }
 0x246   : > { %10990 = vmatprep.subr.bf16.mxu1 %v3503_v9 }
 0x248   : > { %10969 = vmatpush3.bf16.msra.mxu0 %v3479_v48  ;;  %v3528_v48 = vunpack.c.h.s8.bf16 %v2253_v35 }
 0x249   : > { %10991 = vmatpush3.bf16.msra.mxu1 %v3495_v7  ;;  %10970 = vmatprep.subr.bf16.mxu0 %v3486_v13 }
 0x24a   : > { %10992 = vmatprep.subr.bf16.mxu1 %v3502_v14  ;;  %v3519_v14 = vunpack.c.l.s8.bf16 %v2249_v58  ;;  %v2270_v58 = vld [vmem:[%s13677_s8 + $0x858] sm:$0xff] }
 0x24c   : > { %10971 = vmatpush3.bf16.msra.mxu0 %v3478_v17  ;;  %v2248_v17 = vld [vmem:[%s13677_s8 + $0x7a8] sm:$0xff] }
 0x24d   : > { %10993 = vmatpush3.bf16.msra.mxu1 %v3494_v62  ;;  %10972 = vmatprep.subr.bf16.mxu0 %v3485_v63  ;;  %v2256_v62 = vld [vmem:[%s13677_s8 + $0x7e8] sm:$0xff]  ;;  %v3511_v63 = vunpack.c.l.s8.bf16 %v2245_v34 }
 0x24e   : > { %10994 = vmatprep.subr.bf16.mxu1 %v3501_v1  ;;  %v3518_v1 = vunpack.c.h.s8.bf16 %v2248_v17  ;;  %v3534_v2 = vunpack.c.h.s8.bf16 %v2256_v62 }
 0x250   : > { %10973 = vmatpush3.bf16.msra.mxu0 %v3477_v11  ;;  %v3510_v11 = vunpack.c.h.s8.bf16 %v2244_v18 }
 0x251   : > { %10995 = vmatpush3.bf16.msra.mxu1 %v3493_v46  ;;  %10974 = vmatprep.subr.bf16.mxu0 %v3484_v6  ;;  %v3526_v46 = vunpack.c.h.s8.bf16 %v2252_v22  ;;  %v3517_v6 = vunpack.c.l.s8.bf16 %v2248_v17 }
 0x252   : > { %10996 = vmatprep.subr.bf16.mxu1 %v3500_v23  ;;  %v3533_v23 = vunpack.c.l.s8.bf16 %v2256_v62 }
 0x254   : > { %10975 = vmatpush3.bf16.msra.mxu0 %v3476_v19  ;;  %v3509_v19 = vunpack.c.l.s8.bf16 %v2244_v18 }
 0x255   : > { %10997 = vmatpush3.bf16.msra.mxu1 %v3492_v10  ;;  %10976 = vmatprep.subr.bf16.mxu0 %v3483_v55  ;;  %v3525_v10 = vunpack.c.l.s8.bf16 %v2252_v22  ;;  %v3516_v55 = vunpack.c.h.s8.bf16 %v2247_v24 }
 0x256   : > { %10998 = vmatprep.subr.bf16.mxu1 %v3499_v30  ;;  %v3532_v30 = vunpack.c.h.s8.bf16 %v2255_v25  ;;  %v2260_v25 = vld [vmem:[%s13677_s8 + $0x808] sm:$0xff] }
 0x258   : > { %10977 = vmatpush3.bf16.msra.mxu0 %v3475_v39  ;;  %v675_v39 = vcombine.high %v291_v29, %v291_v29  ;;  %v2268_v29 = vld [vmem:[%s13677_s8 + $0x848] sm:$0xff] }
 0x259   : > { %10999 = vmatpush3.bf16.msra.mxu1 %v3491_v26  ;;  %11006 = vmatprep.subr.bf16.mxu0 %v3522_v61  ;;  %v3508_v26 = vunpack.c.h.s8.bf16 %v2243_v31  ;;  %v3524_v61 = vunpack.c.h.s8.bf16 %v2251_v32 }
 0x25a   : > { %11028 = vmatprep.subr.bf16.mxu1 %v3538_v15  ;;  %v3515_v15 = vunpack.c.l.s8.bf16 %v2247_v24 }
 0x25b   : > { %v10714_v40 = vpop.f32.mrf.mxu0  ;;  %6229 = vmatmul.mubr.bf16.vlgmr.msra.gmra.mxu0 %v1803_v53  ;;  %v14220_v53 = vrot.slane %v675_v39, %v13706_v38  ;;  %v292_v39 = vld [vmem:[%s13670_s10 + $0x88] sm:$0xff] }
 0x25c   : > { %v10736_v49 = vpop.f32.mrf.mxu1  ;;  %6269 = vmatmul.mubr.bf16.vlgmr.msra.gmra.mxu1 %v1805_v54  ;;  %11007 = vmatpush3.bf16.msra.mxu0 %v3514_v33  ;;  %v3507_v54 = vunpack.c.l.s8.bf16 %v2243_v31  ;;  %v3523_v33 = vunpack.c.l.s8.bf16 %v2251_v32  ;;  %v2263_v31 = vld [vmem:[%s13677_s8 + $0x820] sm:$0xff] }
 0x25d   : > { %11029 = vmatpush3.bf16.msra.mxu1 %v3530_v20  ;;  %v10715_v41 = vpop.f32.mrf.mxu0  ;;  %11008 = vmatprep.subr.bf16.mxu0 %v3521_v21  ;;  %v3554_v20 = vunpack.c.h.s8.bf16 %v2266_v43  ;;  %v3570_v21 = vunpack.c.h.s8.bf16 %v2274_v44  ;;  %v2271_v32 = vld [vmem:[%s13677_s8 + $0x860] sm:$0xff] }
 0x25e   : > { %v10737_v5 = vpop.f32.mrf.mxu1  ;;  %11030 = vmatprep.subr.bf16.mxu1 %v3537_v57  ;;  %v10716_v0 = vadd.f32 %v10715_v41, %v10714_v40  ;;  %6308 = vmatprep.mubr.bf16.mxu0 %v1808_v3  ;;  %v2262_v57 = vld [vmem:[%s13677_s8 + $0x818] sm:$0xff]  ;;  %v691_v3 = vcombine.high %v14220_v53, %v14220_v53  ;;  %v1809_v40 = vpack.c.bf16 %v14186_v37, %v14186_v37  ;;  %v3569_v41 = vunpack.c.l.s8.bf16 %v2274_v44  ;;  %v2267_v44 = vld [vmem:[%s13677_s8 + $0x840] sm:$0xff] }
 0x25f   : > { %v10738_v50 = vadd.f32 %v10737_v5, %v10736_v49  ;;  %6348 = vmatprep.mubr.bf16.mxu1 %v1810_v4  ;;  %v10717_v51 = vpop.f32.mrf.mxu0  ;;  %v1807_v4 = vpack.c.bf16 %v14183_v36, %v14183_v36  ;;  %v3546_v49 = vunpack.c.h.s8.bf16 %v2262_v57  ;;  %v2265_v5 = vld [vmem:[%s13677_s8 + $0x830] sm:$0xff]  ;;  %v3545_v36 = vunpack.c.l.s8.bf16 %v2262_v57 }
 0x260   : > { %v10739_v9 = vpop.f32.mrf.mxu1  ;;  %v5751_v12 = vadd.f32 %v10716_v0, %v14169_v56  ;;  %11009 = vmatpush3.bf16.msra.mxu0 %v3513_v27  ;;  %v3527_v56 = vunpack.c.l.s8.bf16 %v2253_v35  ;;  %v3562_v27 = vunpack.c.h.s8.bf16 %v2270_v58  ;;  %v1814_v34 = vpack.c.bf16 %v691_v3, %v691_v3 }
 0x261   : > { %11031 = vmatpush3.bf16.msra.mxu1 %v3529_v28  ;;  %v10718_v7 = vpop.f32.mrf.mxu0  ;;  %11010 = vmatprep.subr.bf16.mxu0 %v3520_v45  ;;  %v3553_v28 = vunpack.c.l.s8.bf16 %v2266_v43  ;;  %v2273_v45 = vld [vmem:[%s13677_s8 + $0x870] sm:$0xff]  ;;  %v3561_v37 = vunpack.c.l.s8.bf16 %v2270_v58  ;;  %v3552_v9 = vunpack.c.h.s8.bf16 %v2265_v5  ;;  %v2259_v43 = vld [vmem:[%s13677_s8 + $0x800] sm:$0xff]  ;;  %v3563_v57 = vunpack.c.l.s8.bf16 %v2271_v32  ;;  %v2282_v58 = vld [vmem:[%s13677_s8 + $0x8b8] sm:$0xff] }
 0x262   : > { %v10740_v13 = vpop.f32.mrf.mxu1  ;;  %11032 = vmatprep.subr.bf16.mxu1 %v3536_v8  ;;  %v14203_v16 = vadd.f32 %v10738_v50, %v5751_v12  ;;  %v1812_v8 = vpack.c.bf16 %v690_v59, %v690_v59  ;;  %v3568_v12 = vunpack.c.h.s8.bf16 %v2273_v45  ;;  %v3567_v18 = vunpack.c.l.s8.bf16 %v2273_v45  ;;  %v2290_v59 = vld [vmem:[%s13677_s8 + $0x8f8] sm:$0xff] }
 0x263   : > { %v14251_v3 = vrot.slane %v292_v39, %v13706_v38 }
 0x264   : > { %11011 = vmatpush3.bf16.msra.mxu0 %v3512_v47  ;;  %v2261_v47 = vld [vmem:[%s13677_s8 + $0x810] sm:$0xff] }
 0x265   : > { %11033 = vmatpush3.bf16.msra.mxu1 %v3528_v48  ;;  %11012 = vmatprep.subr.bf16.mxu0 %v3519_v14  ;;  %v2269_v48 = vld [vmem:[%s13677_s8 + $0x850] sm:$0xff]  ;;  %v3544_v62 = vunpack.c.h.s8.bf16 %v2261_v47  ;;  %v707_v45 = vcombine.high %v14251_v3, %v14251_v3 }
 0x266   : > { %11034 = vmatprep.subr.bf16.mxu1 %v3535_v60 }
 0x268   : > { %11013 = vmatpush3.bf16.msra.mxu0 %v3511_v63  ;;  %v3560_v63 = vunpack.c.h.s8.bf16 %v2269_v48 }
 0x269   : > { %11035 = vmatpush3.bf16.msra.mxu1 %v3527_v56  ;;  %11014 = vmatprep.subr.bf16.mxu0 %v3518_v1 }
 0x26a   : > { %11036 = vmatprep.subr.bf16.mxu1 %v3534_v2  ;;  %v3551_v2 = vunpack.c.l.s8.bf16 %v2265_v5  ;;  %v2286_v5 = vld [vmem:[%s13677_s8 + $0x8d8] sm:$0xff] }
 0x26c   : > { %11015 = vmatpush3.bf16.msra.mxu0 %v3510_v11  ;;  %v2264_v11 = vld [vmem:[%s13677_s8 + $0x828] sm:$0xff] }
 0x26d   : > { %11037 = vmatpush3.bf16.msra.mxu1 %v3526_v46  ;;  %11016 = vmatprep.subr.bf16.mxu0 %v3517_v6  ;;  %v2272_v46 = vld [vmem:[%s13677_s8 + $0x868] sm:$0xff]  ;;  %v3543_v6 = vunpack.c.l.s8.bf16 %v2261_v47 }
 0x26e   : > { %11038 = vmatprep.subr.bf16.mxu1 %v3533_v23  ;;  %v3550_v23 = vunpack.c.h.s8.bf16 %v2264_v11  ;;  %v3566_v24 = vunpack.c.h.s8.bf16 %v2272_v46 }
 0x270   : > { %11017 = vmatpush3.bf16.msra.mxu0 %v3509_v19  ;;  %v3542_v19 = vunpack.c.h.s8.bf16 %v2260_v25 }
 0x271   : > { %11039 = vmatpush3.bf16.msra.mxu1 %v3525_v10  ;;  %11018 = vmatprep.subr.bf16.mxu0 %v3516_v55  ;;  %v3558_v10 = vunpack.c.h.s8.bf16 %v2268_v29  ;;  %v3549_v55 = vunpack.c.l.s8.bf16 %v2264_v11 }
 0x272   : > { %11040 = vmatprep.subr.bf16.mxu1 %v3532_v30  ;;  %v3565_v30 = vunpack.c.l.s8.bf16 %v2272_v46 }
 0x274   : > { %11019 = vmatpush3.bf16.msra.mxu0 %v3508_v26  ;;  %v3541_v26 = vunpack.c.l.s8.bf16 %v2260_v25 }
 0x275   : > { %11041 = vmatpush3.bf16.msra.mxu1 %v3524_v61  ;;  %11020 = vmatprep.subr.bf16.mxu0 %v3515_v15  ;;  %v3557_v61 = vunpack.c.l.s8.bf16 %v2268_v29  ;;  %v3548_v15 = vunpack.c.h.s8.bf16 %v2263_v31 }
 0x276   : > { %11042 = vmatprep.subr.bf16.mxu1 %v3531_v42  ;;  %v3564_v42 = vunpack.c.h.s8.bf16 %v2271_v32  ;;  %v2276_v32 = vld [vmem:[%s13677_s8 + $0x888] sm:$0xff] }
 0x278   : > { %11021 = vmatpush3.bf16.msra.mxu0 %v3507_v54  ;;  %v692_v54 = vcombine.high %v292_v39, %v292_v39  ;;  %v2284_v39 = vld [vmem:[%s13677_s8 + $0x8c8] sm:$0xff] }
 0x279   : > { %11043 = vmatpush3.bf16.msra.mxu1 %v3523_v33  ;;  %11050 = vmatprep.subr.bf16.mxu0 %v3554_v20  ;;  %v3540_v33 = vunpack.c.h.s8.bf16 %v2259_v43  ;;  %v3556_v20 = vunpack.c.h.s8.bf16 %v2267_v44 }
 0x27a   : > { %11072 = vmatprep.subr.bf16.mxu1 %v3570_v21  ;;  %v3547_v21 = vunpack.c.l.s8.bf16 %v2263_v31 }
 0x27b   : > { %v10758_v35 = vpop.f32.mrf.mxu0  ;;  %6309 = vmatmul.mubr.bf16.vlgmr.msra.gmra.mxu0 %v1807_v4  ;;  %v14254_v4 = vrot.slane %v692_v54, %v13706_v38  ;;  %v293_v54 = vld [vmem:[%s13670_s10 + $0x90] sm:$0xff] }
 0x27c   : > { %v10780_v0 = vpop.f32.mrf.mxu1  ;;  %6349 = vmatmul.mubr.bf16.vlgmr.msra.gmra.mxu1 %v1809_v40  ;;  %11051 = vmatpush3.bf16.msra.mxu0 %v3546_v49  ;;  %v3539_v40 = vunpack.c.l.s8.bf16 %v2259_v43  ;;  %v3555_v49 = vunpack.c.l.s8.bf16 %v2267_v44  ;;  %v2279_v43 = vld [vmem:[%s13677_s8 + $0x8a0] sm:$0xff] }
 0x27d   : > { %11073 = vmatpush3.bf16.msra.mxu1 %v3562_v27  ;;  %v10759_v50 = vpop.f32.mrf.mxu0  ;;  %11052 = vmatprep.subr.bf16.mxu0 %v3553_v28  ;;  %v3586_v27 = vunpack.c.h.s8.bf16 %v2282_v58  ;;  %v3602_v28 = vunpack.c.h.s8.bf16 %v2290_v59  ;;  %v2287_v44 = vld [vmem:[%s13677_s8 + $0x8e0] sm:$0xff] }
 0x27e   : > { %v10781_v51 = vpop.f32.mrf.mxu1  ;;  %11074 = vmatprep.subr.bf16.mxu1 %v3569_v41  ;;  %v10760_v7 = vadd.f32 %v10759_v50, %v10758_v35  ;;  %6388 = vmatprep.mubr.bf16.mxu0 %v1812_v8  ;;  %v2278_v41 = vld [vmem:[%s13677_s8 + $0x898] sm:$0xff]  ;;  %v708_v8 = vcombine.high %v14254_v4, %v14254_v4  ;;  %v1813_v35 = vpack.c.bf16 %v14220_v53, %v14220_v53  ;;  %v3601_v50 = vunpack.c.l.s8.bf16 %v2290_v59  ;;  %v2283_v59 = vld [vmem:[%s13677_s8 + $0x8c0] sm:$0xff] }
 0x27f   : > { %v10782_v13 = vadd.f32 %v10781_v51, %v10780_v0  ;;  %6428 = vmatprep.mubr.bf16.mxu1 %v1814_v34  ;;  %v10761_v14 = vpop.f32.mrf.mxu0  ;;  %v1811_v34 = vpack.c.bf16 %v14217_v52, %v14217_v52  ;;  %v3578_v0 = vunpack.c.h.s8.bf16 %v2278_v41  ;;  %v2281_v51 = vld [vmem:[%s13677_s8 + $0x8b0] sm:$0xff]  ;;  %v3577_v52 = vunpack.c.l.s8.bf16 %v2278_v41 }
 0x280   : > { %v10783_v60 = vpop.f32.mrf.mxu1  ;;  %v5831_v17 = vadd.f32 %v10760_v7, %v14203_v16  ;;  %11053 = vmatpush3.bf16.msra.mxu0 %v3545_v36  ;;  %v3559_v16 = vunpack.c.l.s8.bf16 %v2269_v48  ;;  %v3594_v36 = vunpack.c.h.s8.bf16 %v2286_v5  ;;  %v1818_v47 = vpack.c.bf16 %v708_v8, %v708_v8 }
 0x281   : > { %11075 = vmatpush3.bf16.msra.mxu1 %v3561_v37  ;;  %v10762_v56 = vpop.f32.mrf.mxu0  ;;  %11054 = vmatprep.subr.bf16.mxu0 %v3552_v9  ;;  %v3585_v37 = vunpack.c.l.s8.bf16 %v2282_v58  ;;  %v2289_v9 = vld [vmem:[%s13677_s8 + $0x8f0] sm:$0xff]  ;;  %v3593_v53 = vunpack.c.l.s8.bf16 %v2286_v5  ;;  %v3584_v60 = vunpack.c.h.s8.bf16 %v2281_v51  ;;  %v2275_v58 = vld [vmem:[%s13677_s8 + $0x880] sm:$0xff]  ;;  %v3595_v41 = vunpack.c.l.s8.bf16 %v2287_v44  ;;  %v2298_v5 = vld [vmem:[%s13677_s8 + $0x938] sm:$0xff] }
 0x282   : > { %v10784_v1 = vpop.f32.mrf.mxu1  ;;  %11076 = vmatprep.subr.bf16.mxu1 %v3568_v12  ;;  %v14237_v22 = vadd.f32 %v10782_v13, %v5831_v17  ;;  %v1816_v12 = vpack.c.bf16 %v707_v45, %v707_v45  ;;  %v3600_v17 = vunpack.c.h.s8.bf16 %v2289_v9  ;;  %v3599_v25 = vunpack.c.l.s8.bf16 %v2289_v9  ;;  %v2306_v45 = vld [vmem:[%s13677_s8 + $0x978] sm:$0xff] }
 0x283   : > { %v14285_v8 = vrot.slane %v293_v54, %v13706_v38 }
 0x284   : > { %11055 = vmatpush3.bf16.msra.mxu0 %v3544_v62  ;;  %v2277_v62 = vld [vmem:[%s13677_s8 + $0x890] sm:$0xff] }
 0x285   : > { %11077 = vmatpush3.bf16.msra.mxu1 %v3560_v63  ;;  %11056 = vmatprep.subr.bf16.mxu0 %v3551_v2  ;;  %v2285_v63 = vld [vmem:[%s13677_s8 + $0x8d0] sm:$0xff]  ;;  %v3576_v46 = vunpack.c.h.s8.bf16 %v2277_v62  ;;  %v724_v9 = vcombine.high %v14285_v8, %v14285_v8 }
 0x286   : > { %11078 = vmatprep.subr.bf16.mxu1 %v3567_v18 }
 0x288   : > { %11057 = vmatpush3.bf16.msra.mxu0 %v3543_v6  ;;  %v3592_v6 = vunpack.c.h.s8.bf16 %v2285_v63 }
 0x289   : > { %11079 = vmatpush3.bf16.msra.mxu1 %v3559_v16  ;;  %11058 = vmatprep.subr.bf16.mxu0 %v3550_v23 }
 0x28a   : > { %11080 = vmatprep.subr.bf16.mxu1 %v3566_v24  ;;  %v3583_v24 = vunpack.c.l.s8.bf16 %v2281_v51  ;;  %v2302_v51 = vld [vmem:[%s13677_s8 + $0x958] sm:$0xff] }
 0x28c   : > { %11059 = vmatpush3.bf16.msra.mxu0 %v3542_v19  ;;  %v2280_v19 = vld [vmem:[%s13677_s8 + $0x8a8] sm:$0xff] }
 0x28d   : > { %11081 = vmatpush3.bf16.msra.mxu1 %v3558_v10  ;;  %11060 = vmatprep.subr.bf16.mxu0 %v3549_v55  ;;  %v2288_v10 = vld [vmem:[%s13677_s8 + $0x8e8] sm:$0xff]  ;;  %v3575_v55 = vunpack.c.l.s8.bf16 %v2277_v62 }
 0x28e   : > { %11082 = vmatprep.subr.bf16.mxu1 %v3565_v30  ;;  %v3582_v30 = vunpack.c.h.s8.bf16 %v2280_v19  ;;  %v3598_v31 = vunpack.c.h.s8.bf16 %v2288_v10 }
 0x290   : > { %11061 = vmatpush3.bf16.msra.mxu0 %v3541_v26  ;;  %v3574_v26 = vunpack.c.h.s8.bf16 %v2276_v32 }
 0x291   : > { %11083 = vmatpush3.bf16.msra.mxu1 %v3557_v61  ;;  %11062 = vmatprep.subr.bf16.mxu0 %v3548_v15  ;;  %v3590_v61 = vunpack.c.h.s8.bf16 %v2284_v39  ;;  %v3581_v15 = vunpack.c.l.s8.bf16 %v2280_v19 }
 0x292   : > { %11084 = vmatprep.subr.bf16.mxu1 %v3564_v42  ;;  %v3597_v42 = vunpack.c.l.s8.bf16 %v2288_v10 }
 0x294   : > { %11063 = vmatpush3.bf16.msra.mxu0 %v3540_v33  ;;  %v3573_v33 = vunpack.c.l.s8.bf16 %v2276_v32 }
 0x295   : > { %11085 = vmatpush3.bf16.msra.mxu1 %v3556_v20  ;;  %11064 = vmatprep.subr.bf16.mxu0 %v3547_v21  ;;  %v3589_v20 = vunpack.c.l.s8.bf16 %v2284_v39  ;;  %v3580_v21 = vunpack.c.h.s8.bf16 %v2279_v43 }
 0x296   : > { %11086 = vmatprep.subr.bf16.mxu1 %v3563_v57  ;;  %v3596_v57 = vunpack.c.h.s8.bf16 %v2287_v44  ;;  %v2292_v44 = vld [vmem:[%s13677_s8 + $0x908] sm:$0xff] }
 0x298   : > { %11065 = vmatpush3.bf16.msra.mxu0 %v3539_v40  ;;  %v709_v40 = vcombine.high %v293_v54, %v293_v54  ;;  %v2300_v54 = vld [vmem:[%s13677_s8 + $0x948] sm:$0xff] }
 0x299   : > { %11087 = vmatpush3.bf16.msra.mxu1 %v3555_v49  ;;  %11094 = vmatprep.subr.bf16.mxu0 %v3586_v27  ;;  %v3572_v49 = vunpack.c.h.s8.bf16 %v2275_v58  ;;  %v3588_v27 = vunpack.c.h.s8.bf16 %v2283_v59 }
 0x29a   : > { %11116 = vmatprep.subr.bf16.mxu1 %v3602_v28  ;;  %v3579_v28 = vunpack.c.l.s8.bf16 %v2279_v43 }
 0x29b   : > { %v10802_v48 = vpop.f32.mrf.mxu0  ;;  %6389 = vmatmul.mubr.bf16.vlgmr.msra.gmra.mxu0 %v1811_v34  ;;  %v14288_v34 = vrot.slane %v709_v40, %v13706_v38  ;;  %v294_v40 = vld [vmem:[%s13670_s10 + $0x98] sm:$0xff] }
 0x29c   : > { %v10824_v7 = vpop.f32.mrf.mxu1  ;;  %6429 = vmatmul.mubr.bf16.vlgmr.msra.gmra.mxu1 %v1813_v35  ;;  %11095 = vmatpush3.bf16.msra.mxu0 %v3578_v0  ;;  %v3571_v35 = vunpack.c.l.s8.bf16 %v2275_v58  ;;  %v3587_v0 = vunpack.c.l.s8.bf16 %v2283_v59  ;;  %v2295_v58 = vld [vmem:[%s13677_s8 + $0x920] sm:$0xff] }
 0x29d   : > { %11117 = vmatpush3.bf16.msra.mxu1 %v3594_v36  ;;  %v10803_v13 = vpop.f32.mrf.mxu0  ;;  %11096 = vmatprep.subr.bf16.mxu0 %v3585_v37  ;;  %v3618_v36 = vunpack.c.h.s8.bf16 %v2298_v5  ;;  %v3634_v37 = vunpack.c.h.s8.bf16 %v2306_v45  ;;  %v2303_v59 = vld [vmem:[%s13677_s8 + $0x960] sm:$0xff] }
 0x29e   : > { %v10825_v14 = vpop.f32.mrf.mxu1  ;;  %11118 = vmatprep.subr.bf16.mxu1 %v3601_v50  ;;  %v10804_v56 = vadd.f32 %v10803_v13, %v10802_v48  ;;  %6468 = vmatprep.mubr.bf16.mxu0 %v1816_v12  ;;  %v2294_v50 = vld [vmem:[%s13677_s8 + $0x918] sm:$0xff]  ;;  %v725_v12 = vcombine.high %v14288_v34, %v14288_v34  ;;  %v1817_v48 = vpack.c.bf16 %v14254_v4, %v14254_v4  ;;  %v3633_v13 = vunpack.c.l.s8.bf16 %v2306_v45  ;;  %v2299_v45 = vld [vmem:[%s13677_s8 + $0x940] sm:$0xff] }
 0x29f   : > { %v10826_v1 = vadd.f32 %v10825_v14, %v10824_v7  ;;  %6508 = vmatprep.mubr.bf16.mxu1 %v1818_v47  ;;  %v10805_v2 = vpop.f32.mrf.mxu0  ;;  %v1815_v47 = vpack.c.bf16 %v14251_v3, %v14251_v3  ;;  %v3610_v7 = vunpack.c.h.s8.bf16 %v2294_v50  ;;  %v2297_v14 = vld [vmem:[%s13677_s8 + $0x930] sm:$0xff]  ;;  %v3609_v3 = vunpack.c.l.s8.bf16 %v2294_v50 }
 0x2a0   : > { %v10827_v18 = vpop.f32.mrf.mxu1  ;;  %v5911_v11 = vadd.f32 %v10804_v56, %v14237_v22  ;;  %11097 = vmatpush3.bf16.msra.mxu0 %v3577_v52  ;;  %v3591_v22 = vunpack.c.l.s8.bf16 %v2285_v63  ;;  %v3626_v52 = vunpack.c.h.s8.bf16 %v2302_v51  ;;  %v1822_v62 = vpack.c.bf16 %v725_v12, %v725_v12 }
 0x2a1   : > { %11119 = vmatpush3.bf16.msra.mxu1 %v3593_v53  ;;  %v10806_v16 = vpop.f32.mrf.mxu0  ;;  %11098 = vmatprep.subr.bf16.mxu0 %v3584_v60  ;;  %v3617_v53 = vunpack.c.l.s8.bf16 %v2298_v5  ;;  %v2305_v60 = vld [vmem:[%s13677_s8 + $0x970] sm:$0xff]  ;;  %v3625_v4 = vunpack.c.l.s8.bf16 %v2302_v51  ;;  %v3616_v18 = vunpack.c.h.s8.bf16 %v2297_v14  ;;  %v2291_v5 = vld [vmem:[%s13677_s8 + $0x900] sm:$0xff]  ;;  %v3627_v50 = vunpack.c.l.s8.bf16 %v2303_v59  ;;  %v2314_v51 = vld [vmem:[%s13677_s8 + $0x9b8] sm:$0xff] }
 0x2a2   : > { %v10828_v23 = vpop.f32.mrf.mxu1  ;;  %11120 = vmatprep.subr.bf16.mxu1 %v3600_v17  ;;  %v14271_v29 = vadd.f32 %v10826_v1, %v5911_v11  ;;  %v1820_v17 = vpack.c.bf16 %v724_v9, %v724_v9  ;;  %v3632_v11 = vunpack.c.h.s8.bf16 %v2305_v60  ;;  %v3631_v32 = vunpack.c.l.s8.bf16 %v2305_v60  ;;  %v2322_v9 = vld [vmem:[%s13677_s8 + $0x9f8] sm:$0xff] }
 0x2a3   : > { %v14319_v12 = vrot.slane %v294_v40, %v13706_v38 }
 0x2a4   : > { %11099 = vmatpush3.bf16.msra.mxu0 %v3576_v46  ;;  %v2293_v46 = vld [vmem:[%s13677_s8 + $0x910] sm:$0xff] }
 0x2a5   : > { %11121 = vmatpush3.bf16.msra.mxu1 %v3592_v6  ;;  %11100 = vmatprep.subr.bf16.mxu0 %v3583_v24  ;;  %v2301_v6 = vld [vmem:[%s13677_s8 + $0x950] sm:$0xff]  ;;  %v3608_v10 = vunpack.c.h.s8.bf16 %v2293_v46  ;;  %v741_v60 = vcombine.high %v14319_v12, %v14319_v12 }
 0x2a6   : > { %11122 = vmatprep.subr.bf16.mxu1 %v3599_v25 }
 0x2a8   : > { %11101 = vmatpush3.bf16.msra.mxu0 %v3575_v55  ;;  %v3624_v55 = vunpack.c.h.s8.bf16 %v2301_v6 }
 0x2a9   : > { %11123 = vmatpush3.bf16.msra.mxu1 %v3591_v22  ;;  %11102 = vmatprep.subr.bf16.mxu0 %v3582_v30 }
 0x2aa   : > { %11124 = vmatprep.subr.bf16.mxu1 %v3598_v31  ;;  %v3615_v31 = vunpack.c.l.s8.bf16 %v2297_v14  ;;  %v2318_v14 = vld [vmem:[%s13677_s8 + $0x9d8] sm:$0xff] }
 0x2ac   : > { %11103 = vmatpush3.bf16.msra.mxu0 %v3574_v26  ;;  %v2296_v26 = vld [vmem:[%s13677_s8 + $0x928] sm:$0xff] }
 0x2ad   : > { %11125 = vmatpush3.bf16.msra.mxu1 %v3590_v61  ;;  %11104 = vmatprep.subr.bf16.mxu0 %v3581_v15  ;;  %v2304_v61 = vld [vmem:[%s13677_s8 + $0x968] sm:$0xff]  ;;  %v3607_v15 = vunpack.c.l.s8.bf16 %v2293_v46 }
 0x2ae   : > { %11126 = vmatprep.subr.bf16.mxu1 %v3597_v42  ;;  %v3614_v42 = vunpack.c.h.s8.bf16 %v2296_v26  ;;  %v3630_v43 = vunpack.c.h.s8.bf16 %v2304_v61 }
 0x2b0   : > { %11105 = vmatpush3.bf16.msra.mxu0 %v3573_v33  ;;  %v3606_v33 = vunpack.c.h.s8.bf16 %v2292_v44 }
 0x2b1   : > { %11127 = vmatpush3.bf16.msra.mxu1 %v3589_v20  ;;  %11106 = vmatprep.subr.bf16.mxu0 %v3580_v21  ;;  %v3622_v20 = vunpack.c.h.s8.bf16 %v2300_v54  ;;  %v3613_v21 = vunpack.c.l.s8.bf16 %v2296_v26 }
 0x2b2   : > { %11128 = vmatprep.subr.bf16.mxu1 %v3596_v57  ;;  %v3629_v57 = vunpack.c.l.s8.bf16 %v2304_v61 }
 0x2b4   : > { %11107 = vmatpush3.bf16.msra.mxu0 %v3572_v49  ;;  %v3605_v49 = vunpack.c.l.s8.bf16 %v2292_v44 }
 0x2b5   : > { %11129 = vmatpush3.bf16.msra.mxu1 %v3588_v27  ;;  %11108 = vmatprep.subr.bf16.mxu0 %v3579_v28  ;;  %v3621_v27 = vunpack.c.l.s8.bf16 %v2300_v54  ;;  %v3612_v28 = vunpack.c.h.s8.bf16 %v2295_v58 }
 0x2b6   : > { %11130 = vmatprep.subr.bf16.mxu1 %v3595_v41  ;;  %v3628_v41 = vunpack.c.h.s8.bf16 %v2303_v59  ;;  %v2308_v59 = vld [vmem:[%s13677_s8 + $0x988] sm:$0xff] }
 0x2b8   : > { %11109 = vmatpush3.bf16.msra.mxu0 %v3571_v35  ;;  %v726_v35 = vcombine.high %v294_v40, %v294_v40  ;;  %v2316_v40 = vld [vmem:[%s13677_s8 + $0x9c8] sm:$0xff] }
 0x2b9   : > { %11131 = vmatpush3.bf16.msra.mxu1 %v3587_v0  ;;  %11138 = vmatprep.subr.bf16.mxu0 %v3618_v36  ;;  %v3604_v0 = vunpack.c.h.s8.bf16 %v2291_v5  ;;  %v3620_v36 = vunpack.c.h.s8.bf16 %v2299_v45 }
 0x2ba   : > { %11160 = vmatprep.subr.bf16.mxu1 %v3634_v37  ;;  %v3611_v37 = vunpack.c.l.s8.bf16 %v2295_v58 }
 0x2bb   : > { %v10846_v63 = vpop.f32.mrf.mxu0  ;;  %6469 = vmatmul.mubr.bf16.vlgmr.msra.gmra.mxu0 %v1815_v47  ;;  %v14322_v47 = vrot.slane %v726_v35, %v13706_v38  ;;  %v295_v35 = vld [vmem:[%s13670_s10 + $0xa0] sm:$0xff] }
 0x2bc   : > { %v10868_v56 = vpop.f32.mrf.mxu1  ;;  %6509 = vmatmul.mubr.bf16.vlgmr.msra.gmra.mxu1 %v1817_v48  ;;  %11139 = vmatpush3.bf16.msra.mxu0 %v3610_v7  ;;  %v3603_v48 = vunpack.c.l.s8.bf16 %v2291_v5  ;;  %v3619_v7 = vunpack.c.l.s8.bf16 %v2299_v45  ;;  %v2311_v5 = vld [vmem:[%s13677_s8 + $0x9a0] sm:$0xff] }
 0x2bd   : > { %11161 = vmatpush3.bf16.msra.mxu1 %v3626_v52  ;;  %v10847_v1 = vpop.f32.mrf.mxu0  ;;  %11140 = vmatprep.subr.bf16.mxu0 %v3617_v53  ;;  %v3650_v52 = vunpack.c.h.s8.bf16 %v2314_v51  ;;  %v3666_v53 = vunpack.c.h.s8.bf16 %v2322_v9  ;;  %v2319_v45 = vld [vmem:[%s13677_s8 + $0x9e0] sm:$0xff] }
 0x2be   : > { %v10869_v2 = vpop.f32.mrf.mxu1  ;;  %11162 = vmatprep.subr.bf16.mxu1 %v3633_v13  ;;  %v10848_v16 = vadd.f32 %v10847_v1, %v10846_v63  ;;  %6548 = vmatprep.mubr.bf16.mxu0 %v1820_v17  ;;  %v2310_v13 = vld [vmem:[%s13677_s8 + $0x998] sm:$0xff]  ;;  %v742_v17 = vcombine.high %v14322_v47, %v14322_v47  ;;  %v1821_v63 = vpack.c.bf16 %v14288_v34, %v14288_v34  ;;  %v3665_v1 = vunpack.c.l.s8.bf16 %v2322_v9  ;;  %v2315_v9 = vld [vmem:[%s13677_s8 + $0x9c0] sm:$0xff] }
 0x2bf   : > { %v10870_v23 = vadd.f32 %v10869_v2, %v10868_v56  ;;  %6588 = vmatprep.mubr.bf16.mxu1 %v1822_v62  ;;  %v10849_v24 = vpop.f32.mrf.mxu0  ;;  %v1819_v62 = vpack.c.bf16 %v14285_v8, %v14285_v8  ;;  %v3642_v56 = vunpack.c.h.s8.bf16 %v2310_v13  ;;  %v2313_v2 = vld [vmem:[%s13677_s8 + $0x9b0] sm:$0xff]  ;;  %v3641_v8 = vunpack.c.l.s8.bf16 %v2310_v13 }
 0x2c0   : > { %v10871_v25 = vpop.f32.mrf.mxu1  ;;  %v5991_v19 = vadd.f32 %v10848_v16, %v14271_v29  ;;  %11141 = vmatpush3.bf16.msra.mxu0 %v3609_v3  ;;  %v3623_v29 = vunpack.c.l.s8.bf16 %v2301_v6  ;;  %v3658_v3 = vunpack.c.h.s8.bf16 %v2318_v14  ;;  %v1826_v46 = vpack.c.bf16 %v742_v17, %v742_v17 }
 0x2c1   : > { %11163 = vmatpush3.bf16.msra.mxu1 %v3625_v4  ;;  %v10850_v22 = vpop.f32.mrf.mxu0  ;;  %11142 = vmatprep.subr.bf16.mxu0 %v3616_v18  ;;  %v3649_v4 = vunpack.c.l.s8.bf16 %v2314_v51  ;;  %v2321_v18 = vld [vmem:[%s13677_s8 + $0x9f0] sm:$0xff]  ;;  %v3657_v34 = vunpack.c.l.s8.bf16 %v2318_v14  ;;  %v3648_v25 = vunpack.c.h.s8.bf16 %v2313_v2  ;;  %v2307_v51 = vld [vmem:[%s13677_s8 + $0x980] sm:$0xff]  ;;  %v3659_v13 = vunpack.c.l.s8.bf16 %v2319_v45  ;;  %v2330_v14 = vld [vmem:[%s13677_s8 + $0xa38] sm:$0xff] }
 0x2c2   : > { %v10872_v30 = vpop.f32.mrf.mxu1  ;;  %11164 = vmatprep.subr.bf16.mxu1 %v3632_v11  ;;  %v14305_v39 = vadd.f32 %v10870_v23, %v5991_v19  ;;  %v1824_v11 = vpack.c.bf16 %v741_v60, %v741_v60  ;;  %v3664_v19 = vunpack.c.h.s8.bf16 %v2321_v18  ;;  %v3663_v44 = vunpack.c.l.s8.bf16 %v2321_v18  ;;  %v2338_v60 = vld [vmem:[%s13677_s8 + $0xa78] sm:$0xff] }
 0x2c3   : > { %v14353_v17 = vrot.slane %v295_v35, %v13706_v38 }
 0x2c4   : > { %11143 = vmatpush3.bf16.msra.mxu0 %v3608_v10  ;;  %v2309_v10 = vld [vmem:[%s13677_s8 + $0x990] sm:$0xff] }
 0x2c5   : > { %11165 = vmatpush3.bf16.msra.mxu1 %v3624_v55  ;;  %11144 = vmatprep.subr.bf16.mxu0 %v3615_v31  ;;  %v2317_v55 = vld [vmem:[%s13677_s8 + $0x9d0] sm:$0xff]  ;;  %v3640_v61 = vunpack.c.h.s8.bf16 %v2309_v10  ;;  %v758_v18 = vcombine.high %v14353_v17, %v14353_v17 }
 0x2c6   : > { %11166 = vmatprep.subr.bf16.mxu1 %v3631_v32 }
 0x2c8   : > { %11145 = vmatpush3.bf16.msra.mxu0 %v3607_v15  ;;  %v3656_v15 = vunpack.c.h.s8.bf16 %v2317_v55 }
 0x2c9   : > { %11167 = vmatpush3.bf16.msra.mxu1 %v3623_v29  ;;  %11146 = vmatprep.subr.bf16.mxu0 %v3614_v42 }
 0x2ca   : > { %11168 = vmatprep.subr.bf16.mxu1 %v3630_v43  ;;  %v3647_v43 = vunpack.c.l.s8.bf16 %v2313_v2  ;;  %v2334_v2 = vld [vmem:[%s13677_s8 + $0xa58] sm:$0xff] }
 0x2cc   : > { %11147 = vmatpush3.bf16.msra.mxu0 %v3606_v33  ;;  %v2312_v33 = vld [vmem:[%s13677_s8 + $0x9a8] sm:$0xff] }
 0x2cd   : > { %11169 = vmatpush3.bf16.msra.mxu1 %v3622_v20  ;;  %11148 = vmatprep.subr.bf16.mxu0 %v3613_v21  ;;  %v2320_v20 = vld [vmem:[%s13677_s8 + $0x9e8] sm:$0xff]  ;;  %v3639_v21 = vunpack.c.l.s8.bf16 %v2309_v10 }
 0x2ce   : > { %11170 = vmatprep.subr.bf16.mxu1 %v3629_v57  ;;  %v3646_v57 = vunpack.c.h.s8.bf16 %v2312_v33  ;;  %v3662_v58 = vunpack.c.h.s8.bf16 %v2320_v20 }
 0x2d0   : > { %11149 = vmatpush3.bf16.msra.mxu0 %v3605_v49  ;;  %v3638_v49 = vunpack.c.h.s8.bf16 %v2308_v59 }
 0x2d1   : > { %11171 = vmatpush3.bf16.msra.mxu1 %v3621_v27  ;;  %11150 = vmatprep.subr.bf16.mxu0 %v3612_v28  ;;  %v3654_v27 = vunpack.c.h.s8.bf16 %v2316_v40  ;;  %v3645_v28 = vunpack.c.l.s8.bf16 %v2312_v33 }
 0x2d2   : > { %11172 = vmatprep.subr.bf16.mxu1 %v3628_v41  ;;  %v3661_v41 = vunpack.c.l.s8.bf16 %v2320_v20 }
 0x2d4   : > { %11151 = vmatpush3.bf16.msra.mxu0 %v3604_v0  ;;  %v3637_v0 = vunpack.c.l.s8.bf16 %v2308_v59 }
 0x2d5   : > { %11173 = vmatpush3.bf16.msra.mxu1 %v3620_v36  ;;  %11152 = vmatprep.subr.bf16.mxu0 %v3611_v37  ;;  %v3653_v36 = vunpack.c.l.s8.bf16 %v2316_v40  ;;  %v3644_v37 = vunpack.c.h.s8.bf16 %v2311_v5 }
 0x2d6   : > { %11174 = vmatprep.subr.bf16.mxu1 %v3627_v50  ;;  %v3660_v50 = vunpack.c.h.s8.bf16 %v2319_v45  ;;  %v2324_v45 = vld [vmem:[%s13677_s8 + $0xa08] sm:$0xff] }
 0x2d8   : > { %11153 = vmatpush3.bf16.msra.mxu0 %v3603_v48  ;;  %v743_v48 = vcombine.high %v295_v35, %v295_v35  ;;  %v2332_v35 = vld [vmem:[%s13677_s8 + $0xa48] sm:$0xff] }
 0x2d9   : > { %11175 = vmatpush3.bf16.msra.mxu1 %v3619_v7  ;;  %11182 = vmatprep.subr.bf16.mxu0 %v3650_v52  ;;  %v3636_v7 = vunpack.c.h.s8.bf16 %v2307_v51  ;;  %v3652_v52 = vunpack.c.h.s8.bf16 %v2315_v9 }
 0x2da   : > { %11204 = vmatprep.subr.bf16.mxu1 %v3666_v53  ;;  %v3643_v53 = vunpack.c.l.s8.bf16 %v2311_v5 }
 0x2db   : > { %v10890_v6 = vpop.f32.mrf.mxu0  ;;  %6549 = vmatmul.mubr.bf16.vlgmr.msra.gmra.mxu0 %v1819_v62  ;;  %v14356_v62 = vrot.slane %v743_v48, %v13706_v38  ;;  %v296_v48 = vld [vmem:[%s13670_s10 + $0xa8] sm:$0xff] }
 0x2dc   : > { %v10912_v16 = vpop.f32.mrf.mxu1  ;;  %6589 = vmatmul.mubr.bf16.vlgmr.msra.gmra.mxu1 %v1821_v63  ;;  %11183 = vmatpush3.bf16.msra.mxu0 %v3642_v56  ;;  %v3635_v63 = vunpack.c.l.s8.bf16 %v2307_v51  ;;  %v3651_v56 = vunpack.c.l.s8.bf16 %v2315_v9  ;;  %v2327_v51 = vld [vmem:[%s13677_s8 + $0xa20] sm:$0xff] }
 0x2dd   : > { %11205 = vmatpush3.bf16.msra.mxu1 %v3658_v3  ;;  %v10891_v23 = vpop.f32.mrf.mxu0  ;;  %11184 = vmatprep.subr.bf16.mxu0 %v3649_v4  ;;  %v3682_v3 = vunpack.c.h.s8.bf16 %v2330_v14  ;;  %v3698_v4 = vunpack.c.h.s8.bf16 %v2338_v60  ;;  %v2335_v9 = vld [vmem:[%s13677_s8 + $0xa60] sm:$0xff] }
 0x2de   : > { %v10913_v24 = vpop.f32.mrf.mxu1  ;;  %11206 = vmatprep.subr.bf16.mxu1 %v3665_v1  ;;  %v10892_v22 = vadd.f32 %v10891_v23, %v10890_v6  ;;  %6628 = vmatprep.mubr.bf16.mxu0 %v1824_v11  ;;  %v2326_v1 = vld [vmem:[%s13677_s8 + $0xa18] sm:$0xff]  ;;  %v759_v11 = vcombine.high %v14356_v62, %v14356_v62  ;;  %v1825_v6 = vpack.c.bf16 %v14322_v47, %v14322_v47  ;;  %v3697_v23 = vunpack.c.l.s8.bf16 %v2338_v60  ;;  %v2331_v60 = vld [vmem:[%s13677_s8 + $0xa40] sm:$0xff] }
 0x2df   : > { %v10914_v30 = vadd.f32 %v10913_v24, %v10912_v16  ;;  %6668 = vmatprep.mubr.bf16.mxu1 %v1826_v46  ;;  %v10893_v31 = vpop.f32.mrf.mxu0  ;;  %v1823_v46 = vpack.c.bf16 %v14319_v12, %v14319_v12  ;;  %v3674_v16 = vunpack.c.h.s8.bf16 %v2326_v1  ;;  %v2329_v24 = vld [vmem:[%s13677_s8 + $0xa30] sm:$0xff]  ;;  %v3673_v12 = vunpack.c.l.s8.bf16 %v2326_v1 }
 0x2e0   : > { %v10915_v32 = vpop.f32.mrf.mxu1  ;;  %v6071_v26 = vadd.f32 %v10892_v22, %v14305_v39  ;;  %11185 = vmatpush3.bf16.msra.mxu0 %v3641_v8  ;;  %v3655_v39 = vunpack.c.l.s8.bf16 %v2317_v55  ;;  %v3690_v8 = vunpack.c.h.s8.bf16 %v2334_v2  ;;  %v1830_v10 = vpack.c.bf16 %v759_v11, %v759_v11 }
 0x2e1   : > { %11207 = vmatpush3.bf16.msra.mxu1 %v3657_v34  ;;  %v10894_v29 = vpop.f32.mrf.mxu0  ;;  %11186 = vmatprep.subr.bf16.mxu0 %v3648_v25  ;;  %v3681_v34 = vunpack.c.l.s8.bf16 %v2330_v14  ;;  %v2337_v25 = vld [vmem:[%s13677_s8 + $0xa70] sm:$0xff]  ;;  %v3689_v47 = vunpack.c.l.s8.bf16 %v2334_v2  ;;  %v3680_v32 = vunpack.c.h.s8.bf16 %v2329_v24  ;;  %v2323_v14 = vld [vmem:[%s13677_s8 + $0xa00] sm:$0xff]  ;;  %v3691_v1 = vunpack.c.l.s8.bf16 %v2335_v9  ;;  %v2346_v2 = vld [vmem:[%s13677_s8 + $0xab8] sm:$0xff] }
 0x2e2   : > { %v10916_v42 = vpop.f32.mrf.mxu1  ;;  %11208 = vmatprep.subr.bf16.mxu1 %v3664_v19  ;;  %v14339_v54 = vadd.f32 %v10914_v30, %v6071_v26  ;;  %v1828_v19 = vpack.c.bf16 %v758_v18, %v758_v18  ;;  %v3696_v26 = vunpack.c.h.s8.bf16 %v2337_v25  ;;  %v3695_v59 = vunpack.c.l.s8.bf16 %v2337_v25  ;;  %v2354_v18 = vld [vmem:[%s13677_s8 + $0xaf8] sm:$0xff] }
 0x2e3   : > { %v14387_v11 = vrot.slane %v296_v48, %v13706_v38 }
 0x2e4   : > { %11187 = vmatpush3.bf16.msra.mxu0 %v3640_v61  ;;  %v2325_v61 = vld [vmem:[%s13677_s8 + $0xa10] sm:$0xff] }
 0x2e5   : > { %11209 = vmatpush3.bf16.msra.mxu1 %v3656_v15  ;;  %11188 = vmatprep.subr.bf16.mxu0 %v3647_v43  ;;  %v2333_v15 = vld [vmem:[%s13677_s8 + $0xa50] sm:$0xff]  ;;  %v3672_v20 = vunpack.c.h.s8.bf16 %v2325_v61  ;;  %v775_v25 = vcombine.high %v14387_v11, %v14387_v11 }
 0x2e6   : > { %11210 = vmatprep.subr.bf16.mxu1 %v3663_v44 }
 0x2e8   : > { %11189 = vmatpush3.bf16.msra.mxu0 %v3639_v21  ;;  %v3688_v21 = vunpack.c.h.s8.bf16 %v2333_v15 }
 0x2e9   : > { %11211 = vmatpush3.bf16.msra.mxu1 %v3655_v39  ;;  %11190 = vmatprep.subr.bf16.mxu0 %v3646_v57 }
 0x2ea   : > { %11212 = vmatprep.subr.bf16.mxu1 %v3662_v58  ;;  %v3679_v58 = vunpack.c.l.s8.bf16 %v2329_v24  ;;  %v2350_v24 = vld [vmem:[%s13677_s8 + $0xad8] sm:$0xff] }
 0x2ec   : > { %11191 = vmatpush3.bf16.msra.mxu0 %v3638_v49  ;;  %v2328_v49 = vld [vmem:[%s13677_s8 + $0xa28] sm:$0xff] }
 0x2ed   : > { %11213 = vmatpush3.bf16.msra.mxu1 %v3654_v27  ;;  %11192 = vmatprep.subr.bf16.mxu0 %v3645_v28  ;;  %v2336_v27 = vld [vmem:[%s13677_s8 + $0xa68] sm:$0xff]  ;;  %v3671_v28 = vunpack.c.l.s8.bf16 %v2325_v61 }
 0x2ee   : > { %11214 = vmatprep.subr.bf16.mxu1 %v3661_v41  ;;  %v3678_v41 = vunpack.c.h.s8.bf16 %v2328_v49  ;;  %v3694_v5 = vunpack.c.h.s8.bf16 %v2336_v27 }
 0x2f0   : > { %11193 = vmatpush3.bf16.msra.mxu0 %v3637_v0  ;;  %v3670_v0 = vunpack.c.h.s8.bf16 %v2324_v45 }
 0x2f1   : > { %11215 = vmatpush3.bf16.msra.mxu1 %v3653_v36  ;;  %11194 = vmatprep.subr.bf16.mxu0 %v3644_v37  ;;  %v3686_v36 = vunpack.c.h.s8.bf16 %v2332_v35  ;;  %v3677_v37 = vunpack.c.l.s8.bf16 %v2328_v49 }
 0x2f2   : > { %11216 = vmatprep.subr.bf16.mxu1 %v3660_v50  ;;  %v3693_v50 = vunpack.c.l.s8.bf16 %v2336_v27 }
 0x2f4   : > { %11195 = vmatpush3.bf16.msra.mxu0 %v3636_v7  ;;  %v3669_v7 = vunpack.c.l.s8.bf16 %v2324_v45 }
 0x2f5   : > { %11217 = vmatpush3.bf16.msra.mxu1 %v3652_v52  ;;  %11196 = vmatprep.subr.bf16.mxu0 %v3643_v53  ;;  %v3685_v52 = vunpack.c.l.s8.bf16 %v2332_v35  ;;  %v3676_v53 = vunpack.c.h.s8.bf16 %v2327_v51 }
 0x2f6   : > { %11218 = vmatprep.subr.bf16.mxu1 %v3659_v13  ;;  %v3692_v13 = vunpack.c.h.s8.bf16 %v2335_v9  ;;  %v2340_v9 = vld [vmem:[%s13677_s8 + $0xa88] sm:$0xff] }
 0x2f8   : > { %11197 = vmatpush3.bf16.msra.mxu0 %v3635_v63  ;;  %v760_v63 = vcombine.high %v296_v48, %v296_v48  ;;  %v2348_v48 = vld [vmem:[%s13677_s8 + $0xac8] sm:$0xff] }
 0x2f9   : > { %11219 = vmatpush3.bf16.msra.mxu1 %v3651_v56  ;;  %11226 = vmatprep.subr.bf16.mxu0 %v3682_v3  ;;  %v3668_v56 = vunpack.c.h.s8.bf16 %v2323_v14  ;;  %v3684_v3 = vunpack.c.h.s8.bf16 %v2331_v60 }
 0x2fa   : > { %11248 = vmatprep.subr.bf16.mxu1 %v3698_v4  ;;  %v3675_v4 = vunpack.c.l.s8.bf16 %v2327_v51 }
 0x2fb   : > { %v10934_v55 = vpop.f32.mrf.mxu0  ;;  %6629 = vmatmul.mubr.bf16.vlgmr.msra.gmra.mxu0 %v1823_v46  ;;  %v14390_v46 = vrot.slane %v760_v63, %v13706_v38  ;;  %v297_v63 = vld [vmem:[%s13670_s10 + $0xb0] sm:$0xff] }
 0x2fc   : > { %v10956_v22 = vpop.f32.mrf.mxu1  ;;  %6669 = vmatmul.mubr.bf16.vlgmr.msra.gmra.mxu1 %v1825_v6  ;;  %11227 = vmatpush3.bf16.msra.mxu0 %v3674_v16  ;;  %v3667_v6 = vunpack.c.l.s8.bf16 %v2323_v14  ;;  %v3683_v16 = vunpack.c.l.s8.bf16 %v2331_v60  ;;  %v2343_v14 = vld [vmem:[%s13677_s8 + $0xaa0] sm:$0xff] }
 0x2fd   : > { %11249 = vmatpush3.bf16.msra.mxu1 %v3690_v8  ;;  %v10935_v30 = vpop.f32.mrf.mxu0  ;;  %11228 = vmatprep.subr.bf16.mxu0 %v3681_v34  ;;  %v3714_v8 = vunpack.c.h.s8.bf16 %v2346_v2  ;;  %v3730_v34 = vunpack.c.h.s8.bf16 %v2354_v18  ;;  %v2351_v60 = vld [vmem:[%s13677_s8 + $0xae0] sm:$0xff] }
 0x2fe   : > { %v10957_v31 = vpop.f32.mrf.mxu1  ;;  %11250 = vmatprep.subr.bf16.mxu1 %v3697_v23  ;;  %v10936_v29 = vadd.f32 %v10935_v30, %v10934_v55  ;;  %6708 = vmatprep.mubr.bf16.mxu0 %v1828_v19  ;;  %v2342_v23 = vld [vmem:[%s13677_s8 + $0xa98] sm:$0xff]  ;;  %v776_v19 = vcombine.high %v14390_v46, %v14390_v46  ;;  %v1829_v55 = vpack.c.bf16 %v14356_v62, %v14356_v62  ;;  %v3729_v30 = vunpack.c.l.s8.bf16 %v2354_v18  ;;  %v2347_v18 = vld [vmem:[%s13677_s8 + $0xac0] sm:$0xff] }
 0x2ff   : > { %v10958_v42 = vadd.f32 %v10957_v31, %v10956_v22  ;;  %6748 = vmatprep.mubr.bf16.mxu1 %v1830_v10  ;;  %v10937_v43 = vpop.f32.mrf.mxu0  ;;  %v1827_v10 = vpack.c.bf16 %v14353_v17, %v14353_v17  ;;  %v3706_v22 = vunpack.c.h.s8.bf16 %v2342_v23  ;;  %v2345_v31 = vld [vmem:[%s13677_s8 + $0xab0] sm:$0xff]  ;;  %v3705_v17 = vunpack.c.l.s8.bf16 %v2342_v23 }
 0x300   : > { %v10959_v44 = vpop.f32.mrf.mxu1  ;;  %v6151_v33 = vadd.f32 %v10936_v29, %v14339_v54  ;;  %11229 = vmatpush3.bf16.msra.mxu0 %v3673_v12  ;;  %v3687_v54 = vunpack.c.l.s8.bf16 %v2333_v15  ;;  %v3722_v12 = vunpack.c.h.s8.bf16 %v2350_v24  ;;  %v1834_v61 = vpack.c.bf16 %v776_v19, %v776_v19 }
 0x301   : > { %11251 = vmatpush3.bf16.msra.mxu1 %v3689_v47  ;;  %v10938_v39 = vpop.f32.mrf.mxu0  ;;  %11230 = vmatprep.subr.bf16.mxu0 %v3680_v32  ;;  %v3713_v47 = vunpack.c.l.s8.bf16 %v2346_v2  ;;  %v2353_v32 = vld [vmem:[%s13677_s8 + $0xaf0] sm:$0xff]  ;;  %v3721_v62 = vunpack.c.l.s8.bf16 %v2350_v24  ;;  %v3712_v44 = vunpack.c.h.s8.bf16 %v2345_v31  ;;  %v2339_v2 = vld [vmem:[%s13677_s8 + $0xa80] sm:$0xff]  ;;  %v3723_v23 = vunpack.c.l.s8.bf16 %v2351_v60  ;;  %v2362_v24 = vld [vmem:[%s13677_s8 + $0xb38] sm:$0xff] }
 0x302   : > { %v10960_v57 = vpop.f32.mrf.mxu1  ;;  %11252 = vmatprep.subr.bf16.mxu1 %v3696_v26  ;;  %v14373_v40 = vadd.f32 %v10958_v42, %v6151_v33  ;;  %v1832_v26 = vpack.c.bf16 %v775_v25, %v775_v25  ;;  %v3728_v33 = vunpack.c.h.s8.bf16 %v2353_v32  ;;  %v3727_v45 = vunpack.c.l.s8.bf16 %v2353_v32  ;;  %v2370_v25 = vld [vmem:[%s13677_s8 + $0xb78] sm:$0xff] }
 0x303   : > { %v14421_v19 = vrot.slane %v297_v63, %v13706_v38 }
 0x304   : > { %11231 = vmatpush3.bf16.msra.mxu0 %v3672_v20  ;;  %v2341_v20 = vld [vmem:[%s13677_s8 + $0xa90] sm:$0xff] }
 0x305   : > { %11253 = vmatpush3.bf16.msra.mxu1 %v3688_v21  ;;  %11232 = vmatprep.subr.bf16.mxu0 %v3679_v58  ;;  %v2349_v21 = vld [vmem:[%s13677_s8 + $0xad0] sm:$0xff]  ;;  %v3704_v27 = vunpack.c.h.s8.bf16 %v2341_v20  ;;  %v792_v32 = vcombine.high %v14421_v19, %v14421_v19 }
 0x306   : > { %11254 = vmatprep.subr.bf16.mxu1 %v3695_v59 }
 0x308   : > { %11233 = vmatpush3.bf16.msra.mxu0 %v3671_v28  ;;  %v3720_v28 = vunpack.c.h.s8.bf16 %v2349_v21 }
 0x309   : > { %11255 = vmatpush3.bf16.msra.mxu1 %v3687_v54  ;;  %11234 = vmatprep.subr.bf16.mxu0 %v3678_v41 }
 0x30a   : > { %11256 = vmatprep.subr.bf16.mxu1 %v3694_v5  ;;  %v3711_v5 = vunpack.c.l.s8.bf16 %v2345_v31  ;;  %v2366_v31 = vld [vmem:[%s13677_s8 + $0xb58] sm:$0xff] }
 0x30c   : > { %11235 = vmatpush3.bf16.msra.mxu0 %v3670_v0  ;;  %v2344_v0 = vld [vmem:[%s13677_s8 + $0xaa8] sm:$0xff] }
 0x30d   : > { %11257 = vmatpush3.bf16.msra.mxu1 %v3686_v36  ;;  %11236 = vmatprep.subr.bf16.mxu0 %v3677_v37  ;;  %v2352_v36 = vld [vmem:[%s13677_s8 + $0xae8] sm:$0xff]  ;;  %v3703_v37 = vunpack.c.l.s8.bf16 %v2341_v20 }
 0x30e   : > { %11258 = vmatprep.subr.bf16.mxu1 %v3693_v50  ;;  %v3710_v50 = vunpack.c.h.s8.bf16 %v2344_v0  ;;  %v3726_v51 = vunpack.c.h.s8.bf16 %v2352_v36 }
 0x310   : > { %11237 = vmatpush3.bf16.msra.mxu0 %v3669_v7  ;;  %v3702_v7 = vunpack.c.h.s8.bf16 %v2340_v9 }
 0x311   : > { %11259 = vmatpush3.bf16.msra.mxu1 %v3685_v52  ;;  %11238 = vmatprep.subr.bf16.mxu0 %v3676_v53  ;;  %v3718_v52 = vunpack.c.h.s8.bf16 %v2348_v48  ;;  %v3709_v53 = vunpack.c.l.s8.bf16 %v2344_v0 }
 0x312   : > { %11260 = vmatprep.subr.bf16.mxu1 %v3692_v13  ;;  %v3725_v13 = vunpack.c.l.s8.bf16 %v2352_v36 }
 0x314   : > { %11239 = vmatpush3.bf16.msra.mxu0 %v3668_v56  ;;  %v3701_v56 = vunpack.c.l.s8.bf16 %v2340_v9 }
 0x315   : > { %11261 = vmatpush3.bf16.msra.mxu1 %v3684_v3  ;;  %11240 = vmatprep.subr.bf16.mxu0 %v3675_v4  ;;  %v3717_v3 = vunpack.c.l.s8.bf16 %v2348_v48  ;;  %v3708_v4 = vunpack.c.h.s8.bf16 %v2343_v14 }
 0x316   : > { %11262 = vmatprep.subr.bf16.mxu1 %v3691_v1  ;;  %v3724_v1 = vunpack.c.h.s8.bf16 %v2351_v60  ;;  %v2356_v60 = vld [vmem:[%s13677_s8 + $0xb08] sm:$0xff] }
 0x318   : > { %11241 = vmatpush3.bf16.msra.mxu0 %v3667_v6  ;;  %v777_v6 = vcombine.high %v297_v63, %v297_v63  ;;  %v2364_v63 = vld [vmem:[%s13677_s8 + $0xb48] sm:$0xff] }
 0x319   : > { %11263 = vmatpush3.bf16.msra.mxu1 %v3683_v16  ;;  %11270 = vmatprep.subr.bf16.mxu0 %v3714_v8  ;;  %v3700_v16 = vunpack.c.h.s8.bf16 %v2339_v2  ;;  %v3716_v8 = vunpack.c.h.s8.bf16 %v2347_v18 }
 0x31a   : > { %11292 = vmatprep.subr.bf16.mxu1 %v3730_v34  ;;  %v3707_v34 = vunpack.c.l.s8.bf16 %v2343_v14 }
 0x31b   : > { %v10978_v15 = vpop.f32.mrf.mxu0  ;;  %6709 = vmatmul.mubr.bf16.vlgmr.msra.gmra.mxu0 %v1827_v10  ;;  %v14424_v10 = vrot.slane %v777_v6, %v13706_v38  ;;  %v298_v6 = vld [vmem:[%s13670_s10 + $0xb8] sm:$0xff] }
 0x31c   : > { %v11000_v29 = vpop.f32.mrf.mxu1  ;;  %6749 = vmatmul.mubr.bf16.vlgmr.msra.gmra.mxu1 %v1829_v55  ;;  %11271 = vmatpush3.bf16.msra.mxu0 %v3706_v22  ;;  %v3699_v55 = vunpack.c.l.s8.bf16 %v2339_v2  ;;  %v3715_v22 = vunpack.c.l.s8.bf16 %v2347_v18  ;;  %v2359_v2 = vld [vmem:[%s13677_s8 + $0xb20] sm:$0xff] }
 0x31d   : > { %11293 = vmatpush3.bf16.msra.mxu1 %v3722_v12  ;;  %v10979_v42 = vpop.f32.mrf.mxu0  ;;  %11272 = vmatprep.subr.bf16.mxu0 %v3713_v47  ;;  %v3746_v12 = vunpack.c.h.s8.bf16 %v2362_v24  ;;  %v3762_v47 = vunpack.c.h.s8.bf16 %v2370_v25  ;;  %v2367_v18 = vld [vmem:[%s13677_s8 + $0xb60] sm:$0xff] }
 0x31e   : > { %v11001_v43 = vpop.f32.mrf.mxu1  ;;  %11294 = vmatprep.subr.bf16.mxu1 %v3729_v30  ;;  %v10980_v39 = vadd.f32 %v10979_v42, %v10978_v15  ;;  %6788 = vmatprep.mubr.bf16.mxu0 %v1832_v26  ;;  %v2358_v30 = vld [vmem:[%s13677_s8 + $0xb18] sm:$0xff]  ;;  %v793_v26 = vcombine.high %v14424_v10, %v14424_v10  ;;  %v1833_v15 = vpack.c.bf16 %v14390_v46, %v14390_v46  ;;  %v3761_v42 = vunpack.c.l.s8.bf16 %v2370_v25  ;;  %v2363_v25 = vld [vmem:[%s13677_s8 + $0xb40] sm:$0xff] }
 0x31f   : > { %v11002_v57 = vadd.f32 %v11001_v43, %v11000_v29  ;;  %6828 = vmatprep.mubr.bf16.mxu1 %v1834_v61  ;;  %v10981_v58 = vpop.f32.mrf.mxu0  ;;  %v1831_v61 = vpack.c.bf16 %v14387_v11, %v14387_v11  ;;  %v3738_v29 = vunpack.c.h.s8.bf16 %v2358_v30  ;;  %v2361_v43 = vld [vmem:[%s13677_s8 + $0xb30] sm:$0xff]  ;;  %v3737_v11 = vunpack.c.l.s8.bf16 %v2358_v30 }
 0x320   : > { %v11003_v59 = vpop.f32.mrf.mxu1  ;;  %v6231_v49 = vadd.f32 %v10980_v39, %v14373_v40  ;;  %11273 = vmatpush3.bf16.msra.mxu0 %v3705_v17  ;;  %v3719_v40 = vunpack.c.l.s8.bf16 %v2349_v21  ;;  %v3754_v17 = vunpack.c.h.s8.bf16 %v2366_v31  ;;  %v1838_v20 = vpack.c.bf16 %v793_v26, %v793_v26 }
 0x321   : > { %11295 = vmatpush3.bf16.msra.mxu1 %v3721_v62  ;;  %v10982_v54 = vpop.f32.mrf.mxu0  ;;  %11274 = vmatprep.subr.bf16.mxu0 %v3712_v44  ;;  %v3745_v62 = vunpack.c.l.s8.bf16 %v2362_v24  ;;  %v2369_v44 = vld [vmem:[%s13677_s8 + $0xb70] sm:$0xff]  ;;  %v3753_v46 = vunpack.c.l.s8.bf16 %v2366_v31  ;;  %v3744_v59 = vunpack.c.h.s8.bf16 %v2361_v43  ;;  %v2355_v24 = vld [vmem:[%s13677_s8 + $0xb00] sm:$0xff]  ;;  %v3755_v30 = vunpack.c.l.s8.bf16 %v2367_v18  ;;  %v2378_v31 = vld [vmem:[%s13677_s8 + $0xbb8] sm:$0xff] }
 0x322   : > { %v11004_v41 = vpop.f32.mrf.mxu1  ;;  %11296 = vmatprep.subr.bf16.mxu1 %v3728_v33  ;;  %v14407_v35 = vadd.f32 %v11002_v57, %v6231_v49  ;;  %v1836_v33 = vpack.c.bf16 %v792_v32, %v792_v32  ;;  %v3760_v49 = vunpack.c.h.s8.bf16 %v2369_v44  ;;  %v3759_v9 = vunpack.c.l.s8.bf16 %v2369_v44  ;;  %v2386_v32 = vld [vmem:[%s13677_s8 + $0xbf8] sm:$0xff] }
 0x323   : > { %v14455_v26 = vrot.slane %v298_v6, %v13706_v38 }
 0x324   : > { %11275 = vmatpush3.bf16.msra.mxu0 %v3704_v27  ;;  %v2357_v27 = vld [vmem:[%s13677_s8 + $0xb10] sm:$0xff] }
 0x325   : > { %11297 = vmatpush3.bf16.msra.mxu1 %v3720_v28  ;;  %11276 = vmatprep.subr.bf16.mxu0 %v3711_v5  ;;  %v2365_v28 = vld [vmem:[%s13677_s8 + $0xb50] sm:$0xff]  ;;  %v3736_v36 = vunpack.c.h.s8.bf16 %v2357_v27  ;;  %v809_v44 = vcombine.high %v14455_v26, %v14455_v26 }
 0x326   : > { %11298 = vmatprep.subr.bf16.mxu1 %v3727_v45 }
 0x328   : > { %11277 = vmatpush3.bf16.msra.mxu0 %v3703_v37  ;;  %v3752_v37 = vunpack.c.h.s8.bf16 %v2365_v28 }
 0x329   : > { %11299 = vmatpush3.bf16.msra.mxu1 %v3719_v40  ;;  %11278 = vmatprep.subr.bf16.mxu0 %v3710_v50 }
 0x32a   : > { %11300 = vmatprep.subr.bf16.mxu1 %v3726_v51  ;;  %v3743_v51 = vunpack.c.l.s8.bf16 %v2361_v43  ;;  %v2382_v43 = vld [vmem:[%s13677_s8 + $0xbd8] sm:$0xff] }
 0x32c   : > { %11279 = vmatpush3.bf16.msra.mxu0 %v3702_v7  ;;  %v2360_v7 = vld [vmem:[%s13677_s8 + $0xb28] sm:$0xff] }
 0x32d   : > { %11301 = vmatpush3.bf16.msra.mxu1 %v3718_v52  ;;  %11280 = vmatprep.subr.bf16.mxu0 %v3709_v53  ;;  %v2368_v52 = vld [vmem:[%s13677_s8 + $0xb68] sm:$0xff]  ;;  %v3735_v53 = vunpack.c.l.s8.bf16 %v2357_v27 }
 0x32e   : > { %11302 = vmatprep.subr.bf16.mxu1 %v3725_v13  ;;  %v3742_v13 = vunpack.c.h.s8.bf16 %v2360_v7  ;;  %v3758_v14 = vunpack.c.h.s8.bf16 %v2368_v52 }
 0x330   : > { %11281 = vmatpush3.bf16.msra.mxu0 %v3701_v56  ;;  %v3734_v56 = vunpack.c.h.s8.bf16 %v2356_v60 }
 0x331   : > { %11303 = vmatpush3.bf16.msra.mxu1 %v3717_v3  ;;  %11282 = vmatprep.subr.bf16.mxu0 %v3708_v4  ;;  %v3750_v3 = vunpack.c.h.s8.bf16 %v2364_v63  ;;  %v3741_v4 = vunpack.c.l.s8.bf16 %v2360_v7 }
 0x332   : > { %11304 = vmatprep.subr.bf16.mxu1 %v3724_v1  ;;  %v3757_v1 = vunpack.c.l.s8.bf16 %v2368_v52 }
 0x334   : > { %11283 = vmatpush3.bf16.msra.mxu0 %v3700_v16  ;;  %v3733_v16 = vunpack.c.l.s8.bf16 %v2356_v60 }
 0x335   : > { %11305 = vmatpush3.bf16.msra.mxu1 %v3716_v8  ;;  %11284 = vmatprep.subr.bf16.mxu0 %v3707_v34  ;;  %v3749_v8 = vunpack.c.l.s8.bf16 %v2364_v63  ;;  %v3740_v34 = vunpack.c.h.s8.bf16 %v2359_v2 }
 0x336   : > { %11306 = vmatprep.subr.bf16.mxu1 %v3723_v23  ;;  %v3756_v23 = vunpack.c.h.s8.bf16 %v2367_v18  ;;  %v2372_v18 = vld [vmem:[%s13677_s8 + $0xb88] sm:$0xff] }
 0x338   : > { %11285 = vmatpush3.bf16.msra.mxu0 %v3699_v55  ;;  %v794_v55 = vcombine.high %v298_v6, %v298_v6  ;;  %v2380_v6 = vld [vmem:[%s13677_s8 + $0xbc8] sm:$0xff] }
 0x339   : > { %11307 = vmatpush3.bf16.msra.mxu1 %v3715_v22  ;;  %11314 = vmatprep.subr.bf16.mxu0 %v3746_v12  ;;  %v3732_v22 = vunpack.c.h.s8.bf16 %v2355_v24  ;;  %v3748_v12 = vunpack.c.h.s8.bf16 %v2363_v25 }
 0x33a   : > { %11336 = vmatprep.subr.bf16.mxu1 %v3762_v47  ;;  %v3739_v47 = vunpack.c.l.s8.bf16 %v2359_v2 }
 0x33b   : > { %v11022_v21 = vpop.f32.mrf.mxu0  ;;  %6789 = vmatmul.mubr.bf16.vlgmr.msra.gmra.mxu0 %v1831_v61  ;;  %v14458_v61 = vrot.slane %v794_v55, %v13706_v38  ;;  %v299_v55 = vld [vmem:[%s13670_s10 + $0xc0] sm:$0xff] }
 0x33c   : > { %v11044_v39 = vpop.f32.mrf.mxu1  ;;  %6829 = vmatmul.mubr.bf16.vlgmr.msra.gmra.mxu1 %v1833_v15  ;;  %11315 = vmatpush3.bf16.msra.mxu0 %v3738_v29  ;;  %v3731_v15 = vunpack.c.l.s8.bf16 %v2355_v24  ;;  %v3747_v29 = vunpack.c.l.s8.bf16 %v2363_v25  ;;  %v2375_v24 = vld [vmem:[%s13677_s8 + $0xba0] sm:$0xff] }
 0x33d   : > { %11337 = vmatpush3.bf16.msra.mxu1 %v3754_v17  ;;  %v11023_v57 = vpop.f32.mrf.mxu0  ;;  %11316 = vmatprep.subr.bf16.mxu0 %v3745_v62  ;;  %v3778_v17 = vunpack.c.h.s8.bf16 %v2378_v31  ;;  %v3794_v62 = vunpack.c.h.s8.bf16 %v2386_v32  ;;  %v2383_v25 = vld [vmem:[%s13677_s8 + $0xbe0] sm:$0xff] }
 0x33e   : > { %v11045_v58 = vpop.f32.mrf.mxu1  ;;  %11338 = vmatprep.subr.bf16.mxu1 %v3761_v42  ;;  %v11024_v54 = vadd.f32 %v11023_v57, %v11022_v21  ;;  %6868 = vmatprep.mubr.bf16.mxu0 %v1836_v33  ;;  %v2374_v42 = vld [vmem:[%s13677_s8 + $0xb98] sm:$0xff]  ;;  %v810_v33 = vcombine.high %v14458_v61, %v14458_v61  ;;  %v1837_v21 = vpack.c.bf16 %v14424_v10, %v14424_v10  ;;  %v3793_v57 = vunpack.c.l.s8.bf16 %v2386_v32  ;;  %v2379_v32 = vld [vmem:[%s13677_s8 + $0xbc0] sm:$0xff] }
 0x33f   : > { %v11046_v41 = vadd.f32 %v11045_v58, %v11044_v39  ;;  %6908 = vmatprep.mubr.bf16.mxu1 %v1838_v20  ;;  %v11025_v5 = vpop.f32.mrf.mxu0  ;;  %v1835_v20 = vpack.c.bf16 %v14421_v19, %v14421_v19  ;;  %v3770_v39 = vunpack.c.h.s8.bf16 %v2374_v42  ;;  %v2377_v58 = vld [vmem:[%s13677_s8 + $0xbb0] sm:$0xff]  ;;  %v3769_v19 = vunpack.c.l.s8.bf16 %v2374_v42 }
 0x340   : > { %v11047_v45 = vpop.f32.mrf.mxu1  ;;  %v6311_v0 = vadd.f32 %v11024_v54, %v14407_v35  ;;  %11317 = vmatpush3.bf16.msra.mxu0 %v3737_v11  ;;  %v3751_v35 = vunpack.c.l.s8.bf16 %v2365_v28  ;;  %v3786_v11 = vunpack.c.h.s8.bf16 %v2382_v43  ;;  %v1842_v27 = vpack.c.bf16 %v810_v33, %v810_v33 }
 0x341   : > { %11339 = vmatpush3.bf16.msra.mxu1 %v3753_v46  ;;  %v11026_v40 = vpop.f32.mrf.mxu0  ;;  %11318 = vmatprep.subr.bf16.mxu0 %v3744_v59  ;;  %v3777_v46 = vunpack.c.l.s8.bf16 %v2378_v31  ;;  %v2385_v59 = vld [vmem:[%s13677_s8 + $0xbf0] sm:$0xff]  ;;  %v3785_v10 = vunpack.c.l.s8.bf16 %v2382_v43  ;;  %v3776_v45 = vunpack.c.h.s8.bf16 %v2377_v58  ;;  %v2371_v31 = vld [vmem:[%s13677_s8 + $0xb80] sm:$0xff]  ;;  %v3787_v42 = vunpack.c.l.s8.bf16 %v2383_v25  ;;  %v2394_v43 = vld [vmem:[%s13677_s8 + $0xc38] sm:$0xff] }
 0x342   : > { %v11048_v50 = vpop.f32.mrf.mxu1  ;;  %11340 = vmatprep.subr.bf16.mxu1 %v3760_v49  ;;  %v14441_v48 = vadd.f32 %v11046_v41, %v6311_v0  ;;  %v1840_v49 = vpack.c.bf16 %v809_v44, %v809_v44  ;;  %v3792_v0 = vunpack.c.h.s8.bf16 %v2385_v59  ;;  %v3791_v60 = vunpack.c.l.s8.bf16 %v2385_v59  ;;  %v2402_v44 = vld [vmem:[%s13677_s8 + $0xc78] sm:$0xff] }
 0x343   : > { %v14489_v33 = vrot.slane %v299_v55, %v13706_v38 }
 0x344   : > { %11319 = vmatpush3.bf16.msra.mxu0 %v3736_v36  ;;  %v2373_v36 = vld [vmem:[%s13677_s8 + $0xb90] sm:$0xff] }
 0x345   : > { %11341 = vmatpush3.bf16.msra.mxu1 %v3752_v37  ;;  %11320 = vmatprep.subr.bf16.mxu0 %v3743_v51  ;;  %v2381_v37 = vld [vmem:[%s13677_s8 + $0xbd0] sm:$0xff]  ;;  %v3768_v52 = vunpack.c.h.s8.bf16 %v2373_v36  ;;  %v826_v59 = vcombine.high %v14489_v33, %v14489_v33 }
 0x346   : > { %11342 = vmatprep.subr.bf16.mxu1 %v3759_v9 }
 0x348   : > { %11321 = vmatpush3.bf16.msra.mxu0 %v3735_v53  ;;  %v3784_v53 = vunpack.c.h.s8.bf16 %v2381_v37 }
 0x349   : > { %11343 = vmatpush3.bf16.msra.mxu1 %v3751_v35  ;;  %11322 = vmatprep.subr.bf16.mxu0 %v3742_v13 }
 0x34a   : > { %11344 = vmatprep.subr.bf16.mxu1 %v3758_v14  ;;  %v3775_v14 = vunpack.c.l.s8.bf16 %v2377_v58  ;;  %v2398_v58 = vld [vmem:[%s13677_s8 + $0xc58] sm:$0xff] }
 0x34c   : > { %11323 = vmatpush3.bf16.msra.mxu0 %v3734_v56  ;;  %v2376_v56 = vld [vmem:[%s13677_s8 + $0xba8] sm:$0xff] }
 0x34d   : > { %11345 = vmatpush3.bf16.msra.mxu1 %v3750_v3  ;;  %11324 = vmatprep.subr.bf16.mxu0 %v3741_v4  ;;  %v2384_v3 = vld [vmem:[%s13677_s8 + $0xbe8] sm:$0xff]  ;;  %v3767_v4 = vunpack.c.l.s8.bf16 %v2373_v36 }
 0x34e   : > { %11346 = vmatprep.subr.bf16.mxu1 %v3757_v1  ;;  %v3774_v1 = vunpack.c.h.s8.bf16 %v2376_v56  ;;  %v3790_v2 = vunpack.c.h.s8.bf16 %v2384_v3 }
 0x350   : > { %11325 = vmatpush3.bf16.msra.mxu0 %v3733_v16  ;;  %v3766_v16 = vunpack.c.h.s8.bf16 %v2372_v18 }
 0x351   : > { %11347 = vmatpush3.bf16.msra.mxu1 %v3749_v8  ;;  %11326 = vmatprep.subr.bf16.mxu0 %v3740_v34  ;;  %v3782_v8 = vunpack.c.h.s8.bf16 %v2380_v6  ;;  %v3773_v34 = vunpack.c.l.s8.bf16 %v2376_v56 }
 0x352   : > { %11348 = vmatprep.subr.bf16.mxu1 %v3756_v23  ;;  %v3789_v23 = vunpack.c.l.s8.bf16 %v2384_v3 }
 0x354   : > { %11327 = vmatpush3.bf16.msra.mxu0 %v3732_v22  ;;  %v3765_v22 = vunpack.c.l.s8.bf16 %v2372_v18 }
 0x355   : > { %11349 = vmatpush3.bf16.msra.mxu1 %v3748_v12  ;;  %11328 = vmatprep.subr.bf16.mxu0 %v3739_v47  ;;  %v3781_v12 = vunpack.c.l.s8.bf16 %v2380_v6  ;;  %v3772_v47 = vunpack.c.h.s8.bf16 %v2375_v24 }
 0x356   : > { %11350 = vmatprep.subr.bf16.mxu1 %v3755_v30  ;;  %v3788_v30 = vunpack.c.h.s8.bf16 %v2383_v25  ;;  %v2388_v25 = vld [vmem:[%s13677_s8 + $0xc08] sm:$0xff] }
 0x358   : > { %11329 = vmatpush3.bf16.msra.mxu0 %v3731_v15  ;;  %v811_v15 = vcombine.high %v299_v55, %v299_v55  ;;  %v2396_v55 = vld [vmem:[%s13677_s8 + $0xc48] sm:$0xff] }
 0x359   : > { %11351 = vmatpush3.bf16.msra.mxu1 %v3747_v29  ;;  %11358 = vmatprep.subr.bf16.mxu0 %v3778_v17  ;;  %v3764_v29 = vunpack.c.h.s8.bf16 %v2371_v31  ;;  %v3780_v17 = vunpack.c.h.s8.bf16 %v2379_v32 }
 0x35a   : > { %11380 = vmatprep.subr.bf16.mxu1 %v3794_v62  ;;  %v3771_v62 = vunpack.c.l.s8.bf16 %v2375_v24 }
 0x35b   : > { %v11066_v28 = vpop.f32.mrf.mxu0  ;;  %6869 = vmatmul.mubr.bf16.vlgmr.msra.gmra.mxu0 %v1835_v20  ;;  %v14492_v20 = vrot.slane %v811_v15, %v13706_v38  ;;  %v300_v15 = vld [vmem:[%s13670_s10 + $0xc8] sm:$0xff] }
 0x35c   : > { %v11088_v54 = vpop.f32.mrf.mxu1  ;;  %6909 = vmatmul.mubr.bf16.vlgmr.msra.gmra.mxu1 %v1837_v21  ;;  %11359 = vmatpush3.bf16.msra.mxu0 %v3770_v39  ;;  %v3763_v21 = vunpack.c.l.s8.bf16 %v2371_v31  ;;  %v3779_v39 = vunpack.c.l.s8.bf16 %v2379_v32  ;;  %v2391_v31 = vld [vmem:[%s13677_s8 + $0xc20] sm:$0xff] }
 0x35d   : > { %11381 = vmatpush3.bf16.msra.mxu1 %v3786_v11  ;;  %v11067_v41 = vpop.f32.mrf.mxu0  ;;  %11360 = vmatprep.subr.bf16.mxu0 %v3777_v46  ;;  %v3810_v11 = vunpack.c.h.s8.bf16 %v2394_v43  ;;  %v3826_v46 = vunpack.c.h.s8.bf16 %v2402_v44  ;;  %v2399_v32 = vld [vmem:[%s13677_s8 + $0xc60] sm:$0xff] }
 0x35e   : > { %v11089_v5 = vpop.f32.mrf.mxu1  ;;  %11382 = vmatprep.subr.bf16.mxu1 %v3793_v57  ;;  %v11068_v40 = vadd.f32 %v11067_v41, %v11066_v28  ;;  %6948 = vmatprep.mubr.bf16.mxu0 %v1840_v49  ;;  %v2390_v57 = vld [vmem:[%s13677_s8 + $0xc18] sm:$0xff]  ;;  %v827_v49 = vcombine.high %v14492_v20, %v14492_v20  ;;  %v1841_v28 = vpack.c.bf16 %v14458_v61, %v14458_v61  ;;  %v3825_v41 = vunpack.c.l.s8.bf16 %v2402_v44  ;;  %v2395_v44 = vld [vmem:[%s13677_s8 + $0xc40] sm:$0xff] }
 0x35f   : > { %v11090_v50 = vadd.f32 %v11089_v5, %v11088_v54  ;;  %6988 = vmatprep.mubr.bf16.mxu1 %v1842_v27  ;;  %v11069_v51 = vpop.f32.mrf.mxu0  ;;  %v1839_v27 = vpack.c.bf16 %v14455_v26, %v14455_v26  ;;  %v3802_v54 = vunpack.c.h.s8.bf16 %v2390_v57  ;;  %v2393_v5 = vld [vmem:[%s13677_s8 + $0xc30] sm:$0xff]  ;;  %v3801_v26 = vunpack.c.l.s8.bf16 %v2390_v57 }
 0x360   : > { %v11091_v9 = vpop.f32.mrf.mxu1  ;;  %v6391_v7 = vadd.f32 %v11068_v40, %v14441_v48  ;;  %11361 = vmatpush3.bf16.msra.mxu0 %v3769_v19  ;;  %v3783_v48 = vunpack.c.l.s8.bf16 %v2381_v37  ;;  %v3818_v19 = vunpack.c.h.s8.bf16 %v2398_v58  ;;  %v1846_v36 = vpack.c.bf16 %v827_v49, %v827_v49 }
 0x361   : > { %11383 = vmatpush3.bf16.msra.mxu1 %v3785_v10  ;;  %v11070_v35 = vpop.f32.mrf.mxu0  ;;  %11362 = vmatprep.subr.bf16.mxu0 %v3776_v45  ;;  %v3809_v10 = vunpack.c.l.s8.bf16 %v2394_v43  ;;  %v2401_v45 = vld [vmem:[%s13677_s8 + $0xc70] sm:$0xff]  ;;  %v3817_v61 = vunpack.c.l.s8.bf16 %v2398_v58  ;;  %v3808_v9 = vunpack.c.h.s8.bf16 %v2393_v5  ;;  %v2387_v43 = vld [vmem:[%s13677_s8 + $0xc00] sm:$0xff]  ;;  %v3819_v57 = vunpack.c.l.s8.bf16 %v2399_v32  ;;  %v2410_v58 = vld [vmem:[%s13677_s8 + $0xcb8] sm:$0xff] }
 0x362   : > { %v11092_v13 = vpop.f32.mrf.mxu1  ;;  %11384 = vmatprep.subr.bf16.mxu1 %v3792_v0  ;;  %v14475_v63 = vadd.f32 %v11090_v50, %v6391_v7  ;;  %v1844_v0 = vpack.c.bf16 %v826_v59, %v826_v59  ;;  %v3824_v7 = vunpack.c.h.s8.bf16 %v2401_v45  ;;  %v3823_v18 = vunpack.c.l.s8.bf16 %v2401_v45  ;;  %v2418_v59 = vld [vmem:[%s13677_s8 + $0xcf8] sm:$0xff] }
 0x363   : > { %v14523_v49 = vrot.slane %v300_v15, %v13706_v38 }
 0x364   : > { %11363 = vmatpush3.bf16.msra.mxu0 %v3768_v52  ;;  %v2389_v52 = vld [vmem:[%s13677_s8 + $0xc10] sm:$0xff] }
 0x365   : > { %11385 = vmatpush3.bf16.msra.mxu1 %v3784_v53  ;;  %11364 = vmatprep.subr.bf16.mxu0 %v3775_v14  ;;  %v2397_v53 = vld [vmem:[%s13677_s8 + $0xc50] sm:$0xff]  ;;  %v3800_v3 = vunpack.c.h.s8.bf16 %v2389_v52  ;;  %v843_v45 = vcombine.high %v14523_v49, %v14523_v49 }
 0x366   : > { %11386 = vmatprep.subr.bf16.mxu1 %v3791_v60 }
 0x368   : > { %11365 = vmatpush3.bf16.msra.mxu0 %v3767_v4  ;;  %v3816_v4 = vunpack.c.h.s8.bf16 %v2397_v53 }
 0x369   : > { %11387 = vmatpush3.bf16.msra.mxu1 %v3783_v48  ;;  %11366 = vmatprep.subr.bf16.mxu0 %v3774_v1 }
 0x36a   : > { %11388 = vmatprep.subr.bf16.mxu1 %v3790_v2  ;;  %v3807_v2 = vunpack.c.l.s8.bf16 %v2393_v5  ;;  %v2414_v5 = vld [vmem:[%s13677_s8 + $0xcd8] sm:$0xff] }
 0x36c   : > { %11367 = vmatpush3.bf16.msra.mxu0 %v3766_v16  ;;  %v2392_v16 = vld [vmem:[%s13677_s8 + $0xc28] sm:$0xff] }
 0x36d   : > { %11389 = vmatpush3.bf16.msra.mxu1 %v3782_v8  ;;  %11368 = vmatprep.subr.bf16.mxu0 %v3773_v34  ;;  %v2400_v8 = vld [vmem:[%s13677_s8 + $0xc68] sm:$0xff]  ;;  %v3799_v34 = vunpack.c.l.s8.bf16 %v2389_v52 }
 0x36e   : > { %11390 = vmatprep.subr.bf16.mxu1 %v3789_v23  ;;  %v3806_v23 = vunpack.c.h.s8.bf16 %v2392_v16  ;;  %v3822_v24 = vunpack.c.h.s8.bf16 %v2400_v8 }
 0x370   : > { %11369 = vmatpush3.bf16.msra.mxu0 %v3765_v22  ;;  %v3798_v22 = vunpack.c.h.s8.bf16 %v2388_v25 }
 0x371   : > { %11391 = vmatpush3.bf16.msra.mxu1 %v3781_v12  ;;  %11370 = vmatprep.subr.bf16.mxu0 %v3772_v47  ;;  %v3814_v12 = vunpack.c.h.s8.bf16 %v2396_v55  ;;  %v3805_v47 = vunpack.c.l.s8.bf16 %v2392_v16 }
 0x372   : > { %11392 = vmatprep.subr.bf16.mxu1 %v3788_v30  ;;  %v3821_v30 = vunpack.c.l.s8.bf16 %v2400_v8 }
 0x374   : > { %11371 = vmatpush3.bf16.msra.mxu0 %v3764_v29  ;;  %v3797_v29 = vunpack.c.l.s8.bf16 %v2388_v25 }
 0x375   : > { %11393 = vmatpush3.bf16.msra.mxu1 %v3780_v17  ;;  %11372 = vmatprep.subr.bf16.mxu0 %v3771_v62  ;;  %v3813_v17 = vunpack.c.l.s8.bf16 %v2396_v55  ;;  %v3804_v62 = vunpack.c.h.s8.bf16 %v2391_v31 }
 0x376   : > { %11394 = vmatprep.subr.bf16.mxu1 %v3787_v42  ;;  %v3820_v42 = vunpack.c.h.s8.bf16 %v2399_v32  ;;  %v2404_v32 = vld [vmem:[%s13677_s8 + $0xc88] sm:$0xff] }
 0x378   : > { %11373 = vmatpush3.bf16.msra.mxu0 %v3763_v21  ;;  %v828_v21 = vcombine.high %v300_v15, %v300_v15  ;;  %v2412_v15 = vld [vmem:[%s13677_s8 + $0xcc8] sm:$0xff] }
 0x379   : > { %11395 = vmatpush3.bf16.msra.mxu1 %v3779_v39  ;;  %11402 = vmatprep.subr.bf16.mxu0 %v3810_v11  ;;  %v3796_v39 = vunpack.c.h.s8.bf16 %v2387_v43  ;;  %v3812_v11 = vunpack.c.h.s8.bf16 %v2395_v44 }
 0x37a   : > { %11424 = vmatprep.subr.bf16.mxu1 %v3826_v46  ;;  %v3803_v46 = vunpack.c.l.s8.bf16 %v2391_v31 }
 0x37b   : > { %v11110_v37 = vpop.f32.mrf.mxu0  ;;  %6949 = vmatmul.mubr.bf16.vlgmr.msra.gmra.mxu0 %v1839_v27  ;;  %v14526_v27 = vrot.slane %v828_v21, %v13706_v38  ;;  %v301_v21 = vld [vmem:[%s13670_s10 + $0xd0] sm:$0xff] }
 0x37c   : > { %v11132_v40 = vpop.f32.mrf.mxu1  ;;  %6989 = vmatmul.mubr.bf16.vlgmr.msra.gmra.mxu1 %v1841_v28  ;;  %11403 = vmatpush3.bf16.msra.mxu0 %v3802_v54  ;;  %v3795_v28 = vunpack.c.l.s8.bf16 %v2387_v43  ;;  %v3811_v54 = vunpack.c.l.s8.bf16 %v2395_v44  ;;  %v2407_v43 = vld [vmem:[%s13677_s8 + $0xca0] sm:$0xff] }
 0x37d   : > { %11425 = vmatpush3.bf16.msra.mxu1 %v3818_v19  ;;  %v11111_v50 = vpop.f32.mrf.mxu0  ;;  %11404 = vmatprep.subr.bf16.mxu0 %v3809_v10  ;;  %v3842_v19 = vunpack.c.h.s8.bf16 %v2410_v58  ;;  %v3858_v10 = vunpack.c.h.s8.bf16 %v2418_v59  ;;  %v2415_v44 = vld [vmem:[%s13677_s8 + $0xce0] sm:$0xff] }
 0x37e   : > { %v11133_v51 = vpop.f32.mrf.mxu1  ;;  %11426 = vmatprep.subr.bf16.mxu1 %v3825_v41  ;;  %v11112_v35 = vadd.f32 %v11111_v50, %v11110_v37  ;;  %7028 = vmatprep.mubr.bf16.mxu0 %v1844_v0  ;;  %v2406_v41 = vld [vmem:[%s13677_s8 + $0xc98] sm:$0xff]  ;;  %v844_v0 = vcombine.high %v14526_v27, %v14526_v27  ;;  %v1845_v37 = vpack.c.bf16 %v14492_v20, %v14492_v20  ;;  %v3857_v50 = vunpack.c.l.s8.bf16 %v2418_v59  ;;  %v2411_v59 = vld [vmem:[%s13677_s8 + $0xcc0] sm:$0xff] }
 0x37f   : > { %v11134_v13 = vadd.f32 %v11133_v51, %v11132_v40  ;;  %7068 = vmatprep.mubr.bf16.mxu1 %v1846_v36  ;;  %v11113_v14 = vpop.f32.mrf.mxu0  ;;  %v1843_v36 = vpack.c.bf16 %v14489_v33, %v14489_v33  ;;  %v3834_v40 = vunpack.c.h.s8.bf16 %v2406_v41  ;;  %v2409_v51 = vld [vmem:[%s13677_s8 + $0xcb0] sm:$0xff]  ;;  %v3833_v33 = vunpack.c.l.s8.bf16 %v2406_v41 }
 0x380   : > { %v11135_v60 = vpop.f32.mrf.mxu1  ;;  %v6471_v56 = vadd.f32 %v11112_v35, %v14475_v63  ;;  %11405 = vmatpush3.bf16.msra.mxu0 %v3801_v26  ;;  %v3815_v63 = vunpack.c.l.s8.bf16 %v2397_v53  ;;  %v3850_v26 = vunpack.c.h.s8.bf16 %v2414_v5  ;;  %v1850_v52 = vpack.c.bf16 %v844_v0, %v844_v0 }
 0x381   : > { %11427 = vmatpush3.bf16.msra.mxu1 %v3817_v61  ;;  %v11114_v48 = vpop.f32.mrf.mxu0  ;;  %11406 = vmatprep.subr.bf16.mxu0 %v3808_v9  ;;  %v3841_v61 = vunpack.c.l.s8.bf16 %v2410_v58  ;;  %v2417_v9 = vld [vmem:[%s13677_s8 + $0xcf0] sm:$0xff]  ;;  %v3849_v20 = vunpack.c.l.s8.bf16 %v2414_v5  ;;  %v3840_v60 = vunpack.c.h.s8.bf16 %v2409_v51  ;;  %v2403_v58 = vld [vmem:[%s13677_s8 + $0xc80] sm:$0xff]  ;;  %v3851_v41 = vunpack.c.l.s8.bf16 %v2415_v44  ;;  %v2426_v5 = vld [vmem:[%s13677_s8 + $0xd38] sm:$0xff] }
 0x382   : > { %v11136_v1 = vpop.f32.mrf.mxu1  ;;  %11428 = vmatprep.subr.bf16.mxu1 %v3824_v7  ;;  %v14509_v6 = vadd.f32 %v11134_v13, %v6471_v56  ;;  %v1848_v7 = vpack.c.bf16 %v843_v45, %v843_v45  ;;  %v3856_v56 = vunpack.c.h.s8.bf16 %v2417_v9  ;;  %v3855_v25 = vunpack.c.l.s8.bf16 %v2417_v9  ;;  %v2434_v45 = vld [vmem:[%s13677_s8 + $0xd78] sm:$0xff] }
 0x383   : > { %v14557_v0 = vrot.slane %v301_v21, %v13706_v38 }
 0x384   : > { %11407 = vmatpush3.bf16.msra.mxu0 %v3800_v3  ;;  %v2405_v3 = vld [vmem:[%s13677_s8 + $0xc90] sm:$0xff] }
 0x385   : > { %11429 = vmatpush3.bf16.msra.mxu1 %v3816_v4  ;;  %11408 = vmatprep.subr.bf16.mxu0 %v3807_v2  ;;  %v2413_v4 = vld [vmem:[%s13677_s8 + $0xcd0] sm:$0xff]  ;;  %v3832_v8 = vunpack.c.h.s8.bf16 %v2405_v3  ;;  %v860_v9 = vcombine.high %v14557_v0, %v14557_v0 }
 0x386   : > { %11430 = vmatprep.subr.bf16.mxu1 %v3823_v18 }
 0x388   : > { %11409 = vmatpush3.bf16.msra.mxu0 %v3799_v34  ;;  %v3848_v34 = vunpack.c.h.s8.bf16 %v2413_v4 }
 0x389   : > { %11431 = vmatpush3.bf16.msra.mxu1 %v3815_v63  ;;  %11410 = vmatprep.subr.bf16.mxu0 %v3806_v23 }
 0x38a   : > { %11432 = vmatprep.subr.bf16.mxu1 %v3822_v24  ;;  %v3839_v24 = vunpack.c.l.s8.bf16 %v2409_v51  ;;  %v2430_v51 = vld [vmem:[%s13677_s8 + $0xd58] sm:$0xff] }
 0x38c   : > { %11411 = vmatpush3.bf16.msra.mxu0 %v3798_v22  ;;  %v2408_v22 = vld [vmem:[%s13677_s8 + $0xca8] sm:$0xff] }
 0x38d   : > { %11433 = vmatpush3.bf16.msra.mxu1 %v3814_v12  ;;  %11412 = vmatprep.subr.bf16.mxu0 %v3805_v47  ;;  %v2416_v12 = vld [vmem:[%s13677_s8 + $0xce8] sm:$0xff]  ;;  %v3831_v47 = vunpack.c.l.s8.bf16 %v2405_v3 }
 0x38e   : > { %11434 = vmatprep.subr.bf16.mxu1 %v3821_v30  ;;  %v3838_v30 = vunpack.c.h.s8.bf16 %v2408_v22  ;;  %v3854_v31 = vunpack.c.h.s8.bf16 %v2416_v12 }
 0x390   : > { %11413 = vmatpush3.bf16.msra.mxu0 %v3797_v29  ;;  %v3830_v29 = vunpack.c.h.s8.bf16 %v2404_v32 }
 0x391   : > { %11435 = vmatpush3.bf16.msra.mxu1 %v3813_v17  ;;  %11414 = vmatprep.subr.bf16.mxu0 %v3804_v62  ;;  %v3846_v17 = vunpack.c.h.s8.bf16 %v2412_v15  ;;  %v3837_v62 = vunpack.c.l.s8.bf16 %v2408_v22 }
 0x392   : > { %11436 = vmatprep.subr.bf16.mxu1 %v3820_v42  ;;  %v3853_v42 = vunpack.c.l.s8.bf16 %v2416_v12 }
 0x394   : > { %11415 = vmatpush3.bf16.msra.mxu0 %v3796_v39  ;;  %v3829_v39 = vunpack.c.l.s8.bf16 %v2404_v32 }
 0x395   : > { %11437 = vmatpush3.bf16.msra.mxu1 %v3812_v11  ;;  %11416 = vmatprep.subr.bf16.mxu0 %v3803_v46  ;;  %v3845_v11 = vunpack.c.l.s8.bf16 %v2412_v15  ;;  %v3836_v46 = vunpack.c.h.s8.bf16 %v2407_v43 }
 0x396   : > { %11438 = vmatprep.subr.bf16.mxu1 %v3819_v57  ;;  %v3852_v57 = vunpack.c.h.s8.bf16 %v2415_v44  ;;  %v2420_v44 = vld [vmem:[%s13677_s8 + $0xd08] sm:$0xff] }
 0x398   : > { %11417 = vmatpush3.bf16.msra.mxu0 %v3795_v28  ;;  %v845_v28 = vcombine.high %v301_v21, %v301_v21  ;;  %v2428_v21 = vld [vmem:[%s13677_s8 + $0xd48] sm:$0xff] }
 0x399   : > { %11439 = vmatpush3.bf16.msra.mxu1 %v3811_v54  ;;  %11446 = vmatprep.subr.bf16.mxu0 %v3842_v19  ;;  %v3828_v54 = vunpack.c.h.s8.bf16 %v2403_v58  ;;  %v3844_v19 = vunpack.c.h.s8.bf16 %v2411_v59 }
 0x39a   : > { %11468 = vmatprep.subr.bf16.mxu1 %v3858_v10  ;;  %v3835_v10 = vunpack.c.l.s8.bf16 %v2407_v43 }
 0x39b   : > { %v11154_v53 = vpop.f32.mrf.mxu0  ;;  %7029 = vmatmul.mubr.bf16.vlgmr.msra.gmra.mxu0 %v1843_v36  ;;  %v14560_v36 = vrot.slane %v845_v28, %v13706_v38  ;;  %v302_v28 = vld [vmem:[%s13670_s10 + $0xd8] sm:$0xff] }
 0x39c   : > { %v11176_v35 = vpop.f32.mrf.mxu1  ;;  %7069 = vmatmul.mubr.bf16.vlgmr.msra.gmra.mxu1 %v1845_v37  ;;  %11447 = vmatpush3.bf16.msra.mxu0 %v3834_v40  ;;  %v3827_v37 = vunpack.c.l.s8.bf16 %v2403_v58  ;;  %v3843_v40 = vunpack.c.l.s8.bf16 %v2411_v59  ;;  %v2423_v58 = vld [vmem:[%s13677_s8 + $0xd20] sm:$0xff] }
 0x39d   : > { %11469 = vmatpush3.bf16.msra.mxu1 %v3850_v26  ;;  %v11155_v13 = vpop.f32.mrf.mxu0  ;;  %11448 = vmatprep.subr.bf16.mxu0 %v3841_v61  ;;  %v3874_v26 = vunpack.c.h.s8.bf16 %v2426_v5  ;;  %v3890_v61 = vunpack.c.h.s8.bf16 %v2434_v45  ;;  %v2431_v59 = vld [vmem:[%s13677_s8 + $0xd60] sm:$0xff] }
 0x39e   : > { %v11177_v14 = vpop.f32.mrf.mxu1  ;;  %11470 = vmatprep.subr.bf16.mxu1 %v3857_v50  ;;  %v11156_v48 = vadd.f32 %v11155_v13, %v11154_v53  ;;  %7108 = vmatprep.mubr.bf16.mxu0 %v1848_v7  ;;  %v2422_v50 = vld [vmem:[%s13677_s8 + $0xd18] sm:$0xff]  ;;  %v861_v7 = vcombine.high %v14560_v36, %v14560_v36  ;;  %v1849_v53 = vpack.c.bf16 %v14526_v27, %v14526_v27  ;;  %v3889_v13 = vunpack.c.l.s8.bf16 %v2434_v45  ;;  %v2427_v45 = vld [vmem:[%s13677_s8 + $0xd40] sm:$0xff] }
 0x39f   : > { %v11178_v1 = vadd.f32 %v11177_v14, %v11176_v35  ;;  %7148 = vmatprep.mubr.bf16.mxu1 %v1850_v52  ;;  %v11157_v2 = vpop.f32.mrf.mxu0  ;;  %v1847_v52 = vpack.c.bf16 %v14523_v49, %v14523_v49  ;;  %v3866_v35 = vunpack.c.h.s8.bf16 %v2422_v50  ;;  %v2425_v14 = vld [vmem:[%s13677_s8 + $0xd30] sm:$0xff]  ;;  %v3865_v49 = vunpack.c.l.s8.bf16 %v2422_v50 }
 0x3a0   : > { %v11179_v18 = vpop.f32.mrf.mxu1  ;;  %v6551_v16 = vadd.f32 %v11156_v48, %v14509_v6  ;;  %11449 = vmatpush3.bf16.msra.mxu0 %v3833_v33  ;;  %v3847_v6 = vunpack.c.l.s8.bf16 %v2413_v4  ;;  %v3882_v33 = vunpack.c.h.s8.bf16 %v2430_v51  ;;  %v1854_v3 = vpack.c.bf16 %v861_v7, %v861_v7 }
 0x3a1   : > { %11471 = vmatpush3.bf16.msra.mxu1 %v3849_v20  ;;  %v11158_v63 = vpop.f32.mrf.mxu0  ;;  %11450 = vmatprep.subr.bf16.mxu0 %v3840_v60  ;;  %v3873_v20 = vunpack.c.l.s8.bf16 %v2426_v5  ;;  %v2433_v60 = vld [vmem:[%s13677_s8 + $0xd70] sm:$0xff]  ;;  %v3881_v27 = vunpack.c.l.s8.bf16 %v2430_v51  ;;  %v3872_v18 = vunpack.c.h.s8.bf16 %v2425_v14  ;;  %v2419_v5 = vld [vmem:[%s13677_s8 + $0xd00] sm:$0xff]  ;;  %v3883_v50 = vunpack.c.l.s8.bf16 %v2431_v59  ;;  %v2442_v51 = vld [vmem:[%s13677_s8 + $0xdb8] sm:$0xff] }
 0x3a2   : > { %v11180_v23 = vpop.f32.mrf.mxu1  ;;  %11472 = vmatprep.subr.bf16.mxu1 %v3856_v56  ;;  %v14543_v55 = vadd.f32 %v11178_v1, %v6551_v16  ;;  %v1852_v56 = vpack.c.bf16 %v860_v9, %v860_v9  ;;  %v3888_v16 = vunpack.c.h.s8.bf16 %v2433_v60  ;;  %v3887_v32 = vunpack.c.l.s8.bf16 %v2433_v60  ;;  %v2450_v9 = vld [vmem:[%s13677_s8 + $0xdf8] sm:$0xff] }
 0x3a3   : > { %v14591_v7 = vrot.slane %v302_v28, %v13706_v38 }
 0x3a4   : > { %11451 = vmatpush3.bf16.msra.mxu0 %v3832_v8  ;;  %v2421_v8 = vld [vmem:[%s13677_s8 + $0xd10] sm:$0xff] }
 0x3a5   : > { %11473 = vmatpush3.bf16.msra.mxu1 %v3848_v34  ;;  %11452 = vmatprep.subr.bf16.mxu0 %v3839_v24  ;;  %v2429_v34 = vld [vmem:[%s13677_s8 + $0xd50] sm:$0xff]  ;;  %v3864_v12 = vunpack.c.h.s8.bf16 %v2421_v8  ;;  %v877_v60 = vcombine.high %v14591_v7, %v14591_v7 }
 0x3a6   : > { %11474 = vmatprep.subr.bf16.mxu1 %v3855_v25 }
 0x3a8   : > { %11453 = vmatpush3.bf16.msra.mxu0 %v3831_v47  ;;  %v3880_v47 = vunpack.c.h.s8.bf16 %v2429_v34 }
 0x3a9   : > { %11475 = vmatpush3.bf16.msra.mxu1 %v3847_v6  ;;  %11454 = vmatprep.subr.bf16.mxu0 %v3838_v30 }
 0x3aa   : > { %11476 = vmatprep.subr.bf16.mxu1 %v3854_v31  ;;  %v3871_v31 = vunpack.c.l.s8.bf16 %v2425_v14  ;;  %v2446_v14 = vld [vmem:[%s13677_s8 + $0xdd8] sm:$0xff] }
 0x3ac   : > { %11455 = vmatpush3.bf16.msra.mxu0 %v3830_v29  ;;  %v2424_v29 = vld [vmem:[%s13677_s8 + $0xd28] sm:$0xff] }
 0x3ad   : > { %11477 = vmatpush3.bf16.msra.mxu1 %v3846_v17  ;;  %11456 = vmatprep.subr.bf16.mxu0 %v3837_v62  ;;  %v2432_v17 = vld [vmem:[%s13677_s8 + $0xd68] sm:$0xff]  ;;  %v3863_v62 = vunpack.c.l.s8.bf16 %v2421_v8 }
 0x3ae   : > { %11478 = vmatprep.subr.bf16.mxu1 %v3853_v42  ;;  %v3870_v42 = vunpack.c.h.s8.bf16 %v2424_v29  ;;  %v3886_v43 = vunpack.c.h.s8.bf16 %v2432_v17 }
 0x3b0   : > { %11457 = vmatpush3.bf16.msra.mxu0 %v3829_v39  ;;  %v3862_v39 = vunpack.c.h.s8.bf16 %v2420_v44 }
 0x3b1   : > { %11479 = vmatpush3.bf16.msra.mxu1 %v3845_v11  ;;  %11458 = vmatprep.subr.bf16.mxu0 %v3836_v46  ;;  %v3878_v11 = vunpack.c.h.s8.bf16 %v2428_v21  ;;  %v3869_v46 = vunpack.c.l.s8.bf16 %v2424_v29 }
 0x3b2   : > { %11480 = vmatprep.subr.bf16.mxu1 %v3852_v57  ;;  %v3885_v57 = vunpack.c.l.s8.bf16 %v2432_v17 }
 0x3b4   : > { %11459 = vmatpush3.bf16.msra.mxu0 %v3828_v54  ;;  %v3861_v54 = vunpack.c.l.s8.bf16 %v2420_v44 }
 0x3b5   : > { %11481 = vmatpush3.bf16.msra.mxu1 %v3844_v19  ;;  %11460 = vmatprep.subr.bf16.mxu0 %v3835_v10  ;;  %v3877_v19 = vunpack.c.l.s8.bf16 %v2428_v21  ;;  %v3868_v10 = vunpack.c.h.s8.bf16 %v2423_v58 }
 0x3b6   : > { %11482 = vmatprep.subr.bf16.mxu1 %v3851_v41  ;;  %v3884_v41 = vunpack.c.h.s8.bf16 %v2431_v59  ;;  %v2436_v59 = vld [vmem:[%s13677_s8 + $0xd88] sm:$0xff] }
 0x3b8   : > { %11461 = vmatpush3.bf16.msra.mxu0 %v3827_v37  ;;  %v862_v37 = vcombine.high %v302_v28, %v302_v28  ;;  %v2444_v28 = vld [vmem:[%s13677_s8 + $0xdc8] sm:$0xff] }
 0x3b9   : > { %11483 = vmatpush3.bf16.msra.mxu1 %v3843_v40  ;;  %11490 = vmatprep.subr.bf16.mxu0 %v3874_v26  ;;  %v3860_v40 = vunpack.c.h.s8.bf16 %v2419_v5  ;;  %v3876_v26 = vunpack.c.h.s8.bf16 %v2427_v45 }
 0x3ba   : > { %11512 = vmatprep.subr.bf16.mxu1 %v3890_v61  ;;  %v3867_v61 = vunpack.c.l.s8.bf16 %v2423_v58 }
 0x3bb   : > { %v11198_v4 = vpop.f32.mrf.mxu0  ;;  %7109 = vmatmul.mubr.bf16.vlgmr.msra.gmra.mxu0 %v1847_v52  ;;  %v14594_v52 = vrot.slane %v862_v37, %v13706_v38  ;;  %v303_v37 = vld [vmem:[%s13670_s10 + $0xe0] sm:$0xff] }
 0x3bc   : > { %v11220_v48 = vpop.f32.mrf.mxu1  ;;  %7149 = vmatmul.mubr.bf16.vlgmr.msra.gmra.mxu1 %v1849_v53  ;;  %11491 = vmatpush3.bf16.msra.mxu0 %v3866_v35  ;;  %v3859_v53 = vunpack.c.l.s8.bf16 %v2419_v5  ;;  %v3875_v35 = vunpack.c.l.s8.bf16 %v2427_v45  ;;  %v2439_v5 = vld [vmem:[%s13677_s8 + $0xda0] sm:$0xff] }
 0x3bd   : > { %11513 = vmatpush3.bf16.msra.mxu1 %v3882_v33  ;;  %v11199_v1 = vpop.f32.mrf.mxu0  ;;  %11492 = vmatprep.subr.bf16.mxu0 %v3873_v20  ;;  %v3906_v33 = vunpack.c.h.s8.bf16 %v2442_v51  ;;  %v3922_v20 = vunpack.c.h.s8.bf16 %v2450_v9  ;;  %v2447_v45 = vld [vmem:[%s13677_s8 + $0xde0] sm:$0xff] }
 0x3be   : > { %v11221_v2 = vpop.f32.mrf.mxu1  ;;  %11514 = vmatprep.subr.bf16.mxu1 %v3889_v13  ;;  %v11200_v63 = vadd.f32 %v11199_v1, %v11198_v4  ;;  %7188 = vmatprep.mubr.bf16.mxu0 %v1852_v56  ;;  %v2438_v13 = vld [vmem:[%s13677_s8 + $0xd98] sm:$0xff]  ;;  %v878_v56 = vcombine.high %v14594_v52, %v14594_v52  ;;  %v1853_v4 = vpack.c.bf16 %v14560_v36, %v14560_v36  ;;  %v3921_v1 = vunpack.c.l.s8.bf16 %v2450_v9  ;;  %v2443_v9 = vld [vmem:[%s13677_s8 + $0xdc0] sm:$0xff] }
 0x3bf   : > { %v11222_v23 = vadd.f32 %v11221_v2, %v11220_v48  ;;  %7228 = vmatprep.mubr.bf16.mxu1 %v1854_v3  ;;  %v11201_v24 = vpop.f32.mrf.mxu0  ;;  %v1851_v3 = vpack.c.bf16 %v14557_v0, %v14557_v0  ;;  %v3898_v48 = vunpack.c.h.s8.bf16 %v2438_v13  ;;  %v2441_v2 = vld [vmem:[%s13677_s8 + $0xdb0] sm:$0xff]  ;;  %v3897_v0 = vunpack.c.l.s8.bf16 %v2438_v13 }
 0x3c0   : > { %v11223_v25 = vpop.f32.mrf.mxu1  ;;  %v6631_v22 = vadd.f32 %v11200_v63, %v14543_v55  ;;  %11493 = vmatpush3.bf16.msra.mxu0 %v3865_v49  ;;  %v3879_v55 = vunpack.c.l.s8.bf16 %v2429_v34  ;;  %v3914_v49 = vunpack.c.h.s8.bf16 %v2446_v14  ;;  %v1858_v8 = vpack.c.bf16 %v878_v56, %v878_v56 }
 0x3c1   : > { %11515 = vmatpush3.bf16.msra.mxu1 %v3881_v27  ;;  %v11202_v6 = vpop.f32.mrf.mxu0  ;;  %11494 = vmatprep.subr.bf16.mxu0 %v3872_v18  ;;  %v3905_v27 = vunpack.c.l.s8.bf16 %v2442_v51  ;;  %v2449_v18 = vld [vmem:[%s13677_s8 + $0xdf0] sm:$0xff]  ;;  %v3913_v36 = vunpack.c.l.s8.bf16 %v2446_v14  ;;  %v3904_v25 = vunpack.c.h.s8.bf16 %v2441_v2  ;;  %v2435_v51 = vld [vmem:[%s13677_s8 + $0xd80] sm:$0xff]  ;;  %v3915_v13 = vunpack.c.l.s8.bf16 %v2447_v45  ;;  %v2458_v14 = vld [vmem:[%s13677_s8 + $0xe38] sm:$0xff] }
 0x3c2   : > { %v11224_v30 = vpop.f32.mrf.mxu1  ;;  %11516 = vmatprep.subr.bf16.mxu1 %v3888_v16  ;;  %v14577_v15 = vadd.f32 %v11222_v23, %v6631_v22  ;;  %v1856_v16 = vpack.c.bf16 %v877_v60, %v877_v60  ;;  %v3920_v22 = vunpack.c.h.s8.bf16 %v2449_v18  ;;  %v3919_v44 = vunpack.c.l.s8.bf16 %v2449_v18  ;;  %v2466_v60 = vld [vmem:[%s13677_s8 + $0xe78] sm:$0xff] }
 0x3c3   : > { %v14625_v56 = vrot.slane %v303_v37, %v13706_v38 }
 0x3c4   : > { %11495 = vmatpush3.bf16.msra.mxu0 %v3864_v12  ;;  %v2437_v12 = vld [vmem:[%s13677_s8 + $0xd90] sm:$0xff] }
 0x3c5   : > { %11517 = vmatpush3.bf16.msra.mxu1 %v3880_v47  ;;  %11496 = vmatprep.subr.bf16.mxu0 %v3871_v31  ;;  %v2445_v47 = vld [vmem:[%s13677_s8 + $0xdd0] sm:$0xff]  ;;  %v3896_v17 = vunpack.c.h.s8.bf16 %v2437_v12  ;;  %v894_v18 = vcombine.high %v14625_v56, %v14625_v56 }
 0x3c6   : > { %11518 = vmatprep.subr.bf16.mxu1 %v3887_v32 }
 0x3c8   : > { %11497 = vmatpush3.bf16.msra.mxu0 %v3863_v62  ;;  %v3912_v62 = vunpack.c.h.s8.bf16 %v2445_v47 }
 0x3c9   : > { %11519 = vmatpush3.bf16.msra.mxu1 %v3879_v55  ;;  %11498 = vmatprep.subr.bf16.mxu0 %v3870_v42 }
 0x3ca   : > { %11520 = vmatprep.subr.bf16.mxu1 %v3886_v43  ;;  %v3903_v43 = vunpack.c.l.s8.bf16 %v2441_v2  ;;  %v2462_v2 = vld [vmem:[%s13677_s8 + $0xe58] sm:$0xff] }
 0x3cc   : > { %11499 = vmatpush3.bf16.msra.mxu0 %v3862_v39  ;;  %v2440_v39 = vld [vmem:[%s13677_s8 + $0xda8] sm:$0xff] }
 0x3cd   : > { %11521 = vmatpush3.bf16.msra.mxu1 %v3878_v11  ;;  %11500 = vmatprep.subr.bf16.mxu0 %v3869_v46  ;;  %v2448_v11 = vld [vmem:[%s13677_s8 + $0xde8] sm:$0xff]  ;;  %v3895_v46 = vunpack.c.l.s8.bf16 %v2437_v12 }
 0x3ce   : > { %11522 = vmatprep.subr.bf16.mxu1 %v3885_v57  ;;  %v3902_v57 = vunpack.c.h.s8.bf16 %v2440_v39  ;;  %v3918_v58 = vunpack.c.h.s8.bf16 %v2448_v11 }
 0x3d0   : > { %11501 = vmatpush3.bf16.msra.mxu0 %v3861_v54  ;;  %v3894_v54 = vunpack.c.h.s8.bf16 %v2436_v59 }
 0x3d1   : > { %11523 = vmatpush3.bf16.msra.mxu1 %v3877_v19  ;;  %11502 = vmatprep.subr.bf16.mxu0 %v3868_v10  ;;  %v3910_v19 = vunpack.c.h.s8.bf16 %v2444_v28  ;;  %v3901_v10 = vunpack.c.l.s8.bf16 %v2440_v39 }
 0x3d2   : > { %11524 = vmatprep.subr.bf16.mxu1 %v3884_v41  ;;  %v3917_v41 = vunpack.c.l.s8.bf16 %v2448_v11 }
 0x3d4   : > { %11503 = vmatpush3.bf16.msra.mxu0 %v3860_v40  ;;  %v3893_v40 = vunpack.c.l.s8.bf16 %v2436_v59 }
 0x3d5   : > { %11525 = vmatpush3.bf16.msra.mxu1 %v3876_v26  ;;  %11504 = vmatprep.subr.bf16.mxu0 %v3867_v61  ;;  %v3909_v26 = vunpack.c.l.s8.bf16 %v2444_v28  ;;  %v3900_v61 = vunpack.c.h.s8.bf16 %v2439_v5 }
 0x3d6   : > { %11526 = vmatprep.subr.bf16.mxu1 %v3883_v50  ;;  %v3916_v50 = vunpack.c.h.s8.bf16 %v2447_v45  ;;  %v2452_v45 = vld [vmem:[%s13677_s8 + $0xe08] sm:$0xff] }
 0x3d8   : > { %11505 = vmatpush3.bf16.msra.mxu0 %v3859_v53  ;;  %v879_v53 = vcombine.high %v303_v37, %v303_v37  ;;  %v2460_v37 = vld [vmem:[%s13677_s8 + $0xe48] sm:$0xff] }
 0x3d9   : > { %11527 = vmatpush3.bf16.msra.mxu1 %v3875_v35  ;;  %11534 = vmatprep.subr.bf16.mxu0 %v3906_v33  ;;  %v3892_v35 = vunpack.c.h.s8.bf16 %v2435_v51  ;;  %v3908_v33 = vunpack.c.h.s8.bf16 %v2443_v9 }
 0x3da   : > { %11556 = vmatprep.subr.bf16.mxu1 %v3922_v20  ;;  %v3899_v20 = vunpack.c.l.s8.bf16 %v2439_v5 }
 0x3db   : > { %v11242_v34 = vpop.f32.mrf.mxu0  ;;  %7189 = vmatmul.mubr.bf16.vlgmr.msra.gmra.mxu0 %v1851_v3  ;;  %v14628_v3 = vrot.slane %v879_v53, %v13706_v38  ;;  %v304_v53 = vld [vmem:[%s13670_s10 + $0xe8] sm:$0xff] }
 0x3dc   : > { %v11264_v63 = vpop.f32.mrf.mxu1  ;;  %7229 = vmatmul.mubr.bf16.vlgmr.msra.gmra.mxu1 %v1853_v4  ;;  %11535 = vmatpush3.bf16.msra.mxu0 %v3898_v48  ;;  %v3891_v4 = vunpack.c.l.s8.bf16 %v2435_v51  ;;  %v3907_v48 = vunpack.c.l.s8.bf16 %v2443_v9  ;;  %v2455_v51 = vld [vmem:[%s13677_s8 + $0xe20] sm:$0xff] }
 0x3dd   : > { %11557 = vmatpush3.bf16.msra.mxu1 %v3914_v49  ;;  %v11243_v23 = vpop.f32.mrf.mxu0  ;;  %11536 = vmatprep.subr.bf16.mxu0 %v3905_v27  ;;  %v3938_v49 = vunpack.c.h.s8.bf16 %v2458_v14  ;;  %v3954_v27 = vunpack.c.h.s8.bf16 %v2466_v60  ;;  %v2463_v9 = vld [vmem:[%s13677_s8 + $0xe60] sm:$0xff] }
 0x3de   : > { %v11265_v24 = vpop.f32.mrf.mxu1  ;;  %11558 = vmatprep.subr.bf16.mxu1 %v3921_v1  ;;  %v11244_v6 = vadd.f32 %v11243_v23, %v11242_v34  ;;  %7268 = vmatprep.mubr.bf16.mxu0 %v1856_v16  ;;  %v2454_v1 = vld [vmem:[%s13677_s8 + $0xe18] sm:$0xff]  ;;  %v895_v16 = vcombine.high %v14628_v3, %v14628_v3  ;;  %v1857_v34 = vpack.c.bf16 %v14594_v52, %v14594_v52  ;;  %v3953_v23 = vunpack.c.l.s8.bf16 %v2466_v60  ;;  %v2459_v60 = vld [vmem:[%s13677_s8 + $0xe40] sm:$0xff] }
 0x3df   : > { %v11266_v30 = vadd.f32 %v11265_v24, %v11264_v63  ;;  %7308 = vmatprep.mubr.bf16.mxu1 %v1858_v8  ;;  %v11245_v31 = vpop.f32.mrf.mxu0  ;;  %v1855_v8 = vpack.c.bf16 %v14591_v7, %v14591_v7  ;;  %v3930_v63 = vunpack.c.h.s8.bf16 %v2454_v1  ;;  %v2457_v24 = vld [vmem:[%s13677_s8 + $0xe30] sm:$0xff]  ;;  %v3929_v7 = vunpack.c.l.s8.bf16 %v2454_v1 }
 0x3e0   : > { %v11267_v32 = vpop.f32.mrf.mxu1  ;;  %v6711_v29 = vadd.f32 %v11244_v6, %v14577_v15  ;;  %11537 = vmatpush3.bf16.msra.mxu0 %v3897_v0  ;;  %v3911_v15 = vunpack.c.l.s8.bf16 %v2445_v47  ;;  %v3946_v0 = vunpack.c.h.s8.bf16 %v2462_v2  ;;  %v1862_v12 = vpack.c.bf16 %v895_v16, %v895_v16 }
 0x3e1   : > { %11559 = vmatpush3.bf16.msra.mxu1 %v3913_v36  ;;  %v11246_v55 = vpop.f32.mrf.mxu0  ;;  %11538 = vmatprep.subr.bf16.mxu0 %v3904_v25  ;;  %v3937_v36 = vunpack.c.l.s8.bf16 %v2458_v14  ;;  %v2465_v25 = vld [vmem:[%s13677_s8 + $0xe70] sm:$0xff]  ;;  %v3945_v52 = vunpack.c.l.s8.bf16 %v2462_v2  ;;  %v3936_v32 = vunpack.c.h.s8.bf16 %v2457_v24  ;;  %v2451_v14 = vld [vmem:[%s13677_s8 + $0xe00] sm:$0xff]  ;;  %v3947_v1 = vunpack.c.l.s8.bf16 %v2463_v9  ;;  %v2474_v2 = vld [vmem:[%s13677_s8 + $0xeb8] sm:$0xff] }
 0x3e2   : > { %v11268_v42 = vpop.f32.mrf.mxu1  ;;  %11560 = vmatprep.subr.bf16.mxu1 %v3920_v22  ;;  %v14611_v21 = vadd.f32 %v11266_v30, %v6711_v29  ;;  %v1860_v22 = vpack.c.bf16 %v894_v18, %v894_v18  ;;  %v3952_v29 = vunpack.c.h.s8.bf16 %v2465_v25  ;;  %v3951_v59 = vunpack.c.l.s8.bf16 %v2465_v25  ;;  %v2482_v18 = vld [vmem:[%s13677_s8 + $0xef8] sm:$0xff] }
 0x3e3   : > { %v14659_v16 = vrot.slane %v304_v53, %v13706_v38 }
 0x3e4   : > { %11539 = vmatpush3.bf16.msra.mxu0 %v3896_v17  ;;  %v2453_v17 = vld [vmem:[%s13677_s8 + $0xe10] sm:$0xff] }
 0x3e5   : > { %11561 = vmatpush3.bf16.msra.mxu1 %v3912_v62  ;;  %11540 = vmatprep.subr.bf16.mxu0 %v3903_v43  ;;  %v2461_v62 = vld [vmem:[%s13677_s8 + $0xe50] sm:$0xff]  ;;  %v3928_v11 = vunpack.c.h.s8.bf16 %v2453_v17  ;;  %v911_v25 = vcombine.high %v14659_v16, %v14659_v16 }
 0x3e6   : > { %11562 = vmatprep.subr.bf16.mxu1 %v3919_v44 }
 0x3e8   : > { %11541 = vmatpush3.bf16.msra.mxu0 %v3895_v46  ;;  %v3944_v46 = vunpack.c.h.s8.bf16 %v2461_v62 }
 0x3e9   : > { %11563 = vmatpush3.bf16.msra.mxu1 %v3911_v15  ;;  %11542 = vmatprep.subr.bf16.mxu0 %v3902_v57 }
 0x3ea   : > { %11564 = vmatprep.subr.bf16.mxu1 %v3918_v58  ;;  %v3935_v58 = vunpack.c.l.s8.bf16 %v2457_v24  ;;  %v2478_v24 = vld [vmem:[%s13677_s8 + $0xed8] sm:$0xff] }
 0x3ec   : > { %11543 = vmatpush3.bf16.msra.mxu0 %v3894_v54  ;;  %v2456_v54 = vld [vmem:[%s13677_s8 + $0xe28] sm:$0xff] }
 0x3ed   : > { %11565 = vmatpush3.bf16.msra.mxu1 %v3910_v19  ;;  %11544 = vmatprep.subr.bf16.mxu0 %v3901_v10  ;;  %v2464_v19 = vld [vmem:[%s13677_s8 + $0xe68] sm:$0xff]  ;;  %v3927_v10 = vunpack.c.l.s8.bf16 %v2453_v17 }
 0x3ee   : > { %11566 = vmatprep.subr.bf16.mxu1 %v3917_v41  ;;  %v3934_v41 = vunpack.c.h.s8.bf16 %v2456_v54  ;;  %v3950_v5 = vunpack.c.h.s8.bf16 %v2464_v19 }
 0x3f0   : > { %11545 = vmatpush3.bf16.msra.mxu0 %v3893_v40  ;;  %v3926_v40 = vunpack.c.h.s8.bf16 %v2452_v45 }
 0x3f1   : > { %11567 = vmatpush3.bf16.msra.mxu1 %v3909_v26  ;;  %11546 = vmatprep.subr.bf16.mxu0 %v3900_v61  ;;  %v3942_v26 = vunpack.c.h.s8.bf16 %v2460_v37  ;;  %v3933_v61 = vunpack.c.l.s8.bf16 %v2456_v54 }
 0x3f2   : > { %11568 = vmatprep.subr.bf16.mxu1 %v3916_v50  ;;  %v3949_v50 = vunpack.c.l.s8.bf16 %v2464_v19 }
 0x3f4   : > { %11547 = vmatpush3.bf16.msra.mxu0 %v3892_v35  ;;  %v3925_v35 = vunpack.c.l.s8.bf16 %v2452_v45 }
 0x3f5   : > { %11569 = vmatpush3.bf16.msra.mxu1 %v3908_v33  ;;  %11548 = vmatprep.subr.bf16.mxu0 %v3899_v20  ;;  %v3941_v33 = vunpack.c.l.s8.bf16 %v2460_v37  ;;  %v3932_v20 = vunpack.c.h.s8.bf16 %v2455_v51 }
 0x3f6   : > { %11570 = vmatprep.subr.bf16.mxu1 %v3915_v13  ;;  %v3948_v13 = vunpack.c.h.s8.bf16 %v2463_v9  ;;  %v2468_v9 = vld [vmem:[%s13677_s8 + $0xe88] sm:$0xff] }
 0x3f8   : > { %11549 = vmatpush3.bf16.msra.mxu0 %v3891_v4  ;;  %v896_v4 = vcombine.high %v304_v53, %v304_v53  ;;  %v2476_v53 = vld [vmem:[%s13677_s8 + $0xec8] sm:$0xff] }
 0x3f9   : > { %11571 = vmatpush3.bf16.msra.mxu1 %v3907_v48  ;;  %11578 = vmatprep.subr.bf16.mxu0 %v3938_v49  ;;  %v3924_v48 = vunpack.c.h.s8.bf16 %v2451_v14  ;;  %v3940_v49 = vunpack.c.h.s8.bf16 %v2459_v60 }
 0x3fa   : > { %11600 = vmatprep.subr.bf16.mxu1 %v3954_v27  ;;  %v3931_v27 = vunpack.c.l.s8.bf16 %v2455_v51 }
 0x3fb   : > { %v11286_v47 = vpop.f32.mrf.mxu0  ;;  %7269 = vmatmul.mubr.bf16.vlgmr.msra.gmra.mxu0 %v1855_v8  ;;  %v14662_v8 = vrot.slane %v896_v4, %v13706_v38  ;;  %v305_v4 = vld [vmem:[%s13670_s10 + $0xf0] sm:$0xff] }
 0x3fc   : > { %v11308_v6 = vpop.f32.mrf.mxu1  ;;  %7309 = vmatmul.mubr.bf16.vlgmr.msra.gmra.mxu1 %v1857_v34  ;;  %11579 = vmatpush3.bf16.msra.mxu0 %v3930_v63  ;;  %v3923_v34 = vunpack.c.l.s8.bf16 %v2451_v14  ;;  %v3939_v63 = vunpack.c.l.s8.bf16 %v2459_v60  ;;  %v2471_v14 = vld [vmem:[%s13677_s8 + $0xea0] sm:$0xff] }
 0x3fd   : > { %11601 = vmatpush3.bf16.msra.mxu1 %v3946_v0  ;;  %v11287_v30 = vpop.f32.mrf.mxu0  ;;  %11580 = vmatprep.subr.bf16.mxu0 %v3937_v36  ;;  %v3970_v0 = vunpack.c.h.s8.bf16 %v2474_v2  ;;  %v3986_v36 = vunpack.c.h.s8.bf16 %v2482_v18  ;;  %v2479_v60 = vld [vmem:[%s13677_s8 + $0xee0] sm:$0xff] }
 0x3fe   : > { %v11309_v31 = vpop.f32.mrf.mxu1  ;;  %11602 = vmatprep.subr.bf16.mxu1 %v3953_v23  ;;  %v11288_v55 = vadd.f32 %v11287_v30, %v11286_v47  ;;  %7348 = vmatprep.mubr.bf16.mxu0 %v1860_v22  ;;  %v2470_v23 = vld [vmem:[%s13677_s8 + $0xe98] sm:$0xff]  ;;  %v912_v22 = vcombine.high %v14662_v8, %v14662_v8  ;;  %v1861_v47 = vpack.c.bf16 %v14628_v3, %v14628_v3  ;;  %v3985_v30 = vunpack.c.l.s8.bf16 %v2482_v18  ;;  %v2475_v18 = vld [vmem:[%s13677_s8 + $0xec0] sm:$0xff] }
 0x3ff   : > { %v11310_v42 = vadd.f32 %v11309_v31, %v11308_v6  ;;  %7388 = vmatprep.mubr.bf16.mxu1 %v1862_v12  ;;  %v11289_v43 = vpop.f32.mrf.mxu0  ;;  %v1859_v12 = vpack.c.bf16 %v14625_v56, %v14625_v56  ;;  %v3962_v6 = vunpack.c.h.s8.bf16 %v2470_v23  ;;  %v2473_v31 = vld [vmem:[%s13677_s8 + $0xeb0] sm:$0xff]  ;;  %v3961_v56 = vunpack.c.l.s8.bf16 %v2470_v23 }
 0x400   : > { %v11311_v44 = vpop.f32.mrf.mxu1  ;;  %v6791_v39 = vadd.f32 %v11288_v55, %v14611_v21  ;;  %11581 = vmatpush3.bf16.msra.mxu0 %v3929_v7  ;;  %v3943_v21 = vunpack.c.l.s8.bf16 %v2461_v62  ;;  %v3978_v7 = vunpack.c.h.s8.bf16 %v2478_v24  ;;  %v1866_v17 = vpack.c.bf16 %v912_v22, %v912_v22 }
 0x401   : > { %11603 = vmatpush3.bf16.msra.mxu1 %v3945_v52  ;;  %v11290_v15 = vpop.f32.mrf.mxu0  ;;  %11582 = vmatprep.subr.bf16.mxu0 %v3936_v32  ;;  %v3969_v52 = vunpack.c.l.s8.bf16 %v2474_v2  ;;  %v2481_v32 = vld [vmem:[%s13677_s8 + $0xef0] sm:$0xff]  ;;  %v3977_v3 = vunpack.c.l.s8.bf16 %v2478_v24  ;;  %v3968_v44 = vunpack.c.h.s8.bf16 %v2473_v31  ;;  %v2467_v2 = vld [vmem:[%s13677_s8 + $0xe80] sm:$0xff]  ;;  %v3979_v23 = vunpack.c.l.s8.bf16 %v2479_v60  ;;  %v2490_v24 = vld [vmem:[%s13677_s8 + $0xf38] sm:$0xff] }
 0x402   : > { %v11312_v57 = vpop.f32.mrf.mxu1  ;;  %11604 = vmatprep.subr.bf16.mxu1 %v3952_v29  ;;  %v14645_v28 = vadd.f32 %v11310_v42, %v6791_v39  ;;  %v1864_v29 = vpack.c.bf16 %v911_v25, %v911_v25  ;;  %v3984_v39 = vunpack.c.h.s8.bf16 %v2481_v32  ;;  %v3983_v45 = vunpack.c.l.s8.bf16 %v2481_v32  ;;  %v2498_v25 = vld [vmem:[%s13677_s8 + $0xf78] sm:$0xff] }
 0x403   : > { %v14693_v22 = vrot.slane %v305_v4, %v13706_v38 }
 0x404   : > { %11583 = vmatpush3.bf16.msra.mxu0 %v3928_v11  ;;  %v2469_v11 = vld [vmem:[%s13677_s8 + $0xe90] sm:$0xff] }
 0x405   : > { %11605 = vmatpush3.bf16.msra.mxu1 %v3944_v46  ;;  %11584 = vmatprep.subr.bf16.mxu0 %v3935_v58  ;;  %v2477_v46 = vld [vmem:[%s13677_s8 + $0xed0] sm:$0xff]  ;;  %v3960_v19 = vunpack.c.h.s8.bf16 %v2469_v11  ;;  %v928_v32 = vcombine.high %v14693_v22, %v14693_v22 }
 0x406   : > { %11606 = vmatprep.subr.bf16.mxu1 %v3951_v59 }
 0x408   : > { %11585 = vmatpush3.bf16.msra.mxu0 %v3927_v10  ;;  %v3976_v10 = vunpack.c.h.s8.bf16 %v2477_v46 }
 0x409   : > { %11607 = vmatpush3.bf16.msra.mxu1 %v3943_v21  ;;  %11586 = vmatprep.subr.bf16.mxu0 %v3934_v41 }
 0x40a   : > { %11608 = vmatprep.subr.bf16.mxu1 %v3950_v5  ;;  %v3967_v5 = vunpack.c.l.s8.bf16 %v2473_v31  ;;  %v2494_v31 = vld [vmem:[%s13677_s8 + $0xf58] sm:$0xff] }
 0x40c   : > { %11587 = vmatpush3.bf16.msra.mxu0 %v3926_v40  ;;  %v2472_v40 = vld [vmem:[%s13677_s8 + $0xea8] sm:$0xff] }
 0x40d   : > { %11609 = vmatpush3.bf16.msra.mxu1 %v3942_v26  ;;  %11588 = vmatprep.subr.bf16.mxu0 %v3933_v61  ;;  %v2480_v26 = vld [vmem:[%s13677_s8 + $0xee8] sm:$0xff]  ;;  %v3959_v61 = vunpack.c.l.s8.bf16 %v2469_v11 }
 0x40e   : > { %11610 = vmatprep.subr.bf16.mxu1 %v3949_v50  ;;  %v3966_v50 = vunpack.c.h.s8.bf16 %v2472_v40  ;;  %v3982_v51 = vunpack.c.h.s8.bf16 %v2480_v26 }
 0x410   : > { %11589 = vmatpush3.bf16.msra.mxu0 %v3925_v35  ;;  %v3958_v35 = vunpack.c.h.s8.bf16 %v2468_v9 }
 0x411   : > { %11611 = vmatpush3.bf16.msra.mxu1 %v3941_v33  ;;  %11590 = vmatprep.subr.bf16.mxu0 %v3932_v20  ;;  %v3974_v33 = vunpack.c.h.s8.bf16 %v2476_v53  ;;  %v3965_v20 = vunpack.c.l.s8.bf16 %v2472_v40 }
 0x412   : > { %11612 = vmatprep.subr.bf16.mxu1 %v3948_v13  ;;  %v3981_v13 = vunpack.c.l.s8.bf16 %v2480_v26 }
 0x414   : > { %11591 = vmatpush3.bf16.msra.mxu0 %v3924_v48  ;;  %v3957_v48 = vunpack.c.l.s8.bf16 %v2468_v9 }
 0x415   : > { %11613 = vmatpush3.bf16.msra.mxu1 %v3940_v49  ;;  %11592 = vmatprep.subr.bf16.mxu0 %v3931_v27  ;;  %v3973_v49 = vunpack.c.l.s8.bf16 %v2476_v53  ;;  %v3964_v27 = vunpack.c.h.s8.bf16 %v2471_v14 }
 0x416   : > { %11614 = vmatprep.subr.bf16.mxu1 %v3947_v1  ;;  %v3980_v1 = vunpack.c.h.s8.bf16 %v2479_v60  ;;  %v2484_v60 = vld [vmem:[%s13677_s8 + $0xf08] sm:$0xff] }
 0x418   : > { %11593 = vmatpush3.bf16.msra.mxu0 %v3923_v34  ;;  %v913_v34 = vcombine.high %v305_v4, %v305_v4  ;;  %v2492_v4 = vld [vmem:[%s13677_s8 + $0xf48] sm:$0xff] }
 0x419   : > { %11615 = vmatpush3.bf16.msra.mxu1 %v3939_v63  ;;  %11622 = vmatprep.subr.bf16.mxu0 %v3970_v0  ;;  %v3956_v63 = vunpack.c.h.s8.bf16 %v2467_v2  ;;  %v3972_v0 = vunpack.c.h.s8.bf16 %v2475_v18 }
 0x41a   : > { %11644 = vmatprep.subr.bf16.mxu1 %v3986_v36  ;;  %v3963_v36 = vunpack.c.l.s8.bf16 %v2471_v14 }
 0x41b   : > { %v11330_v62 = vpop.f32.mrf.mxu0  ;;  %7349 = vmatmul.mubr.bf16.vlgmr.msra.gmra.mxu0 %v1859_v12  ;;  %v14696_v12 = vrot.slane %v913_v34, %v13706_v38  ;;  %v306_v34 = vld [vmem:[%s13670_s10 + $0xf8] sm:$0xff] }
 0x41c   : > { %v11352_v55 = vpop.f32.mrf.mxu1  ;;  %7389 = vmatmul.mubr.bf16.vlgmr.msra.gmra.mxu1 %v1861_v47  ;;  %11623 = vmatpush3.bf16.msra.mxu0 %v3962_v6  ;;  %v3955_v47 = vunpack.c.l.s8.bf16 %v2467_v2  ;;  %v3971_v6 = vunpack.c.l.s8.bf16 %v2475_v18  ;;  %v2487_v2 = vld [vmem:[%s13677_s8 + $0xf20] sm:$0xff] }
 0x41d   : > { %11645 = vmatpush3.bf16.msra.mxu1 %v3978_v7  ;;  %v11331_v42 = vpop.f32.mrf.mxu0  ;;  %11624 = vmatprep.subr.bf16.mxu0 %v3969_v52  ;;  %v4002_v7 = vunpack.c.h.s8.bf16 %v2490_v24  ;;  %v4018_v52 = vunpack.c.h.s8.bf16 %v2498_v25  ;;  %v2495_v18 = vld [vmem:[%s13677_s8 + $0xf60] sm:$0xff] }
 0x41e   : > { %v11353_v43 = vpop.f32.mrf.mxu1  ;;  %11646 = vmatprep.subr.bf16.mxu1 %v3985_v30  ;;  %v11332_v15 = vadd.f32 %v11331_v42, %v11330_v62  ;;  %7428 = vmatprep.mubr.bf16.mxu0 %v1864_v29  ;;  %v2486_v30 = vld [vmem:[%s13677_s8 + $0xf18] sm:$0xff]  ;;  %v929_v29 = vcombine.high %v14696_v12, %v14696_v12  ;;  %v1865_v62 = vpack.c.bf16 %v14662_v8, %v14662_v8  ;;  %v4017_v42 = vunpack.c.l.s8.bf16 %v2498_v25  ;;  %v2491_v25 = vld [vmem:[%s13677_s8 + $0xf40] sm:$0xff] }
 0x41f   : > { %v11354_v57 = vadd.f32 %v11353_v43, %v11352_v55  ;;  %7468 = vmatprep.mubr.bf16.mxu1 %v1866_v17  ;;  %v11333_v58 = vpop.f32.mrf.mxu0  ;;  %v1863_v17 = vpack.c.bf16 %v14659_v16, %v14659_v16  ;;  %v3994_v55 = vunpack.c.h.s8.bf16 %v2486_v30  ;;  %v2489_v43 = vld [vmem:[%s13677_s8 + $0xf30] sm:$0xff]  ;;  %v3993_v16 = vunpack.c.l.s8.bf16 %v2486_v30 }
 0x420   : > { %v11355_v59 = vpop.f32.mrf.mxu1  ;;  %v6871_v54 = vadd.f32 %v11332_v15, %v14645_v28  ;;  %11625 = vmatpush3.bf16.msra.mxu0 %v3961_v56  ;;  %v3975_v28 = vunpack.c.l.s8.bf16 %v2477_v46  ;;  %v4010_v56 = vunpack.c.h.s8.bf16 %v2494_v31  ;;  %v1870_v11 = vpack.c.bf16 %v929_v29, %v929_v29 }
 0x421   : > { %11647 = vmatpush3.bf16.msra.mxu1 %v3977_v3  ;;  %v11334_v21 = vpop.f32.mrf.mxu0  ;;  %11626 = vmatprep.subr.bf16.mxu0 %v3968_v44  ;;  %v4001_v3 = vunpack.c.l.s8.bf16 %v2490_v24  ;;  %v2497_v44 = vld [vmem:[%s13677_s8 + $0xf70] sm:$0xff]  ;;  %v4009_v8 = vunpack.c.l.s8.bf16 %v2494_v31  ;;  %v4000_v59 = vunpack.c.h.s8.bf16 %v2489_v43  ;;  %v2483_v24 = vld [vmem:[%s13677_s8 + $0xf00] sm:$0xff]  ;;  %v4011_v30 = vunpack.c.l.s8.bf16 %v2495_v18  ;;  %v2506_v31 = vld [vmem:[%s13677_s8 + $0xfb8] sm:$0xff] }
 0x422   : > { %v11356_v41 = vpop.f32.mrf.mxu1  ;;  %11648 = vmatprep.subr.bf16.mxu1 %v3984_v39  ;;  %v14679_v37 = vadd.f32 %v11354_v57, %v6871_v54  ;;  %v1868_v39 = vpack.c.bf16 %v928_v32, %v928_v32  ;;  %v4016_v54 = vunpack.c.h.s8.bf16 %v2497_v44  ;;  %v4015_v9 = vunpack.c.l.s8.bf16 %v2497_v44  ;;  %v2514_v32 = vld [vmem:[%s13677_s8 + $0xff8] sm:$0xff] }
 0x423   : > { %v14727_v29 = vrot.slane %v306_v34, %v13706_v38 }
 0x424   : > { %11627 = vmatpush3.bf16.msra.mxu0 %v3960_v19  ;;  %v2485_v19 = vld [vmem:[%s13677_s8 + $0xf10] sm:$0xff] }
 0x425   : > { %11649 = vmatpush3.bf16.msra.mxu1 %v3976_v10  ;;  %11628 = vmatprep.subr.bf16.mxu0 %v3967_v5  ;;  %v2493_v10 = vld [vmem:[%s13677_s8 + $0xf50] sm:$0xff]  ;;  %v3992_v26 = vunpack.c.h.s8.bf16 %v2485_v19  ;;  %v945_v44 = vcombine.high %v14727_v29, %v14727_v29 }
 0x426   : > { %11650 = vmatprep.subr.bf16.mxu1 %v3983_v45 }
 0x428   : > { %11629 = vmatpush3.bf16.msra.mxu0 %v3959_v61  ;;  %v4008_v61 = vunpack.c.h.s8.bf16 %v2493_v10 }
 0x429   : > { %11651 = vmatpush3.bf16.msra.mxu1 %v3975_v28  ;;  %11630 = vmatprep.subr.bf16.mxu0 %v3966_v50 }
 0x42a   : > { %11652 = vmatprep.subr.bf16.mxu1 %v3982_v51  ;;  %v3999_v51 = vunpack.c.l.s8.bf16 %v2489_v43  ;;  %v2510_v43 = vld [vmem:[%s13677_s8 + $0xfd8] sm:$0xff] }
 0x42c   : > { %11631 = vmatpush3.bf16.msra.mxu0 %v3958_v35  ;;  %v2488_v35 = vld [vmem:[%s13677_s8 + $0xf28] sm:$0xff] }
 0x42d   : > { %11653 = vmatpush3.bf16.msra.mxu1 %v3974_v33  ;;  %11632 = vmatprep.subr.bf16.mxu0 %v3965_v20  ;;  %v2496_v33 = vld [vmem:[%s13677_s8 + $0xf68] sm:$0xff]  ;;  %v3991_v20 = vunpack.c.l.s8.bf16 %v2485_v19 }
 0x42e   : > { %11654 = vmatprep.subr.bf16.mxu1 %v3981_v13  ;;  %v3998_v13 = vunpack.c.h.s8.bf16 %v2488_v35  ;;  %v4014_v14 = vunpack.c.h.s8.bf16 %v2496_v33 }
 0x430   : > { %11633 = vmatpush3.bf16.msra.mxu0 %v3957_v48  ;;  %v3990_v48 = vunpack.c.h.s8.bf16 %v2484_v60 }
 0x431   : > { %11655 = vmatpush3.bf16.msra.mxu1 %v3973_v49  ;;  %11634 = vmatprep.subr.bf16.mxu0 %v3964_v27  ;;  %v4006_v49 = vunpack.c.h.s8.bf16 %v2492_v4  ;;  %v3997_v27 = vunpack.c.l.s8.bf16 %v2488_v35 }
 0x432   : > { %11656 = vmatprep.subr.bf16.mxu1 %v3980_v1  ;;  %v4013_v1 = vunpack.c.l.s8.bf16 %v2496_v33 }
 0x434   : > { %11635 = vmatpush3.bf16.msra.mxu0 %v3956_v63  ;;  %v3989_v63 = vunpack.c.l.s8.bf16 %v2484_v60 }
 0x435   : > { %11657 = vmatpush3.bf16.msra.mxu1 %v3972_v0  ;;  %11636 = vmatprep.subr.bf16.mxu0 %v3963_v36  ;;  %v4005_v0 = vunpack.c.l.s8.bf16 %v2492_v4  ;;  %v3996_v36 = vunpack.c.h.s8.bf16 %v2487_v2 }
 0x436   : > { %11658 = vmatprep.subr.bf16.mxu1 %v3979_v23  ;;  %v4012_v23 = vunpack.c.h.s8.bf16 %v2495_v18  ;;  %v2500_v18 = vld [vmem:[%s13677_s8 + $0xf88] sm:$0xff] }
 0x438   : > { %11637 = vmatpush3.bf16.msra.mxu0 %v3955_v47  ;;  %v930_v47 = vcombine.high %v306_v34, %v306_v34  ;;  %v2508_v34 = vld [vmem:[%s13677_s8 + $0xfc8] sm:$0xff] }
 0x439   : > { %11659 = vmatpush3.bf16.msra.mxu1 %v3971_v6  ;;  %11666 = vmatprep.subr.bf16.mxu0 %v4002_v7  ;;  %v3988_v6 = vunpack.c.h.s8.bf16 %v2483_v24  ;;  %v4004_v7 = vunpack.c.h.s8.bf16 %v2491_v25 }
 0x43a   : > { %11688 = vmatprep.subr.bf16.mxu1 %v4018_v52  ;;  %v3995_v52 = vunpack.c.l.s8.bf16 %v2487_v2 }
 0x43b   : > { %v11374_v46 = vpop.f32.mrf.mxu0  ;;  %7429 = vmatmul.mubr.bf16.vlgmr.msra.gmra.mxu0 %v1863_v17  ;;  %v14730_v17 = vrot.slane %v930_v47, %v13706_v38  ;;  %v307_v47 = vld [vmem:[%s13670_s10 + $0x100] sm:$0xff] }
 0x43c   : > { %v11396_v15 = vpop.f32.mrf.mxu1  ;;  %7469 = vmatmul.mubr.bf16.vlgmr.msra.gmra.mxu1 %v1865_v62  ;;  %11667 = vmatpush3.bf16.msra.mxu0 %v3994_v55  ;;  %v3987_v62 = vunpack.c.l.s8.bf16 %v2483_v24  ;;  %v4003_v55 = vunpack.c.l.s8.bf16 %v2491_v25  ;;  %v2503_v24 = vld [vmem:[%s13677_s8 + $0xfa0] sm:$0xff] }
 0x43d   : > { %11689 = vmatpush3.bf16.msra.mxu1 %v4010_v56  ;;  %v11375_v57 = vpop.f32.mrf.mxu0  ;;  %11668 = vmatprep.subr.bf16.mxu0 %v4001_v3  ;;  %v4034_v56 = vunpack.c.h.s8.bf16 %v2506_v31  ;;  %v4050_v3 = vunpack.c.h.s8.bf16 %v2514_v32  ;;  %v2511_v25 = vld [vmem:[%s13677_s8 + $0xfe0] sm:$0xff] }
 0x43e   : > { %v11397_v58 = vpop.f32.mrf.mxu1  ;;  %11690 = vmatprep.subr.bf16.mxu1 %v4017_v42  ;;  %v11376_v21 = vadd.f32 %v11375_v57, %v11374_v46  ;;  %7508 = vmatprep.mubr.bf16.mxu0 %v1868_v39  ;;  %v2502_v42 = vld [vmem:[%s13677_s8 + $0xf98] sm:$0xff]  ;;  %v946_v39 = vcombine.high %v14730_v17, %v14730_v17  ;;  %v1869_v46 = vpack.c.bf16 %v14696_v12, %v14696_v12  ;;  %v4049_v57 = vunpack.c.l.s8.bf16 %v2514_v32  ;;  %v2507_v32 = vld [vmem:[%s13677_s8 + $0xfc0] sm:$0xff] }
 0x43f   : > { %v11398_v41 = vadd.f32 %v11397_v58, %v11396_v15  ;;  %7548 = vmatprep.mubr.bf16.mxu1 %v1870_v11  ;;  %v11377_v5 = vpop.f32.mrf.mxu0  ;;  %v1867_v11 = vpack.c.bf16 %v14693_v22, %v14693_v22  ;;  %v4026_v15 = vunpack.c.h.s8.bf16 %v2502_v42  ;;  %v2505_v58 = vld [vmem:[%s13677_s8 + $0xfb0] sm:$0xff]  ;;  %v4025_v22 = vunpack.c.l.s8.bf16 %v2502_v42 }
 0x440   : > { %v11399_v45 = vpop.f32.mrf.mxu1  ;;  %v6951_v40 = vadd.f32 %v11376_v21, %v14679_v37  ;;  %11669 = vmatpush3.bf16.msra.mxu0 %v3993_v16  ;;  %v4007_v37 = vunpack.c.l.s8.bf16 %v2493_v10  ;;  %v4042_v16 = vunpack.c.h.s8.bf16 %v2510_v43  ;;  %v1874_v19 = vpack.c.bf16 %v946_v39, %v946_v39 }
 0x441   : > { %11691 = vmatpush3.bf16.msra.mxu1 %v4009_v8  ;;  %v11378_v28 = vpop.f32.mrf.mxu0  ;;  %11670 = vmatprep.subr.bf16.mxu0 %v4000_v59  ;;  %v4033_v8 = vunpack.c.l.s8.bf16 %v2506_v31  ;;  %v2513_v59 = vld [vmem:[%s13677_s8 + $0xff0] sm:$0xff]  ;;  %v4041_v12 = vunpack.c.l.s8.bf16 %v2510_v43  ;;  %v4032_v45 = vunpack.c.h.s8.bf16 %v2505_v58  ;;  %v2499_v31 = vld [vmem:[%s13677_s8 + $0xf80] sm:$0xff]  ;;  %v4043_v42 = vunpack.c.l.s8.bf16 %v2511_v25  ;;  %v2522_v43 = vld [vmem:[%s13677_s8 + $0x1038] sm:$0xff] }
 0x442   : > { %v11400_v50 = vpop.f32.mrf.mxu1  ;;  %11692 = vmatprep.subr.bf16.mxu1 %v4016_v54  ;;  %v14713_v53 = vadd.f32 %v11398_v41, %v6951_v40  ;;  %v1872_v54 = vpack.c.bf16 %v945_v44, %v945_v44  ;;  %v4048_v40 = vunpack.c.h.s8.bf16 %v2513_v59  ;;  %v4047_v60 = vunpack.c.l.s8.bf16 %v2513_v59  ;;  %v2530_v44 = vld [vmem:[%s13677_s8 + $0x1078] sm:$0xff] }
 0x443   : > { %v14761_v39 = vrot.slane %v307_v47, %v13706_v38 }
 0x444   : > { %11671 = vmatpush3.bf16.msra.mxu0 %v3992_v26  ;;  %v2501_v26 = vld [vmem:[%s13677_s8 + $0xf90] sm:$0xff] }
 0x445   : > { %11693 = vmatpush3.bf16.msra.mxu1 %v4008_v61  ;;  %11672 = vmatprep.subr.bf16.mxu0 %v3999_v51  ;;  %v2509_v61 = vld [vmem:[%s13677_s8 + $0xfd0] sm:$0xff]  ;;  %v4024_v33 = vunpack.c.h.s8.bf16 %v2501_v26  ;;  %v962_v59 = vcombine.high %v14761_v39, %v14761_v39 }
 0x446   : > { %11694 = vmatprep.subr.bf16.mxu1 %v4015_v9 }
 0x448   : > { %11673 = vmatpush3.bf16.msra.mxu0 %v3991_v20  ;;  %v4040_v20 = vunpack.c.h.s8.bf16 %v2509_v61 }
 0x449   : > { %11695 = vmatpush3.bf16.msra.mxu1 %v4007_v37  ;;  %11674 = vmatprep.subr.bf16.mxu0 %v3998_v13 }
 0x44a   : > { %11696 = vmatprep.subr.bf16.mxu1 %v4014_v14  ;;  %v4031_v14 = vunpack.c.l.s8.bf16 %v2505_v58  ;;  %v2526_v58 = vld [vmem:[%s13677_s8 + $0x1058] sm:$0xff] }
 0x44c   : > { %11675 = vmatpush3.bf16.msra.mxu0 %v3990_v48  ;;  %v2504_v48 = vld [vmem:[%s13677_s8 + $0xfa8] sm:$0xff] }
 0x44d   : > { %11697 = vmatpush3.bf16.msra.mxu1 %v4006_v49  ;;  %11676 = vmatprep.subr.bf16.mxu0 %v3997_v27  ;;  %v2512_v49 = vld [vmem:[%s13677_s8 + $0xfe8] sm:$0xff]  ;;  %v4023_v27 = vunpack.c.l.s8.bf16 %v2501_v26 }
 0x44e   : > { %11698 = vmatprep.subr.bf16.mxu1 %v4013_v1  ;;  %v4030_v1 = vunpack.c.h.s8.bf16 %v2504_v48  ;;  %v4046_v2 = vunpack.c.h.s8.bf16 %v2512_v49 }
 0x450   : > { %11677 = vmatpush3.bf16.msra.mxu0 %v3989_v63  ;;  %v4022_v63 = vunpack.c.h.s8.bf16 %v2500_v18 }
 0x451   : > { %11699 = vmatpush3.bf16.msra.mxu1 %v4005_v0  ;;  %11678 = vmatprep.subr.bf16.mxu0 %v3996_v36  ;;  %v4038_v0 = vunpack.c.h.s8.bf16 %v2508_v34  ;;  %v4029_v36 = vunpack.c.l.s8.bf16 %v2504_v48 }
 0x452   : > { %11700 = vmatprep.subr.bf16.mxu1 %v4012_v23  ;;  %v4045_v23 = vunpack.c.l.s8.bf16 %v2512_v49 }
 0x454   : > { %11679 = vmatpush3.bf16.msra.mxu0 %v3988_v6  ;;  %v4021_v6 = vunpack.c.l.s8.bf16 %v2500_v18 }
 0x455   : > { %11701 = vmatpush3.bf16.msra.mxu1 %v4004_v7  ;;  %11680 = vmatprep.subr.bf16.mxu0 %v3995_v52  ;;  %v4037_v7 = vunpack.c.l.s8.bf16 %v2508_v34  ;;  %v4028_v52 = vunpack.c.h.s8.bf16 %v2503_v24 }
 0x456   : > { %11702 = vmatprep.subr.bf16.mxu1 %v4011_v30  ;;  %v4044_v30 = vunpack.c.h.s8.bf16 %v2511_v25  ;;  %v2516_v25 = vld [vmem:[%s13677_s8 + $0x1008] sm:$0xff] }
 0x458   : > { %11681 = vmatpush3.bf16.msra.mxu0 %v3987_v62  ;;  %v947_v62 = vcombine.high %v307_v47, %v307_v47  ;;  %v2524_v47 = vld [vmem:[%s13677_s8 + $0x1048] sm:$0xff] }
 0x459   : > { %11703 = vmatpush3.bf16.msra.mxu1 %v4003_v55  ;;  %11710 = vmatprep.subr.bf16.mxu0 %v4034_v56  ;;  %v4020_v55 = vunpack.c.h.s8.bf16 %v2499_v31  ;;  %v4036_v56 = vunpack.c.h.s8.bf16 %v2507_v32 }
 0x45a   : > { %11732 = vmatprep.subr.bf16.mxu1 %v4050_v3  ;;  %v4027_v3 = vunpack.c.l.s8.bf16 %v2503_v24 }
 0x45b   : > { %v11418_v10 = vpop.f32.mrf.mxu0  ;;  %7509 = vmatmul.mubr.bf16.vlgmr.msra.gmra.mxu0 %v1867_v11  ;;  %v14764_v11 = vrot.slane %v947_v62, %v13706_v38  ;;  %v308_v62 = vld [vmem:[%s13670_s10 + $0x108] sm:$0xff] }
 0x45c   : > { %v11440_v21 = vpop.f32.mrf.mxu1  ;;  %7549 = vmatmul.mubr.bf16.vlgmr.msra.gmra.mxu1 %v1869_v46  ;;  %11711 = vmatpush3.bf16.msra.mxu0 %v4026_v15  ;;  %v4019_v46 = vunpack.c.l.s8.bf16 %v2499_v31  ;;  %v4035_v15 = vunpack.c.l.s8.bf16 %v2507_v32  ;;  %v2519_v31 = vld [vmem:[%s13677_s8 + $0x1020] sm:$0xff] }
 0x45d   : > { %11733 = vmatpush3.bf16.msra.mxu1 %v4042_v16  ;;  %v11419_v41 = vpop.f32.mrf.mxu0  ;;  %11712 = vmatprep.subr.bf16.mxu0 %v4033_v8  ;;  %v4066_v16 = vunpack.c.h.s8.bf16 %v2522_v43  ;;  %v4082_v8 = vunpack.c.h.s8.bf16 %v2530_v44  ;;  %v2527_v32 = vld [vmem:[%s13677_s8 + $0x1060] sm:$0xff] }
 0x45e   : > { %v11441_v5 = vpop.f32.mrf.mxu1  ;;  %11734 = vmatprep.subr.bf16.mxu1 %v4049_v57  ;;  %v11420_v28 = vadd.f32 %v11419_v41, %v11418_v10  ;;  %7588 = vmatprep.mubr.bf16.mxu0 %v1872_v54  ;;  %v2518_v57 = vld [vmem:[%s13677_s8 + $0x1018] sm:$0xff]  ;;  %v963_v54 = vcombine.high %v14764_v11, %v14764_v11  ;;  %v1873_v10 = vpack.c.bf16 %v14730_v17, %v14730_v17  ;;  %v4081_v41 = vunpack.c.l.s8.bf16 %v2530_v44  ;;  %v2523_v44 = vld [vmem:[%s13677_s8 + $0x1040] sm:$0xff] }
 0x45f   : > { %v11442_v50 = vadd.f32 %v11441_v5, %v11440_v21  ;;  %7628 = vmatprep.mubr.bf16.mxu1 %v1874_v19  ;;  %v11421_v51 = vpop.f32.mrf.mxu0  ;;  %v1871_v19 = vpack.c.bf16 %v14727_v29, %v14727_v29  ;;  %v4058_v21 = vunpack.c.h.s8.bf16 %v2518_v57  ;;  %v2521_v5 = vld [vmem:[%s13677_s8 + $0x1030] sm:$0xff]  ;;  %v4057_v29 = vunpack.c.l.s8.bf16 %v2518_v57 }
 0x460   : > { %v11443_v9 = vpop.f32.mrf.mxu1  ;;  %v7031_v35 = vadd.f32 %v11420_v28, %v14713_v53  ;;  %11713 = vmatpush3.bf16.msra.mxu0 %v4025_v22  ;;  %v4039_v53 = vunpack.c.l.s8.bf16 %v2509_v61  ;;  %v4074_v22 = vunpack.c.h.s8.bf16 %v2526_v58  ;;  %v1878_v26 = vpack.c.bf16 %v963_v54, %v963_v54 }
 0x461   : > { %11735 = vmatpush3.bf16.msra.mxu1 %v4041_v12  ;;  %v11422_v37 = vpop.f32.mrf.mxu0  ;;  %11714 = vmatprep.subr.bf16.mxu0 %v4032_v45  ;;  %v4065_v12 = vunpack.c.l.s8.bf16 %v2522_v43  ;;  %v2529_v45 = vld [vmem:[%s13677_s8 + $0x1070] sm:$0xff]  ;;  %v4073_v17 = vunpack.c.l.s8.bf16 %v2526_v58  ;;  %v4064_v9 = vunpack.c.h.s8.bf16 %v2521_v5  ;;  %v2515_v43 = vld [vmem:[%s13677_s8 + $0x1000] sm:$0xff]  ;;  %v4075_v57 = vunpack.c.l.s8.bf16 %v2527_v32  ;;  %v2538_v58 = vld [vmem:[%s13677_s8 + $0x10b8] sm:$0xff] }
 0x462   : > { %v11444_v13 = vpop.f32.mrf.mxu1  ;;  %11736 = vmatprep.subr.bf16.mxu1 %v4048_v40  ;;  %v14747_v4 = vadd.f32 %v11442_v50, %v7031_v35  ;;  %v1876_v40 = vpack.c.bf16 %v962_v59, %v962_v59  ;;  %v4080_v35 = vunpack.c.h.s8.bf16 %v2529_v45  ;;  %v4079_v18 = vunpack.c.l.s8.bf16 %v2529_v45  ;;  %v2546_v59 = vld [vmem:[%s13677_s8 + $0x10f8] sm:$0xff] }
 0x463   : > { %v14795_v54 = vrot.slane %v308_v62, %v13706_v38 }
 0x464   : > { %11715 = vmatpush3.bf16.msra.mxu0 %v4024_v33  ;;  %v2517_v33 = vld [vmem:[%s13677_s8 + $0x1010] sm:$0xff] }
 0x465   : > { %11737 = vmatpush3.bf16.msra.mxu1 %v4040_v20  ;;  %11716 = vmatprep.subr.bf16.mxu0 %v4031_v14  ;;  %v2525_v20 = vld [vmem:[%s13677_s8 + $0x1050] sm:$0xff]  ;;  %v4056_v49 = vunpack.c.h.s8.bf16 %v2517_v33  ;;  %v979_v45 = vcombine.high %v14795_v54, %v14795_v54 }
 0x466   : > { %11738 = vmatprep.subr.bf16.mxu1 %v4047_v60 }
 0x468   : > { %11717 = vmatpush3.bf16.msra.mxu0 %v4023_v27  ;;  %v4072_v27 = vunpack.c.h.s8.bf16 %v2525_v20 }
 0x469   : > { %11739 = vmatpush3.bf16.msra.mxu1 %v4039_v53  ;;  %11718 = vmatprep.subr.bf16.mxu0 %v4030_v1 }
 0x46a   : > { %11740 = vmatprep.subr.bf16.mxu1 %v4046_v2  ;;  %v4063_v2 = vunpack.c.l.s8.bf16 %v2521_v5  ;;  %v2542_v5 = vld [vmem:[%s13677_s8 + $0x10d8] sm:$0xff] }
 0x46c   : > { %11719 = vmatpush3.bf16.msra.mxu0 %v4022_v63  ;;  %v2520_v63 = vld [vmem:[%s13677_s8 + $0x1028] sm:$0xff] }
 0x46d   : > { %11741 = vmatpush3.bf16.msra.mxu1 %v4038_v0  ;;  %11720 = vmatprep.subr.bf16.mxu0 %v4029_v36  ;;  %v2528_v0 = vld [vmem:[%s13677_s8 + $0x1068] sm:$0xff]  ;;  %v4055_v36 = vunpack.c.l.s8.bf16 %v2517_v33 }
 0x46e   : > { %11742 = vmatprep.subr.bf16.mxu1 %v4045_v23  ;;  %v4062_v23 = vunpack.c.h.s8.bf16 %v2520_v63  ;;  %v4078_v24 = vunpack.c.h.s8.bf16 %v2528_v0 }
 0x470   : > { %11721 = vmatpush3.bf16.msra.mxu0 %v4021_v6  ;;  %v4054_v6 = vunpack.c.h.s8.bf16 %v2516_v25 }
 0x471   : > { %11743 = vmatpush3.bf16.msra.mxu1 %v4037_v7  ;;  %11722 = vmatprep.subr.bf16.mxu0 %v4028_v52  ;;  %v4070_v7 = vunpack.c.h.s8.bf16 %v2524_v47  ;;  %v4061_v52 = vunpack.c.l.s8.bf16 %v2520_v63 }
 0x472   : > { %11744 = vmatprep.subr.bf16.mxu1 %v4044_v30  ;;  %v4077_v30 = vunpack.c.l.s8.bf16 %v2528_v0 }
 0x474   : > { %11723 = vmatpush3.bf16.msra.mxu0 %v4020_v55  ;;  %v4053_v55 = vunpack.c.l.s8.bf16 %v2516_v25 }
 0x475   : > { %11745 = vmatpush3.bf16.msra.mxu1 %v4036_v56  ;;  %11724 = vmatprep.subr.bf16.mxu0 %v4027_v3  ;;  %v4069_v56 = vunpack.c.l.s8.bf16 %v2524_v47  ;;  %v4060_v3 = vunpack.c.h.s8.bf16 %v2519_v31 }
 0x476   : > { %11746 = vmatprep.subr.bf16.mxu1 %v4043_v42  ;;  %v4076_v42 = vunpack.c.h.s8.bf16 %v2527_v32  ;;  %v2532_v32 = vld [vmem:[%s13677_s8 + $0x1088] sm:$0xff] }
 0x478   : > { %11725 = vmatpush3.bf16.msra.mxu0 %v4019_v46  ;;  %v964_v46 = vcombine.high %v308_v62, %v308_v62  ;;  %v2540_v62 = vld [vmem:[%s13677_s8 + $0x10c8] sm:$0xff] }
 0x479   : > { %11747 = vmatpush3.bf16.msra.mxu1 %v4035_v15  ;;  %11754 = vmatprep.subr.bf16.mxu0 %v4066_v16  ;;  %v4052_v15 = vunpack.c.h.s8.bf16 %v2515_v43  ;;  %v4068_v16 = vunpack.c.h.s8.bf16 %v2523_v44 }
 0x47a   : > { %11776 = vmatprep.subr.bf16.mxu1 %v4082_v8  ;;  %v4059_v8 = vunpack.c.l.s8.bf16 %v2519_v31 }
 0x47b   : > { %v11462_v61 = vpop.f32.mrf.mxu0  ;;  %7589 = vmatmul.mubr.bf16.vlgmr.msra.gmra.mxu0 %v1871_v19  ;;  %v14798_v19 = vrot.slane %v964_v46, %v13706_v38  ;;  %v309_v46 = vld [vmem:[%s13670_s10 + $0x110] sm:$0xff] }
 0x47c   : > { %v11484_v28 = vpop.f32.mrf.mxu1  ;;  %7629 = vmatmul.mubr.bf16.vlgmr.msra.gmra.mxu1 %v1873_v10  ;;  %11755 = vmatpush3.bf16.msra.mxu0 %v4058_v21  ;;  %v4051_v10 = vunpack.c.l.s8.bf16 %v2515_v43  ;;  %v4067_v21 = vunpack.c.l.s8.bf16 %v2523_v44  ;;  %v2535_v43 = vld [vmem:[%s13677_s8 + $0x10a0] sm:$0xff] }
 0x47d   : > { %11777 = vmatpush3.bf16.msra.mxu1 %v4074_v22  ;;  %v11463_v50 = vpop.f32.mrf.mxu0  ;;  %11756 = vmatprep.subr.bf16.mxu0 %v4065_v12  ;;  %v4098_v22 = vunpack.c.h.s8.bf16 %v2538_v58  ;;  %v4114_v12 = vunpack.c.h.s8.bf16 %v2546_v59  ;;  %v2543_v44 = vld [vmem:[%s13677_s8 + $0x10e0] sm:$0xff] }
 0x47e   : > { %v11485_v51 = vpop.f32.mrf.mxu1  ;;  %11778 = vmatprep.subr.bf16.mxu1 %v4081_v41  ;;  %v11464_v37 = vadd.f32 %v11463_v50, %v11462_v61  ;;  %7668 = vmatprep.mubr.bf16.mxu0 %v1876_v40  ;;  %v2534_v41 = vld [vmem:[%s13677_s8 + $0x1098] sm:$0xff]  ;;  %v980_v40 = vcombine.high %v14798_v19, %v14798_v19  ;;  %v1877_v61 = vpack.c.bf16 %v14764_v11, %v14764_v11  ;;  %v4113_v50 = vunpack.c.l.s8.bf16 %v2546_v59  ;;  %v2539_v59 = vld [vmem:[%s13677_s8 + $0x10c0] sm:$0xff] }
 0x47f   : > { %v11486_v13 = vadd.f32 %v11485_v51, %v11484_v28  ;;  %7708 = vmatprep.mubr.bf16.mxu1 %v1878_v26  ;;  %v11465_v14 = vpop.f32.mrf.mxu0  ;;  %v1875_v26 = vpack.c.bf16 %v14761_v39, %v14761_v39  ;;  %v4090_v28 = vunpack.c.h.s8.bf16 %v2534_v41  ;;  %v2537_v51 = vld [vmem:[%s13677_s8 + $0x10b0] sm:$0xff]  ;;  %v4089_v39 = vunpack.c.l.s8.bf16 %v2534_v41 }
 0x480   : > { %v11487_v60 = vpop.f32.mrf.mxu1  ;;  %v7111_v48 = vadd.f32 %v11464_v37, %v14747_v4  ;;  %11757 = vmatpush3.bf16.msra.mxu0 %v4057_v29  ;;  %v4071_v4 = vunpack.c.l.s8.bf16 %v2525_v20  ;;  %v4106_v29 = vunpack.c.h.s8.bf16 %v2542_v5  ;;  %v1882_v33 = vpack.c.bf16 %v980_v40, %v980_v40 }
 0x481   : > { %11779 = vmatpush3.bf16.msra.mxu1 %v4073_v17  ;;  %v11466_v53 = vpop.f32.mrf.mxu0  ;;  %11758 = vmatprep.subr.bf16.mxu0 %v4064_v9  ;;  %v4097_v17 = vunpack.c.l.s8.bf16 %v2538_v58  ;;  %v2545_v9 = vld [vmem:[%s13677_s8 + $0x10f0] sm:$0xff]  ;;  %v4105_v11 = vunpack.c.l.s8.bf16 %v2542_v5  ;;  %v4096_v60 = vunpack.c.h.s8.bf16 %v2537_v51  ;;  %v2531_v58 = vld [vmem:[%s13677_s8 + $0x1080] sm:$0xff]  ;;  %v4107_v41 = vunpack.c.l.s8.bf16 %v2543_v44  ;;  %v2554_v5 = vld [vmem:[%s13677_s8 + $0x1138] sm:$0xff] }
 0x482   : > { %v11488_v1 = vpop.f32.mrf.mxu1  ;;  %11780 = vmatprep.subr.bf16.mxu1 %v4080_v35  ;;  %v14781_v34 = vadd.f32 %v11486_v13, %v7111_v48  ;;  %v1880_v35 = vpack.c.bf16 %v979_v45, %v979_v45  ;;  %v4112_v48 = vunpack.c.h.s8.bf16 %v2545_v9  ;;  %v4111_v25 = vunpack.c.l.s8.bf16 %v2545_v9  ;;  %v2562_v45 = vld [vmem:[%s13677_s8 + $0x1178] sm:$0xff] }
 0x483   : > { %v14829_v40 = vrot.slane %v309_v46, %v13706_v38 }
 0x484   : > { %11759 = vmatpush3.bf16.msra.mxu0 %v4056_v49  ;;  %v2533_v49 = vld [vmem:[%s13677_s8 + $0x1090] sm:$0xff] }
 0x485   : > { %11781 = vmatpush3.bf16.msra.mxu1 %v4072_v27  ;;  %11760 = vmatprep.subr.bf16.mxu0 %v4063_v2  ;;  %v2541_v27 = vld [vmem:[%s13677_s8 + $0x10d0] sm:$0xff]  ;;  %v4088_v0 = vunpack.c.h.s8.bf16 %v2533_v49  ;;  %v996_v9 = vcombine.high %v14829_v40, %v14829_v40 }
 0x486   : > { %11782 = vmatprep.subr.bf16.mxu1 %v4079_v18 }
 0x488   : > { %11761 = vmatpush3.bf16.msra.mxu0 %v4055_v36  ;;  %v4104_v36 = vunpack.c.h.s8.bf16 %v2541_v27 }
 0x489   : > { %11783 = vmatpush3.bf16.msra.mxu1 %v4071_v4  ;;  %11762 = vmatprep.subr.bf16.mxu0 %v4062_v23 }
 0x48a   : > { %11784 = vmatprep.subr.bf16.mxu1 %v4078_v24  ;;  %v4095_v24 = vunpack.c.l.s8.bf16 %v2537_v51  ;;  %v2558_v51 = vld [vmem:[%s13677_s8 + $0x1158] sm:$0xff] }
 0x48c   : > { %11763 = vmatpush3.bf16.msra.mxu0 %v4054_v6  ;;  %v2536_v6 = vld [vmem:[%s13677_s8 + $0x10a8] sm:$0xff] }
 0x48d   : > { %11785 = vmatpush3.bf16.msra.mxu1 %v4070_v7  ;;  %11764 = vmatprep.subr.bf16.mxu0 %v4061_v52  ;;  %v2544_v7 = vld [vmem:[%s13677_s8 + $0x10e8] sm:$0xff]  ;;  %v4087_v52 = vunpack.c.l.s8.bf16 %v2533_v49 }
 0x48e   : > { %11786 = vmatprep.subr.bf16.mxu1 %v4077_v30  ;;  %v4094_v30 = vunpack.c.h.s8.bf16 %v2536_v6  ;;  %v4110_v31 = vunpack.c.h.s8.bf16 %v2544_v7 }
 0x490   : > { %11765 = vmatpush3.bf16.msra.mxu0 %v4053_v55  ;;  %v4086_v55 = vunpack.c.h.s8.bf16 %v2532_v32 }
 0x491   : > { %11787 = vmatpush3.bf16.msra.mxu1 %v4069_v56  ;;  %11766 = vmatprep.subr.bf16.mxu0 %v4060_v3  ;;  %v4102_v56 = vunpack.c.h.s8.bf16 %v2540_v62  ;;  %v4093_v3 = vunpack.c.l.s8.bf16 %v2536_v6 }
 0x492   : > { %11788 = vmatprep.subr.bf16.mxu1 %v4076_v42  ;;  %v4109_v42 = vunpack.c.l.s8.bf16 %v2544_v7 }
 0x494   : > { %11767 = vmatpush3.bf16.msra.mxu0 %v4052_v15  ;;  %v4085_v15 = vunpack.c.l.s8.bf16 %v2532_v32 }
 0x495   : > { %11789 = vmatpush3.bf16.msra.mxu1 %v4068_v16  ;;  %11768 = vmatprep.subr.bf16.mxu0 %v4059_v8  ;;  %v4101_v16 = vunpack.c.l.s8.bf16 %v2540_v62  ;;  %v4092_v8 = vunpack.c.h.s8.bf16 %v2535_v43 }
 0x496   : > { %11790 = vmatprep.subr.bf16.mxu1 %v4075_v57  ;;  %v4108_v57 = vunpack.c.h.s8.bf16 %v2543_v44  ;;  %v2548_v44 = vld [vmem:[%s13677_s8 + $0x1108] sm:$0xff] }
 0x498   : > { %11769 = vmatpush3.bf16.msra.mxu0 %v4051_v10  ;;  %v981_v10 = vcombine.high %v309_v46, %v309_v46  ;;  %v2556_v46 = vld [vmem:[%s13677_s8 + $0x1148] sm:$0xff] }
 0x499   : > { %11791 = vmatpush3.bf16.msra.mxu1 %v4067_v21  ;;  %11798 = vmatprep.subr.bf16.mxu0 %v4098_v22  ;;  %v4084_v21 = vunpack.c.h.s8.bf16 %v2531_v58  ;;  %v4100_v22 = vunpack.c.h.s8.bf16 %v2539_v59 }
 0x49a   : > { %11820 = vmatprep.subr.bf16.mxu1 %v4114_v12  ;;  %v4091_v12 = vunpack.c.l.s8.bf16 %v2535_v43 }
 0x49b   : > { %v11506_v20 = vpop.f32.mrf.mxu0  ;;  %7669 = vmatmul.mubr.bf16.vlgmr.msra.gmra.mxu0 %v1875_v26  ;;  %v14832_v26 = vrot.slane %v981_v10, %v13706_v38  ;;  %v310_v10 = vld [vmem:[%s13670_s10 + $0x118] sm:$0xff] }
 0x49c   : > { %v11528_v37 = vpop.f32.mrf.mxu1  ;;  %7709 = vmatmul.mubr.bf16.vlgmr.msra.gmra.mxu1 %v1877_v61  ;;  %11799 = vmatpush3.bf16.msra.mxu0 %v4090_v28  ;;  %v4083_v61 = vunpack.c.l.s8.bf16 %v2531_v58  ;;  %v4099_v28 = vunpack.c.l.s8.bf16 %v2539_v59  ;;  %v2551_v58 = vld [vmem:[%s13677_s8 + $0x1120] sm:$0xff] }
 0x49d   : > { %11821 = vmatpush3.bf16.msra.mxu1 %v4106_v29  ;;  %v11507_v13 = vpop.f32.mrf.mxu0  ;;  %11800 = vmatprep.subr.bf16.mxu0 %v4097_v17  ;;  %v4130_v29 = vunpack.c.h.s8.bf16 %v2554_v5  ;;  %v4146_v17 = vunpack.c.h.s8.bf16 %v2562_v45  ;;  %v2559_v59 = vld [vmem:[%s13677_s8 + $0x1160] sm:$0xff] }
 0x49e   : > { %v11529_v14 = vpop.f32.mrf.mxu1  ;;  %11822 = vmatprep.subr.bf16.mxu1 %v4113_v50  ;;  %v11508_v53 = vadd.f32 %v11507_v13, %v11506_v20  ;;  %7748 = vmatprep.mubr.bf16.mxu0 %v1880_v35  ;;  %v2550_v50 = vld [vmem:[%s13677_s8 + $0x1118] sm:$0xff]  ;;  %v997_v35 = vcombine.high %v14832_v26, %v14832_v26  ;;  %v1881_v20 = vpack.c.bf16 %v14798_v19, %v14798_v19  ;;  %v4145_v13 = vunpack.c.l.s8.bf16 %v2562_v45  ;;  %v2555_v45 = vld [vmem:[%s13677_s8 + $0x1140] sm:$0xff] }
 0x49f   : > { %v11530_v1 = vadd.f32 %v11529_v14, %v11528_v37  ;;  %7788 = vmatprep.mubr.bf16.mxu1 %v1882_v33  ;;  %v11509_v2 = vpop.f32.mrf.mxu0  ;;  %v1879_v33 = vpack.c.bf16 %v14795_v54, %v14795_v54  ;;  %v4122_v37 = vunpack.c.h.s8.bf16 %v2550_v50  ;;  %v2553_v14 = vld [vmem:[%s13677_s8 + $0x1130] sm:$0xff]  ;;  %v4121_v54 = vunpack.c.l.s8.bf16 %v2550_v50 }
 0x4a0   : > { %v11531_v18 = vpop.f32.mrf.mxu1  ;;  %v7191_v63 = vadd.f32 %v11508_v53, %v14781_v34  ;;  %11801 = vmatpush3.bf16.msra.mxu0 %v4089_v39  ;;  %v4103_v34 = vunpack.c.l.s8.bf16 %v2541_v27  ;;  %v4138_v39 = vunpack.c.h.s8.bf16 %v2558_v51  ;;  %v1886_v49 = vpack.c.bf16 %v997_v35, %v997_v35 }
 0x4a1   : > { %11823 = vmatpush3.bf16.msra.mxu1 %v4105_v11  ;;  %v11510_v4 = vpop.f32.mrf.mxu0  ;;  %11802 = vmatprep.subr.bf16.mxu0 %v4096_v60  ;;  %v4129_v11 = vunpack.c.l.s8.bf16 %v2554_v5  ;;  %v2561_v60 = vld [vmem:[%s13677_s8 + $0x1170] sm:$0xff]  ;;  %v4137_v19 = vunpack.c.l.s8.bf16 %v2558_v51  ;;  %v4128_v18 = vunpack.c.h.s8.bf16 %v2553_v14  ;;  %v2547_v5 = vld [vmem:[%s13677_s8 + $0x1100] sm:$0xff]  ;;  %v4139_v50 = vunpack.c.l.s8.bf16 %v2559_v59  ;;  %v2570_v51 = vld [vmem:[%s13677_s8 + $0x11b8] sm:$0xff] }
 0x4a2   : > { %v11532_v23 = vpop.f32.mrf.mxu1  ;;  %11824 = vmatprep.subr.bf16.mxu1 %v4112_v48  ;;  %v14815_v47 = vadd.f32 %v11530_v1, %v7191_v63  ;;  %v1884_v48 = vpack.c.bf16 %v996_v9, %v996_v9  ;;  %v4144_v63 = vunpack.c.h.s8.bf16 %v2561_v60  ;;  %v4143_v32 = vunpack.c.l.s8.bf16 %v2561_v60  ;;  %v2578_v9 = vld [vmem:[%s13677_s8 + $0x11f8] sm:$0xff] }
 0x4a3   : > { %v14863_v35 = vrot.slane %v310_v10, %v13706_v38 }
 0x4a4   : > { %11803 = vmatpush3.bf16.msra.mxu0 %v4088_v0  ;;  %v2549_v0 = vld [vmem:[%s13677_s8 + $0x1110] sm:$0xff] }
 0x4a5   : > { %11825 = vmatpush3.bf16.msra.mxu1 %v4104_v36  ;;  %11804 = vmatprep.subr.bf16.mxu0 %v4095_v24  ;;  %v2557_v36 = vld [vmem:[%s13677_s8 + $0x1150] sm:$0xff]  ;;  %v4120_v7 = vunpack.c.h.s8.bf16 %v2549_v0  ;;  %v1013_v60 = vcombine.high %v14863_v35, %v14863_v35 }
 0x4a6   : > { %11826 = vmatprep.subr.bf16.mxu1 %v4111_v25 }
 0x4a8   : > { %11805 = vmatpush3.bf16.msra.mxu0 %v4087_v52  ;;  %v4136_v52 = vunpack.c.h.s8.bf16 %v2557_v36 }
 0x4a9   : > { %11827 = vmatpush3.bf16.msra.mxu1 %v4103_v34  ;;  %11806 = vmatprep.subr.bf16.mxu0 %v4094_v30 }
 0x4aa   : > { %11828 = vmatprep.subr.bf16.mxu1 %v4110_v31  ;;  %v4127_v31 = vunpack.c.l.s8.bf16 %v2553_v14  ;;  %v2574_v14 = vld [vmem:[%s13677_s8 + $0x11d8] sm:$0xff] }
 0x4ac   : > { %11807 = vmatpush3.bf16.msra.mxu0 %v4086_v55  ;;  %v2552_v55 = vld [vmem:[%s13677_s8 + $0x1128] sm:$0xff] }
 0x4ad   : > { %11829 = vmatpush3.bf16.msra.mxu1 %v4102_v56  ;;  %11808 = vmatprep.subr.bf16.mxu0 %v4093_v3  ;;  %v2560_v56 = vld [vmem:[%s13677_s8 + $0x1168] sm:$0xff]  ;;  %v4119_v3 = vunpack.c.l.s8.bf16 %v2549_v0 }
 0x4ae   : > { %11830 = vmatprep.subr.bf16.mxu1 %v4109_v42  ;;  %v4126_v42 = vunpack.c.h.s8.bf16 %v2552_v55  ;;  %v4142_v43 = vunpack.c.h.s8.bf16 %v2560_v56 }
 0x4b0   : > { %11809 = vmatpush3.bf16.msra.mxu0 %v4085_v15  ;;  %v4118_v15 = vunpack.c.h.s8.bf16 %v2548_v44 }
 0x4b1   : > { %11831 = vmatpush3.bf16.msra.mxu1 %v4101_v16  ;;  %11810 = vmatprep.subr.bf16.mxu0 %v4092_v8  ;;  %v4134_v16 = vunpack.c.h.s8.bf16 %v2556_v46  ;;  %v4125_v8 = vunpack.c.l.s8.bf16 %v2552_v55 }
 0x4b2   : > { %11832 = vmatprep.subr.bf16.mxu1 %v4108_v57  ;;  %v4141_v57 = vunpack.c.l.s8.bf16 %v2560_v56 }
 0x4b4   : > { %11811 = vmatpush3.bf16.msra.mxu0 %v4084_v21  ;;  %v4117_v21 = vunpack.c.l.s8.bf16 %v2548_v44 }
 0x4b5   : > { %11833 = vmatpush3.bf16.msra.mxu1 %v4100_v22  ;;  %11812 = vmatprep.subr.bf16.mxu0 %v4091_v12  ;;  %v4133_v22 = vunpack.c.l.s8.bf16 %v2556_v46  ;;  %v4124_v12 = vunpack.c.h.s8.bf16 %v2551_v58 }
 0x4b6   : > { %11834 = vmatprep.subr.bf16.mxu1 %v4107_v41  ;;  %v4140_v41 = vunpack.c.h.s8.bf16 %v2559_v59  ;;  %v2564_v59 = vld [vmem:[%s13677_s8 + $0x1188] sm:$0xff] }
 0x4b8   : > { %11813 = vmatpush3.bf16.msra.mxu0 %v4083_v61  ;;  %v998_v61 = vcombine.high %v310_v10, %v310_v10  ;;  %v2572_v10 = vld [vmem:[%s13677_s8 + $0x11c8] sm:$0xff] }
 0x4b9   : > { %11835 = vmatpush3.bf16.msra.mxu1 %v4099_v28  ;;  %11842 = vmatprep.subr.bf16.mxu0 %v4130_v29  ;;  %v4116_v28 = vunpack.c.h.s8.bf16 %v2547_v5  ;;  %v4132_v29 = vunpack.c.h.s8.bf16 %v2555_v45 }
 0x4ba   : > { %11864 = vmatprep.subr.bf16.mxu1 %v4146_v17  ;;  %v4123_v17 = vunpack.c.l.s8.bf16 %v2551_v58 }
 0x4bb   : > { %v11550_v27 = vpop.f32.mrf.mxu0  ;;  %7749 = vmatmul.mubr.bf16.vlgmr.msra.gmra.mxu0 %v1879_v33  ;;  %v14866_v33 = vrot.slane %v998_v61, %v13706_v38  ;;  %v311_v61 = vld [vmem:[%s13670_s10 + $0x120] sm:$0xff] }
 0x4bc   : > { %v11572_v53 = vpop.f32.mrf.mxu1  ;;  %7789 = vmatmul.mubr.bf16.vlgmr.msra.gmra.mxu1 %v1881_v20  ;;  %11843 = vmatpush3.bf16.msra.mxu0 %v4122_v37  ;;  %v4115_v20 = vunpack.c.l.s8.bf16 %v2547_v5  ;;  %v4131_v37 = vunpack.c.l.s8.bf16 %v2555_v45  ;;  %v2567_v5 = vld [vmem:[%s13677_s8 + $0x11a0] sm:$0xff] }
 0x4bd   : > { %11865 = vmatpush3.bf16.msra.mxu1 %v4138_v39  ;;  %v11551_v1 = vpop.f32.mrf.mxu0  ;;  %11844 = vmatprep.subr.bf16.mxu0 %v4129_v11  ;;  %v4162_v39 = vunpack.c.h.s8.bf16 %v2570_v51  ;;  %v4178_v11 = vunpack.c.h.s8.bf16 %v2578_v9  ;;  %v2575_v45 = vld [vmem:[%s13677_s8 + $0x11e0] sm:$0xff] }
 0x4be   : > { %v11573_v2 = vpop.f32.mrf.mxu1  ;;  %11866 = vmatprep.subr.bf16.mxu1 %v4145_v13  ;;  %v11552_v4 = vadd.f32 %v11551_v1, %v11550_v27  ;;  %7828 = vmatprep.mubr.bf16.mxu0 %v1884_v48  ;;  %v2566_v13 = vld [vmem:[%s13677_s8 + $0x1198] sm:$0xff]  ;;  %v1014_v48 = vcombine.high %v14866_v33, %v14866_v33  ;;  %v1885_v27 = vpack.c.bf16 %v14832_v26, %v14832_v26  ;;  %v4177_v1 = vunpack.c.l.s8.bf16 %v2578_v9  ;;  %v2571_v9 = vld [vmem:[%s13677_s8 + $0x11c0] sm:$0xff] }
 0x4bf   : > { %v11574_v23 = vadd.f32 %v11573_v2, %v11572_v53  ;;  %7868 = vmatprep.mubr.bf16.mxu1 %v1886_v49  ;;  %v11553_v24 = vpop.f32.mrf.mxu0  ;;  %v1883_v49 = vpack.c.bf16 %v14829_v40, %v14829_v40  ;;  %v4154_v53 = vunpack.c.h.s8.bf16 %v2566_v13  ;;  %v2569_v2 = vld [vmem:[%s13677_s8 + $0x11b0] sm:$0xff]  ;;  %v4153_v40 = vunpack.c.l.s8.bf16 %v2566_v13 }
 0x4c0   : > { %v11575_v25 = vpop.f32.mrf.mxu1  ;;  %v7271_v6 = vadd.f32 %v11552_v4, %v14815_v47  ;;  %11845 = vmatpush3.bf16.msra.mxu0 %v4121_v54  ;;  %v4135_v47 = vunpack.c.l.s8.bf16 %v2557_v36  ;;  %v4170_v54 = vunpack.c.h.s8.bf16 %v2574_v14  ;;  %v1890_v0 = vpack.c.bf16 %v1014_v48, %v1014_v48 }
 0x4c1   : > { %11867 = vmatpush3.bf16.msra.mxu1 %v4137_v19  ;;  %v11554_v34 = vpop.f32.mrf.mxu0  ;;  %11846 = vmatprep.subr.bf16.mxu0 %v4128_v18  ;;  %v4161_v19 = vunpack.c.l.s8.bf16 %v2570_v51  ;;  %v2577_v18 = vld [vmem:[%s13677_s8 + $0x11f0] sm:$0xff]  ;;  %v4169_v26 = vunpack.c.l.s8.bf16 %v2574_v14  ;;  %v4160_v25 = vunpack.c.h.s8.bf16 %v2569_v2  ;;  %v2563_v51 = vld [vmem:[%s13677_s8 + $0x1180] sm:$0xff]  ;;  %v4171_v13 = vunpack.c.l.s8.bf16 %v2575_v45  ;;  %v2586_v14 = vld [vmem:[%s13677_s8 + $0x1238] sm:$0xff] }
 0x4c2   : > { %v11576_v30 = vpop.f32.mrf.mxu1  ;;  %11868 = vmatprep.subr.bf16.mxu1 %v4144_v63  ;;  %v14849_v62 = vadd.f32 %v11574_v23, %v7271_v6  ;;  %v1888_v63 = vpack.c.bf16 %v1013_v60, %v1013_v60  ;;  %v4176_v6 = vunpack.c.h.s8.bf16 %v2577_v18  ;;  %v4175_v44 = vunpack.c.l.s8.bf16 %v2577_v18  ;;  %v2594_v60 = vld [vmem:[%s13677_s8 + $0x1278] sm:$0xff] }
 0x4c3   : > { %v14897_v48 = vrot.slane %v311_v61, %v13706_v38 }
 0x4c4   : > { %11847 = vmatpush3.bf16.msra.mxu0 %v4120_v7  ;;  %v2565_v7 = vld [vmem:[%s13677_s8 + $0x1190] sm:$0xff] }
 0x4c5   : > { %11869 = vmatpush3.bf16.msra.mxu1 %v4136_v52  ;;  %11848 = vmatprep.subr.bf16.mxu0 %v4127_v31  ;;  %v2573_v52 = vld [vmem:[%s13677_s8 + $0x11d0] sm:$0xff]  ;;  %v4152_v56 = vunpack.c.h.s8.bf16 %v2565_v7  ;;  %v1030_v18 = vcombine.high %v14897_v48, %v14897_v48 }
 0x4c6   : > { %11870 = vmatprep.subr.bf16.mxu1 %v4143_v32 }
 0x4c8   : > { %11849 = vmatpush3.bf16.msra.mxu0 %v4119_v3  ;;  %v4168_v3 = vunpack.c.h.s8.bf16 %v2573_v52 }
 0x4c9   : > { %11871 = vmatpush3.bf16.msra.mxu1 %v4135_v47  ;;  %11850 = vmatprep.subr.bf16.mxu0 %v4126_v42 }
 0x4ca   : > { %11872 = vmatprep.subr.bf16.mxu1 %v4142_v43  ;;  %v4159_v43 = vunpack.c.l.s8.bf16 %v2569_v2  ;;  %v2590_v2 = vld [vmem:[%s13677_s8 + $0x1258] sm:$0xff] }
 0x4cc   : > { %11851 = vmatpush3.bf16.msra.mxu0 %v4118_v15  ;;  %v2568_v15 = vld [vmem:[%s13677_s8 + $0x11a8] sm:$0xff] }
 0x4cd   : > { %11873 = vmatpush3.bf16.msra.mxu1 %v4134_v16  ;;  %11852 = vmatprep.subr.bf16.mxu0 %v4125_v8  ;;  %v2576_v16 = vld [vmem:[%s13677_s8 + $0x11e8] sm:$0xff]  ;;  %v4151_v8 = vunpack.c.l.s8.bf16 %v2565_v7 }
 0x4ce   : > { %11874 = vmatprep.subr.bf16.mxu1 %v4141_v57  ;;  %v4158_v57 = vunpack.c.h.s8.bf16 %v2568_v15  ;;  %v4174_v58 = vunpack.c.h.s8.bf16 %v2576_v16 }
 0x4d0   : > { %11853 = vmatpush3.bf16.msra.mxu0 %v4117_v21  ;;  %v4150_v21 = vunpack.c.h.s8.bf16 %v2564_v59 }
 0x4d1   : > { %11875 = vmatpush3.bf16.msra.mxu1 %v4133_v22  ;;  %11854 = vmatprep.subr.bf16.mxu0 %v4124_v12  ;;  %v4166_v22 = vunpack.c.h.s8.bf16 %v2572_v10  ;;  %v4157_v12 = vunpack.c.l.s8.bf16 %v2568_v15 }
 0x4d2   : > { %11876 = vmatprep.subr.bf16.mxu1 %v4140_v41  ;;  %v4173_v41 = vunpack.c.l.s8.bf16 %v2576_v16 }
 0x4d4   : > { %11855 = vmatpush3.bf16.msra.mxu0 %v4116_v28  ;;  %v4149_v28 = vunpack.c.l.s8.bf16 %v2564_v59 }
 0x4d5   : > { %11877 = vmatpush3.bf16.msra.mxu1 %v4132_v29  ;;  %11856 = vmatprep.subr.bf16.mxu0 %v4123_v17  ;;  %v4165_v29 = vunpack.c.l.s8.bf16 %v2572_v10  ;;  %v4156_v17 = vunpack.c.h.s8.bf16 %v2567_v5 }
 0x4d6   : > { %11878 = vmatprep.subr.bf16.mxu1 %v4139_v50  ;;  %v4172_v50 = vunpack.c.h.s8.bf16 %v2575_v45  ;;  %v2580_v45 = vld [vmem:[%s13677_s8 + $0x1208] sm:$0xff] }
 0x4d8   : > { %11857 = vmatpush3.bf16.msra.mxu0 %v4115_v20  ;;  %v1015_v20 = vcombine.high %v311_v61, %v311_v61  ;;  %v2588_v61 = vld [vmem:[%s13677_s8 + $0x1248] sm:$0xff] }
 0x4d9   : > { %11879 = vmatpush3.bf16.msra.mxu1 %v4131_v37  ;;  %11886 = vmatprep.subr.bf16.mxu0 %v4162_v39  ;;  %v4148_v37 = vunpack.c.h.s8.bf16 %v2563_v51  ;;  %v4164_v39 = vunpack.c.h.s8.bf16 %v2571_v9 }
 0x4da   : > { %11908 = vmatprep.subr.bf16.mxu1 %v4178_v11  ;;  %v4155_v11 = vunpack.c.l.s8.bf16 %v2567_v5 }
 0x4db   : > { %v11594_v36 = vpop.f32.mrf.mxu0  ;;  %7829 = vmatmul.mubr.bf16.vlgmr.msra.gmra.mxu0 %v1883_v49  ;;  %v14900_v49 = vrot.slane %v1015_v20, %v13706_v38  ;;  %v312_v20 = vld [vmem:[%s13670_s10 + $0x128] sm:$0xff] }
 0x4dc   : > { %v11616_v4 = vpop.f32.mrf.mxu1  ;;  %7869 = vmatmul.mubr.bf16.vlgmr.msra.gmra.mxu1 %v1885_v27  ;;  %11887 = vmatpush3.bf16.msra.mxu0 %v4154_v53  ;;  %v4147_v27 = vunpack.c.l.s8.bf16 %v2563_v51  ;;  %v4163_v53 = vunpack.c.l.s8.bf16 %v2571_v9  ;;  %v2583_v51 = vld [vmem:[%s13677_s8 + $0x1220] sm:$0xff] }
 0x4dd   : > { %11909 = vmatpush3.bf16.msra.mxu1 %v4170_v54  ;;  %v11595_v23 = vpop.f32.mrf.mxu0  ;;  %11888 = vmatprep.subr.bf16.mxu0 %v4161_v19  ;;  %v4194_v54 = vunpack.c.h.s8.bf16 %v2586_v14  ;;  %v4210_v19 = vunpack.c.h.s8.bf16 %v2594_v60  ;;  %v2591_v9 = vld [vmem:[%s13677_s8 + $0x1260] sm:$0xff] }
 0x4de   : > { %v11617_v24 = vpop.f32.mrf.mxu1  ;;  %11910 = vmatprep.subr.bf16.mxu1 %v4177_v1  ;;  %v11596_v34 = vadd.f32 %v11595_v23, %v11594_v36  ;;  %7908 = vmatprep.mubr.bf16.mxu0 %v1888_v63  ;;  %v2582_v1 = vld [vmem:[%s13677_s8 + $0x1218] sm:$0xff]  ;;  %v1031_v63 = vcombine.high %v14900_v49, %v14900_v49  ;;  %v1889_v36 = vpack.c.bf16 %v14866_v33, %v14866_v33  ;;  %v4209_v23 = vunpack.c.l.s8.bf16 %v2594_v60  ;;  %v2587_v60 = vld [vmem:[%s13677_s8 + $0x1240] sm:$0xff] }
 0x4df   : > { %v11618_v30 = vadd.f32 %v11617_v24, %v11616_v4  ;;  %7948 = vmatprep.mubr.bf16.mxu1 %v1890_v0  ;;  %v11597_v31 = vpop.f32.mrf.mxu0  ;;  %v1887_v0 = vpack.c.bf16 %v14863_v35, %v14863_v35  ;;  %v4186_v4 = vunpack.c.h.s8.bf16 %v2582_v1  ;;  %v2585_v24 = vld [vmem:[%s13677_s8 + $0x1230] sm:$0xff]  ;;  %v4185_v35 = vunpack.c.l.s8.bf16 %v2582_v1 }
 0x4e0   : > { %v11619_v32 = vpop.f32.mrf.mxu1  ;;  %v7351_v55 = vadd.f32 %v11596_v34, %v14849_v62  ;;  %11889 = vmatpush3.bf16.msra.mxu0 %v4153_v40  ;;  %v4167_v62 = vunpack.c.l.s8.bf16 %v2573_v52  ;;  %v4202_v40 = vunpack.c.h.s8.bf16 %v2590_v2  ;;  %v1894_v7 = vpack.c.bf16 %v1031_v63, %v1031_v63 }
 0x4e1   : > { %11911 = vmatpush3.bf16.msra.mxu1 %v4169_v26  ;;  %v11598_v47 = vpop.f32.mrf.mxu0  ;;  %11890 = vmatprep.subr.bf16.mxu0 %v4160_v25  ;;  %v4193_v26 = vunpack.c.l.s8.bf16 %v2586_v14  ;;  %v2593_v25 = vld [vmem:[%s13677_s8 + $0x1270] sm:$0xff]  ;;  %v4201_v33 = vunpack.c.l.s8.bf16 %v2590_v2  ;;  %v4192_v32 = vunpack.c.h.s8.bf16 %v2585_v24  ;;  %v2579_v14 = vld [vmem:[%s13677_s8 + $0x1200] sm:$0xff]  ;;  %v4203_v1 = vunpack.c.l.s8.bf16 %v2591_v9  ;;  %v2602_v2 = vld [vmem:[%s13677_s8 + $0x12b8] sm:$0xff] }
 0x4e2   : > { %v11620_v42 = vpop.f32.mrf.mxu1  ;;  %11912 = vmatprep.subr.bf16.mxu1 %v4176_v6  ;;  %v14883_v46 = vadd.f32 %v11618_v30, %v7351_v55  ;;  %v1892_v6 = vpack.c.bf16 %v1030_v18, %v1030_v18  ;;  %v4208_v55 = vunpack.c.h.s8.bf16 %v2593_v25  ;;  %v4207_v59 = vunpack.c.l.s8.bf16 %v2593_v25  ;;  %v2610_v18 = vld [vmem:[%s13677_s8 + $0x12f8] sm:$0xff] }
 0x4e3   : > { %v14931_v63 = vrot.slane %v312_v20, %v13706_v38 }
 0x4e4   : > { %11891 = vmatpush3.bf16.msra.mxu0 %v4152_v56  ;;  %v2581_v56 = vld [vmem:[%s13677_s8 + $0x1210] sm:$0xff] }
 0x4e5   : > { %11913 = vmatpush3.bf16.msra.mxu1 %v4168_v3  ;;  %11892 = vmatprep.subr.bf16.mxu0 %v4159_v43  ;;  %v2589_v3 = vld [vmem:[%s13677_s8 + $0x1250] sm:$0xff]  ;;  %v4184_v16 = vunpack.c.h.s8.bf16 %v2581_v56  ;;  %v1047_v25 = vcombine.high %v14931_v63, %v14931_v63 }
 0x4e6   : > { %11914 = vmatprep.subr.bf16.mxu1 %v4175_v44 }
 0x4e8   : > { %11893 = vmatpush3.bf16.msra.mxu0 %v4151_v8  ;;  %v4200_v8 = vunpack.c.h.s8.bf16 %v2589_v3 }
 0x4e9   : > { %11915 = vmatpush3.bf16.msra.mxu1 %v4167_v62  ;;  %11894 = vmatprep.subr.bf16.mxu0 %v4158_v57 }
 0x4ea   : > { %11916 = vmatprep.subr.bf16.mxu1 %v4174_v58  ;;  %v4191_v58 = vunpack.c.l.s8.bf16 %v2585_v24  ;;  %v2606_v24 = vld [vmem:[%s13677_s8 + $0x12d8] sm:$0xff] }
 0x4ec   : > { %11895 = vmatpush3.bf16.msra.mxu0 %v4150_v21  ;;  %v2584_v21 = vld [vmem:[%s13677_s8 + $0x1228] sm:$0xff] }
 0x4ed   : > { %11917 = vmatpush3.bf16.msra.mxu1 %v4166_v22  ;;  %11896 = vmatprep.subr.bf16.mxu0 %v4157_v12  ;;  %v2592_v22 = vld [vmem:[%s13677_s8 + $0x1268] sm:$0xff]  ;;  %v4183_v12 = vunpack.c.l.s8.bf16 %v2581_v56 }
 0x4ee   : > { %11918 = vmatprep.subr.bf16.mxu1 %v4173_v41  ;;  %v4190_v41 = vunpack.c.h.s8.bf16 %v2584_v21  ;;  %v4206_v5 = vunpack.c.h.s8.bf16 %v2592_v22 }
 0x4f0   : > { %11897 = vmatpush3.bf16.msra.mxu0 %v4149_v28  ;;  %v4182_v28 = vunpack.c.h.s8.bf16 %v2580_v45 }
 0x4f1   : > { %11919 = vmatpush3.bf16.msra.mxu1 %v4165_v29  ;;  %11898 = vmatprep.subr.bf16.mxu0 %v4156_v17  ;;  %v4198_v29 = vunpack.c.h.s8.bf16 %v2588_v61  ;;  %v4189_v17 = vunpack.c.l.s8.bf16 %v2584_v21 }
 0x4f2   : > { %11920 = vmatprep.subr.bf16.mxu1 %v4172_v50  ;;  %v4205_v50 = vunpack.c.l.s8.bf16 %v2592_v22 }
 0x4f4   : > { %11899 = vmatpush3.bf16.msra.mxu0 %v4148_v37  ;;  %v4181_v37 = vunpack.c.l.s8.bf16 %v2580_v45 }
 0x4f5   : > { %11921 = vmatpush3.bf16.msra.mxu1 %v4164_v39  ;;  %11900 = vmatprep.subr.bf16.mxu0 %v4155_v11  ;;  %v4197_v39 = vunpack.c.l.s8.bf16 %v2588_v61  ;;  %v4188_v11 = vunpack.c.h.s8.bf16 %v2583_v51 }
 0x4f6   : > { %11922 = vmatprep.subr.bf16.mxu1 %v4171_v13  ;;  %v4204_v13 = vunpack.c.h.s8.bf16 %v2591_v9  ;;  %v2596_v9 = vld [vmem:[%s13677_s8 + $0x1288] sm:$0xff] }
 0x4f8   : > { %11901 = vmatpush3.bf16.msra.mxu0 %v4147_v27  ;;  %v1032_v27 = vcombine.high %v312_v20, %v312_v20  ;;  %v2604_v20 = vld [vmem:[%s13677_s8 + $0x12c8] sm:$0xff] }
 0x4f9   : > { %11923 = vmatpush3.bf16.msra.mxu1 %v4163_v53  ;;  %11930 = vmatprep.subr.bf16.mxu0 %v4194_v54  ;;  %v4180_v53 = vunpack.c.h.s8.bf16 %v2579_v14  ;;  %v4196_v54 = vunpack.c.h.s8.bf16 %v2587_v60 }
 0x4fa   : > { %11952 = vmatprep.subr.bf16.mxu1 %v4210_v19  ;;  %v4187_v19 = vunpack.c.l.s8.bf16 %v2583_v51 }
 0x4fb   : > { %v11638_v52 = vpop.f32.mrf.mxu0  ;;  %7909 = vmatmul.mubr.bf16.vlgmr.msra.gmra.mxu0 %v1887_v0  ;;  %v14934_v0 = vrot.slane %v1032_v27, %v13706_v38  ;;  %v313_v27 = vld [vmem:[%s13670_s10 + $0x130] sm:$0xff] }
 0x4fc   : > { %v11660_v34 = vpop.f32.mrf.mxu1  ;;  %7949 = vmatmul.mubr.bf16.vlgmr.msra.gmra.mxu1 %v1889_v36  ;;  %11931 = vmatpush3.bf16.msra.mxu0 %v4186_v4  ;;  %v4179_v36 = vunpack.c.l.s8.bf16 %v2579_v14  ;;  %v4195_v4 = vunpack.c.l.s8.bf16 %v2587_v60  ;;  %v2599_v14 = vld [vmem:[%s13677_s8 + $0x12a0] sm:$0xff] }
 0x4fd   : > { %11953 = vmatpush3.bf16.msra.mxu1 %v4202_v40  ;;  %v11639_v30 = vpop.f32.mrf.mxu0  ;;  %11932 = vmatprep.subr.bf16.mxu0 %v4193_v26  ;;  %v4226_v40 = vunpack.c.h.s8.bf16 %v2602_v2  ;;  %v4242_v26 = vunpack.c.h.s8.bf16 %v2610_v18  ;;  %v2607_v60 = vld [vmem:[%s13677_s8 + $0x12e0] sm:$0xff] }
 0x4fe   : > { %v11661_v31 = vpop.f32.mrf.mxu1  ;;  %11954 = vmatprep.subr.bf16.mxu1 %v4209_v23  ;;  %v11640_v47 = vadd.f32 %v11639_v30, %v11638_v52  ;;  %7988 = vmatprep.mubr.bf16.mxu0 %v1892_v6  ;;  %v2598_v23 = vld [vmem:[%s13677_s8 + $0x1298] sm:$0xff]  ;;  %v1048_v6 = vcombine.high %v14934_v0, %v14934_v0  ;;  %v1893_v52 = vpack.c.bf16 %v14900_v49, %v14900_v49  ;;  %v4241_v30 = vunpack.c.l.s8.bf16 %v2610_v18  ;;  %v2603_v18 = vld [vmem:[%s13677_s8 + $0x12c0] sm:$0xff] }
 0x4ff   : > { %v11662_v42 = vadd.f32 %v11661_v31, %v11660_v34  ;;  %8028 = vmatprep.mubr.bf16.mxu1 %v1894_v7  ;;  %v11641_v43 = vpop.f32.mrf.mxu0  ;;  %v1891_v7 = vpack.c.bf16 %v14897_v48, %v14897_v48  ;;  %v4218_v34 = vunpack.c.h.s8.bf16 %v2598_v23  ;;  %v2601_v31 = vld [vmem:[%s13677_s8 + $0x12b0] sm:$0xff]  ;;  %v4217_v48 = vunpack.c.l.s8.bf16 %v2598_v23 }
 0x500   : > { %v11663_v44 = vpop.f32.mrf.mxu1  ;;  %v7431_v15 = vadd.f32 %v11640_v47, %v14883_v46  ;;  %11933 = vmatpush3.bf16.msra.mxu0 %v4185_v35  ;;  %v4199_v46 = vunpack.c.l.s8.bf16 %v2589_v3  ;;  %v4234_v35 = vunpack.c.h.s8.bf16 %v2606_v24  ;;  %v1898_v56 = vpack.c.bf16 %v1048_v6, %v1048_v6 }
 0x501   : > { %11955 = vmatpush3.bf16.msra.mxu1 %v4201_v33  ;;  %v11642_v62 = vpop.f32.mrf.mxu0  ;;  %11934 = vmatprep.subr.bf16.mxu0 %v4192_v32  ;;  %v4225_v33 = vunpack.c.l.s8.bf16 %v2602_v2  ;;  %v2609_v32 = vld [vmem:[%s13677_s8 + $0x12f0] sm:$0xff]  ;;  %v4233_v49 = vunpack.c.l.s8.bf16 %v2606_v24  ;;  %v4224_v44 = vunpack.c.h.s8.bf16 %v2601_v31  ;;  %v2595_v2 = vld [vmem:[%s13677_s8 + $0x1280] sm:$0xff]  ;;  %v4235_v23 = vunpack.c.l.s8.bf16 %v2607_v60  ;;  %v2618_v24 = vld [vmem:[%s13677_s8 + $0x1338] sm:$0xff] }
 0x502   : > { %v11664_v57 = vpop.f32.mrf.mxu1  ;;  %11956 = vmatprep.subr.bf16.mxu1 %v4208_v55  ;;  %v14917_v10 = vadd.f32 %v11662_v42, %v7431_v15  ;;  %v1896_v55 = vpack.c.bf16 %v1047_v25, %v1047_v25  ;;  %v4240_v15 = vunpack.c.h.s8.bf16 %v2609_v32  ;;  %v4239_v45 = vunpack.c.l.s8.bf16 %v2609_v32  ;;  %v2626_v25 = vld [vmem:[%s13677_s8 + $0x1378] sm:$0xff] }
 0x503   : > { %v14965_v6 = vrot.slane %v313_v27, %v13706_v38 }
 0x504   : > { %11935 = vmatpush3.bf16.msra.mxu0 %v4184_v16  ;;  %v2597_v16 = vld [vmem:[%s13677_s8 + $0x1290] sm:$0xff] }
 0x505   : > { %11957 = vmatpush3.bf16.msra.mxu1 %v4200_v8  ;;  %11936 = vmatprep.subr.bf16.mxu0 %v4191_v58  ;;  %v2605_v8 = vld [vmem:[%s13677_s8 + $0x12d0] sm:$0xff]  ;;  %v4216_v22 = vunpack.c.h.s8.bf16 %v2597_v16  ;;  %v1064_v32 = vcombine.high %v14965_v6, %v14965_v6 }
 0x506   : > { %11958 = vmatprep.subr.bf16.mxu1 %v4207_v59 }
 0x508   : > { %11937 = vmatpush3.bf16.msra.mxu0 %v4183_v12  ;;  %v4232_v12 = vunpack.c.h.s8.bf16 %v2605_v8 }
 0x509   : > { %11959 = vmatpush3.bf16.msra.mxu1 %v4199_v46  ;;  %11938 = vmatprep.subr.bf16.mxu0 %v4190_v41 }
 0x50a   : > { %11960 = vmatprep.subr.bf16.mxu1 %v4206_v5  ;;  %v4223_v5 = vunpack.c.l.s8.bf16 %v2601_v31  ;;  %v2622_v31 = vld [vmem:[%s13677_s8 + $0x1358] sm:$0xff] }
 0x50c   : > { %11939 = vmatpush3.bf16.msra.mxu0 %v4182_v28  ;;  %v2600_v28 = vld [vmem:[%s13677_s8 + $0x12a8] sm:$0xff] }
 0x50d   : > { %11961 = vmatpush3.bf16.msra.mxu1 %v4198_v29  ;;  %11940 = vmatprep.subr.bf16.mxu0 %v4189_v17  ;;  %v2608_v29 = vld [vmem:[%s13677_s8 + $0x12e8] sm:$0xff]  ;;  %v4215_v17 = vunpack.c.l.s8.bf16 %v2597_v16 }
 0x50e   : > { %11962 = vmatprep.subr.bf16.mxu1 %v4205_v50  ;;  %v4222_v50 = vunpack.c.h.s8.bf16 %v2600_v28  ;;  %v4238_v51 = vunpack.c.h.s8.bf16 %v2608_v29 }
 0x510   : > { %11941 = vmatpush3.bf16.msra.mxu0 %v4181_v37  ;;  %v4214_v37 = vunpack.c.h.s8.bf16 %v2596_v9 }
 0x511   : > { %11963 = vmatpush3.bf16.msra.mxu1 %v4197_v39  ;;  %11942 = vmatprep.subr.bf16.mxu0 %v4188_v11  ;;  %v4230_v39 = vunpack.c.h.s8.bf16 %v2604_v20  ;;  %v4221_v11 = vunpack.c.l.s8.bf16 %v2600_v28 }
 0x512   : > { %11964 = vmatprep.subr.bf16.mxu1 %v4204_v13  ;;  %v4237_v13 = vunpack.c.l.s8.bf16 %v2608_v29 }
 0x514   : > { %11943 = vmatpush3.bf16.msra.mxu0 %v4180_v53  ;;  %v4213_v53 = vunpack.c.l.s8.bf16 %v2596_v9 }
 0x515   : > { %11965 = vmatpush3.bf16.msra.mxu1 %v4196_v54  ;;  %11944 = vmatprep.subr.bf16.mxu0 %v4187_v19  ;;  %v4229_v54 = vunpack.c.l.s8.bf16 %v2604_v20  ;;  %v4220_v19 = vunpack.c.h.s8.bf16 %v2599_v14 }
 0x516   : > { %11966 = vmatprep.subr.bf16.mxu1 %v4203_v1  ;;  %v4236_v1 = vunpack.c.h.s8.bf16 %v2607_v60  ;;  %v2612_v60 = vld [vmem:[%s13677_s8 + $0x1308] sm:$0xff] }
 0x518   : > { %11945 = vmatpush3.bf16.msra.mxu0 %v4179_v36  ;;  %v1049_v36 = vcombine.high %v313_v27, %v313_v27  ;;  %v2620_v27 = vld [vmem:[%s13677_s8 + $0x1348] sm:$0xff] }
 0x519   : > { %11967 = vmatpush3.bf16.msra.mxu1 %v4195_v4  ;;  %11974 = vmatprep.subr.bf16.mxu0 %v4226_v40  ;;  %v4212_v4 = vunpack.c.h.s8.bf16 %v2595_v2  ;;  %v4228_v40 = vunpack.c.h.s8.bf16 %v2603_v18 }
 0x51a   : > { %11996 = vmatprep.subr.bf16.mxu1 %v4242_v26  ;;  %v4219_v26 = vunpack.c.l.s8.bf16 %v2599_v14 }
 0x51b   : > { %v11682_v3 = vpop.f32.mrf.mxu0  ;;  %7989 = vmatmul.mubr.bf16.vlgmr.msra.gmra.mxu0 %v1891_v7  ;;  %v14968_v7 = vrot.slane %v1049_v36, %v13706_v38  ;;  %v314_v36 = vld [vmem:[%s13670_s10 + $0x138] sm:$0xff] }
 0x51c   : > { %v11704_v47 = vpop.f32.mrf.mxu1  ;;  %8029 = vmatmul.mubr.bf16.vlgmr.msra.gmra.mxu1 %v1893_v52  ;;  %11975 = vmatpush3.bf16.msra.mxu0 %v4218_v34  ;;  %v4211_v52 = vunpack.c.l.s8.bf16 %v2595_v2  ;;  %v4227_v34 = vunpack.c.l.s8.bf16 %v2603_v18  ;;  %v2615_v2 = vld [vmem:[%s13677_s8 + $0x1320] sm:$0xff] }
 0x51d   : > { %11997 = vmatpush3.bf16.msra.mxu1 %v4234_v35  ;;  %v11683_v42 = vpop.f32.mrf.mxu0  ;;  %11976 = vmatprep.subr.bf16.mxu0 %v4225_v33  ;;  %v4258_v35 = vunpack.c.h.s8.bf16 %v2618_v24  ;;  %v4274_v33 = vunpack.c.h.s8.bf16 %v2626_v25  ;;  %v2623_v18 = vld [vmem:[%s13677_s8 + $0x1360] sm:$0xff] }
 0x51e   : > { %v11705_v43 = vpop.f32.mrf.mxu1  ;;  %11998 = vmatprep.subr.bf16.mxu1 %v4241_v30  ;;  %v11684_v62 = vadd.f32 %v11683_v42, %v11682_v3  ;;  %8068 = vmatprep.mubr.bf16.mxu0 %v1896_v55  ;;  %v2614_v30 = vld [vmem:[%s13677_s8 + $0x1318] sm:$0xff]  ;;  %v1065_v55 = vcombine.high %v14968_v7, %v14968_v7  ;;  %v1897_v3 = vpack.c.bf16 %v14934_v0, %v14934_v0  ;;  %v4273_v42 = vunpack.c.l.s8.bf16 %v2626_v25  ;;  %v2619_v25 = vld [vmem:[%s13677_s8 + $0x1340] sm:$0xff] }
 0x51f   : > { %v11706_v57 = vadd.f32 %v11705_v43, %v11704_v47  ;;  %8108 = vmatprep.mubr.bf16.mxu1 %v1898_v56  ;;  %v11685_v58 = vpop.f32.mrf.mxu0  ;;  %v1895_v56 = vpack.c.bf16 %v14931_v63, %v14931_v63  ;;  %v4250_v47 = vunpack.c.h.s8.bf16 %v2614_v30  ;;  %v2617_v43 = vld [vmem:[%s13677_s8 + $0x1330] sm:$0xff]  ;;  %v4249_v63 = vunpack.c.l.s8.bf16 %v2614_v30 }
 0x520   : > { %v11707_v59 = vpop.f32.mrf.mxu1  ;;  %v7511_v21 = vadd.f32 %v11684_v62, %v14917_v10  ;;  %11977 = vmatpush3.bf16.msra.mxu0 %v4217_v48  ;;  %v4231_v10 = vunpack.c.l.s8.bf16 %v2605_v8  ;;  %v4266_v48 = vunpack.c.h.s8.bf16 %v2622_v31  ;;  %v1902_v16 = vpack.c.bf16 %v1065_v55, %v1065_v55 }
 0x521   : > { %11999 = vmatpush3.bf16.msra.mxu1 %v4233_v49  ;;  %v11686_v46 = vpop.f32.mrf.mxu0  ;;  %11978 = vmatprep.subr.bf16.mxu0 %v4224_v44  ;;  %v4257_v49 = vunpack.c.l.s8.bf16 %v2618_v24  ;;  %v2625_v44 = vld [vmem:[%s13677_s8 + $0x1370] sm:$0xff]  ;;  %v4265_v0 = vunpack.c.l.s8.bf16 %v2622_v31  ;;  %v4256_v59 = vunpack.c.h.s8.bf16 %v2617_v43  ;;  %v2611_v24 = vld [vmem:[%s13677_s8 + $0x1300] sm:$0xff]  ;;  %v4267_v30 = vunpack.c.l.s8.bf16 %v2623_v18  ;;  %v2634_v31 = vld [vmem:[%s13677_s8 + $0x13b8] sm:$0xff] }
 0x522   : > { %v11708_v41 = vpop.f32.mrf.mxu1  ;;  %12000 = vmatprep.subr.bf16.mxu1 %v4240_v15  ;;  %v14951_v61 = vadd.f32 %v11706_v57, %v7511_v21  ;;  %v1900_v15 = vpack.c.bf16 %v1064_v32, %v1064_v32  ;;  %v4272_v21 = vunpack.c.h.s8.bf16 %v2625_v44  ;;  %v4271_v9 = vunpack.c.l.s8.bf16 %v2625_v44  ;;  %v2642_v32 = vld [vmem:[%s13677_s8 + $0x13f8] sm:$0xff] }
 0x523   : > { %v14999_v55 = vrot.slane %v314_v36, %v13706_v38 }
 0x524   : > { %11979 = vmatpush3.bf16.msra.mxu0 %v4216_v22  ;;  %v2613_v22 = vld [vmem:[%s13677_s8 + $0x1310] sm:$0xff] }
 0x525   : > { %12001 = vmatpush3.bf16.msra.mxu1 %v4232_v12  ;;  %11980 = vmatprep.subr.bf16.mxu0 %v4223_v5  ;;  %v2621_v12 = vld [vmem:[%s13677_s8 + $0x1350] sm:$0xff]  ;;  %v4248_v29 = vunpack.c.h.s8.bf16 %v2613_v22  ;;  %v1081_v44 = vcombine.high %v14999_v55, %v14999_v55 }
 0x526   : > { %12002 = vmatprep.subr.bf16.mxu1 %v4239_v45 }
 0x528   : > { %11981 = vmatpush3.bf16.msra.mxu0 %v4215_v17  ;;  %v4264_v17 = vunpack.c.h.s8.bf16 %v2621_v12 }
 0x529   : > { %12003 = vmatpush3.bf16.msra.mxu1 %v4231_v10  ;;  %11982 = vmatprep.subr.bf16.mxu0 %v4222_v50 }
 0x52a   : > { %12004 = vmatprep.subr.bf16.mxu1 %v4238_v51  ;;  %v4255_v51 = vunpack.c.l.s8.bf16 %v2617_v43  ;;  %v2638_v43 = vld [vmem:[%s13677_s8 + $0x13d8] sm:$0xff] }
 0x52c   : > { %11983 = vmatpush3.bf16.msra.mxu0 %v4214_v37  ;;  %v2616_v37 = vld [vmem:[%s13677_s8 + $0x1328] sm:$0xff] }
 0x52d   : > { %12005 = vmatpush3.bf16.msra.mxu1 %v4230_v39  ;;  %11984 = vmatprep.subr.bf16.mxu0 %v4221_v11  ;;  %v2624_v39 = vld [vmem:[%s13677_s8 + $0x1368] sm:$0xff]  ;;  %v4247_v11 = vunpack.c.l.s8.bf16 %v2613_v22 }
 0x52e   : > { %12006 = vmatprep.subr.bf16.mxu1 %v4237_v13  ;;  %v4254_v13 = vunpack.c.h.s8.bf16 %v2616_v37  ;;  %v4270_v14 = vunpack.c.h.s8.bf16 %v2624_v39 }
 0x530   : > { %11985 = vmatpush3.bf16.msra.mxu0 %v4213_v53  ;;  %v4246_v53 = vunpack.c.h.s8.bf16 %v2612_v60 }
 0x531   : > { %12007 = vmatpush3.bf16.msra.mxu1 %v4229_v54  ;;  %11986 = vmatprep.subr.bf16.mxu0 %v4220_v19  ;;  %v4262_v54 = vunpack.c.h.s8.bf16 %v2620_v27  ;;  %v4253_v19 = vunpack.c.l.s8.bf16 %v2616_v37 }
 0x532   : > { %12008 = vmatprep.subr.bf16.mxu1 %v4236_v1  ;;  %v4269_v1 = vunpack.c.l.s8.bf16 %v2624_v39 }
 0x534   : > { %11987 = vmatpush3.bf16.msra.mxu0 %v4212_v4  ;;  %v4245_v4 = vunpack.c.l.s8.bf16 %v2612_v60 }
 0x535   : > { %12009 = vmatpush3.bf16.msra.mxu1 %v4228_v40  ;;  %11988 = vmatprep.subr.bf16.mxu0 %v4219_v26  ;;  %v4261_v40 = vunpack.c.l.s8.bf16 %v2620_v27  ;;  %v4252_v26 = vunpack.c.h.s8.bf16 %v2615_v2 }
 0x536   : > { %12010 = vmatprep.subr.bf16.mxu1 %v4235_v23  ;;  %v4268_v23 = vunpack.c.h.s8.bf16 %v2623_v18  ;;  %v2628_v18 = vld [vmem:[%s13677_s8 + $0x1388] sm:$0xff] }
 0x538   : > { %11989 = vmatpush3.bf16.msra.mxu0 %v4211_v52  ;;  %v1066_v52 = vcombine.high %v314_v36, %v314_v36  ;;  %v2636_v36 = vld [vmem:[%s13677_s8 + $0x13c8] sm:$0xff] }
 0x539   : > { %12011 = vmatpush3.bf16.msra.mxu1 %v4227_v34  ;;  %12018 = vmatprep.subr.bf16.mxu0 %v4258_v35  ;;  %v4244_v34 = vunpack.c.h.s8.bf16 %v2611_v24  ;;  %v4260_v35 = vunpack.c.h.s8.bf16 %v2619_v25 }
 0x53a   : > { %12040 = vmatprep.subr.bf16.mxu1 %v4274_v33  ;;  %v4251_v33 = vunpack.c.l.s8.bf16 %v2615_v2 }
 0x53b   : > { %v11726_v8 = vpop.f32.mrf.mxu0  ;;  %8069 = vmatmul.mubr.bf16.vlgmr.msra.gmra.mxu0 %v1895_v56  ;;  %v15002_v56 = vrot.slane %v1066_v52, %v13706_v38  ;;  %v315_v52 = vld [vmem:[%s13670_s10 + $0x140] sm:$0xff] }
 0x53c   : > { %v11748_v62 = vpop.f32.mrf.mxu1  ;;  %8109 = vmatmul.mubr.bf16.vlgmr.msra.gmra.mxu1 %v1897_v3  ;;  %12019 = vmatpush3.bf16.msra.mxu0 %v4250_v47  ;;  %v4243_v3 = vunpack.c.l.s8.bf16 %v2611_v24  ;;  %v4259_v47 = vunpack.c.l.s8.bf16 %v2619_v25  ;;  %v2631_v24 = vld [vmem:[%s13677_s8 + $0x13a0] sm:$0xff] }
 0x53d   : > { %12041 = vmatpush3.bf16.msra.mxu1 %v4266_v48  ;;  %v11727_v57 = vpop.f32.mrf.mxu0  ;;  %12020 = vmatprep.subr.bf16.mxu0 %v4257_v49  ;;  %v4290_v48 = vunpack.c.h.s8.bf16 %v2634_v31  ;;  %v4306_v49 = vunpack.c.h.s8.bf16 %v2642_v32  ;;  %v2639_v25 = vld [vmem:[%s13677_s8 + $0x13e0] sm:$0xff] }
 0x53e   : > { %v11749_v58 = vpop.f32.mrf.mxu1  ;;  %12042 = vmatprep.subr.bf16.mxu1 %v4273_v42  ;;  %v11728_v46 = vadd.f32 %v11727_v57, %v11726_v8  ;;  %8148 = vmatprep.mubr.bf16.mxu0 %v1900_v15  ;;  %v2630_v42 = vld [vmem:[%s13677_s8 + $0x1398] sm:$0xff]  ;;  %v1082_v15 = vcombine.high %v15002_v56, %v15002_v56  ;;  %v1901_v8 = vpack.c.bf16 %v14968_v7, %v14968_v7  ;;  %v4305_v57 = vunpack.c.l.s8.bf16 %v2642_v32  ;;  %v2635_v32 = vld [vmem:[%s13677_s8 + $0x13c0] sm:$0xff] }
 0x53f   : > { %v11750_v41 = vadd.f32 %v11749_v58, %v11748_v62  ;;  %8188 = vmatprep.mubr.bf16.mxu1 %v1902_v16  ;;  %v11729_v5 = vpop.f32.mrf.mxu0  ;;  %v1899_v16 = vpack.c.bf16 %v14965_v6, %v14965_v6  ;;  %v4282_v62 = vunpack.c.h.s8.bf16 %v2630_v42  ;;  %v2633_v58 = vld [vmem:[%s13677_s8 + $0x13b0] sm:$0xff]  ;;  %v4281_v6 = vunpack.c.l.s8.bf16 %v2630_v42 }
 0x540   : > { %v11751_v45 = vpop.f32.mrf.mxu1  ;;  %v7591_v28 = vadd.f32 %v11728_v46, %v14951_v61  ;;  %12021 = vmatpush3.bf16.msra.mxu0 %v4249_v63  ;;  %v4263_v61 = vunpack.c.l.s8.bf16 %v2621_v12  ;;  %v4298_v63 = vunpack.c.h.s8.bf16 %v2638_v43  ;;  %v1906_v22 = vpack.c.bf16 %v1082_v15, %v1082_v15 }
 0x541   : > { %12043 = vmatpush3.bf16.msra.mxu1 %v4265_v0  ;;  %v11730_v10 = vpop.f32.mrf.mxu0  ;;  %12022 = vmatprep.subr.bf16.mxu0 %v4256_v59  ;;  %v4289_v0 = vunpack.c.l.s8.bf16 %v2634_v31  ;;  %v2641_v59 = vld [vmem:[%s13677_s8 + $0x13f0] sm:$0xff]  ;;  %v4297_v7 = vunpack.c.l.s8.bf16 %v2638_v43  ;;  %v4288_v45 = vunpack.c.h.s8.bf16 %v2633_v58  ;;  %v2627_v31 = vld [vmem:[%s13677_s8 + $0x1380] sm:$0xff]  ;;  %v4299_v42 = vunpack.c.l.s8.bf16 %v2639_v25  ;;  %v2650_v43 = vld [vmem:[%s13677_s8 + $0x1438] sm:$0xff] }
 0x542   : > { %v11752_v50 = vpop.f32.mrf.mxu1  ;;  %12044 = vmatprep.subr.bf16.mxu1 %v4272_v21  ;;  %v14985_v20 = vadd.f32 %v11750_v41, %v7591_v28  ;;  %v1904_v21 = vpack.c.bf16 %v1081_v44, %v1081_v44  ;;  %v4304_v28 = vunpack.c.h.s8.bf16 %v2641_v59  ;;  %v4303_v60 = vunpack.c.l.s8.bf16 %v2641_v59  ;;  %v2658_v44 = vld [vmem:[%s13677_s8 + $0x1478] sm:$0xff] }
 0x543   : > { %v15033_v15 = vrot.slane %v315_v52, %v13706_v38 }
 0x544   : > { %12023 = vmatpush3.bf16.msra.mxu0 %v4248_v29  ;;  %v2629_v29 = vld [vmem:[%s13677_s8 + $0x1390] sm:$0xff] }
 0x545   : > { %12045 = vmatpush3.bf16.msra.mxu1 %v4264_v17  ;;  %12024 = vmatprep.subr.bf16.mxu0 %v4255_v51  ;;  %v2637_v17 = vld [vmem:[%s13677_s8 + $0x13d0] sm:$0xff]  ;;  %v4280_v39 = vunpack.c.h.s8.bf16 %v2629_v29  ;;  %v1098_v59 = vcombine.high %v15033_v15, %v15033_v15 }
 0x546   : > { %12046 = vmatprep.subr.bf16.mxu1 %v4271_v9 }
 0x548   : > { %12025 = vmatpush3.bf16.msra.mxu0 %v4247_v11  ;;  %v4296_v11 = vunpack.c.h.s8.bf16 %v2637_v17 }
 0x549   : > { %12047 = vmatpush3.bf16.msra.mxu1 %v4263_v61  ;;  %12026 = vmatprep.subr.bf16.mxu0 %v4254_v13 }
 0x54a   : > { %12048 = vmatprep.subr.bf16.mxu1 %v4270_v14  ;;  %v4287_v14 = vunpack.c.l.s8.bf16 %v2633_v58  ;;  %v2654_v58 = vld [vmem:[%s13677_s8 + $0x1458] sm:$0xff] }
 0x54c   : > { %12027 = vmatpush3.bf16.msra.mxu0 %v4246_v53  ;;  %v2632_v53 = vld [vmem:[%s13677_s8 + $0x13a8] sm:$0xff] }
 0x54d   : > { %12049 = vmatpush3.bf16.msra.mxu1 %v4262_v54  ;;  %12028 = vmatprep.subr.bf16.mxu0 %v4253_v19  ;;  %v2640_v54 = vld [vmem:[%s13677_s8 + $0x13e8] sm:$0xff]  ;;  %v4279_v19 = vunpack.c.l.s8.bf16 %v2629_v29 }
 0x54e   : > { %12050 = vmatprep.subr.bf16.mxu1 %v4269_v1  ;;  %v4286_v1 = vunpack.c.h.s8.bf16 %v2632_v53  ;;  %v4302_v2 = vunpack.c.h.s8.bf16 %v2640_v54 }
 0x550   : > { %12029 = vmatpush3.bf16.msra.mxu0 %v4245_v4  ;;  %v4278_v4 = vunpack.c.h.s8.bf16 %v2628_v18 }
 0x551   : > { %12051 = vmatpush3.bf16.msra.mxu1 %v4261_v40  ;;  %12030 = vmatprep.subr.bf16.mxu0 %v4252_v26  ;;  %v4294_v40 = vunpack.c.h.s8.bf16 %v2636_v36  ;;  %v4285_v26 = vunpack.c.l.s8.bf16 %v2632_v53 }
 0x552   : > { %12052 = vmatprep.subr.bf16.mxu1 %v4268_v23  ;;  %v4301_v23 = vunpack.c.l.s8.bf16 %v2640_v54 }
 0x554   : > { %12031 = vmatpush3.bf16.msra.mxu0 %v4244_v34  ;;  %v4277_v34 = vunpack.c.l.s8.bf16 %v2628_v18 }
 0x555   : > { %12053 = vmatpush3.bf16.msra.mxu1 %v4260_v35  ;;  %12032 = vmatprep.subr.bf16.mxu0 %v4251_v33  ;;  %v4293_v35 = vunpack.c.l.s8.bf16 %v2636_v36  ;;  %v4284_v33 = vunpack.c.h.s8.bf16 %v2631_v24 }
 0x556   : > { %12054 = vmatprep.subr.bf16.mxu1 %v4267_v30  ;;  %v4300_v30 = vunpack.c.h.s8.bf16 %v2639_v25  ;;  %v2644_v25 = vld [vmem:[%s13677_s8 + $0x1408] sm:$0xff] }
 0x558   : > { %12033 = vmatpush3.bf16.msra.mxu0 %v4243_v3  ;;  %v1083_v3 = vcombine.high %v315_v52, %v315_v52  ;;  %v2652_v52 = vld [vmem:[%s13677_s8 + $0x1448] sm:$0xff] }
 0x559   : > { %12055 = vmatpush3.bf16.msra.mxu1 %v4259_v47  ;;  %12062 = vmatprep.subr.bf16.mxu0 %v4290_v48  ;;  %v4276_v47 = vunpack.c.h.s8.bf16 %v2627_v31  ;;  %v4292_v48 = vunpack.c.h.s8.bf16 %v2635_v32 }
 0x55a   : > { %12084 = vmatprep.subr.bf16.mxu1 %v4306_v49  ;;  %v4283_v49 = vunpack.c.l.s8.bf16 %v2631_v24 }
 0x55b   : > { %v11770_v12 = vpop.f32.mrf.mxu0  ;;  %8149 = vmatmul.mubr.bf16.vlgmr.msra.gmra.mxu0 %v1899_v16  ;;  %v15036_v16 = vrot.slane %v1083_v3, %v13706_v38  ;;  %v316_v3 = vld [vmem:[%s13670_s10 + $0x148] sm:$0xff] }
 0x55c   : > { %v11792_v46 = vpop.f32.mrf.mxu1  ;;  %8189 = vmatmul.mubr.bf16.vlgmr.msra.gmra.mxu1 %v1901_v8  ;;  %12063 = vmatpush3.bf16.msra.mxu0 %v4282_v62  ;;  %v4275_v8 = vunpack.c.l.s8.bf16 %v2627_v31  ;;  %v4291_v62 = vunpack.c.l.s8.bf16 %v2635_v32  ;;  %v2647_v31 = vld [vmem:[%s13677_s8 + $0x1420] sm:$0xff] }
 0x55d   : > { %12085 = vmatpush3.bf16.msra.mxu1 %v4298_v63  ;;  %v11771_v41 = vpop.f32.mrf.mxu0  ;;  %12064 = vmatprep.subr.bf16.mxu0 %v4289_v0  ;;  %v4322_v63 = vunpack.c.h.s8.bf16 %v2650_v43  ;;  %v4338_v0 = vunpack.c.h.s8.bf16 %v2658_v44  ;;  %v2655_v32 = vld [vmem:[%s13677_s8 + $0x1460] sm:$0xff] }
 0x55e   : > { %v11793_v5 = vpop.f32.mrf.mxu1  ;;  %12086 = vmatprep.subr.bf16.mxu1 %v4305_v57  ;;  %v11772_v10 = vadd.f32 %v11771_v41, %v11770_v12  ;;  %8228 = vmatprep.mubr.bf16.mxu0 %v1904_v21  ;;  %v2646_v57 = vld [vmem:[%s13677_s8 + $0x1418] sm:$0xff]  ;;  %v1099_v21 = vcombine.high %v15036_v16, %v15036_v16  ;;  %v1905_v12 = vpack.c.bf16 %v15002_v56, %v15002_v56  ;;  %v4337_v41 = vunpack.c.l.s8.bf16 %v2658_v44  ;;  %v2651_v44 = vld [vmem:[%s13677_s8 + $0x1440] sm:$0xff] }
 0x55f   : > { %v11794_v50 = vadd.f32 %v11793_v5, %v11792_v46  ;;  %8268 = vmatprep.mubr.bf16.mxu1 %v1906_v22  ;;  %v11773_v51 = vpop.f32.mrf.mxu0  ;;  %v1903_v22 = vpack.c.bf16 %v14999_v55, %v14999_v55  ;;  %v4314_v46 = vunpack.c.h.s8.bf16 %v2646_v57  ;;  %v2649_v5 = vld [vmem:[%s13677_s8 + $0x1430] sm:$0xff]  ;;  %v4313_v55 = vunpack.c.l.s8.bf16 %v2646_v57 }
 0x560   : > { %v11795_v9 = vpop.f32.mrf.mxu1  ;;  %v7671_v37 = vadd.f32 %v11772_v10, %v14985_v20  ;;  %12065 = vmatpush3.bf16.msra.mxu0 %v4281_v6  ;;  %v4295_v20 = vunpack.c.l.s8.bf16 %v2637_v17  ;;  %v4330_v6 = vunpack.c.h.s8.bf16 %v2654_v58  ;;  %v1910_v29 = vpack.c.bf16 %v1099_v21, %v1099_v21 }
 0x561   : > { %12087 = vmatpush3.bf16.msra.mxu1 %v4297_v7  ;;  %v11774_v61 = vpop.f32.mrf.mxu0  ;;  %12066 = vmatprep.subr.bf16.mxu0 %v4288_v45  ;;  %v4321_v7 = vunpack.c.l.s8.bf16 %v2650_v43  ;;  %v2657_v45 = vld [vmem:[%s13677_s8 + $0x1470] sm:$0xff]  ;;  %v4329_v56 = vunpack.c.l.s8.bf16 %v2654_v58  ;;  %v4320_v9 = vunpack.c.h.s8.bf16 %v2649_v5  ;;  %v2643_v43 = vld [vmem:[%s13677_s8 + $0x1400] sm:$0xff]  ;;  %v4331_v57 = vunpack.c.l.s8.bf16 %v2655_v32  ;;  %v2666_v58 = vld [vmem:[%s13677_s8 + $0x14b8] sm:$0xff] }
 0x562   : > { %v11796_v13 = vpop.f32.mrf.mxu1  ;;  %12088 = vmatprep.subr.bf16.mxu1 %v4304_v28  ;;  %v15019_v27 = vadd.f32 %v11794_v50, %v7671_v37  ;;  %v1908_v28 = vpack.c.bf16 %v1098_v59, %v1098_v59  ;;  %v4336_v37 = vunpack.c.h.s8.bf16 %v2657_v45  ;;  %v4335_v18 = vunpack.c.l.s8.bf16 %v2657_v45  ;;  %v2674_v59 = vld [vmem:[%s13677_s8 + $0x14f8] sm:$0xff] }
 0x563   : > { %v15067_v21 = vrot.slane %v316_v3, %v13706_v38 }
 0x564   : > { %12067 = vmatpush3.bf16.msra.mxu0 %v4280_v39  ;;  %v2645_v39 = vld [vmem:[%s13677_s8 + $0x1410] sm:$0xff] }
 0x565   : > { %12089 = vmatpush3.bf16.msra.mxu1 %v4296_v11  ;;  %12068 = vmatprep.subr.bf16.mxu0 %v4287_v14  ;;  %v2653_v11 = vld [vmem:[%s13677_s8 + $0x1450] sm:$0xff]  ;;  %v4312_v54 = vunpack.c.h.s8.bf16 %v2645_v39  ;;  %v1115_v45 = vcombine.high %v15067_v21, %v15067_v21 }
 0x566   : > { %12090 = vmatprep.subr.bf16.mxu1 %v4303_v60 }
 0x568   : > { %12069 = vmatpush3.bf16.msra.mxu0 %v4279_v19  ;;  %v4328_v19 = vunpack.c.h.s8.bf16 %v2653_v11 }
 0x569   : > { %12091 = vmatpush3.bf16.msra.mxu1 %v4295_v20  ;;  %12070 = vmatprep.subr.bf16.mxu0 %v4286_v1 }
 0x56a   : > { %12092 = vmatprep.subr.bf16.mxu1 %v4302_v2  ;;  %v4319_v2 = vunpack.c.l.s8.bf16 %v2649_v5  ;;  %v2670_v5 = vld [vmem:[%s13677_s8 + $0x14d8] sm:$0xff] }
 0x56c   : > { %12071 = vmatpush3.bf16.msra.mxu0 %v4278_v4  ;;  %v2648_v4 = vld [vmem:[%s13677_s8 + $0x1428] sm:$0xff] }
 0x56d   : > { %12093 = vmatpush3.bf16.msra.mxu1 %v4294_v40  ;;  %12072 = vmatprep.subr.bf16.mxu0 %v4285_v26  ;;  %v2656_v40 = vld [vmem:[%s13677_s8 + $0x1468] sm:$0xff]  ;;  %v4311_v26 = vunpack.c.l.s8.bf16 %v2645_v39 }
 0x56e   : > { %12094 = vmatprep.subr.bf16.mxu1 %v4301_v23  ;;  %v4318_v23 = vunpack.c.h.s8.bf16 %v2648_v4  ;;  %v4334_v24 = vunpack.c.h.s8.bf16 %v2656_v40 }
 0x570   : > { %12073 = vmatpush3.bf16.msra.mxu0 %v4277_v34  ;;  %v4310_v34 = vunpack.c.h.s8.bf16 %v2644_v25 }
 0x571   : > { %12095 = vmatpush3.bf16.msra.mxu1 %v4293_v35  ;;  %12074 = vmatprep.subr.bf16.mxu0 %v4284_v33  ;;  %v4326_v35 = vunpack.c.h.s8.bf16 %v2652_v52  ;;  %v4317_v33 = vunpack.c.l.s8.bf16 %v2648_v4 }
 0x572   : > { %12096 = vmatprep.subr.bf16.mxu1 %v4300_v30  ;;  %v4333_v30 = vunpack.c.l.s8.bf16 %v2656_v40 }
 0x574   : > { %12075 = vmatpush3.bf16.msra.mxu0 %v4276_v47  ;;  %v4309_v47 = vunpack.c.l.s8.bf16 %v2644_v25 }
 0x575   : > { %12097 = vmatpush3.bf16.msra.mxu1 %v4292_v48  ;;  %12076 = vmatprep.subr.bf16.mxu0 %v4283_v49  ;;  %v4325_v48 = vunpack.c.l.s8.bf16 %v2652_v52  ;;  %v4316_v49 = vunpack.c.h.s8.bf16 %v2647_v31 }
 0x576   : > { %12098 = vmatprep.subr.bf16.mxu1 %v4299_v42  ;;  %v4332_v42 = vunpack.c.h.s8.bf16 %v2655_v32  ;;  %v2660_v32 = vld [vmem:[%s13677_s8 + $0x1488] sm:$0xff] }
 0x578   : > { %12077 = vmatpush3.bf16.msra.mxu0 %v4275_v8  ;;  %v1100_v8 = vcombine.high %v316_v3, %v316_v3  ;;  %v2668_v3 = vld [vmem:[%s13677_s8 + $0x14c8] sm:$0xff] }
 0x579   : > { %12099 = vmatpush3.bf16.msra.mxu1 %v4291_v62  ;;  %12106 = vmatprep.subr.bf16.mxu0 %v4322_v63  ;;  %v4308_v62 = vunpack.c.h.s8.bf16 %v2643_v43  ;;  %v4324_v63 = vunpack.c.h.s8.bf16 %v2651_v44 }
 0x57a   : > { %12128 = vmatprep.subr.bf16.mxu1 %v4338_v0  ;;  %v4315_v0 = vunpack.c.l.s8.bf16 %v2647_v31 }
 0x57b   : > { %v11814_v17 = vpop.f32.mrf.mxu0  ;;  %8229 = vmatmul.mubr.bf16.vlgmr.msra.gmra.mxu0 %v1903_v22  ;;  %v15070_v22 = vrot.slane %v1100_v8, %v13706_v38  ;;  %v317_v8 = vld [vmem:[%s13670_s10 + $0x150] sm:$0xff] }
 0x57c   : > { %v11836_v10 = vpop.f32.mrf.mxu1  ;;  %8269 = vmatmul.mubr.bf16.vlgmr.msra.gmra.mxu1 %v1905_v12  ;;  %12107 = vmatpush3.bf16.msra.mxu0 %v4314_v46  ;;  %v4307_v12 = vunpack.c.l.s8.bf16 %v2643_v43  ;;  %v4323_v46 = vunpack.c.l.s8.bf16 %v2651_v44  ;;  %v2663_v43 = vld [vmem:[%s13677_s8 + $0x14a0] sm:$0xff] }
 0x57d   : > { %12129 = vmatpush3.bf16.msra.mxu1 %v4330_v6  ;;  %v11815_v50 = vpop.f32.mrf.mxu0  ;;  %12108 = vmatprep.subr.bf16.mxu0 %v4321_v7  ;;  %v4354_v6 = vunpack.c.h.s8.bf16 %v2666_v58  ;;  %v4370_v7 = vunpack.c.h.s8.bf16 %v2674_v59  ;;  %v2671_v44 = vld [vmem:[%s13677_s8 + $0x14e0] sm:$0xff] }
 0x57e   : > { %v11837_v51 = vpop.f32.mrf.mxu1  ;;  %12130 = vmatprep.subr.bf16.mxu1 %v4337_v41  ;;  %v11816_v61 = vadd.f32 %v11815_v50, %v11814_v17  ;;  %8308 = vmatprep.mubr.bf16.mxu0 %v1908_v28  ;;  %v2662_v41 = vld [vmem:[%s13677_s8 + $0x1498] sm:$0xff]  ;;  %v1116_v28 = vcombine.high %v15070_v22, %v15070_v22  ;;  %v1909_v17 = vpack.c.bf16 %v15036_v16, %v15036_v16  ;;  %v4369_v50 = vunpack.c.l.s8.bf16 %v2674_v59  ;;  %v2667_v59 = vld [vmem:[%s13677_s8 + $0x14c0] sm:$0xff] }
 0x57f   : > { %v11838_v13 = vadd.f32 %v11837_v51, %v11836_v10  ;;  %8348 = vmatprep.mubr.bf16.mxu1 %v1910_v29  ;;  %v11817_v14 = vpop.f32.mrf.mxu0  ;;  %v1907_v29 = vpack.c.bf16 %v15033_v15, %v15033_v15  ;;  %v4346_v10 = vunpack.c.h.s8.bf16 %v2662_v41  ;;  %v2665_v51 = vld [vmem:[%s13677_s8 + $0x14b0] sm:$0xff]  ;;  %v4345_v15 = vunpack.c.l.s8.bf16 %v2662_v41 }
 0x580   : > { %v11839_v60 = vpop.f32.mrf.mxu1  ;;  %v7751_v53 = vadd.f32 %v11816_v61, %v15019_v27  ;;  %12109 = vmatpush3.bf16.msra.mxu0 %v4313_v55  ;;  %v4327_v27 = vunpack.c.l.s8.bf16 %v2653_v11  ;;  %v4362_v55 = vunpack.c.h.s8.bf16 %v2670_v5  ;;  %v1914_v39 = vpack.c.bf16 %v1116_v28, %v1116_v28 }
 0x581   : > { %12131 = vmatpush3.bf16.msra.mxu1 %v4329_v56  ;;  %v11818_v20 = vpop.f32.mrf.mxu0  ;;  %12110 = vmatprep.subr.bf16.mxu0 %v4320_v9  ;;  %v4353_v56 = vunpack.c.l.s8.bf16 %v2666_v58  ;;  %v2673_v9 = vld [vmem:[%s13677_s8 + $0x14f0] sm:$0xff]  ;;  %v4361_v16 = vunpack.c.l.s8.bf16 %v2670_v5  ;;  %v4352_v60 = vunpack.c.h.s8.bf16 %v2665_v51  ;;  %v2659_v58 = vld [vmem:[%s13677_s8 + $0x1480] sm:$0xff]  ;;  %v4363_v41 = vunpack.c.l.s8.bf16 %v2671_v44  ;;  %v2682_v5 = vld [vmem:[%s13677_s8 + $0x1538] sm:$0xff] }
 0x582   : > { %v11840_v1 = vpop.f32.mrf.mxu1  ;;  %12132 = vmatprep.subr.bf16.mxu1 %v4336_v37  ;;  %v15053_v36 = vadd.f32 %v11838_v13, %v7751_v53  ;;  %v1912_v37 = vpack.c.bf16 %v1115_v45, %v1115_v45  ;;  %v4368_v53 = vunpack.c.h.s8.bf16 %v2673_v9  ;;  %v4367_v25 = vunpack.c.l.s8.bf16 %v2673_v9  ;;  %v2690_v45 = vld [vmem:[%s13677_s8 + $0x1578] sm:$0xff] }
 0x583   : > { %v15101_v28 = vrot.slane %v317_v8, %v13706_v38 }
 0x584   : > { %12111 = vmatpush3.bf16.msra.mxu0 %v4312_v54  ;;  %v2661_v54 = vld [vmem:[%s13677_s8 + $0x1490] sm:$0xff] }
 0x585   : > { %12133 = vmatpush3.bf16.msra.mxu1 %v4328_v19  ;;  %12112 = vmatprep.subr.bf16.mxu0 %v4319_v2  ;;  %v2669_v19 = vld [vmem:[%s13677_s8 + $0x14d0] sm:$0xff]  ;;  %v4344_v40 = vunpack.c.h.s8.bf16 %v2661_v54  ;;  %v1132_v9 = vcombine.high %v15101_v28, %v15101_v28 }
 0x586   : > { %12134 = vmatprep.subr.bf16.mxu1 %v4335_v18 }
 0x588   : > { %12113 = vmatpush3.bf16.msra.mxu0 %v4311_v26  ;;  %v4360_v26 = vunpack.c.h.s8.bf16 %v2669_v19 }
 0x589   : > { %12135 = vmatpush3.bf16.msra.mxu1 %v4327_v27  ;;  %12114 = vmatprep.subr.bf16.mxu0 %v4318_v23 }
 0x58a   : > { %12136 = vmatprep.subr.bf16.mxu1 %v4334_v24  ;;  %v4351_v24 = vunpack.c.l.s8.bf16 %v2665_v51  ;;  %v2686_v51 = vld [vmem:[%s13677_s8 + $0x1558] sm:$0xff] }
 0x58c   : > { %12115 = vmatpush3.bf16.msra.mxu0 %v4310_v34  ;;  %v2664_v34 = vld [vmem:[%s13677_s8 + $0x14a8] sm:$0xff] }
 0x58d   : > { %12137 = vmatpush3.bf16.msra.mxu1 %v4326_v35  ;;  %12116 = vmatprep.subr.bf16.mxu0 %v4317_v33  ;;  %v2672_v35 = vld [vmem:[%s13677_s8 + $0x14e8] sm:$0xff]  ;;  %v4343_v33 = vunpack.c.l.s8.bf16 %v2661_v54 }
 0x58e   : > { %12138 = vmatprep.subr.bf16.mxu1 %v4333_v30  ;;  %v4350_v30 = vunpack.c.h.s8.bf16 %v2664_v34  ;;  %v4366_v31 = vunpack.c.h.s8.bf16 %v2672_v35 }
 0x590   : > { %12117 = vmatpush3.bf16.msra.mxu0 %v4309_v47  ;;  %v4342_v47 = vunpack.c.h.s8.bf16 %v2660_v32 }
 0x591   : > { %12139 = vmatpush3.bf16.msra.mxu1 %v4325_v48  ;;  %12118 = vmatprep.subr.bf16.mxu0 %v4316_v49  ;;  %v4358_v48 = vunpack.c.h.s8.bf16 %v2668_v3  ;;  %v4349_v49 = vunpack.c.l.s8.bf16 %v2664_v34 }
 0x592   : > { %12140 = vmatprep.subr.bf16.mxu1 %v4332_v42  ;;  %v4365_v42 = vunpack.c.l.s8.bf16 %v2672_v35 }
 0x594   : > { %12119 = vmatpush3.bf16.msra.mxu0 %v4308_v62  ;;  %v4341_v62 = vunpack.c.l.s8.bf16 %v2660_v32 }
 0x595   : > { %12141 = vmatpush3.bf16.msra.mxu1 %v4324_v63  ;;  %12120 = vmatprep.subr.bf16.mxu0 %v4315_v0  ;;  %v4357_v63 = vunpack.c.l.s8.bf16 %v2668_v3  ;;  %v4348_v0 = vunpack.c.h.s8.bf16 %v2663_v43 }
 0x596   : > { %12142 = vmatprep.subr.bf16.mxu1 %v4331_v57  ;;  %v4364_v57 = vunpack.c.h.s8.bf16 %v2671_v44  ;;  %v2676_v44 = vld [vmem:[%s13677_s8 + $0x1508] sm:$0xff] }
 0x598   : > { %12121 = vmatpush3.bf16.msra.mxu0 %v4307_v12  ;;  %v1117_v12 = vcombine.high %v317_v8, %v317_v8  ;;  %v2684_v8 = vld [vmem:[%s13677_s8 + $0x1548] sm:$0xff] }
 0x599   : > { %12143 = vmatpush3.bf16.msra.mxu1 %v4323_v46  ;;  %12150 = vmatprep.subr.bf16.mxu0 %v4354_v6  ;;  %v4340_v46 = vunpack.c.h.s8.bf16 %v2659_v58  ;;  %v4356_v6 = vunpack.c.h.s8.bf16 %v2667_v59 }
 0x59a   : > { %12172 = vmatprep.subr.bf16.mxu1 %v4370_v7  ;;  %v4347_v7 = vunpack.c.l.s8.bf16 %v2663_v43 }
 0x59b   : > { %v11858_v11 = vpop.f32.mrf.mxu0  ;;  %8309 = vmatmul.mubr.bf16.vlgmr.msra.gmra.mxu0 %v1907_v29  ;;  %v15104_v29 = vrot.slane %v1117_v12, %v13706_v38  ;;  %v318_v12 = vld [vmem:[%s13670_s10 + $0x158] sm:$0xff] }
 0x59c   : > { %v11880_v61 = vpop.f32.mrf.mxu1  ;;  %8349 = vmatmul.mubr.bf16.vlgmr.msra.gmra.mxu1 %v1909_v17  ;;  %12151 = vmatpush3.bf16.msra.mxu0 %v4346_v10  ;;  %v4339_v17 = vunpack.c.l.s8.bf16 %v2659_v58  ;;  %v4355_v10 = vunpack.c.l.s8.bf16 %v2667_v59  ;;  %v2679_v58 = vld [vmem:[%s13677_s8 + $0x1520] sm:$0xff] }
 0x59d   : > { %12173 = vmatpush3.bf16.msra.mxu1 %v4362_v55  ;;  %v11859_v13 = vpop.f32.mrf.mxu0  ;;  %12152 = vmatprep.subr.bf16.mxu0 %v4353_v56  ;;  %v4386_v55 = vunpack.c.h.s8.bf16 %v2682_v5  ;;  %v4402_v56 = vunpack.c.h.s8.bf16 %v2690_v45  ;;  %v2687_v59 = vld [vmem:[%s13677_s8 + $0x1560] sm:$0xff] }
 0x59e   : > { %v11881_v14 = vpop.f32.mrf.mxu1  ;;  %12174 = vmatprep.subr.bf16.mxu1 %v4369_v50  ;;  %v11860_v20 = vadd.f32 %v11859_v13, %v11858_v11  ;;  %8388 = vmatprep.mubr.bf16.mxu0 %v1912_v37  ;;  %v2678_v50 = vld [vmem:[%s13677_s8 + $0x1518] sm:$0xff]  ;;  %v1133_v37 = vcombine.high %v15104_v29, %v15104_v29  ;;  %v1913_v11 = vpack.c.bf16 %v15070_v22, %v15070_v22  ;;  %v4401_v13 = vunpack.c.l.s8.bf16 %v2690_v45  ;;  %v2683_v45 = vld [vmem:[%s13677_s8 + $0x1540] sm:$0xff] }
 0x59f   : > { %v11882_v1 = vadd.f32 %v11881_v14, %v11880_v61  ;;  %8428 = vmatprep.mubr.bf16.mxu1 %v1914_v39  ;;  %v11861_v2 = vpop.f32.mrf.mxu0  ;;  %v1911_v39 = vpack.c.bf16 %v15067_v21, %v15067_v21  ;;  %v4378_v61 = vunpack.c.h.s8.bf16 %v2678_v50  ;;  %v2681_v14 = vld [vmem:[%s13677_s8 + $0x1530] sm:$0xff]  ;;  %v4377_v21 = vunpack.c.l.s8.bf16 %v2678_v50 }
 0x5a0   : > { %v11883_v18 = vpop.f32.mrf.mxu1  ;;  %v7831_v4 = vadd.f32 %v11860_v20, %v15053_v36  ;;  %12153 = vmatpush3.bf16.msra.mxu0 %v4345_v15  ;;  %v4359_v36 = vunpack.c.l.s8.bf16 %v2669_v19  ;;  %v4394_v15 = vunpack.c.h.s8.bf16 %v2686_v51  ;;  %v1918_v54 = vpack.c.bf16 %v1133_v37, %v1133_v37 }
 0x5a1   : > { %12175 = vmatpush3.bf16.msra.mxu1 %v4361_v16  ;;  %v11862_v27 = vpop.f32.mrf.mxu0  ;;  %12154 = vmatprep.subr.bf16.mxu0 %v4352_v60  ;;  %v4385_v16 = vunpack.c.l.s8.bf16 %v2682_v5  ;;  %v2689_v60 = vld [vmem:[%s13677_s8 + $0x1570] sm:$0xff]  ;;  %v4393_v22 = vunpack.c.l.s8.bf16 %v2686_v51  ;;  %v4384_v18 = vunpack.c.h.s8.bf16 %v2681_v14  ;;  %v2675_v5 = vld [vmem:[%s13677_s8 + $0x1500] sm:$0xff]  ;;  %v4395_v50 = vunpack.c.l.s8.bf16 %v2687_v59  ;;  %v2698_v51 = vld [vmem:[%s13677_s8 + $0x15b8] sm:$0xff] }
 0x5a2   : > { %v11884_v23 = vpop.f32.mrf.mxu1  ;;  %12176 = vmatprep.subr.bf16.mxu1 %v4368_v53  ;;  %v15087_v52 = vadd.f32 %v11882_v1, %v7831_v4  ;;  %v1916_v53 = vpack.c.bf16 %v1132_v9, %v1132_v9  ;;  %v4400_v4 = vunpack.c.h.s8.bf16 %v2689_v60  ;;  %v4399_v32 = vunpack.c.l.s8.bf16 %v2689_v60  ;;  %v2706_v9 = vld [vmem:[%s13677_s8 + $0x15f8] sm:$0xff] }
 0x5a3   : > { %v15135_v37 = vrot.slane %v318_v12, %v13706_v38 }
 0x5a4   : > { %12155 = vmatpush3.bf16.msra.mxu0 %v4344_v40  ;;  %v2677_v40 = vld [vmem:[%s13677_s8 + $0x1510] sm:$0xff] }
 0x5a5   : > { %12177 = vmatpush3.bf16.msra.mxu1 %v4360_v26  ;;  %12156 = vmatprep.subr.bf16.mxu0 %v4351_v24  ;;  %v2685_v26 = vld [vmem:[%s13677_s8 + $0x1550] sm:$0xff]  ;;  %v4376_v35 = vunpack.c.h.s8.bf16 %v2677_v40  ;;  %v1149_v60 = vcombine.high %v15135_v37, %v15135_v37 }
 0x5a6   : > { %12178 = vmatprep.subr.bf16.mxu1 %v4367_v25 }
 0x5a8   : > { %12157 = vmatpush3.bf16.msra.mxu0 %v4343_v33  ;;  %v4392_v33 = vunpack.c.h.s8.bf16 %v2685_v26 }
 0x5a9   : > { %12179 = vmatpush3.bf16.msra.mxu1 %v4359_v36  ;;  %12158 = vmatprep.subr.bf16.mxu0 %v4350_v30 }
 0x5aa   : > { %12180 = vmatprep.subr.bf16.mxu1 %v4366_v31  ;;  %v4383_v31 = vunpack.c.l.s8.bf16 %v2681_v14  ;;  %v2702_v14 = vld [vmem:[%s13677_s8 + $0x15d8] sm:$0xff] }
 0x5ac   : > { %12159 = vmatpush3.bf16.msra.mxu0 %v4342_v47  ;;  %v2680_v47 = vld [vmem:[%s13677_s8 + $0x1528] sm:$0xff] }
 0x5ad   : > { %12181 = vmatpush3.bf16.msra.mxu1 %v4358_v48  ;;  %12160 = vmatprep.subr.bf16.mxu0 %v4349_v49  ;;  %v2688_v48 = vld [vmem:[%s13677_s8 + $0x1568] sm:$0xff]  ;;  %v4375_v49 = vunpack.c.l.s8.bf16 %v2677_v40 }
 0x5ae   : > { %12182 = vmatprep.subr.bf16.mxu1 %v4365_v42  ;;  %v4382_v42 = vunpack.c.h.s8.bf16 %v2680_v47  ;;  %v4398_v43 = vunpack.c.h.s8.bf16 %v2688_v48 }
 0x5b0   : > { %12161 = vmatpush3.bf16.msra.mxu0 %v4341_v62  ;;  %v4374_v62 = vunpack.c.h.s8.bf16 %v2676_v44 }
 0x5b1   : > { %12183 = vmatpush3.bf16.msra.mxu1 %v4357_v63  ;;  %12162 = vmatprep.subr.bf16.mxu0 %v4348_v0  ;;  %v4390_v63 = vunpack.c.h.s8.bf16 %v2684_v8  ;;  %v4381_v0 = vunpack.c.l.s8.bf16 %v2680_v47 }
 0x5b2   : > { %12184 = vmatprep.subr.bf16.mxu1 %v4364_v57  ;;  %v4397_v57 = vunpack.c.l.s8.bf16 %v2688_v48 }
 0x5b4   : > { %12163 = vmatpush3.bf16.msra.mxu0 %v4340_v46  ;;  %v4373_v46 = vunpack.c.l.s8.bf16 %v2676_v44 }
 0x5b5   : > { %12185 = vmatpush3.bf16.msra.mxu1 %v4356_v6  ;;  %12164 = vmatprep.subr.bf16.mxu0 %v4347_v7  ;;  %v4389_v6 = vunpack.c.l.s8.bf16 %v2684_v8  ;;  %v4380_v7 = vunpack.c.h.s8.bf16 %v2679_v58 }
 0x5b6   : > { %12186 = vmatprep.subr.bf16.mxu1 %v4363_v41  ;;  %v4396_v41 = vunpack.c.h.s8.bf16 %v2687_v59  ;;  %v2692_v59 = vld [vmem:[%s13677_s8 + $0x1588] sm:$0xff] }
 0x5b8   : > { %12165 = vmatpush3.bf16.msra.mxu0 %v4339_v17  ;;  %v1134_v17 = vcombine.high %v318_v12, %v318_v12  ;;  %v2700_v12 = vld [vmem:[%s13677_s8 + $0x15c8] sm:$0xff] }
 0x5b9   : > { %12187 = vmatpush3.bf16.msra.mxu1 %v4355_v10  ;;  %12194 = vmatprep.subr.bf16.mxu0 %v4386_v55  ;;  %v4372_v10 = vunpack.c.h.s8.bf16 %v2675_v5  ;;  %v4388_v55 = vunpack.c.h.s8.bf16 %v2683_v45 }
 0x5ba   : > { %12216 = vmatprep.subr.bf16.mxu1 %v4402_v56  ;;  %v4379_v56 = vunpack.c.l.s8.bf16 %v2679_v58 }
 0x5bb   : > { %v11902_v19 = vpop.f32.mrf.mxu0  ;;  %8389 = vmatmul.mubr.bf16.vlgmr.msra.gmra.mxu0 %v1911_v39  ;;  %v15138_v39 = vrot.slane %v1134_v17, %v13706_v38  ;;  %v319_v17 = vld [vmem:[%s13670_s10 + $0x160] sm:$0xff] }
 0x5bc   : > { %v11924_v20 = vpop.f32.mrf.mxu1  ;;  %8429 = vmatmul.mubr.bf16.vlgmr.msra.gmra.mxu1 %v1913_v11  ;;  %12195 = vmatpush3.bf16.msra.mxu0 %v4378_v61  ;;  %v4371_v11 = vunpack.c.l.s8.bf16 %v2675_v5  ;;  %v4387_v61 = vunpack.c.l.s8.bf16 %v2683_v45  ;;  %v2695_v5 = vld [vmem:[%s13677_s8 + $0x15a0] sm:$0xff] }
 0x5bd   : > { %12217 = vmatpush3.bf16.msra.mxu1 %v4394_v15  ;;  %v11903_v1 = vpop.f32.mrf.mxu0  ;;  %12196 = vmatprep.subr.bf16.mxu0 %v4385_v16  ;;  %v4418_v15 = vunpack.c.h.s8.bf16 %v2698_v51  ;;  %v4434_v16 = vunpack.c.h.s8.bf16 %v2706_v9  ;;  %v2703_v45 = vld [vmem:[%s13677_s8 + $0x15e0] sm:$0xff] }
 0x5be   : > { %v11925_v2 = vpop.f32.mrf.mxu1  ;;  %12218 = vmatprep.subr.bf16.mxu1 %v4401_v13  ;;  %v11904_v27 = vadd.f32 %v11903_v1, %v11902_v19  ;;  %8468 = vmatprep.mubr.bf16.mxu0 %v1916_v53  ;;  %v2694_v13 = vld [vmem:[%s13677_s8 + $0x1598] sm:$0xff]  ;;  %v1150_v53 = vcombine.high %v15138_v39, %v15138_v39  ;;  %v1917_v19 = vpack.c.bf16 %v15104_v29, %v15104_v29  ;;  %v4433_v1 = vunpack.c.l.s8.bf16 %v2706_v9  ;;  %v2699_v9 = vld [vmem:[%s13677_s8 + $0x15c0] sm:$0xff] }
 0x5bf   : > { %v11926_v23 = vadd.f32 %v11925_v2, %v11924_v20  ;;  %8508 = vmatprep.mubr.bf16.mxu1 %v1918_v54  ;;  %v11905_v24 = vpop.f32.mrf.mxu0  ;;  %v1915_v54 = vpack.c.bf16 %v15101_v28, %v15101_v28  ;;  %v4410_v20 = vunpack.c.h.s8.bf16 %v2694_v13  ;;  %v2697_v2 = vld [vmem:[%s13677_s8 + $0x15b0] sm:$0xff]  ;;  %v4409_v28 = vunpack.c.l.s8.bf16 %v2694_v13 }
 0x5c0   : > { %v11927_v25 = vpop.f32.mrf.mxu1  ;;  %v7911_v34 = vadd.f32 %v11904_v27, %v15087_v52  ;;  %12197 = vmatpush3.bf16.msra.mxu0 %v4377_v21  ;;  %v4391_v52 = vunpack.c.l.s8.bf16 %v2685_v26  ;;  %v4426_v21 = vunpack.c.h.s8.bf16 %v2702_v14  ;;  %v1922_v40 = vpack.c.bf16 %v1150_v53, %v1150_v53 }
 0x5c1   : > { %12219 = vmatpush3.bf16.msra.mxu1 %v4393_v22  ;;  %v11906_v36 = vpop.f32.mrf.mxu0  ;;  %12198 = vmatprep.subr.bf16.mxu0 %v4384_v18  ;;  %v4417_v22 = vunpack.c.l.s8.bf16 %v2698_v51  ;;  %v2705_v18 = vld [vmem:[%s13677_s8 + $0x15f0] sm:$0xff]  ;;  %v4425_v29 = vunpack.c.l.s8.bf16 %v2702_v14  ;;  %v4416_v25 = vunpack.c.h.s8.bf16 %v2697_v2  ;;  %v2691_v51 = vld [vmem:[%s13677_s8 + $0x1580] sm:$0xff]  ;;  %v4427_v13 = vunpack.c.l.s8.bf16 %v2703_v45  ;;  %v2714_v14 = vld [vmem:[%s13677_s8 + $0x1638] sm:$0xff] }
 0x5c2   : > { %v11928_v30 = vpop.f32.mrf.mxu1  ;;  %12220 = vmatprep.subr.bf16.mxu1 %v4400_v4  ;;  %v15121_v3 = vadd.f32 %v11926_v23, %v7911_v34  ;;  %v1920_v4 = vpack.c.bf16 %v1149_v60, %v1149_v60  ;;  %v4432_v34 = vunpack.c.h.s8.bf16 %v2705_v18  ;;  %v4431_v44 = vunpack.c.l.s8.bf16 %v2705_v18  ;;  %v2722_v60 = vld [vmem:[%s13677_s8 + $0x1678] sm:$0xff] }
 0x5c3   : > { %v15169_v53 = vrot.slane %v319_v17, %v13706_v38 }
 0x5c4   : > { %12199 = vmatpush3.bf16.msra.mxu0 %v4376_v35  ;;  %v2693_v35 = vld [vmem:[%s13677_s8 + $0x1590] sm:$0xff] }
 0x5c5   : > { %12221 = vmatpush3.bf16.msra.mxu1 %v4392_v33  ;;  %12200 = vmatprep.subr.bf16.mxu0 %v4383_v31  ;;  %v2701_v33 = vld [vmem:[%s13677_s8 + $0x15d0] sm:$0xff]  ;;  %v4408_v48 = vunpack.c.h.s8.bf16 %v2693_v35  ;;  %v1166_v18 = vcombine.high %v15169_v53, %v15169_v53 }
 0x5c6   : > { %12222 = vmatprep.subr.bf16.mxu1 %v4399_v32 }
 0x5c8   : > { %12201 = vmatpush3.bf16.msra.mxu0 %v4375_v49  ;;  %v4424_v49 = vunpack.c.h.s8.bf16 %v2701_v33 }
 0x5c9   : > { %12223 = vmatpush3.bf16.msra.mxu1 %v4391_v52  ;;  %12202 = vmatprep.subr.bf16.mxu0 %v4382_v42 }
 0x5ca   : > { %12224 = vmatprep.subr.bf16.mxu1 %v4398_v43  ;;  %v4415_v43 = vunpack.c.l.s8.bf16 %v2697_v2  ;;  %v2718_v2 = vld [vmem:[%s13677_s8 + $0x1658] sm:$0xff] }
 0x5cc   : > { %12203 = vmatpush3.bf16.msra.mxu0 %v4374_v62  ;;  %v2696_v62 = vld [vmem:[%s13677_s8 + $0x15a8] sm:$0xff] }
 0x5cd   : > { %12225 = vmatpush3.bf16.msra.mxu1 %v4390_v63  ;;  %12204 = vmatprep.subr.bf16.mxu0 %v4381_v0  ;;  %v2704_v63 = vld [vmem:[%s13677_s8 + $0x15e8] sm:$0xff]  ;;  %v4407_v0 = vunpack.c.l.s8.bf16 %v2693_v35 }
 0x5ce   : > { %12226 = vmatprep.subr.bf16.mxu1 %v4397_v57  ;;  %v4414_v57 = vunpack.c.h.s8.bf16 %v2696_v62  ;;  %v4430_v58 = vunpack.c.h.s8.bf16 %v2704_v63 }
 0x5d0   : > { %12205 = vmatpush3.bf16.msra.mxu0 %v4373_v46  ;;  %v4406_v46 = vunpack.c.h.s8.bf16 %v2692_v59 }
 0x5d1   : > { %12227 = vmatpush3.bf16.msra.mxu1 %v4389_v6  ;;  %12206 = vmatprep.subr.bf16.mxu0 %v4380_v7  ;;  %v4422_v6 = vunpack.c.h.s8.bf16 %v2700_v12  ;;  %v4413_v7 = vunpack.c.l.s8.bf16 %v2696_v62 }
 0x5d2   : > { %12228 = vmatprep.subr.bf16.mxu1 %v4396_v41  ;;  %v4429_v41 = vunpack.c.l.s8.bf16 %v2704_v63 }
 0x5d4   : > { %12207 = vmatpush3.bf16.msra.mxu0 %v4372_v10  ;;  %v4405_v10 = vunpack.c.l.s8.bf16 %v2692_v59 }
 0x5d5   : > { %12229 = vmatpush3.bf16.msra.mxu1 %v4388_v55  ;;  %12208 = vmatprep.subr.bf16.mxu0 %v4379_v56  ;;  %v4421_v55 = vunpack.c.l.s8.bf16 %v2700_v12  ;;  %v4412_v56 = vunpack.c.h.s8.bf16 %v2695_v5 }
 0x5d6   : > { %12230 = vmatprep.subr.bf16.mxu1 %v4395_v50  ;;  %v4428_v50 = vunpack.c.h.s8.bf16 %v2703_v45  ;;  %v2708_v45 = vld [vmem:[%s13677_s8 + $0x1608] sm:$0xff] }
 0x5d8   : > { %12209 = vmatpush3.bf16.msra.mxu0 %v4371_v11  ;;  %v1151_v11 = vcombine.high %v319_v17, %v319_v17  ;;  %v2716_v17 = vld [vmem:[%s13677_s8 + $0x1648] sm:$0xff] }
 0x5d9   : > { %12231 = vmatpush3.bf16.msra.mxu1 %v4387_v61  ;;  %12238 = vmatprep.subr.bf16.mxu0 %v4418_v15  ;;  %v4404_v61 = vunpack.c.h.s8.bf16 %v2691_v51  ;;  %v4420_v15 = vunpack.c.h.s8.bf16 %v2699_v9 }
 0x5da   : > { %12260 = vmatprep.subr.bf16.mxu1 %v4434_v16  ;;  %v4411_v16 = vunpack.c.l.s8.bf16 %v2695_v5 }
 0x5db   : > { %v11946_v26 = vpop.f32.mrf.mxu0  ;;  %8469 = vmatmul.mubr.bf16.vlgmr.msra.gmra.mxu0 %v1915_v54  ;;  %v15172_v54 = vrot.slane %v1151_v11, %v13706_v38  ;;  %v320_v11 = vld [vmem:[%s13670_s10 + $0x168] sm:$0xff] }
 0x5dc   : > { %v11968_v27 = vpop.f32.mrf.mxu1  ;;  %8509 = vmatmul.mubr.bf16.vlgmr.msra.gmra.mxu1 %v1917_v19  ;;  %12239 = vmatpush3.bf16.msra.mxu0 %v4410_v20  ;;  %v4403_v19 = vunpack.c.l.s8.bf16 %v2691_v51  ;;  %v4419_v20 = vunpack.c.l.s8.bf16 %v2699_v9  ;;  %v2711_v51 = vld [vmem:[%s13677_s8 + $0x1620] sm:$0xff] }
 0x5dd   : > { %12261 = vmatpush3.bf16.msra.mxu1 %v4426_v21  ;;  %v11947_v23 = vpop.f32.mrf.mxu0  ;;  %12240 = vmatprep.subr.bf16.mxu0 %v4417_v22  ;;  %v4450_v21 = vunpack.c.h.s8.bf16 %v2714_v14  ;;  %v4466_v22 = vunpack.c.h.s8.bf16 %v2722_v60  ;;  %v2719_v9 = vld [vmem:[%s13677_s8 + $0x1660] sm:$0xff] }
 0x5de   : > { %v11969_v24 = vpop.f32.mrf.mxu1  ;;  %12262 = vmatprep.subr.bf16.mxu1 %v4433_v1  ;;  %v11948_v36 = vadd.f32 %v11947_v23, %v11946_v26  ;;  %8548 = vmatprep.mubr.bf16.mxu0 %v1920_v4  ;;  %v2710_v1 = vld [vmem:[%s13677_s8 + $0x1618] sm:$0xff]  ;;  %v1167_v4 = vcombine.high %v15172_v54, %v15172_v54  ;;  %v1921_v26 = vpack.c.bf16 %v15138_v39, %v15138_v39  ;;  %v4465_v23 = vunpack.c.l.s8.bf16 %v2722_v60  ;;  %v2715_v60 = vld [vmem:[%s13677_s8 + $0x1640] sm:$0xff] }
 0x5df   : > { %v11970_v30 = vadd.f32 %v11969_v24, %v11968_v27  ;;  %8588 = vmatprep.mubr.bf16.mxu1 %v1922_v40  ;;  %v11949_v31 = vpop.f32.mrf.mxu0  ;;  %v1919_v40 = vpack.c.bf16 %v15135_v37, %v15135_v37  ;;  %v4442_v27 = vunpack.c.h.s8.bf16 %v2710_v1  ;;  %v2713_v24 = vld [vmem:[%s13677_s8 + $0x1630] sm:$0xff]  ;;  %v4441_v37 = vunpack.c.l.s8.bf16 %v2710_v1 }
 0x5e0   : > { %v11971_v32 = vpop.f32.mrf.mxu1  ;;  %v7991_v47 = vadd.f32 %v11948_v36, %v15121_v3  ;;  %12241 = vmatpush3.bf16.msra.mxu0 %v4409_v28  ;;  %v4423_v3 = vunpack.c.l.s8.bf16 %v2701_v33  ;;  %v4458_v28 = vunpack.c.h.s8.bf16 %v2718_v2  ;;  %v1926_v35 = vpack.c.bf16 %v1167_v4, %v1167_v4 }
 0x5e1   : > { %12263 = vmatpush3.bf16.msra.mxu1 %v4425_v29  ;;  %v11950_v52 = vpop.f32.mrf.mxu0  ;;  %12242 = vmatprep.subr.bf16.mxu0 %v4416_v25  ;;  %v4449_v29 = vunpack.c.l.s8.bf16 %v2714_v14  ;;  %v2721_v25 = vld [vmem:[%s13677_s8 + $0x1670] sm:$0xff]  ;;  %v4457_v39 = vunpack.c.l.s8.bf16 %v2718_v2  ;;  %v4448_v32 = vunpack.c.h.s8.bf16 %v2713_v24  ;;  %v2707_v14 = vld [vmem:[%s13677_s8 + $0x1600] sm:$0xff]  ;;  %v4459_v1 = vunpack.c.l.s8.bf16 %v2719_v9  ;;  %v2730_v2 = vld [vmem:[%s13677_s8 + $0x16b8] sm:$0xff] }
 0x5e2   : > { %v11972_v42 = vpop.f32.mrf.mxu1  ;;  %12264 = vmatprep.subr.bf16.mxu1 %v4432_v34  ;;  %v15155_v8 = vadd.f32 %v11970_v30, %v7991_v47  ;;  %v1924_v34 = vpack.c.bf16 %v1166_v18, %v1166_v18  ;;  %v4464_v47 = vunpack.c.h.s8.bf16 %v2721_v25  ;;  %v4463_v59 = vunpack.c.l.s8.bf16 %v2721_v25  ;;  %v2738_v18 = vld [vmem:[%s13677_s8 + $0x16f8] sm:$0xff] }
 0x5e3   : > { %v15203_v4 = vrot.slane %v320_v11, %v13706_v38 }
 0x5e4   : > { %12243 = vmatpush3.bf16.msra.mxu0 %v4408_v48  ;;  %v2709_v48 = vld [vmem:[%s13677_s8 + $0x1610] sm:$0xff] }
 0x5e5   : > { %12265 = vmatpush3.bf16.msra.mxu1 %v4424_v49  ;;  %12244 = vmatprep.subr.bf16.mxu0 %v4415_v43  ;;  %v2717_v49 = vld [vmem:[%s13677_s8 + $0x1650] sm:$0xff]  ;;  %v4440_v63 = vunpack.c.h.s8.bf16 %v2709_v48  ;;  %v1183_v25 = vcombine.high %v15203_v4, %v15203_v4 }
 0x5e6   : > { %12266 = vmatprep.subr.bf16.mxu1 %v4431_v44 }
 0x5e8   : > { %12245 = vmatpush3.bf16.msra.mxu0 %v4407_v0  ;;  %v4456_v0 = vunpack.c.h.s8.bf16 %v2717_v49 }
 0x5e9   : > { %12267 = vmatpush3.bf16.msra.mxu1 %v4423_v3  ;;  %12246 = vmatprep.subr.bf16.mxu0 %v4414_v57 }
 0x5ea   : > { %12268 = vmatprep.subr.bf16.mxu1 %v4430_v58  ;;  %v4447_v58 = vunpack.c.l.s8.bf16 %v2713_v24  ;;  %v2734_v24 = vld [vmem:[%s13677_s8 + $0x16d8] sm:$0xff] }
 0x5ec   : > { %12247 = vmatpush3.bf16.msra.mxu0 %v4406_v46  ;;  %v2712_v46 = vld [vmem:[%s13677_s8 + $0x1628] sm:$0xff] }
 0x5ed   : > { %12269 = vmatpush3.bf16.msra.mxu1 %v4422_v6  ;;  %12248 = vmatprep.subr.bf16.mxu0 %v4413_v7  ;;  %v2720_v6 = vld [vmem:[%s13677_s8 + $0x1668] sm:$0xff]  ;;  %v4439_v7 = vunpack.c.l.s8.bf16 %v2709_v48 }
 0x5ee   : > { %12270 = vmatprep.subr.bf16.mxu1 %v4429_v41  ;;  %v4446_v41 = vunpack.c.h.s8.bf16 %v2712_v46  ;;  %v4462_v5 = vunpack.c.h.s8.bf16 %v2720_v6 }
 0x5f0   : > { %12249 = vmatpush3.bf16.msra.mxu0 %v4405_v10  ;;  %v4438_v10 = vunpack.c.h.s8.bf16 %v2708_v45 }
 0x5f1   : > { %12271 = vmatpush3.bf16.msra.mxu1 %v4421_v55  ;;  %12250 = vmatprep.subr.bf16.mxu0 %v4412_v56  ;;  %v4454_v55 = vunpack.c.h.s8.bf16 %v2716_v17  ;;  %v4445_v56 = vunpack.c.l.s8.bf16 %v2712_v46 }
 0x5f2   : > { %12272 = vmatprep.subr.bf16.mxu1 %v4428_v50  ;;  %v4461_v50 = vunpack.c.l.s8.bf16 %v2720_v6 }
 0x5f4   : > { %12251 = vmatpush3.bf16.msra.mxu0 %v4404_v61  ;;  %v4437_v61 = vunpack.c.l.s8.bf16 %v2708_v45 }
 0x5f5   : > { %12273 = vmatpush3.bf16.msra.mxu1 %v4420_v15  ;;  %12252 = vmatprep.subr.bf16.mxu0 %v4411_v16  ;;  %v4453_v15 = vunpack.c.l.s8.bf16 %v2716_v17  ;;  %v4444_v16 = vunpack.c.h.s8.bf16 %v2711_v51 }
 0x5f6   : > { %12274 = vmatprep.subr.bf16.mxu1 %v4427_v13  ;;  %v4460_v13 = vunpack.c.h.s8.bf16 %v2719_v9  ;;  %v2724_v9 = vld [vmem:[%s13677_s8 + $0x1688] sm:$0xff] }
 0x5f8   : > { %12253 = vmatpush3.bf16.msra.mxu0 %v4403_v19  ;;  %v1168_v19 = vcombine.high %v320_v11, %v320_v11  ;;  %v2732_v11 = vld [vmem:[%s13677_s8 + $0x16c8] sm:$0xff] }
 0x5f9   : > { %12275 = vmatpush3.bf16.msra.mxu1 %v4419_v20  ;;  %12282 = vmatprep.subr.bf16.mxu0 %v4450_v21  ;;  %v4436_v20 = vunpack.c.h.s8.bf16 %v2707_v14  ;;  %v4452_v21 = vunpack.c.h.s8.bf16 %v2715_v60 }
 0x5fa   : > { %12304 = vmatprep.subr.bf16.mxu1 %v4466_v22  ;;  %v4443_v22 = vunpack.c.l.s8.bf16 %v2711_v51 }
 0x5fb   : > { %v11990_v33 = vpop.f32.mrf.mxu0  ;;  %8549 = vmatmul.mubr.bf16.vlgmr.msra.gmra.mxu0 %v1919_v40  ;;  %v15206_v40 = vrot.slane %v1168_v19, %v13706_v38  ;;  %v321_v19 = vld [vmem:[%s13670_s10 + $0x170] sm:$0xff] }
 0x5fc   : > { %v12012_v36 = vpop.f32.mrf.mxu1  ;;  %8589 = vmatmul.mubr.bf16.vlgmr.msra.gmra.mxu1 %v1921_v26  ;;  %12283 = vmatpush3.bf16.msra.mxu0 %v4442_v27  ;;  %v4435_v26 = vunpack.c.l.s8.bf16 %v2707_v14  ;;  %v4451_v27 = vunpack.c.l.s8.bf16 %v2715_v60  ;;  %v2727_v14 = vld [vmem:[%s13677_s8 + $0x16a0] sm:$0xff] }
 0x5fd   : > { %12305 = vmatpush3.bf16.msra.mxu1 %v4458_v28  ;;  %v11991_v30 = vpop.f32.mrf.mxu0  ;;  %12284 = vmatprep.subr.bf16.mxu0 %v4449_v29  ;;  %v4482_v28 = vunpack.c.h.s8.bf16 %v2730_v2  ;;  %v4498_v29 = vunpack.c.h.s8.bf16 %v2738_v18  ;;  %v2735_v60 = vld [vmem:[%s13677_s8 + $0x16e0] sm:$0xff] }
 0x5fe   : > { %v12013_v31 = vpop.f32.mrf.mxu1  ;;  %12306 = vmatprep.subr.bf16.mxu1 %v4465_v23  ;;  %v11992_v52 = vadd.f32 %v11991_v30, %v11990_v33  ;;  %8628 = vmatprep.mubr.bf16.mxu0 %v1924_v34  ;;  %v2726_v23 = vld [vmem:[%s13677_s8 + $0x1698] sm:$0xff]  ;;  %v1184_v34 = vcombine.high %v15206_v40, %v15206_v40  ;;  %v1925_v33 = vpack.c.bf16 %v15172_v54, %v15172_v54  ;;  %v4497_v30 = vunpack.c.l.s8.bf16 %v2738_v18  ;;  %v2731_v18 = vld [vmem:[%s13677_s8 + $0x16c0] sm:$0xff] }
 0x5ff   : > { %v12014_v42 = vadd.f32 %v12013_v31, %v12012_v36  ;;  %8668 = vmatprep.mubr.bf16.mxu1 %v1926_v35  ;;  %v11993_v43 = vpop.f32.mrf.mxu0  ;;  %v1923_v35 = vpack.c.bf16 %v15169_v53, %v15169_v53  ;;  %v4474_v36 = vunpack.c.h.s8.bf16 %v2726_v23  ;;  %v2729_v31 = vld [vmem:[%s13677_s8 + $0x16b0] sm:$0xff]  ;;  %v4473_v53 = vunpack.c.l.s8.bf16 %v2726_v23 }
 0x600   : > { %v12015_v44 = vpop.f32.mrf.mxu1  ;;  %v8071_v62 = vadd.f32 %v11992_v52, %v15155_v8  ;;  %12285 = vmatpush3.bf16.msra.mxu0 %v4441_v37  ;;  %v4455_v8 = vunpack.c.l.s8.bf16 %v2717_v49  ;;  %v4490_v37 = vunpack.c.h.s8.bf16 %v2734_v24  ;;  %v1930_v48 = vpack.c.bf16 %v1184_v34, %v1184_v34 }
 0x601   : > { %12307 = vmatpush3.bf16.msra.mxu1 %v4457_v39  ;;  %v11994_v3 = vpop.f32.mrf.mxu0  ;;  %12286 = vmatprep.subr.bf16.mxu0 %v4448_v32  ;;  %v4481_v39 = vunpack.c.l.s8.bf16 %v2730_v2  ;;  %v2737_v32 = vld [vmem:[%s13677_s8 + $0x16f0] sm:$0xff]  ;;  %v4489_v54 = vunpack.c.l.s8.bf16 %v2734_v24  ;;  %v4480_v44 = vunpack.c.h.s8.bf16 %v2729_v31  ;;  %v2723_v2 = vld [vmem:[%s13677_s8 + $0x1680] sm:$0xff]  ;;  %v4491_v23 = vunpack.c.l.s8.bf16 %v2735_v60  ;;  %v2746_v24 = vld [vmem:[%s13677_s8 + $0x1738] sm:$0xff] }
 0x602   : > { %v12016_v57 = vpop.f32.mrf.mxu1  ;;  %12308 = vmatprep.subr.bf16.mxu1 %v4464_v47  ;;  %v15189_v12 = vadd.f32 %v12014_v42, %v8071_v62  ;;  %v1928_v47 = vpack.c.bf16 %v1183_v25, %v1183_v25  ;;  %v4496_v62 = vunpack.c.h.s8.bf16 %v2737_v32  ;;  %v4495_v45 = vunpack.c.l.s8.bf16 %v2737_v32  ;;  %v2754_v25 = vld [vmem:[%s13677_s8 + $0x1778] sm:$0xff] }
 0x603   : > { %v15237_v34 = vrot.slane %v321_v19, %v13706_v38 }
 0x604   : > { %12287 = vmatpush3.bf16.msra.mxu0 %v4440_v63  ;;  %v2725_v63 = vld [vmem:[%s13677_s8 + $0x1690] sm:$0xff] }
 0x605   : > { %12309 = vmatpush3.bf16.msra.mxu1 %v4456_v0  ;;  %12288 = vmatprep.subr.bf16.mxu0 %v4447_v58  ;;  %v2733_v0 = vld [vmem:[%s13677_s8 + $0x16d0] sm:$0xff]  ;;  %v4472_v6 = vunpack.c.h.s8.bf16 %v2725_v63  ;;  %v1200_v32 = vcombine.high %v15237_v34, %v15237_v34 }
 0x606   : > { %12310 = vmatprep.subr.bf16.mxu1 %v4463_v59 }
 0x608   : > { %12289 = vmatpush3.bf16.msra.mxu0 %v4439_v7  ;;  %v4488_v7 = vunpack.c.h.s8.bf16 %v2733_v0 }
 0x609   : > { %12311 = vmatpush3.bf16.msra.mxu1 %v4455_v8  ;;  %12290 = vmatprep.subr.bf16.mxu0 %v4446_v41 }
 0x60a   : > { %12312 = vmatprep.subr.bf16.mxu1 %v4462_v5  ;;  %v4479_v5 = vunpack.c.l.s8.bf16 %v2729_v31  ;;  %v2750_v31 = vld [vmem:[%s13677_s8 + $0x1758] sm:$0xff] }
 0x60c   : > { %12291 = vmatpush3.bf16.msra.mxu0 %v4438_v10  ;;  %v2728_v10 = vld [vmem:[%s13677_s8 + $0x16a8] sm:$0xff] }
 0x60d   : > { %12313 = vmatpush3.bf16.msra.mxu1 %v4454_v55  ;;  %12292 = vmatprep.subr.bf16.mxu0 %v4445_v56  ;;  %v2736_v55 = vld [vmem:[%s13677_s8 + $0x16e8] sm:$0xff]  ;;  %v4471_v56 = vunpack.c.l.s8.bf16 %v2725_v63 }
 0x60e   : > { %12314 = vmatprep.subr.bf16.mxu1 %v4461_v50  ;;  %v4478_v50 = vunpack.c.h.s8.bf16 %v2728_v10  ;;  %v4494_v51 = vunpack.c.h.s8.bf16 %v2736_v55 }
 0x610   : > { %12293 = vmatpush3.bf16.msra.mxu0 %v4437_v61  ;;  %v4470_v61 = vunpack.c.h.s8.bf16 %v2724_v9 }
 0x611   : > { %12315 = vmatpush3.bf16.msra.mxu1 %v4453_v15  ;;  %12294 = vmatprep.subr.bf16.mxu0 %v4444_v16  ;;  %v4486_v15 = vunpack.c.h.s8.bf16 %v2732_v11  ;;  %v4477_v16 = vunpack.c.l.s8.bf16 %v2728_v10 }
 0x612   : > { %12316 = vmatprep.subr.bf16.mxu1 %v4460_v13  ;;  %v4493_v13 = vunpack.c.l.s8.bf16 %v2736_v55 }
 0x614   : > { %12295 = vmatpush3.bf16.msra.mxu0 %v4436_v20  ;;  %v4469_v20 = vunpack.c.l.s8.bf16 %v2724_v9 }
 0x615   : > { %12317 = vmatpush3.bf16.msra.mxu1 %v4452_v21  ;;  %12296 = vmatprep.subr.bf16.mxu0 %v4443_v22  ;;  %v4485_v21 = vunpack.c.l.s8.bf16 %v2732_v11  ;;  %v4476_v22 = vunpack.c.h.s8.bf16 %v2727_v14 }
 0x616   : > { %12318 = vmatprep.subr.bf16.mxu1 %v4459_v1  ;;  %v4492_v1 = vunpack.c.h.s8.bf16 %v2735_v60  ;;  %v2740_v60 = vld [vmem:[%s13677_s8 + $0x1708] sm:$0xff] }
 0x618   : > { %12297 = vmatpush3.bf16.msra.mxu0 %v4435_v26  ;;  %v1185_v26 = vcombine.high %v321_v19, %v321_v19  ;;  %v2748_v19 = vld [vmem:[%s13677_s8 + $0x1748] sm:$0xff] }
 0x619   : > { %12319 = vmatpush3.bf16.msra.mxu1 %v4451_v27  ;;  %12326 = vmatprep.subr.bf16.mxu0 %v4482_v28  ;;  %v4468_v27 = vunpack.c.h.s8.bf16 %v2723_v2  ;;  %v4484_v28 = vunpack.c.h.s8.bf16 %v2731_v18 }
 0x61a   : > { %12348 = vmatprep.subr.bf16.mxu1 %v4498_v29  ;;  %v4475_v29 = vunpack.c.l.s8.bf16 %v2727_v14 }
 0x61b   : > { %v12034_v49 = vpop.f32.mrf.mxu0  ;;  %8629 = vmatmul.mubr.bf16.vlgmr.msra.gmra.mxu0 %v1923_v35  ;;  %v15240_v35 = vrot.slane %v1185_v26, %v13706_v38  ;;  %v322_v26 = vld [vmem:[%s13670_s10 + $0x178] sm:$0xff] }
 0x61c   : > { %v12056_v52 = vpop.f32.mrf.mxu1  ;;  %8669 = vmatmul.mubr.bf16.vlgmr.msra.gmra.mxu1 %v1925_v33  ;;  %12327 = vmatpush3.bf16.msra.mxu0 %v4474_v36  ;;  %v4467_v33 = vunpack.c.l.s8.bf16 %v2723_v2  ;;  %v4483_v36 = vunpack.c.l.s8.bf16 %v2731_v18  ;;  %v2743_v2 = vld [vmem:[%s13677_s8 + $0x1720] sm:$0xff] }
 0x61d   : > { %12349 = vmatpush3.bf16.msra.mxu1 %v4490_v37  ;;  %v12035_v42 = vpop.f32.mrf.mxu0  ;;  %12328 = vmatprep.subr.bf16.mxu0 %v4481_v39  ;;  %v4514_v37 = vunpack.c.h.s8.bf16 %v2746_v24  ;;  %v4530_v39 = vunpack.c.h.s8.bf16 %v2754_v25  ;;  %v2751_v18 = vld [vmem:[%s13677_s8 + $0x1760] sm:$0xff] }
 0x61e   : > { %v12057_v43 = vpop.f32.mrf.mxu1  ;;  %12350 = vmatprep.subr.bf16.mxu1 %v4497_v30  ;;  %v12036_v3 = vadd.f32 %v12035_v42, %v12034_v49  ;;  %8708 = vmatprep.mubr.bf16.mxu0 %v1928_v47  ;;  %v2742_v30 = vld [vmem:[%s13677_s8 + $0x1718] sm:$0xff]  ;;  %v1201_v47 = vcombine.high %v15240_v35, %v15240_v35  ;;  %v1929_v49 = vpack.c.bf16 %v15206_v40, %v15206_v40  ;;  %v4529_v42 = vunpack.c.l.s8.bf16 %v2754_v25  ;;  %v2747_v25 = vld [vmem:[%s13677_s8 + $0x1740] sm:$0xff] }
 0x61f   : > { %v12058_v57 = vadd.f32 %v12057_v43, %v12056_v52  ;;  %8748 = vmatprep.mubr.bf16.mxu1 %v1930_v48  ;;  %v12037_v58 = vpop.f32.mrf.mxu0  ;;  %v1927_v48 = vpack.c.bf16 %v15203_v4, %v15203_v4  ;;  %v4506_v52 = vunpack.c.h.s8.bf16 %v2742_v30  ;;  %v2745_v43 = vld [vmem:[%s13677_s8 + $0x1730] sm:$0xff]  ;;  %v4505_v4 = vunpack.c.l.s8.bf16 %v2742_v30 }
 0x620   : > { %v12059_v59 = vpop.f32.mrf.mxu1  ;;  %v8151_v46 = vadd.f32 %v12036_v3, %v15189_v12  ;;  %12329 = vmatpush3.bf16.msra.mxu0 %v4473_v53  ;;  %v4487_v12 = vunpack.c.l.s8.bf16 %v2733_v0  ;;  %v4522_v53 = vunpack.c.h.s8.bf16 %v2750_v31  ;;  %v1934_v63 = vpack.c.bf16 %v1201_v47, %v1201_v47 }
 0x621   : > { %12351 = vmatpush3.bf16.msra.mxu1 %v4489_v54  ;;  %v12038_v8 = vpop.f32.mrf.mxu0  ;;  %12330 = vmatprep.subr.bf16.mxu0 %v4480_v44  ;;  %v4513_v54 = vunpack.c.l.s8.bf16 %v2746_v24  ;;  %v2753_v44 = vld [vmem:[%s13677_s8 + $0x1770] sm:$0xff]  ;;  %v4521_v40 = vunpack.c.l.s8.bf16 %v2750_v31  ;;  %v4512_v59 = vunpack.c.h.s8.bf16 %v2745_v43  ;;  %v2739_v24 = vld [vmem:[%s13677_s8 + $0x1700] sm:$0xff]  ;;  %v4523_v30 = vunpack.c.l.s8.bf16 %v2751_v18  ;;  %v2762_v31 = vld [vmem:[%s13677_s8 + $0x17b8] sm:$0xff] }
 0x622   : > { %v12060_v41 = vpop.f32.mrf.mxu1  ;;  %12352 = vmatprep.subr.bf16.mxu1 %v4496_v62  ;;  %v15223_v17 = vadd.f32 %v12058_v57, %v8151_v46  ;;  %v1932_v62 = vpack.c.bf16 %v1200_v32, %v1200_v32  ;;  %v4528_v46 = vunpack.c.h.s8.bf16 %v2753_v44  ;;  %v4527_v9 = vunpack.c.l.s8.bf16 %v2753_v44  ;;  %v2770_v32 = vld [vmem:[%s13677_s8 + $0x17f8] sm:$0xff] }
 0x623   : > { %v15271_v47 = vrot.slane %v322_v26, %v13706_v38 }
 0x624   : > { %12331 = vmatpush3.bf16.msra.mxu0 %v4472_v6  ;;  %v2741_v6 = vld [vmem:[%s13677_s8 + $0x1710] sm:$0xff] }
 0x625   : > { %12353 = vmatpush3.bf16.msra.mxu1 %v4488_v7  ;;  %12332 = vmatprep.subr.bf16.mxu0 %v4479_v5  ;;  %v2749_v7 = vld [vmem:[%s13677_s8 + $0x1750] sm:$0xff]  ;;  %v4504_v55 = vunpack.c.h.s8.bf16 %v2741_v6  ;;  %v1217_v44 = vcombine.high %v15271_v47, %v15271_v47 }
 0x626   : > { %12354 = vmatprep.subr.bf16.mxu1 %v4495_v45 }
 0x628   : > { %12333 = vmatpush3.bf16.msra.mxu0 %v4471_v56  ;;  %v4520_v56 = vunpack.c.h.s8.bf16 %v2749_v7 }
 0x629   : > { %12355 = vmatpush3.bf16.msra.mxu1 %v4487_v12  ;;  %12334 = vmatprep.subr.bf16.mxu0 %v4478_v50 }
 0x62a   : > { %12356 = vmatprep.subr.bf16.mxu1 %v4494_v51  ;;  %v4511_v51 = vunpack.c.l.s8.bf16 %v2745_v43  ;;  %v2766_v43 = vld [vmem:[%s13677_s8 + $0x17d8] sm:$0xff] }
 0x62c   : > { %12335 = vmatpush3.bf16.msra.mxu0 %v4470_v61  ;;  %v2744_v61 = vld [vmem:[%s13677_s8 + $0x1728] sm:$0xff] }
 0x62d   : > { %12357 = vmatpush3.bf16.msra.mxu1 %v4486_v15  ;;  %12336 = vmatprep.subr.bf16.mxu0 %v4477_v16  ;;  %v2752_v15 = vld [vmem:[%s13677_s8 + $0x1768] sm:$0xff]  ;;  %v4503_v16 = vunpack.c.l.s8.bf16 %v2741_v6 }
 0x62e   : > { %12358 = vmatprep.subr.bf16.mxu1 %v4493_v13  ;;  %v4510_v13 = vunpack.c.h.s8.bf16 %v2744_v61  ;;  %v4526_v14 = vunpack.c.h.s8.bf16 %v2752_v15 }
 0x630   : > { %12337 = vmatpush3.bf16.msra.mxu0 %v4469_v20  ;;  %v4502_v20 = vunpack.c.h.s8.bf16 %v2740_v60 }
 0x631   : > { %12359 = vmatpush3.bf16.msra.mxu1 %v4485_v21  ;;  %12338 = vmatprep.subr.bf16.mxu0 %v4476_v22  ;;  %v4518_v21 = vunpack.c.h.s8.bf16 %v2748_v19  ;;  %v4509_v22 = vunpack.c.l.s8.bf16 %v2744_v61 }
 0x632   : > { %12360 = vmatprep.subr.bf16.mxu1 %v4492_v1  ;;  %v4525_v1 = vunpack.c.l.s8.bf16 %v2752_v15 }
 0x634   : > { %12339 = vmatpush3.bf16.msra.mxu0 %v4468_v27  ;;  %v4501_v27 = vunpack.c.l.s8.bf16 %v2740_v60 }
 0x635   : > { %12361 = vmatpush3.bf16.msra.mxu1 %v4484_v28  ;;  %12340 = vmatprep.subr.bf16.mxu0 %v4475_v29  ;;  %v4517_v28 = vunpack.c.l.s8.bf16 %v2748_v19  ;;  %v4508_v29 = vunpack.c.h.s8.bf16 %v2743_v2 }
 0x636   : > { %12362 = vmatprep.subr.bf16.mxu1 %v4491_v23  ;;  %v4524_v23 = vunpack.c.h.s8.bf16 %v2751_v18  ;;  %v2756_v18 = vld [vmem:[%s13677_s8 + $0x1788] sm:$0xff] }
 0x638   : > { %12341 = vmatpush3.bf16.msra.mxu0 %v4467_v33  ;;  %v1202_v33 = vcombine.high %v322_v26, %v322_v26  ;;  %v2764_v26 = vld [vmem:[%s13677_s8 + $0x17c8] sm:$0xff] }
 0x639   : > { %12363 = vmatpush3.bf16.msra.mxu1 %v4483_v36  ;;  %12370 = vmatprep.subr.bf16.mxu0 %v4514_v37  ;;  %v4500_v36 = vunpack.c.h.s8.bf16 %v2739_v24  ;;  %v4516_v37 = vunpack.c.h.s8.bf16 %v2747_v25 }
 0x63a   : > { %12392 = vmatprep.subr.bf16.mxu1 %v4530_v39  ;;  %v4507_v39 = vunpack.c.l.s8.bf16 %v2743_v2 }
 0x63b   : > { %v12078_v0 = vpop.f32.mrf.mxu0  ;;  %8709 = vmatmul.mubr.bf16.vlgmr.msra.gmra.mxu0 %v1927_v48  ;;  %v15274_v48 = vrot.slane %v1202_v33, %v13706_v38  ;;  %v323_v33 = vld [vmem:[%s13670_s10 + $0x180] sm:$0xff] }
 0x63c   : > { %v12100_v3 = vpop.f32.mrf.mxu1  ;;  %8749 = vmatmul.mubr.bf16.vlgmr.msra.gmra.mxu1 %v1929_v49  ;;  %12371 = vmatpush3.bf16.msra.mxu0 %v4506_v52  ;;  %v4499_v49 = vunpack.c.l.s8.bf16 %v2739_v24  ;;  %v4515_v52 = vunpack.c.l.s8.bf16 %v2747_v25  ;;  %v2759_v24 = vld [vmem:[%s13677_s8 + $0x17a0] sm:$0xff] }
 0x63d   : > { %12393 = vmatpush3.bf16.msra.mxu1 %v4522_v53  ;;  %v12079_v57 = vpop.f32.mrf.mxu0  ;;  %12372 = vmatprep.subr.bf16.mxu0 %v4513_v54  ;;  %v4546_v53 = vunpack.c.h.s8.bf16 %v2762_v31  ;;  %v4562_v54 = vunpack.c.h.s8.bf16 %v2770_v32  ;;  %v2767_v25 = vld [vmem:[%s13677_s8 + $0x17e0] sm:$0xff] }
 0x63e   : > { %v12101_v58 = vpop.f32.mrf.mxu1  ;;  %12394 = vmatprep.subr.bf16.mxu1 %v4529_v42  ;;  %v12080_v8 = vadd.f32 %v12079_v57, %v12078_v0  ;;  %8788 = vmatprep.mubr.bf16.mxu0 %v1932_v62  ;;  %v2758_v42 = vld [vmem:[%s13677_s8 + $0x1798] sm:$0xff]  ;;  %v1218_v62 = vcombine.high %v15274_v48, %v15274_v48  ;;  %v1933_v0 = vpack.c.bf16 %v15240_v35, %v15240_v35  ;;  %v4561_v57 = vunpack.c.l.s8.bf16 %v2770_v32  ;;  %v2763_v32 = vld [vmem:[%s13677_s8 + $0x17c0] sm:$0xff] }
 0x63f   : > { %v12102_v41 = vadd.f32 %v12101_v58, %v12100_v3  ;;  %8828 = vmatprep.mubr.bf16.mxu1 %v1934_v63  ;;  %v12081_v5 = vpop.f32.mrf.mxu0  ;;  %v1931_v63 = vpack.c.bf16 %v15237_v34, %v15237_v34  ;;  %v4538_v3 = vunpack.c.h.s8.bf16 %v2758_v42  ;;  %v2761_v58 = vld [vmem:[%s13677_s8 + $0x17b0] sm:$0xff]  ;;  %v4537_v34 = vunpack.c.l.s8.bf16 %v2758_v42 }
 0x640   : > { %v12103_v45 = vpop.f32.mrf.mxu1  ;;  %v8231_v10 = vadd.f32 %v12080_v8, %v15223_v17  ;;  %12373 = vmatpush3.bf16.msra.mxu0 %v4505_v4  ;;  %v4519_v17 = vunpack.c.l.s8.bf16 %v2749_v7  ;;  %v4554_v4 = vunpack.c.h.s8.bf16 %v2766_v43  ;;  %v1938_v6 = vpack.c.bf16 %v1218_v62, %v1218_v62 }
 0x641   : > { %12395 = vmatpush3.bf16.msra.mxu1 %v4521_v40  ;;  %v12082_v12 = vpop.f32.mrf.mxu0  ;;  %12374 = vmatprep.subr.bf16.mxu0 %v4512_v59  ;;  %v4545_v40 = vunpack.c.l.s8.bf16 %v2762_v31  ;;  %v2769_v59 = vld [vmem:[%s13677_s8 + $0x17f0] sm:$0xff]  ;;  %v4553_v35 = vunpack.c.l.s8.bf16 %v2766_v43  ;;  %v4544_v45 = vunpack.c.h.s8.bf16 %v2761_v58  ;;  %v2755_v31 = vld [vmem:[%s13677_s8 + $0x1780] sm:$0xff]  ;;  %v4555_v42 = vunpack.c.l.s8.bf16 %v2767_v25  ;;  %v2778_v43 = vld [vmem:[%s13677_s8 + $0x1838] sm:$0xff] }
 0x642   : > { %v12104_v50 = vpop.f32.mrf.mxu1  ;;  %12396 = vmatprep.subr.bf16.mxu1 %v4528_v46  ;;  %v15257_v11 = vadd.f32 %v12102_v41, %v8231_v10  ;;  %v1936_v46 = vpack.c.bf16 %v1217_v44, %v1217_v44  ;;  %v4560_v10 = vunpack.c.h.s8.bf16 %v2769_v59  ;;  %v4559_v60 = vunpack.c.l.s8.bf16 %v2769_v59  ;;  %v2786_v44 = vld [vmem:[%s13677_s8 + $0x1878] sm:$0xff] }
 0x643   : > { %v15305_v62 = vrot.slane %v323_v33, %v13706_v38 }
 0x644   : > { %12375 = vmatpush3.bf16.msra.mxu0 %v4504_v55  ;;  %v2757_v55 = vld [vmem:[%s13677_s8 + $0x1790] sm:$0xff] }
 0x645   : > { %12397 = vmatpush3.bf16.msra.mxu1 %v4520_v56  ;;  %12376 = vmatprep.subr.bf16.mxu0 %v4511_v51  ;;  %v2765_v56 = vld [vmem:[%s13677_s8 + $0x17d0] sm:$0xff]  ;;  %v4536_v15 = vunpack.c.h.s8.bf16 %v2757_v55  ;;  %v1234_v59 = vcombine.high %v15305_v62, %v15305_v62 }
 0x646   : > { %12398 = vmatprep.subr.bf16.mxu1 %v4527_v9 }
 0x648   : > { %12377 = vmatpush3.bf16.msra.mxu0 %v4503_v16  ;;  %v4552_v16 = vunpack.c.h.s8.bf16 %v2765_v56 }
 0x649   : > { %12399 = vmatpush3.bf16.msra.mxu1 %v4519_v17  ;;  %12378 = vmatprep.subr.bf16.mxu0 %v4510_v13 }
 0x64a   : > { %12400 = vmatprep.subr.bf16.mxu1 %v4526_v14  ;;  %v4543_v14 = vunpack.c.l.s8.bf16 %v2761_v58  ;;  %v2782_v58 = vld [vmem:[%s13677_s8 + $0x1858] sm:$0xff] }
 0x64c   : > { %12379 = vmatpush3.bf16.msra.mxu0 %v4502_v20  ;;  %v2760_v20 = vld [vmem:[%s13677_s8 + $0x17a8] sm:$0xff] }
 0x64d   : > { %12401 = vmatpush3.bf16.msra.mxu1 %v4518_v21  ;;  %12380 = vmatprep.subr.bf16.mxu0 %v4509_v22  ;;  %v2768_v21 = vld [vmem:[%s13677_s8 + $0x17e8] sm:$0xff]  ;;  %v4535_v22 = vunpack.c.l.s8.bf16 %v2757_v55 }
 0x64e   : > { %12402 = vmatprep.subr.bf16.mxu1 %v4525_v1  ;;  %v4542_v1 = vunpack.c.h.s8.bf16 %v2760_v20  ;;  %v4558_v2 = vunpack.c.h.s8.bf16 %v2768_v21 }
 0x650   : > { %12381 = vmatpush3.bf16.msra.mxu0 %v4501_v27  ;;  %v4534_v27 = vunpack.c.h.s8.bf16 %v2756_v18 }
 0x651   : > { %12403 = vmatpush3.bf16.msra.mxu1 %v4517_v28  ;;  %12382 = vmatprep.subr.bf16.mxu0 %v4508_v29  ;;  %v4550_v28 = vunpack.c.h.s8.bf16 %v2764_v26  ;;  %v4541_v29 = vunpack.c.l.s8.bf16 %v2760_v20 }
 0x652   : > { %12404 = vmatprep.subr.bf16.mxu1 %v4524_v23  ;;  %v4557_v23 = vunpack.c.l.s8.bf16 %v2768_v21 }
 0x654   : > { %12383 = vmatpush3.bf16.msra.mxu0 %v4500_v36  ;;  %v4533_v36 = vunpack.c.l.s8.bf16 %v2756_v18 }
 0x655   : > { %12405 = vmatpush3.bf16.msra.mxu1 %v4516_v37  ;;  %12384 = vmatprep.subr.bf16.mxu0 %v4507_v39  ;;  %v4549_v37 = vunpack.c.l.s8.bf16 %v2764_v26  ;;  %v4540_v39 = vunpack.c.h.s8.bf16 %v2759_v24 }
 0x656   : > { %12406 = vmatprep.subr.bf16.mxu1 %v4523_v30  ;;  %v4556_v30 = vunpack.c.h.s8.bf16 %v2767_v25  ;;  %v2772_v25 = vld [vmem:[%s13677_s8 + $0x1808] sm:$0xff] }
 0x658   : > { %12385 = vmatpush3.bf16.msra.mxu0 %v4499_v49  ;;  %v1219_v49 = vcombine.high %v323_v33, %v323_v33  ;;  %v2780_v33 = vld [vmem:[%s13677_s8 + $0x1848] sm:$0xff] }
 0x659   : > { %12407 = vmatpush3.bf16.msra.mxu1 %v4515_v52  ;;  %12414 = vmatprep.subr.bf16.mxu0 %v4546_v53  ;;  %v4532_v52 = vunpack.c.h.s8.bf16 %v2755_v31  ;;  %v4548_v53 = vunpack.c.h.s8.bf16 %v2763_v32 }
 0x65a   : > { %12436 = vmatprep.subr.bf16.mxu1 %v4562_v54  ;;  %v4539_v54 = vunpack.c.l.s8.bf16 %v2759_v24 }
 0x65b   : > { %v12122_v7 = vpop.f32.mrf.mxu0  ;;  %8789 = vmatmul.mubr.bf16.vlgmr.msra.gmra.mxu0 %v1931_v63  ;;  %v15308_v63 = vrot.slane %v1219_v49, %v13706_v38  ;;  %v324_v49 = vld [vmem:[%s13670_s10 + $0x188] sm:$0xff] }
 0x65c   : > { %v12144_v8 = vpop.f32.mrf.mxu1  ;;  %8829 = vmatmul.mubr.bf16.vlgmr.msra.gmra.mxu1 %v1933_v0  ;;  %12415 = vmatpush3.bf16.msra.mxu0 %v4538_v3  ;;  %v4531_v0 = vunpack.c.l.s8.bf16 %v2755_v31  ;;  %v4547_v3 = vunpack.c.l.s8.bf16 %v2763_v32  ;;  %v2775_v31 = vld [vmem:[%s13677_s8 + $0x1820] sm:$0xff] }
 0x65d   : > { %12437 = vmatpush3.bf16.msra.mxu1 %v4554_v4  ;;  %v12123_v41 = vpop.f32.mrf.mxu0  ;;  %12416 = vmatprep.subr.bf16.mxu0 %v4545_v40  ;;  %v4578_v4 = vunpack.c.h.s8.bf16 %v2778_v43  ;;  %v4594_v40 = vunpack.c.h.s8.bf16 %v2786_v44  ;;  %v2783_v32 = vld [vmem:[%s13677_s8 + $0x1860] sm:$0xff] }
 0x65e   : > { %v12145_v5 = vpop.f32.mrf.mxu1  ;;  %12438 = vmatprep.subr.bf16.mxu1 %v4561_v57  ;;  %v12124_v12 = vadd.f32 %v12123_v41, %v12122_v7  ;;  %8868 = vmatprep.mubr.bf16.mxu0 %v1936_v46  ;;  %v2774_v57 = vld [vmem:[%s13677_s8 + $0x1818] sm:$0xff]  ;;  %v1235_v46 = vcombine.high %v15308_v63, %v15308_v63  ;;  %v1937_v7 = vpack.c.bf16 %v15274_v48, %v15274_v48  ;;  %v4593_v41 = vunpack.c.l.s8.bf16 %v2786_v44  ;;  %v2779_v44 = vld [vmem:[%s13677_s8 + $0x1840] sm:$0xff] }
 0x65f   : > { %v12146_v50 = vadd.f32 %v12145_v5, %v12144_v8  ;;  %8908 = vmatprep.mubr.bf16.mxu1 %v1938_v6  ;;  %v12125_v51 = vpop.f32.mrf.mxu0  ;;  %v1935_v6 = vpack.c.bf16 %v15271_v47, %v15271_v47  ;;  %v4570_v8 = vunpack.c.h.s8.bf16 %v2774_v57  ;;  %v2777_v5 = vld [vmem:[%s13677_s8 + $0x1830] sm:$0xff]  ;;  %v4569_v47 = vunpack.c.l.s8.bf16 %v2774_v57 }
 0x660   : > { %v12147_v9 = vpop.f32.mrf.mxu1  ;;  %v8311_v61 = vadd.f32 %v12124_v12, %v15257_v11  ;;  %12417 = vmatpush3.bf16.msra.mxu0 %v4537_v34  ;;  %v4551_v11 = vunpack.c.l.s8.bf16 %v2765_v56  ;;  %v4586_v34 = vunpack.c.h.s8.bf16 %v2782_v58  ;;  %v1942_v55 = vpack.c.bf16 %v1235_v46, %v1235_v46 }
 0x661   : > { %12439 = vmatpush3.bf16.msra.mxu1 %v4553_v35  ;;  %v12126_v17 = vpop.f32.mrf.mxu0  ;;  %12418 = vmatprep.subr.bf16.mxu0 %v4544_v45  ;;  %v4577_v35 = vunpack.c.l.s8.bf16 %v2778_v43  ;;  %v2785_v45 = vld [vmem:[%s13677_s8 + $0x1870] sm:$0xff]  ;;  %v4585_v48 = vunpack.c.l.s8.bf16 %v2782_v58  ;;  %v4576_v9 = vunpack.c.h.s8.bf16 %v2777_v5  ;;  %v2771_v43 = vld [vmem:[%s13677_s8 + $0x1800] sm:$0xff]  ;;  %v4587_v57 = vunpack.c.l.s8.bf16 %v2783_v32  ;;  %v2794_v58 = vld [vmem:[%s13677_s8 + $0x18b8] sm:$0xff] }
 0x662   : > { %v12148_v13 = vpop.f32.mrf.mxu1  ;;  %12440 = vmatprep.subr.bf16.mxu1 %v4560_v10  ;;  %v15291_v19 = vadd.f32 %v12146_v50, %v8311_v61  ;;  %v1940_v10 = vpack.c.bf16 %v1234_v59, %v1234_v59  ;;  %v4592_v61 = vunpack.c.h.s8.bf16 %v2785_v45  ;;  %v4591_v18 = vunpack.c.l.s8.bf16 %v2785_v45  ;;  %v2802_v59 = vld [vmem:[%s13677_s8 + $0x18f8] sm:$0xff] }
 0x663   : > { %v15339_v46 = vrot.slane %v324_v49, %v13706_v38 }
 0x664   : > { %12419 = vmatpush3.bf16.msra.mxu0 %v4536_v15  ;;  %v2773_v15 = vld [vmem:[%s13677_s8 + $0x1810] sm:$0xff] }
 0x665   : > { %12441 = vmatpush3.bf16.msra.mxu1 %v4552_v16  ;;  %12420 = vmatprep.subr.bf16.mxu0 %v4543_v14  ;;  %v2781_v16 = vld [vmem:[%s13677_s8 + $0x1850] sm:$0xff]  ;;  %v4568_v21 = vunpack.c.h.s8.bf16 %v2773_v15  ;;  %v1251_v45 = vcombine.high %v15339_v46, %v15339_v46 }
 0x666   : > { %12442 = vmatprep.subr.bf16.mxu1 %v4559_v60 }
 0x668   : > { %12421 = vmatpush3.bf16.msra.mxu0 %v4535_v22  ;;  %v4584_v22 = vunpack.c.h.s8.bf16 %v2781_v16 }
 0x669   : > { %12443 = vmatpush3.bf16.msra.mxu1 %v4551_v11  ;;  %12422 = vmatprep.subr.bf16.mxu0 %v4542_v1 }
 0x66a   : > { %12444 = vmatprep.subr.bf16.mxu1 %v4558_v2  ;;  %v4575_v2 = vunpack.c.l.s8.bf16 %v2777_v5  ;;  %v2798_v5 = vld [vmem:[%s13677_s8 + $0x18d8] sm:$0xff] }
 0x66c   : > { %12423 = vmatpush3.bf16.msra.mxu0 %v4534_v27  ;;  %v2776_v27 = vld [vmem:[%s13677_s8 + $0x1828] sm:$0xff] }
 0x66d   : > { %12445 = vmatpush3.bf16.msra.mxu1 %v4550_v28  ;;  %12424 = vmatprep.subr.bf16.mxu0 %v4541_v29  ;;  %v2784_v28 = vld [vmem:[%s13677_s8 + $0x1868] sm:$0xff]  ;;  %v4567_v29 = vunpack.c.l.s8.bf16 %v2773_v15 }
 0x66e   : > { %12446 = vmatprep.subr.bf16.mxu1 %v4557_v23  ;;  %v4574_v23 = vunpack.c.h.s8.bf16 %v2776_v27  ;;  %v4590_v24 = vunpack.c.h.s8.bf16 %v2784_v28 }
 0x670   : > { %12425 = vmatpush3.bf16.msra.mxu0 %v4533_v36  ;;  %v4566_v36 = vunpack.c.h.s8.bf16 %v2772_v25 }
 0x671   : > { %12447 = vmatpush3.bf16.msra.mxu1 %v4549_v37  ;;  %12426 = vmatprep.subr.bf16.mxu0 %v4540_v39  ;;  %v4582_v37 = vunpack.c.h.s8.bf16 %v2780_v33  ;;  %v4573_v39 = vunpack.c.l.s8.bf16 %v2776_v27 }
 0x672   : > { %12448 = vmatprep.subr.bf16.mxu1 %v4556_v30  ;;  %v4589_v30 = vunpack.c.l.s8.bf16 %v2784_v28 }
 0x674   : > { %12427 = vmatpush3.bf16.msra.mxu0 %v4532_v52  ;;  %v4565_v52 = vunpack.c.l.s8.bf16 %v2772_v25 }
 0x675   : > { %12449 = vmatpush3.bf16.msra.mxu1 %v4548_v53  ;;  %12428 = vmatprep.subr.bf16.mxu0 %v4539_v54  ;;  %v4581_v53 = vunpack.c.l.s8.bf16 %v2780_v33  ;;  %v4572_v54 = vunpack.c.h.s8.bf16 %v2775_v31 }
 0x676   : > { %12450 = vmatprep.subr.bf16.mxu1 %v4555_v42  ;;  %v4588_v42 = vunpack.c.h.s8.bf16 %v2783_v32  ;;  %v2788_v32 = vld [vmem:[%s13677_s8 + $0x1888] sm:$0xff] }
 0x678   : > { %12429 = vmatpush3.bf16.msra.mxu0 %v4531_v0  ;;  %v1236_v0 = vcombine.high %v324_v49, %v324_v49  ;;  %v2796_v49 = vld [vmem:[%s13677_s8 + $0x18c8] sm:$0xff] }
 0x679   : > { %12451 = vmatpush3.bf16.msra.mxu1 %v4547_v3  ;;  %12458 = vmatprep.subr.bf16.mxu0 %v4578_v4  ;;  %v4564_v3 = vunpack.c.h.s8.bf16 %v2771_v43  ;;  %v4580_v4 = vunpack.c.h.s8.bf16 %v2779_v44 }
 0x67a   : > { %12480 = vmatprep.subr.bf16.mxu1 %v4594_v40  ;;  %v4571_v40 = vunpack.c.l.s8.bf16 %v2775_v31 }
 0x67b   : > { %v12166_v56 = vpop.f32.mrf.mxu0  ;;  %8869 = vmatmul.mubr.bf16.vlgmr.msra.gmra.mxu0 %v1935_v6  ;;  %v15342_v6 = vrot.slane %v1236_v0, %v13706_v38  ;;  %v325_v0 = vld [vmem:[%s13670_s10 + $0x190] sm:$0xff] }
 0x67c   : > { %v12188_v12 = vpop.f32.mrf.mxu1  ;;  %8909 = vmatmul.mubr.bf16.vlgmr.msra.gmra.mxu1 %v1937_v7  ;;  %12459 = vmatpush3.bf16.msra.mxu0 %v4570_v8  ;;  %v4563_v7 = vunpack.c.l.s8.bf16 %v2771_v43  ;;  %v4579_v8 = vunpack.c.l.s8.bf16 %v2779_v44  ;;  %v2791_v43 = vld [vmem:[%s13677_s8 + $0x18a0] sm:$0xff] }
 0x67d   : > { %12481 = vmatpush3.bf16.msra.mxu1 %v4586_v34  ;;  %v12167_v50 = vpop.f32.mrf.mxu0  ;;  %12460 = vmatprep.subr.bf16.mxu0 %v4577_v35  ;;  %v4610_v34 = vunpack.c.h.s8.bf16 %v2794_v58  ;;  %v4626_v35 = vunpack.c.h.s8.bf16 %v2802_v59  ;;  %v2799_v44 = vld [vmem:[%s13677_s8 + $0x18e0] sm:$0xff] }
 0x67e   : > { %v12189_v51 = vpop.f32.mrf.mxu1  ;;  %12482 = vmatprep.subr.bf16.mxu1 %v4593_v41  ;;  %v12168_v17 = vadd.f32 %v12167_v50, %v12166_v56  ;;  %8948 = vmatprep.mubr.bf16.mxu0 %v1940_v10  ;;  %v2790_v41 = vld [vmem:[%s13677_s8 + $0x1898] sm:$0xff]  ;;  %v1252_v10 = vcombine.high %v15342_v6, %v15342_v6  ;;  %v1941_v56 = vpack.c.bf16 %v15308_v63, %v15308_v63  ;;  %v4625_v50 = vunpack.c.l.s8.bf16 %v2802_v59  ;;  %v2795_v59 = vld [vmem:[%s13677_s8 + $0x18c0] sm:$0xff] }
 0x67f   : > { %v12190_v13 = vadd.f32 %v12189_v51, %v12188_v12  ;;  %8988 = vmatprep.mubr.bf16.mxu1 %v1942_v55  ;;  %v12169_v14 = vpop.f32.mrf.mxu0  ;;  %v1939_v55 = vpack.c.bf16 %v15305_v62, %v15305_v62  ;;  %v4602_v12 = vunpack.c.h.s8.bf16 %v2790_v41  ;;  %v2793_v51 = vld [vmem:[%s13677_s8 + $0x18b0] sm:$0xff]  ;;  %v4601_v62 = vunpack.c.l.s8.bf16 %v2790_v41 }
 0x680   : > { %v12191_v60 = vpop.f32.mrf.mxu1  ;;  %v8391_v20 = vadd.f32 %v12168_v17, %v15291_v19  ;;  %12461 = vmatpush3.bf16.msra.mxu0 %v4569_v47  ;;  %v4583_v19 = vunpack.c.l.s8.bf16 %v2781_v16  ;;  %v4618_v47 = vunpack.c.h.s8.bf16 %v2798_v5  ;;  %v1946_v15 = vpack.c.bf16 %v1252_v10, %v1252_v10 }
 0x681   : > { %12483 = vmatpush3.bf16.msra.mxu1 %v4585_v48  ;;  %v12170_v11 = vpop.f32.mrf.mxu0  ;;  %12462 = vmatprep.subr.bf16.mxu0 %v4576_v9  ;;  %v4609_v48 = vunpack.c.l.s8.bf16 %v2794_v58  ;;  %v2801_v9 = vld [vmem:[%s13677_s8 + $0x18f0] sm:$0xff]  ;;  %v4617_v63 = vunpack.c.l.s8.bf16 %v2798_v5  ;;  %v4608_v60 = vunpack.c.h.s8.bf16 %v2793_v51  ;;  %v2787_v58 = vld [vmem:[%s13677_s8 + $0x1880] sm:$0xff]  ;;  %v4619_v41 = vunpack.c.l.s8.bf16 %v2799_v44  ;;  %v2810_v5 = vld [vmem:[%s13677_s8 + $0x1938] sm:$0xff] }
 0x682   : > { %v12192_v1 = vpop.f32.mrf.mxu1  ;;  %12484 = vmatprep.subr.bf16.mxu1 %v4592_v61  ;;  %v15325_v26 = vadd.f32 %v12190_v13, %v8391_v20  ;;  %v1944_v61 = vpack.c.bf16 %v1251_v45, %v1251_v45  ;;  %v4624_v20 = vunpack.c.h.s8.bf16 %v2801_v9  ;;  %v4623_v25 = vunpack.c.l.s8.bf16 %v2801_v9  ;;  %v2818_v45 = vld [vmem:[%s13677_s8 + $0x1978] sm:$0xff] }
 0x683   : > { %v15373_v10 = vrot.slane %v325_v0, %v13706_v38 }
 0x684   : > { %12463 = vmatpush3.bf16.msra.mxu0 %v4568_v21  ;;  %v2789_v21 = vld [vmem:[%s13677_s8 + $0x1890] sm:$0xff] }
 0x685   : > { %12485 = vmatpush3.bf16.msra.mxu1 %v4584_v22  ;;  %12464 = vmatprep.subr.bf16.mxu0 %v4575_v2  ;;  %v2797_v22 = vld [vmem:[%s13677_s8 + $0x18d0] sm:$0xff]  ;;  %v4600_v28 = vunpack.c.h.s8.bf16 %v2789_v21  ;;  %v1268_v9 = vcombine.high %v15373_v10, %v15373_v10 }
 0x686   : > { %12486 = vmatprep.subr.bf16.mxu1 %v4591_v18 }
 0x688   : > { %12465 = vmatpush3.bf16.msra.mxu0 %v4567_v29  ;;  %v4616_v29 = vunpack.c.h.s8.bf16 %v2797_v22 }
 0x689   : > { %12487 = vmatpush3.bf16.msra.mxu1 %v4583_v19  ;;  %12466 = vmatprep.subr.bf16.mxu0 %v4574_v23 }
 0x68a   : > { %12488 = vmatprep.subr.bf16.mxu1 %v4590_v24  ;;  %v4607_v24 = vunpack.c.l.s8.bf16 %v2793_v51  ;;  %v2814_v51 = vld [vmem:[%s13677_s8 + $0x1958] sm:$0xff] }
 0x68c   : > { %12467 = vmatpush3.bf16.msra.mxu0 %v4566_v36  ;;  %v2792_v36 = vld [vmem:[%s13677_s8 + $0x18a8] sm:$0xff] }
 0x68d   : > { %12489 = vmatpush3.bf16.msra.mxu1 %v4582_v37  ;;  %12468 = vmatprep.subr.bf16.mxu0 %v4573_v39  ;;  %v2800_v37 = vld [vmem:[%s13677_s8 + $0x18e8] sm:$0xff]  ;;  %v4599_v39 = vunpack.c.l.s8.bf16 %v2789_v21 }
 0x68e   : > { %12490 = vmatprep.subr.bf16.mxu1 %v4589_v30  ;;  %v4606_v30 = vunpack.c.h.s8.bf16 %v2792_v36  ;;  %v4622_v31 = vunpack.c.h.s8.bf16 %v2800_v37 }
 0x690   : > { %12469 = vmatpush3.bf16.msra.mxu0 %v4565_v52  ;;  %v4598_v52 = vunpack.c.h.s8.bf16 %v2788_v32 }
 0x691   : > { %12491 = vmatpush3.bf16.msra.mxu1 %v4581_v53  ;;  %12470 = vmatprep.subr.bf16.mxu0 %v4572_v54  ;;  %v4614_v53 = vunpack.c.h.s8.bf16 %v2796_v49  ;;  %v4605_v54 = vunpack.c.l.s8.bf16 %v2792_v36 }
 0x692   : > { %12492 = vmatprep.subr.bf16.mxu1 %v4588_v42  ;;  %v4621_v42 = vunpack.c.l.s8.bf16 %v2800_v37 }
 0x694   : > { %12471 = vmatpush3.bf16.msra.mxu0 %v4564_v3  ;;  %v4597_v3 = vunpack.c.l.s8.bf16 %v2788_v32 }
 0x695   : > { %12493 = vmatpush3.bf16.msra.mxu1 %v4580_v4  ;;  %12472 = vmatprep.subr.bf16.mxu0 %v4571_v40  ;;  %v4613_v4 = vunpack.c.l.s8.bf16 %v2796_v49  ;;  %v4604_v40 = vunpack.c.h.s8.bf16 %v2791_v43 }
 0x696   : > { %12494 = vmatprep.subr.bf16.mxu1 %v4587_v57  ;;  %v4620_v57 = vunpack.c.h.s8.bf16 %v2799_v44  ;;  %v2804_v44 = vld [vmem:[%s13677_s8 + $0x1908] sm:$0xff] }
 0x698   : > { %12473 = vmatpush3.bf16.msra.mxu0 %v4563_v7  ;;  %v1253_v7 = vcombine.high %v325_v0, %v325_v0  ;;  %v2812_v0 = vld [vmem:[%s13677_s8 + $0x1948] sm:$0xff] }
 0x699   : > { %12495 = vmatpush3.bf16.msra.mxu1 %v4579_v8  ;;  %12502 = vmatprep.subr.bf16.mxu0 %v4610_v34  ;;  %v4596_v8 = vunpack.c.h.s8.bf16 %v2787_v58  ;;  %v4612_v34 = vunpack.c.h.s8.bf16 %v2795_v59 }
 0x69a   : > { %12524 = vmatprep.subr.bf16.mxu1 %v4626_v35  ;;  %v4603_v35 = vunpack.c.l.s8.bf16 %v2791_v43 }
 0x69b   : > { %v12210_v16 = vpop.f32.mrf.mxu0  ;;  %8949 = vmatmul.mubr.bf16.vlgmr.msra.gmra.mxu0 %v1939_v55  ;;  %v15376_v55 = vrot.slane %v1253_v7, %v13706_v38  ;;  %v326_v7 = vld [vmem:[%s13670_s10 + $0x198] sm:$0xff] }
 0x69c   : > { %v12232_v17 = vpop.f32.mrf.mxu1  ;;  %8989 = vmatmul.mubr.bf16.vlgmr.msra.gmra.mxu1 %v1941_v56  ;;  %12503 = vmatpush3.bf16.msra.mxu0 %v4602_v12  ;;  %v4595_v56 = vunpack.c.l.s8.bf16 %v2787_v58  ;;  %v4611_v12 = vunpack.c.l.s8.bf16 %v2795_v59  ;;  %v2807_v58 = vld [vmem:[%s13677_s8 + $0x1920] sm:$0xff] }
 0x69d   : > { %12525 = vmatpush3.bf16.msra.mxu1 %v4618_v47  ;;  %v12211_v13 = vpop.f32.mrf.mxu0  ;;  %12504 = vmatprep.subr.bf16.mxu0 %v4609_v48  ;;  %v4642_v47 = vunpack.c.h.s8.bf16 %v2810_v5  ;;  %v4658_v48 = vunpack.c.h.s8.bf16 %v2818_v45  ;;  %v2815_v59 = vld [vmem:[%s13677_s8 + $0x1960] sm:$0xff] }
 0x69e   : > { %v12233_v14 = vpop.f32.mrf.mxu1  ;;  %12526 = vmatprep.subr.bf16.mxu1 %v4625_v50  ;;  %v12212_v11 = vadd.f32 %v12211_v13, %v12210_v16  ;;  %9028 = vmatprep.mubr.bf16.mxu0 %v1944_v61  ;;  %v2806_v50 = vld [vmem:[%s13677_s8 + $0x1918] sm:$0xff]  ;;  %v1269_v61 = vcombine.high %v15376_v55, %v15376_v55  ;;  %v1945_v16 = vpack.c.bf16 %v15342_v6, %v15342_v6  ;;  %v4657_v13 = vunpack.c.l.s8.bf16 %v2818_v45  ;;  %v2811_v45 = vld [vmem:[%s13677_s8 + $0x1940] sm:$0xff] }
 0x69f   : > { %v12234_v1 = vadd.f32 %v12233_v14, %v12232_v17  ;;  %9068 = vmatprep.mubr.bf16.mxu1 %v1946_v15  ;;  %v12213_v2 = vpop.f32.mrf.mxu0  ;;  %v1943_v15 = vpack.c.bf16 %v15339_v46, %v15339_v46  ;;  %v4634_v17 = vunpack.c.h.s8.bf16 %v2806_v50  ;;  %v2809_v14 = vld [vmem:[%s13677_s8 + $0x1930] sm:$0xff]  ;;  %v4633_v46 = vunpack.c.l.s8.bf16 %v2806_v50 }
 0x6a0   : > { %v12235_v18 = vpop.f32.mrf.mxu1  ;;  %v8471_v27 = vadd.f32 %v12212_v11, %v15325_v26  ;;  %12505 = vmatpush3.bf16.msra.mxu0 %v4601_v62  ;;  %v4615_v26 = vunpack.c.l.s8.bf16 %v2797_v22  ;;  %v4650_v62 = vunpack.c.h.s8.bf16 %v2814_v51  ;;  %v1950_v21 = vpack.c.bf16 %v1269_v61, %v1269_v61 }
 0x6a1   : > { %12527 = vmatpush3.bf16.msra.mxu1 %v4617_v63  ;;  %v12214_v19 = vpop.f32.mrf.mxu0  ;;  %12506 = vmatprep.subr.bf16.mxu0 %v4608_v60  ;;  %v4641_v63 = vunpack.c.l.s8.bf16 %v2810_v5  ;;  %v2817_v60 = vld [vmem:[%s13677_s8 + $0x1970] sm:$0xff]  ;;  %v4649_v6 = vunpack.c.l.s8.bf16 %v2814_v51  ;;  %v4640_v18 = vunpack.c.h.s8.bf16 %v2809_v14  ;;  %v2803_v5 = vld [vmem:[%s13677_s8 + $0x1900] sm:$0xff]  ;;  %v4651_v50 = vunpack.c.l.s8.bf16 %v2815_v59  ;;  %v2826_v51 = vld [vmem:[%s13677_s8 + $0x19b8] sm:$0xff] }
 0x6a2   : > { %v12236_v23 = vpop.f32.mrf.mxu1  ;;  %12528 = vmatprep.subr.bf16.mxu1 %v4624_v20  ;;  %v15359_v33 = vadd.f32 %v12234_v1, %v8471_v27  ;;  %v1948_v20 = vpack.c.bf16 %v1268_v9, %v1268_v9  ;;  %v4656_v27 = vunpack.c.h.s8.bf16 %v2817_v60  ;;  %v4655_v32 = vunpack.c.l.s8.bf16 %v2817_v60  ;;  %v2834_v9 = vld [vmem:[%s13677_s8 + $0x19f8] sm:$0xff] }
 0x6a3   : > { %v15407_v61 = vrot.slane %v326_v7, %v13706_v38 }
 0x6a4   : > { %12507 = vmatpush3.bf16.msra.mxu0 %v4600_v28  ;;  %v2805_v28 = vld [vmem:[%s13677_s8 + $0x1910] sm:$0xff] }
 0x6a5   : > { %12529 = vmatpush3.bf16.msra.mxu1 %v4616_v29  ;;  %12508 = vmatprep.subr.bf16.mxu0 %v4607_v24  ;;  %v2813_v29 = vld [vmem:[%s13677_s8 + $0x1950] sm:$0xff]  ;;  %v4632_v37 = vunpack.c.h.s8.bf16 %v2805_v28  ;;  %v1285_v60 = vcombine.high %v15407_v61, %v15407_v61 }
 0x6a6   : > { %12530 = vmatprep.subr.bf16.mxu1 %v4623_v25 }
 0x6a8   : > { %12509 = vmatpush3.bf16.msra.mxu0 %v4599_v39  ;;  %v4648_v39 = vunpack.c.h.s8.bf16 %v2813_v29 }
 0x6a9   : > { %12531 = vmatpush3.bf16.msra.mxu1 %v4615_v26  ;;  %12510 = vmatprep.subr.bf16.mxu0 %v4606_v30 }
 0x6aa   : > { %12532 = vmatprep.subr.bf16.mxu1 %v4622_v31  ;;  %v4639_v31 = vunpack.c.l.s8.bf16 %v2809_v14  ;;  %v2830_v14 = vld [vmem:[%s13677_s8 + $0x19d8] sm:$0xff] }
 0x6ac   : > { %12511 = vmatpush3.bf16.msra.mxu0 %v4598_v52  ;;  %v2808_v52 = vld [vmem:[%s13677_s8 + $0x1928] sm:$0xff] }
 0x6ad   : > { %12533 = vmatpush3.bf16.msra.mxu1 %v4614_v53  ;;  %12512 = vmatprep.subr.bf16.mxu0 %v4605_v54  ;;  %v2816_v53 = vld [vmem:[%s13677_s8 + $0x1968] sm:$0xff]  ;;  %v4631_v54 = vunpack.c.l.s8.bf16 %v2805_v28 }
 0x6ae   : > { %12534 = vmatprep.subr.bf16.mxu1 %v4621_v42  ;;  %v4638_v42 = vunpack.c.h.s8.bf16 %v2808_v52  ;;  %v4654_v43 = vunpack.c.h.s8.bf16 %v2816_v53 }
 0x6b0   : > { %12513 = vmatpush3.bf16.msra.mxu0 %v4597_v3  ;;  %v4630_v3 = vunpack.c.h.s8.bf16 %v2804_v44 }
 0x6b1   : > { %12535 = vmatpush3.bf16.msra.mxu1 %v4613_v4  ;;  %12514 = vmatprep.subr.bf16.mxu0 %v4604_v40  ;;  %v4646_v4 = vunpack.c.h.s8.bf16 %v2812_v0  ;;  %v4637_v40 = vunpack.c.l.s8.bf16 %v2808_v52 }
 0x6b2   : > { %12536 = vmatprep.subr.bf16.mxu1 %v4620_v57  ;;  %v4653_v57 = vunpack.c.l.s8.bf16 %v2816_v53 }
 0x6b4   : > { %12515 = vmatpush3.bf16.msra.mxu0 %v4596_v8  ;;  %v4629_v8 = vunpack.c.l.s8.bf16 %v2804_v44 }
 0x6b5   : > { %12537 = vmatpush3.bf16.msra.mxu1 %v4612_v34  ;;  %12516 = vmatprep.subr.bf16.mxu0 %v4603_v35  ;;  %v4645_v34 = vunpack.c.l.s8.bf16 %v2812_v0  ;;  %v4636_v35 = vunpack.c.h.s8.bf16 %v2807_v58 }
 0x6b6   : > { %12538 = vmatprep.subr.bf16.mxu1 %v4619_v41  ;;  %v4652_v41 = vunpack.c.h.s8.bf16 %v2815_v59  ;;  %v2820_v59 = vld [vmem:[%s13677_s8 + $0x1988] sm:$0xff] }
 0x6b8   : > { %12517 = vmatpush3.bf16.msra.mxu0 %v4595_v56  ;;  %v1270_v56 = vcombine.high %v326_v7, %v326_v7  ;;  %v2828_v7 = vld [vmem:[%s13677_s8 + $0x19c8] sm:$0xff] }
 0x6b9   : > { %12539 = vmatpush3.bf16.msra.mxu1 %v4611_v12  ;;  %12546 = vmatprep.subr.bf16.mxu0 %v4642_v47  ;;  %v4628_v12 = vunpack.c.h.s8.bf16 %v2803_v5  ;;  %v4644_v47 = vunpack.c.h.s8.bf16 %v2811_v45 }
 0x6ba   : > { %12568 = vmatprep.subr.bf16.mxu1 %v4658_v48  ;;  %v4635_v48 = vunpack.c.l.s8.bf16 %v2807_v58 }
 0x6bb   : > { %v12254_v22 = vpop.f32.mrf.mxu0  ;;  %9029 = vmatmul.mubr.bf16.vlgmr.msra.gmra.mxu0 %v1943_v15  ;;  %v15410_v15 = vrot.slane %v1270_v56, %v13706_v38  ;;  %v327_v56 = vld [vmem:[%s13670_s10 + $0x1a0] sm:$0xff] }
 0x6bc   : > { %v12276_v11 = vpop.f32.mrf.mxu1  ;;  %9069 = vmatmul.mubr.bf16.vlgmr.msra.gmra.mxu1 %v1945_v16  ;;  %12547 = vmatpush3.bf16.msra.mxu0 %v4634_v17  ;;  %v4627_v16 = vunpack.c.l.s8.bf16 %v2803_v5  ;;  %v4643_v17 = vunpack.c.l.s8.bf16 %v2811_v45  ;;  %v2823_v5 = vld [vmem:[%s13677_s8 + $0x19a0] sm:$0xff] }
 0x6bd   : > { %12569 = vmatpush3.bf16.msra.mxu1 %v4650_v62  ;;  %v12255_v1 = vpop.f32.mrf.mxu0  ;;  %12548 = vmatprep.subr.bf16.mxu0 %v4641_v63  ;;  %v4674_v62 = vunpack.c.h.s8.bf16 %v2826_v51  ;;  %v4690_v63 = vunpack.c.h.s8.bf16 %v2834_v9  ;;  %v2831_v45 = vld [vmem:[%s13677_s8 + $0x19e0] sm:$0xff] }
 0x6be   : > { %v12277_v2 = vpop.f32.mrf.mxu1  ;;  %12570 = vmatprep.subr.bf16.mxu1 %v4657_v13  ;;  %v12256_v19 = vadd.f32 %v12255_v1, %v12254_v22  ;;  %9108 = vmatprep.mubr.bf16.mxu0 %v1948_v20  ;;  %v2822_v13 = vld [vmem:[%s13677_s8 + $0x1998] sm:$0xff]  ;;  %v1286_v20 = vcombine.high %v15410_v15, %v15410_v15  ;;  %v1949_v22 = vpack.c.bf16 %v15376_v55, %v15376_v55  ;;  %v4689_v1 = vunpack.c.l.s8.bf16 %v2834_v9  ;;  %v2827_v9 = vld [vmem:[%s13677_s8 + $0x19c0] sm:$0xff] }
 0x6bf   : > { %v12278_v23 = vadd.f32 %v12277_v2, %v12276_v11  ;;  %9148 = vmatprep.mubr.bf16.mxu1 %v1950_v21  ;;  %v12257_v24 = vpop.f32.mrf.mxu0  ;;  %v1947_v21 = vpack.c.bf16 %v15373_v10, %v15373_v10  ;;  %v4666_v11 = vunpack.c.h.s8.bf16 %v2822_v13  ;;  %v2825_v2 = vld [vmem:[%s13677_s8 + $0x19b0] sm:$0xff]  ;;  %v4665_v10 = vunpack.c.l.s8.bf16 %v2822_v13 }
 0x6c0   : > { %v12279_v25 = vpop.f32.mrf.mxu1  ;;  %v8551_v36 = vadd.f32 %v12256_v19, %v15359_v33  ;;  %12549 = vmatpush3.bf16.msra.mxu0 %v4633_v46  ;;  %v4647_v33 = vunpack.c.l.s8.bf16 %v2813_v29  ;;  %v4682_v46 = vunpack.c.h.s8.bf16 %v2830_v14  ;;  %v1954_v28 = vpack.c.bf16 %v1286_v20, %v1286_v20 }
 0x6c1   : > { %12571 = vmatpush3.bf16.msra.mxu1 %v4649_v6  ;;  %v12258_v26 = vpop.f32.mrf.mxu0  ;;  %12550 = vmatprep.subr.bf16.mxu0 %v4640_v18  ;;  %v4673_v6 = vunpack.c.l.s8.bf16 %v2826_v51  ;;  %v2833_v18 = vld [vmem:[%s13677_s8 + $0x19f0] sm:$0xff]  ;;  %v4681_v55 = vunpack.c.l.s8.bf16 %v2830_v14  ;;  %v4672_v25 = vunpack.c.h.s8.bf16 %v2825_v2  ;;  %v2819_v51 = vld [vmem:[%s13677_s8 + $0x1980] sm:$0xff]  ;;  %v4683_v13 = vunpack.c.l.s8.bf16 %v2831_v45  ;;  %v2842_v14 = vld [vmem:[%s13677_s8 + $0x1a38] sm:$0xff] }
 0x6c2   : > { %v12280_v30 = vpop.f32.mrf.mxu1  ;;  %12572 = vmatprep.subr.bf16.mxu1 %v4656_v27  ;;  %v15393_v49 = vadd.f32 %v12278_v23, %v8551_v36  ;;  %v1952_v27 = vpack.c.bf16 %v1285_v60, %v1285_v60  ;;  %v4688_v36 = vunpack.c.h.s8.bf16 %v2833_v18  ;;  %v4687_v44 = vunpack.c.l.s8.bf16 %v2833_v18  ;;  %v2850_v60 = vld [vmem:[%s13677_s8 + $0x1a78] sm:$0xff] }
 0x6c3   : > { %v15441_v20 = vrot.slane %v327_v56, %v13706_v38 }
 0x6c4   : > { %12551 = vmatpush3.bf16.msra.mxu0 %v4632_v37  ;;  %v2821_v37 = vld [vmem:[%s13677_s8 + $0x1990] sm:$0xff] }
 0x6c5   : > { %12573 = vmatpush3.bf16.msra.mxu1 %v4648_v39  ;;  %12552 = vmatprep.subr.bf16.mxu0 %v4639_v31  ;;  %v2829_v39 = vld [vmem:[%s13677_s8 + $0x19d0] sm:$0xff]  ;;  %v4664_v53 = vunpack.c.h.s8.bf16 %v2821_v37  ;;  %v1302_v18 = vcombine.high %v15441_v20, %v15441_v20 }
 0x6c6   : > { %12574 = vmatprep.subr.bf16.mxu1 %v4655_v32 }
 0x6c8   : > { %12553 = vmatpush3.bf16.msra.mxu0 %v4631_v54  ;;  %v4680_v54 = vunpack.c.h.s8.bf16 %v2829_v39 }
 0x6c9   : > { %12575 = vmatpush3.bf16.msra.mxu1 %v4647_v33  ;;  %12554 = vmatprep.subr.bf16.mxu0 %v4638_v42 }
 0x6ca   : > { %12576 = vmatprep.subr.bf16.mxu1 %v4654_v43  ;;  %v4671_v43 = vunpack.c.l.s8.bf16 %v2825_v2  ;;  %v2846_v2 = vld [vmem:[%s13677_s8 + $0x1a58] sm:$0xff] }
 0x6cc   : > { %12555 = vmatpush3.bf16.msra.mxu0 %v4630_v3  ;;  %v2824_v3 = vld [vmem:[%s13677_s8 + $0x19a8] sm:$0xff] }
 0x6cd   : > { %12577 = vmatpush3.bf16.msra.mxu1 %v4646_v4  ;;  %12556 = vmatprep.subr.bf16.mxu0 %v4637_v40  ;;  %v2832_v4 = vld [vmem:[%s13677_s8 + $0x19e8] sm:$0xff]  ;;  %v4663_v40 = vunpack.c.l.s8.bf16 %v2821_v37 }
 0x6ce   : > { %12578 = vmatprep.subr.bf16.mxu1 %v4653_v57  ;;  %v4670_v57 = vunpack.c.h.s8.bf16 %v2824_v3  ;;  %v4686_v58 = vunpack.c.h.s8.bf16 %v2832_v4 }
 0x6d0   : > { %12557 = vmatpush3.bf16.msra.mxu0 %v4629_v8  ;;  %v4662_v8 = vunpack.c.h.s8.bf16 %v2820_v59 }
 0x6d1   : > { %12579 = vmatpush3.bf16.msra.mxu1 %v4645_v34  ;;  %12558 = vmatprep.subr.bf16.mxu0 %v4636_v35  ;;  %v4678_v34 = vunpack.c.h.s8.bf16 %v2828_v7  ;;  %v4669_v35 = vunpack.c.l.s8.bf16 %v2824_v3 }
 0x6d2   : > { %12580 = vmatprep.subr.bf16.mxu1 %v4652_v41  ;;  %v4685_v41 = vunpack.c.l.s8.bf16 %v2832_v4 }
 0x6d4   : > { %12559 = vmatpush3.bf16.msra.mxu0 %v4628_v12  ;;  %v4661_v12 = vunpack.c.l.s8.bf16 %v2820_v59 }
 0x6d5   : > { %12581 = vmatpush3.bf16.msra.mxu1 %v4644_v47  ;;  %12560 = vmatprep.subr.bf16.mxu0 %v4635_v48  ;;  %v4677_v47 = vunpack.c.l.s8.bf16 %v2828_v7  ;;  %v4668_v48 = vunpack.c.h.s8.bf16 %v2823_v5 }
 0x6d6   : > { %12582 = vmatprep.subr.bf16.mxu1 %v4651_v50  ;;  %v4684_v50 = vunpack.c.h.s8.bf16 %v2831_v45  ;;  %v2836_v45 = vld [vmem:[%s13677_s8 + $0x1a08] sm:$0xff] }
 0x6d8   : > { %12561 = vmatpush3.bf16.msra.mxu0 %v4627_v16  ;;  %v1287_v16 = vcombine.high %v327_v56, %v327_v56  ;;  %v2844_v56 = vld [vmem:[%s13677_s8 + $0x1a48] sm:$0xff] }
 0x6d9   : > { %12583 = vmatpush3.bf16.msra.mxu1 %v4643_v17  ;;  %12590 = vmatprep.subr.bf16.mxu0 %v4674_v62  ;;  %v4660_v17 = vunpack.c.h.s8.bf16 %v2819_v51  ;;  %v4676_v62 = vunpack.c.h.s8.bf16 %v2827_v9 }
 0x6da   : > { %12612 = vmatprep.subr.bf16.mxu1 %v4690_v63  ;;  %v4667_v63 = vunpack.c.l.s8.bf16 %v2823_v5 }
 0x6db   : > { %v12298_v29 = vpop.f32.mrf.mxu0  ;;  %9109 = vmatmul.mubr.bf16.vlgmr.msra.gmra.mxu0 %v1947_v21  ;;  %v15444_v21 = vrot.slane %v1287_v16, %v13706_v38  ;;  %v328_v16 = vld [vmem:[%s13670_s10 + $0x1a8] sm:$0xff] }
 0x6dc   : > { %v12320_v19 = vpop.f32.mrf.mxu1  ;;  %9149 = vmatmul.mubr.bf16.vlgmr.msra.gmra.mxu1 %v1949_v22  ;;  %12591 = vmatpush3.bf16.msra.mxu0 %v4666_v11  ;;  %v4659_v22 = vunpack.c.l.s8.bf16 %v2819_v51  ;;  %v4675_v11 = vunpack.c.l.s8.bf16 %v2827_v9  ;;  %v2839_v51 = vld [vmem:[%s13677_s8 + $0x1a20] sm:$0xff] }
 0x6dd   : > { %12613 = vmatpush3.bf16.msra.mxu1 %v4682_v46  ;;  %v12299_v23 = vpop.f32.mrf.mxu0  ;;  %12592 = vmatprep.subr.bf16.mxu0 %v4673_v6  ;;  %v4706_v46 = vunpack.c.h.s8.bf16 %v2842_v14  ;;  %v4722_v6 = vunpack.c.h.s8.bf16 %v2850_v60  ;;  %v2847_v9 = vld [vmem:[%s13677_s8 + $0x1a60] sm:$0xff] }
 0x6de   : > { %v12321_v24 = vpop.f32.mrf.mxu1  ;;  %12614 = vmatprep.subr.bf16.mxu1 %v4689_v1  ;;  %v12300_v26 = vadd.f32 %v12299_v23, %v12298_v29  ;;  %9188 = vmatprep.mubr.bf16.mxu0 %v1952_v27  ;;  %v2838_v1 = vld [vmem:[%s13677_s8 + $0x1a18] sm:$0xff]  ;;  %v1303_v27 = vcombine.high %v15444_v21, %v15444_v21  ;;  %v1953_v29 = vpack.c.bf16 %v15410_v15, %v15410_v15  ;;  %v4721_v23 = vunpack.c.l.s8.bf16 %v2850_v60  ;;  %v2843_v60 = vld [vmem:[%s13677_s8 + $0x1a40] sm:$0xff] }
 0x6df   : > { %v12322_v30 = vadd.f32 %v12321_v24, %v12320_v19  ;;  %9228 = vmatprep.mubr.bf16.mxu1 %v1954_v28  ;;  %v12301_v31 = vpop.f32.mrf.mxu0  ;;  %v1951_v28 = vpack.c.bf16 %v15407_v61, %v15407_v61  ;;  %v4698_v19 = vunpack.c.h.s8.bf16 %v2838_v1  ;;  %v2841_v24 = vld [vmem:[%s13677_s8 + $0x1a30] sm:$0xff]  ;;  %v4697_v61 = vunpack.c.l.s8.bf16 %v2838_v1 }
 0x6e0   : > { %v12323_v32 = vpop.f32.mrf.mxu1  ;;  %v8631_v52 = vadd.f32 %v12300_v26, %v15393_v49  ;;  %12593 = vmatpush3.bf16.msra.mxu0 %v4665_v10  ;;  %v4679_v49 = vunpack.c.l.s8.bf16 %v2829_v39  ;;  %v4714_v10 = vunpack.c.h.s8.bf16 %v2846_v2  ;;  %v1958_v37 = vpack.c.bf16 %v1303_v27, %v1303_v27 }
 0x6e1   : > { %12615 = vmatpush3.bf16.msra.mxu1 %v4681_v55  ;;  %v12302_v33 = vpop.f32.mrf.mxu0  ;;  %12594 = vmatprep.subr.bf16.mxu0 %v4672_v25  ;;  %v4705_v55 = vunpack.c.l.s8.bf16 %v2842_v14  ;;  %v2849_v25 = vld [vmem:[%s13677_s8 + $0x1a70] sm:$0xff]  ;;  %v4713_v15 = vunpack.c.l.s8.bf16 %v2846_v2  ;;  %v4704_v32 = vunpack.c.h.s8.bf16 %v2841_v24  ;;  %v2835_v14 = vld [vmem:[%s13677_s8 + $0x1a00] sm:$0xff]  ;;  %v4715_v1 = vunpack.c.l.s8.bf16 %v2847_v9  ;;  %v2858_v2 = vld [vmem:[%s13677_s8 + $0x1ab8] sm:$0xff] }
 0x6e2   : > { %v12324_v42 = vpop.f32.mrf.mxu1  ;;  %12616 = vmatprep.subr.bf16.mxu1 %v4688_v36  ;;  %v15427_v0 = vadd.f32 %v12322_v30, %v8631_v52  ;;  %v1956_v36 = vpack.c.bf16 %v1302_v18, %v1302_v18  ;;  %v4720_v52 = vunpack.c.h.s8.bf16 %v2849_v25  ;;  %v4719_v59 = vunpack.c.l.s8.bf16 %v2849_v25  ;;  %v2866_v18 = vld [vmem:[%s13677_s8 + $0x1af8] sm:$0xff] }
 0x6e3   : > { %v15475_v27 = vrot.slane %v328_v16, %v13706_v38 }
 0x6e4   : > { %12595 = vmatpush3.bf16.msra.mxu0 %v4664_v53  ;;  %v2837_v53 = vld [vmem:[%s13677_s8 + $0x1a10] sm:$0xff] }
 0x6e5   : > { %12617 = vmatpush3.bf16.msra.mxu1 %v4680_v54  ;;  %12596 = vmatprep.subr.bf16.mxu0 %v4671_v43  ;;  %v2845_v54 = vld [vmem:[%s13677_s8 + $0x1a50] sm:$0xff]  ;;  %v4696_v4 = vunpack.c.h.s8.bf16 %v2837_v53  ;;  %v1319_v25 = vcombine.high %v15475_v27, %v15475_v27 }
 0x6e6   : > { %12618 = vmatprep.subr.bf16.mxu1 %v4687_v44 }
 0x6e8   : > { %12597 = vmatpush3.bf16.msra.mxu0 %v4663_v40  ;;  %v4712_v40 = vunpack.c.h.s8.bf16 %v2845_v54 }
 0x6e9   : > { %12619 = vmatpush3.bf16.msra.mxu1 %v4679_v49  ;;  %12598 = vmatprep.subr.bf16.mxu0 %v4670_v57 }
 0x6ea   : > { %12620 = vmatprep.subr.bf16.mxu1 %v4686_v58  ;;  %v4703_v58 = vunpack.c.l.s8.bf16 %v2841_v24  ;;  %v2862_v24 = vld [vmem:[%s13677_s8 + $0x1ad8] sm:$0xff] }
 0x6ec   : > { %12599 = vmatpush3.bf16.msra.mxu0 %v4662_v8  ;;  %v2840_v8 = vld [vmem:[%s13677_s8 + $0x1a28] sm:$0xff] }
 0x6ed   : > { %12621 = vmatpush3.bf16.msra.mxu1 %v4678_v34  ;;  %12600 = vmatprep.subr.bf16.mxu0 %v4669_v35  ;;  %v2848_v34 = vld [vmem:[%s13677_s8 + $0x1a68] sm:$0xff]  ;;  %v4695_v35 = vunpack.c.l.s8.bf16 %v2837_v53 }
 0x6ee   : > { %12622 = vmatprep.subr.bf16.mxu1 %v4685_v41  ;;  %v4702_v41 = vunpack.c.h.s8.bf16 %v2840_v8  ;;  %v4718_v5 = vunpack.c.h.s8.bf16 %v2848_v34 }
 0x6f0   : > { %12601 = vmatpush3.bf16.msra.mxu0 %v4661_v12  ;;  %v4694_v12 = vunpack.c.h.s8.bf16 %v2836_v45 }
 0x6f1   : > { %12623 = vmatpush3.bf16.msra.mxu1 %v4677_v47  ;;  %12602 = vmatprep.subr.bf16.mxu0 %v4668_v48  ;;  %v4710_v47 = vunpack.c.h.s8.bf16 %v2844_v56  ;;  %v4701_v48 = vunpack.c.l.s8.bf16 %v2840_v8 }
 0x6f2   : > { %12624 = vmatprep.subr.bf16.mxu1 %v4684_v50  ;;  %v4717_v50 = vunpack.c.l.s8.bf16 %v2848_v34 }
 0x6f4   : > { %12603 = vmatpush3.bf16.msra.mxu0 %v4660_v17  ;;  %v4693_v17 = vunpack.c.l.s8.bf16 %v2836_v45 }
 0x6f5   : > { %12625 = vmatpush3.bf16.msra.mxu1 %v4676_v62  ;;  %12604 = vmatprep.subr.bf16.mxu0 %v4667_v63  ;;  %v4709_v62 = vunpack.c.l.s8.bf16 %v2844_v56  ;;  %v4700_v63 = vunpack.c.h.s8.bf16 %v2839_v51 }
 0x6f6   : > { %12626 = vmatprep.subr.bf16.mxu1 %v4683_v13  ;;  %v4716_v13 = vunpack.c.h.s8.bf16 %v2847_v9  ;;  %v2852_v9 = vld [vmem:[%s13677_s8 + $0x1a88] sm:$0xff] }
 0x6f8   : > { %12605 = vmatpush3.bf16.msra.mxu0 %v4659_v22  ;;  %v1304_v22 = vcombine.high %v328_v16, %v328_v16  ;;  %v2860_v16 = vld [vmem:[%s13677_s8 + $0x1ac8] sm:$0xff] }
 0x6f9   : > { %12627 = vmatpush3.bf16.msra.mxu1 %v4675_v11  ;;  %12634 = vmatprep.subr.bf16.mxu0 %v4706_v46  ;;  %v4692_v11 = vunpack.c.h.s8.bf16 %v2835_v14  ;;  %v4708_v46 = vunpack.c.h.s8.bf16 %v2843_v60 }
 0x6fa   : > { %12656 = vmatprep.subr.bf16.mxu1 %v4722_v6  ;;  %v4699_v6 = vunpack.c.l.s8.bf16 %v2839_v51 }
 0x6fb   : > { %v12342_v39 = vpop.f32.mrf.mxu0  ;;  %9189 = vmatmul.mubr.bf16.vlgmr.msra.gmra.mxu0 %v1951_v28  ;;  %v15478_v28 = vrot.slane %v1304_v22, %v13706_v38  ;;  %v329_v22 = vld [vmem:[%s13670_s10 + $0x1b0] sm:$0xff] }
 0x6fc   : > { %v12364_v26 = vpop.f32.mrf.mxu1  ;;  %9229 = vmatmul.mubr.bf16.vlgmr.msra.gmra.mxu1 %v1953_v29  ;;  %12635 = vmatpush3.bf16.msra.mxu0 %v4698_v19  ;;  %v4691_v29 = vunpack.c.l.s8.bf16 %v2835_v14  ;;  %v4707_v19 = vunpack.c.l.s8.bf16 %v2843_v60  ;;  %v2855_v14 = vld [vmem:[%s13677_s8 + $0x1aa0] sm:$0xff] }
 0x6fd   : > { %12657 = vmatpush3.bf16.msra.mxu1 %v4714_v10  ;;  %v12343_v30 = vpop.f32.mrf.mxu0  ;;  %12636 = vmatprep.subr.bf16.mxu0 %v4705_v55  ;;  %v4738_v10 = vunpack.c.h.s8.bf16 %v2858_v2  ;;  %v4754_v55 = vunpack.c.h.s8.bf16 %v2866_v18  ;;  %v2863_v60 = vld [vmem:[%s13677_s8 + $0x1ae0] sm:$0xff] }
 0x6fe   : > { %v12365_v31 = vpop.f32.mrf.mxu1  ;;  %12658 = vmatprep.subr.bf16.mxu1 %v4721_v23  ;;  %v12344_v33 = vadd.f32 %v12343_v30, %v12342_v39  ;;  %9268 = vmatprep.mubr.bf16.mxu0 %v1956_v36  ;;  %v2854_v23 = vld [vmem:[%s13677_s8 + $0x1a98] sm:$0xff]  ;;  %v1320_v36 = vcombine.high %v15478_v28, %v15478_v28  ;;  %v1957_v39 = vpack.c.bf16 %v15444_v21, %v15444_v21  ;;  %v4753_v30 = vunpack.c.l.s8.bf16 %v2866_v18  ;;  %v2859_v18 = vld [vmem:[%s13677_s8 + $0x1ac0] sm:$0xff] }
 0x6ff   : > { %v12366_v42 = vadd.f32 %v12365_v31, %v12364_v26  ;;  %9308 = vmatprep.mubr.bf16.mxu1 %v1958_v37  ;;  %v12345_v43 = vpop.f32.mrf.mxu0  ;;  %v1955_v37 = vpack.c.bf16 %v15441_v20, %v15441_v20  ;;  %v4730_v26 = vunpack.c.h.s8.bf16 %v2854_v23  ;;  %v2857_v31 = vld [vmem:[%s13677_s8 + $0x1ab0] sm:$0xff]  ;;  %v4729_v20 = vunpack.c.l.s8.bf16 %v2854_v23 }
 0x700   : > { %v12367_v44 = vpop.f32.mrf.mxu1  ;;  %v8711_v3 = vadd.f32 %v12344_v33, %v15427_v0  ;;  %12637 = vmatpush3.bf16.msra.mxu0 %v4697_v61  ;;  %v4711_v0 = vunpack.c.l.s8.bf16 %v2845_v54  ;;  %v4746_v61 = vunpack.c.h.s8.bf16 %v2862_v24  ;;  %v1962_v53 = vpack.c.bf16 %v1320_v36, %v1320_v36 }
 0x701   : > { %12659 = vmatpush3.bf16.msra.mxu1 %v4713_v15  ;;  %v12346_v49 = vpop.f32.mrf.mxu0  ;;  %12638 = vmatprep.subr.bf16.mxu0 %v4704_v32  ;;  %v4737_v15 = vunpack.c.l.s8.bf16 %v2858_v2  ;;  %v2865_v32 = vld [vmem:[%s13677_s8 + $0x1af0] sm:$0xff]  ;;  %v4745_v21 = vunpack.c.l.s8.bf16 %v2862_v24  ;;  %v4736_v44 = vunpack.c.h.s8.bf16 %v2857_v31  ;;  %v2851_v2 = vld [vmem:[%s13677_s8 + $0x1a80] sm:$0xff]  ;;  %v4747_v23 = vunpack.c.l.s8.bf16 %v2863_v60  ;;  %v2874_v24 = vld [vmem:[%s13677_s8 + $0x1b38] sm:$0xff] }
 0x702   : > { %v12368_v57 = vpop.f32.mrf.mxu1  ;;  %12660 = vmatprep.subr.bf16.mxu1 %v4720_v52  ;;  %v15461_v7 = vadd.f32 %v12366_v42, %v8711_v3  ;;  %v1960_v52 = vpack.c.bf16 %v1319_v25, %v1319_v25  ;;  %v4752_v3 = vunpack.c.h.s8.bf16 %v2865_v32  ;;  %v4751_v45 = vunpack.c.l.s8.bf16 %v2865_v32  ;;  %v2882_v25 = vld [vmem:[%s13677_s8 + $0x1b78] sm:$0xff] }
 0x703   : > { %v15509_v36 = vrot.slane %v329_v22, %v13706_v38 }
 0x704   : > { %12639 = vmatpush3.bf16.msra.mxu0 %v4696_v4  ;;  %v2853_v4 = vld [vmem:[%s13677_s8 + $0x1a90] sm:$0xff] }
 0x705   : > { %12661 = vmatpush3.bf16.msra.mxu1 %v4712_v40  ;;  %12640 = vmatprep.subr.bf16.mxu0 %v4703_v58  ;;  %v2861_v40 = vld [vmem:[%s13677_s8 + $0x1ad0] sm:$0xff]  ;;  %v4728_v34 = vunpack.c.h.s8.bf16 %v2853_v4  ;;  %v1336_v32 = vcombine.high %v15509_v36, %v15509_v36 }
 0x706   : > { %12662 = vmatprep.subr.bf16.mxu1 %v4719_v59 }
 0x708   : > { %12641 = vmatpush3.bf16.msra.mxu0 %v4695_v35  ;;  %v4744_v35 = vunpack.c.h.s8.bf16 %v2861_v40 }
 0x709   : > { %12663 = vmatpush3.bf16.msra.mxu1 %v4711_v0  ;;  %12642 = vmatprep.subr.bf16.mxu0 %v4702_v41 }
 0x70a   : > { %12664 = vmatprep.subr.bf16.mxu1 %v4718_v5  ;;  %v4735_v5 = vunpack.c.l.s8.bf16 %v2857_v31  ;;  %v2878_v31 = vld [vmem:[%s13677_s8 + $0x1b58] sm:$0xff] }
 0x70c   : > { %12643 = vmatpush3.bf16.msra.mxu0 %v4694_v12  ;;  %v2856_v12 = vld [vmem:[%s13677_s8 + $0x1aa8] sm:$0xff] }
 0x70d   : > { %12665 = vmatpush3.bf16.msra.mxu1 %v4710_v47  ;;  %12644 = vmatprep.subr.bf16.mxu0 %v4701_v48  ;;  %v2864_v47 = vld [vmem:[%s13677_s8 + $0x1ae8] sm:$0xff]  ;;  %v4727_v48 = vunpack.c.l.s8.bf16 %v2853_v4 }
 0x70e   : > { %12666 = vmatprep.subr.bf16.mxu1 %v4717_v50  ;;  %v4734_v50 = vunpack.c.h.s8.bf16 %v2856_v12  ;;  %v4750_v51 = vunpack.c.h.s8.bf16 %v2864_v47 }
 0x710   : > { %12645 = vmatpush3.bf16.msra.mxu0 %v4693_v17  ;;  %v4726_v17 = vunpack.c.h.s8.bf16 %v2852_v9 }
 0x711   : > { %12667 = vmatpush3.bf16.msra.mxu1 %v4709_v62  ;;  %12646 = vmatprep.subr.bf16.mxu0 %v4700_v63  ;;  %v4742_v62 = vunpack.c.h.s8.bf16 %v2860_v16  ;;  %v4733_v63 = vunpack.c.l.s8.bf16 %v2856_v12 }
 0x712   : > { %12668 = vmatprep.subr.bf16.mxu1 %v4716_v13  ;;  %v4749_v13 = vunpack.c.l.s8.bf16 %v2864_v47 }
 0x714   : > { %12647 = vmatpush3.bf16.msra.mxu0 %v4692_v11  ;;  %v4725_v11 = vunpack.c.l.s8.bf16 %v2852_v9 }
 0x715   : > { %12669 = vmatpush3.bf16.msra.mxu1 %v4708_v46  ;;  %12648 = vmatprep.subr.bf16.mxu0 %v4699_v6  ;;  %v4741_v46 = vunpack.c.l.s8.bf16 %v2860_v16  ;;  %v4732_v6 = vunpack.c.h.s8.bf16 %v2855_v14 }
 0x716   : > { %12670 = vmatprep.subr.bf16.mxu1 %v4715_v1  ;;  %v4748_v1 = vunpack.c.h.s8.bf16 %v2863_v60  ;;  %v2868_v60 = vld [vmem:[%s13677_s8 + $0x1b08] sm:$0xff] }
 0x718   : > { %12649 = vmatpush3.bf16.msra.mxu0 %v4691_v29  ;;  %v1321_v29 = vcombine.high %v329_v22, %v329_v22  ;;  %v2876_v22 = vld [vmem:[%s13677_s8 + $0x1b48] sm:$0xff] }
 0x719   : > { %12671 = vmatpush3.bf16.msra.mxu1 %v4707_v19  ;;  %12678 = vmatprep.subr.bf16.mxu0 %v4738_v10  ;;  %v4724_v19 = vunpack.c.h.s8.bf16 %v2851_v2  ;;  %v4740_v10 = vunpack.c.h.s8.bf16 %v2859_v18 }
 0x71a   : > { %12700 = vmatprep.subr.bf16.mxu1 %v4754_v55  ;;  %v4731_v55 = vunpack.c.l.s8.bf16 %v2855_v14 }
 0x71b   : > { %v12386_v54 = vpop.f32.mrf.mxu0  ;;  %9269 = vmatmul.mubr.bf16.vlgmr.msra.gmra.mxu0 %v1955_v37  ;;  %v15512_v37 = vrot.slane %v1321_v29, %v13706_v38  ;;  %v330_v29 = vld [vmem:[%s13670_s10 + $0x1b8] sm:$0xff] }
 0x71c   : > { %v12408_v33 = vpop.f32.mrf.mxu1  ;;  %9309 = vmatmul.mubr.bf16.vlgmr.msra.gmra.mxu1 %v1957_v39  ;;  %12679 = vmatpush3.bf16.msra.mxu0 %v4730_v26  ;;  %v4723_v39 = vunpack.c.l.s8.bf16 %v2851_v2  ;;  %v4739_v26 = vunpack.c.l.s8.bf16 %v2859_v18  ;;  %v2871_v2 = vld [vmem:[%s13677_s8 + $0x1b20] sm:$0xff] }
 0x71d   : > { %12701 = vmatpush3.bf16.msra.mxu1 %v4746_v61  ;;  %v12387_v42 = vpop.f32.mrf.mxu0  ;;  %12680 = vmatprep.subr.bf16.mxu0 %v4737_v15  ;;  %v4770_v61 = vunpack.c.h.s8.bf16 %v2874_v24  ;;  %v4786_v15 = vunpack.c.h.s8.bf16 %v2882_v25  ;;  %v2879_v18 = vld [vmem:[%s13677_s8 + $0x1b60] sm:$0xff] }
 0x71e   : > { %v12409_v43 = vpop.f32.mrf.mxu1  ;;  %12702 = vmatprep.subr.bf16.mxu1 %v4753_v30  ;;  %v12388_v49 = vadd.f32 %v12387_v42, %v12386_v54  ;;  %9348 = vmatprep.mubr.bf16.mxu0 %v1960_v52  ;;  %v2870_v30 = vld [vmem:[%s13677_s8 + $0x1b18] sm:$0xff]  ;;  %v1337_v52 = vcombine.high %v15512_v37, %v15512_v37  ;;  %v1961_v54 = vpack.c.bf16 %v15478_v28, %v15478_v28  ;;  %v4785_v42 = vunpack.c.l.s8.bf16 %v2882_v25  ;;  %v2875_v25 = vld [vmem:[%s13677_s8 + $0x1b40] sm:$0xff] }
 0x71f   : > { %v12410_v57 = vadd.f32 %v12409_v43, %v12408_v33  ;;  %9388 = vmatprep.mubr.bf16.mxu1 %v1962_v53  ;;  %v12389_v58 = vpop.f32.mrf.mxu0  ;;  %v1959_v53 = vpack.c.bf16 %v15475_v27, %v15475_v27  ;;  %v4762_v33 = vunpack.c.h.s8.bf16 %v2870_v30  ;;  %v2873_v43 = vld [vmem:[%s13677_s8 + $0x1b30] sm:$0xff]  ;;  %v4761_v27 = vunpack.c.l.s8.bf16 %v2870_v30 }
 0x720   : > { %v12411_v59 = vpop.f32.mrf.mxu1  ;;  %v8791_v8 = vadd.f32 %v12388_v49, %v15461_v7  ;;  %12681 = vmatpush3.bf16.msra.mxu0 %v4729_v20  ;;  %v4743_v7 = vunpack.c.l.s8.bf16 %v2861_v40  ;;  %v4778_v20 = vunpack.c.h.s8.bf16 %v2878_v31  ;;  %v1966_v4 = vpack.c.bf16 %v1337_v52, %v1337_v52 }
 0x721   : > { %12703 = vmatpush3.bf16.msra.mxu1 %v4745_v21  ;;  %v12390_v0 = vpop.f32.mrf.mxu0  ;;  %12682 = vmatprep.subr.bf16.mxu0 %v4736_v44  ;;  %v4769_v21 = vunpack.c.l.s8.bf16 %v2874_v24  ;;  %v2881_v44 = vld [vmem:[%s13677_s8 + $0x1b70] sm:$0xff]  ;;  %v4777_v28 = vunpack.c.l.s8.bf16 %v2878_v31  ;;  %v4768_v59 = vunpack.c.h.s8.bf16 %v2873_v43  ;;  %v2867_v24 = vld [vmem:[%s13677_s8 + $0x1b00] sm:$0xff]  ;;  %v4779_v30 = vunpack.c.l.s8.bf16 %v2879_v18  ;;  %v2890_v31 = vld [vmem:[%s13677_s8 + $0x1bb8] sm:$0xff] }
 0x722   : > { %v12412_v41 = vpop.f32.mrf.mxu1  ;;  %12704 = vmatprep.subr.bf16.mxu1 %v4752_v3  ;;  %v15495_v56 = vadd.f32 %v12410_v57, %v8791_v8  ;;  %v1964_v3 = vpack.c.bf16 %v1336_v32, %v1336_v32  ;;  %v4784_v8 = vunpack.c.h.s8.bf16 %v2881_v44  ;;  %v4783_v9 = vunpack.c.l.s8.bf16 %v2881_v44  ;;  %v2898_v32 = vld [vmem:[%s13677_s8 + $0x1bf8] sm:$0xff] }
 0x723   : > { %v15543_v52 = vrot.slane %v330_v29, %v13706_v38 }
 0x724   : > { %12683 = vmatpush3.bf16.msra.mxu0 %v4728_v34  ;;  %v2869_v34 = vld [vmem:[%s13677_s8 + $0x1b10] sm:$0xff] }
 0x725   : > { %12705 = vmatpush3.bf16.msra.mxu1 %v4744_v35  ;;  %12684 = vmatprep.subr.bf16.mxu0 %v4735_v5  ;;  %v2877_v35 = vld [vmem:[%s13677_s8 + $0x1b50] sm:$0xff]  ;;  %v4760_v47 = vunpack.c.h.s8.bf16 %v2869_v34  ;;  %v1353_v44 = vcombine.high %v15543_v52, %v15543_v52 }
 0x726   : > { %12706 = vmatprep.subr.bf16.mxu1 %v4751_v45 }
 0x728   : > { %12685 = vmatpush3.bf16.msra.mxu0 %v4727_v48  ;;  %v4776_v48 = vunpack.c.h.s8.bf16 %v2877_v35 }
 0x729   : > { %12707 = vmatpush3.bf16.msra.mxu1 %v4743_v7  ;;  %12686 = vmatprep.subr.bf16.mxu0 %v4734_v50 }
 0x72a   : > { %12708 = vmatprep.subr.bf16.mxu1 %v4750_v51  ;;  %v4767_v51 = vunpack.c.l.s8.bf16 %v2873_v43  ;;  %v2894_v43 = vld [vmem:[%s13677_s8 + $0x1bd8] sm:$0xff] }
 0x72c   : > { %12687 = vmatpush3.bf16.msra.mxu0 %v4726_v17  ;;  %v2872_v17 = vld [vmem:[%s13677_s8 + $0x1b28] sm:$0xff] }
 0x72d   : > { %12709 = vmatpush3.bf16.msra.mxu1 %v4742_v62  ;;  %12688 = vmatprep.subr.bf16.mxu0 %v4733_v63  ;;  %v2880_v62 = vld [vmem:[%s13677_s8 + $0x1b68] sm:$0xff]  ;;  %v4759_v63 = vunpack.c.l.s8.bf16 %v2869_v34 }
 0x72e   : > { %12710 = vmatprep.subr.bf16.mxu1 %v4749_v13  ;;  %v4766_v13 = vunpack.c.h.s8.bf16 %v2872_v17  ;;  %v4782_v14 = vunpack.c.h.s8.bf16 %v2880_v62 }
 0x730   : > { %12689 = vmatpush3.bf16.msra.mxu0 %v4725_v11  ;;  %v4758_v11 = vunpack.c.h.s8.bf16 %v2868_v60 }
 0x731   : > { %12711 = vmatpush3.bf16.msra.mxu1 %v4741_v46  ;;  %12690 = vmatprep.subr.bf16.mxu0 %v4732_v6  ;;  %v4774_v46 = vunpack.c.h.s8.bf16 %v2876_v22  ;;  %v4765_v6 = vunpack.c.l.s8.bf16 %v2872_v17 }
 0x732   : > { %12712 = vmatprep.subr.bf16.mxu1 %v4748_v1  ;;  %v4781_v1 = vunpack.c.l.s8.bf16 %v2880_v62 }
 0x734   : > { %12691 = vmatpush3.bf16.msra.mxu0 %v4724_v19  ;;  %v4757_v19 = vunpack.c.l.s8.bf16 %v2868_v60 }
 0x735   : > { %12713 = vmatpush3.bf16.msra.mxu1 %v4740_v10  ;;  %12692 = vmatprep.subr.bf16.mxu0 %v4731_v55  ;;  %v4773_v10 = vunpack.c.l.s8.bf16 %v2876_v22  ;;  %v4764_v55 = vunpack.c.h.s8.bf16 %v2871_v2 }
 0x736   : > { %12714 = vmatprep.subr.bf16.mxu1 %v4747_v23  ;;  %v4780_v23 = vunpack.c.h.s8.bf16 %v2879_v18  ;;  %v2884_v18 = vld [vmem:[%s13677_s8 + $0x1b88] sm:$0xff] }
 0x738   : > { %12693 = vmatpush3.bf16.msra.mxu0 %v4723_v39  ;;  %v1338_v39 = vcombine.high %v330_v29, %v330_v29  ;;  %v2892_v29 = vld [vmem:[%s13677_s8 + $0x1bc8] sm:$0xff] }
 0x739   : > { %12715 = vmatpush3.bf16.msra.mxu1 %v4739_v26  ;;  %12722 = vmatprep.subr.bf16.mxu0 %v4770_v61  ;;  %v4756_v26 = vunpack.c.h.s8.bf16 %v2867_v24  ;;  %v4772_v61 = vunpack.c.h.s8.bf16 %v2875_v25 }
 0x73a   : > { %12744 = vmatprep.subr.bf16.mxu1 %v4786_v15  ;;  %v4763_v15 = vunpack.c.l.s8.bf16 %v2871_v2 }
 0x73b   : > { %v12430_v40 = vpop.f32.mrf.mxu0  ;;  %9349 = vmatmul.mubr.bf16.vlgmr.msra.gmra.mxu0 %v1959_v53  ;;  %v15546_v53 = vrot.slane %v1338_v39, %v13706_v38  ;;  %v331_v39 = vld [vmem:[%s13670_s10 + $0x1c0] sm:$0xff] }
 0x73c   : > { %v12452_v49 = vpop.f32.mrf.mxu1  ;;  %9389 = vmatmul.mubr.bf16.vlgmr.msra.gmra.mxu1 %v1961_v54  ;;  %12723 = vmatpush3.bf16.msra.mxu0 %v4762_v33  ;;  %v4755_v54 = vunpack.c.l.s8.bf16 %v2867_v24  ;;  %v4771_v33 = vunpack.c.l.s8.bf16 %v2875_v25  ;;  %v2887_v24 = vld [vmem:[%s13677_s8 + $0x1ba0] sm:$0xff] }
 0x73d   : > { %12745 = vmatpush3.bf16.msra.mxu1 %v4778_v20  ;;  %v12431_v57 = vpop.f32.mrf.mxu0  ;;  %12724 = vmatprep.subr.bf16.mxu0 %v4769_v21  ;;  %v4802_v20 = vunpack.c.h.s8.bf16 %v2890_v31  ;;  %v4818_v21 = vunpack.c.h.s8.bf16 %v2898_v32  ;;  %v2895_v25 = vld [vmem:[%s13677_s8 + $0x1be0] sm:$0xff] }
 0x73e   : > { %v12453_v58 = vpop.f32.mrf.mxu1  ;;  %12746 = vmatprep.subr.bf16.mxu1 %v4785_v42  ;;  %v12432_v0 = vadd.f32 %v12431_v57, %v12430_v40  ;;  %9428 = vmatprep.mubr.bf16.mxu0 %v1964_v3  ;;  %v2886_v42 = vld [vmem:[%s13677_s8 + $0x1b98] sm:$0xff]  ;;  %v1354_v3 = vcombine.high %v15546_v53, %v15546_v53  ;;  %v1965_v40 = vpack.c.bf16 %v15512_v37, %v15512_v37  ;;  %v4817_v57 = vunpack.c.l.s8.bf16 %v2898_v32  ;;  %v2891_v32 = vld [vmem:[%s13677_s8 + $0x1bc0] sm:$0xff] }
 0x73f   : > { %v12454_v41 = vadd.f32 %v12453_v58, %v12452_v49  ;;  %9468 = vmatprep.mubr.bf16.mxu1 %v1966_v4  ;;  %v12433_v5 = vpop.f32.mrf.mxu0  ;;  %v1963_v4 = vpack.c.bf16 %v15509_v36, %v15509_v36  ;;  %v4794_v49 = vunpack.c.h.s8.bf16 %v2886_v42  ;;  %v2889_v58 = vld [vmem:[%s13677_s8 + $0x1bb0] sm:$0xff]  ;;  %v4793_v36 = vunpack.c.l.s8.bf16 %v2886_v42 }
 0x740   : > { %v12455_v45 = vpop.f32.mrf.mxu1  ;;  %v8871_v12 = vadd.f32 %v12432_v0, %v15495_v56  ;;  %12725 = vmatpush3.bf16.msra.mxu0 %v4761_v27  ;;  %v4775_v56 = vunpack.c.l.s8.bf16 %v2877_v35  ;;  %v4810_v27 = vunpack.c.h.s8.bf16 %v2894_v43  ;;  %v1970_v34 = vpack.c.bf16 %v1354_v3, %v1354_v3 }
 0x741   : > { %12747 = vmatpush3.bf16.msra.mxu1 %v4777_v28  ;;  %v12434_v7 = vpop.f32.mrf.mxu0  ;;  %12726 = vmatprep.subr.bf16.mxu0 %v4768_v59  ;;  %v4801_v28 = vunpack.c.l.s8.bf16 %v2890_v31  ;;  %v2897_v59 = vld [vmem:[%s13677_s8 + $0x1bf0] sm:$0xff]  ;;  %v4809_v37 = vunpack.c.l.s8.bf16 %v2894_v43  ;;  %v4800_v45 = vunpack.c.h.s8.bf16 %v2889_v58  ;;  %v2883_v31 = vld [vmem:[%s13677_s8 + $0x1b80] sm:$0xff]  ;;  %v4811_v42 = vunpack.c.l.s8.bf16 %v2895_v25  ;;  %v2906_v43 = vld [vmem:[%s13677_s8 + $0x1c38] sm:$0xff] }
 0x742   : > { %v12456_v50 = vpop.f32.mrf.mxu1  ;;  %12748 = vmatprep.subr.bf16.mxu1 %v4784_v8  ;;  %v15529_v16 = vadd.f32 %v12454_v41, %v8871_v12  ;;  %v1968_v8 = vpack.c.bf16 %v1353_v44, %v1353_v44  ;;  %v4816_v12 = vunpack.c.h.s8.bf16 %v2897_v59  ;;  %v4815_v60 = vunpack.c.l.s8.bf16 %v2897_v59  ;;  %v2914_v44 = vld [vmem:[%s13677_s8 + $0x1c78] sm:$0xff] }
 0x743   : > { %v15577_v3 = vrot.slane %v331_v39, %v13706_v38 }
 0x744   : > { %12727 = vmatpush3.bf16.msra.mxu0 %v4760_v47  ;;  %v2885_v47 = vld [vmem:[%s13677_s8 + $0x1b90] sm:$0xff] }
 0x745   : > { %12749 = vmatpush3.bf16.msra.mxu1 %v4776_v48  ;;  %12728 = vmatprep.subr.bf16.mxu0 %v4767_v51  ;;  %v2893_v48 = vld [vmem:[%s13677_s8 + $0x1bd0] sm:$0xff]  ;;  %v4792_v62 = vunpack.c.h.s8.bf16 %v2885_v47  ;;  %v1370_v59 = vcombine.high %v15577_v3, %v15577_v3 }
 0x746   : > { %12750 = vmatprep.subr.bf16.mxu1 %v4783_v9 }
 0x748   : > { %12729 = vmatpush3.bf16.msra.mxu0 %v4759_v63  ;;  %v4808_v63 = vunpack.c.h.s8.bf16 %v2893_v48 }
 0x749   : > { %12751 = vmatpush3.bf16.msra.mxu1 %v4775_v56  ;;  %12730 = vmatprep.subr.bf16.mxu0 %v4766_v13 }
 0x74a   : > { %12752 = vmatprep.subr.bf16.mxu1 %v4782_v14  ;;  %v4799_v14 = vunpack.c.l.s8.bf16 %v2889_v58  ;;  %v2910_v58 = vld [vmem:[%s13677_s8 + $0x1c58] sm:$0xff] }
 0x74c   : > { %12731 = vmatpush3.bf16.msra.mxu0 %v4758_v11  ;;  %v2888_v11 = vld [vmem:[%s13677_s8 + $0x1ba8] sm:$0xff] }
 0x74d   : > { %12753 = vmatpush3.bf16.msra.mxu1 %v4774_v46  ;;  %12732 = vmatprep.subr.bf16.mxu0 %v4765_v6  ;;  %v2896_v46 = vld [vmem:[%s13677_s8 + $0x1be8] sm:$0xff]  ;;  %v4791_v6 = vunpack.c.l.s8.bf16 %v2885_v47 }
 0x74e   : > { %12754 = vmatprep.subr.bf16.mxu1 %v4781_v1  ;;  %v4798_v1 = vunpack.c.h.s8.bf16 %v2888_v11  ;;  %v4814_v2 = vunpack.c.h.s8.bf16 %v2896_v46 }
 0x750   : > { %12733 = vmatpush3.bf16.msra.mxu0 %v4757_v19  ;;  %v4790_v19 = vunpack.c.h.s8.bf16 %v2884_v18 }
 0x751   : > { %12755 = vmatpush3.bf16.msra.mxu1 %v4773_v10  ;;  %12734 = vmatprep.subr.bf16.mxu0 %v4764_v55  ;;  %v4806_v10 = vunpack.c.h.s8.bf16 %v2892_v29  ;;  %v4797_v55 = vunpack.c.l.s8.bf16 %v2888_v11 }
 0x752   : > { %12756 = vmatprep.subr.bf16.mxu1 %v4780_v23  ;;  %v4813_v23 = vunpack.c.l.s8.bf16 %v2896_v46 }
 0x754   : > { %12735 = vmatpush3.bf16.msra.mxu0 %v4756_v26  ;;  %v4789_v26 = vunpack.c.l.s8.bf16 %v2884_v18 }
 0x755   : > { %12757 = vmatpush3.bf16.msra.mxu1 %v4772_v61  ;;  %12736 = vmatprep.subr.bf16.mxu0 %v4763_v15  ;;  %v4805_v61 = vunpack.c.l.s8.bf16 %v2892_v29  ;;  %v4796_v15 = vunpack.c.h.s8.bf16 %v2887_v24 }
 0x756   : > { %12758 = vmatprep.subr.bf16.mxu1 %v4779_v30  ;;  %v4812_v30 = vunpack.c.h.s8.bf16 %v2895_v25  ;;  %v2900_v25 = vld [vmem:[%s13677_s8 + $0x1c08] sm:$0xff] }
 0x758   : > { %12737 = vmatpush3.bf16.msra.mxu0 %v4755_v54  ;;  %v1355_v54 = vcombine.high %v331_v39, %v331_v39  ;;  %v2908_v39 = vld [vmem:[%s13677_s8 + $0x1c48] sm:$0xff] }
 0x759   : > { %12759 = vmatpush3.bf16.msra.mxu1 %v4771_v33  ;;  %12766 = vmatprep.subr.bf16.mxu0 %v4802_v20  ;;  %v4788_v33 = vunpack.c.h.s8.bf16 %v2883_v31  ;;  %v4804_v20 = vunpack.c.h.s8.bf16 %v2891_v32 }
 0x75a   : > { %12788 = vmatprep.subr.bf16.mxu1 %v4818_v21  ;;  %v4795_v21 = vunpack.c.l.s8.bf16 %v2887_v24 }
 0x75b   : > { %v12474_v35 = vpop.f32.mrf.mxu0  ;;  %9429 = vmatmul.mubr.bf16.vlgmr.msra.gmra.mxu0 %v1963_v4  ;;  %v15580_v4 = vrot.slane %v1355_v54, %v13706_v38  ;;  %v332_v54 = vld [vmem:[%s13670_s10 + $0x1c8] sm:$0xff] }
 0x75c   : > { %v12496_v0 = vpop.f32.mrf.mxu1  ;;  %9469 = vmatmul.mubr.bf16.vlgmr.msra.gmra.mxu1 %v1965_v40  ;;  %12767 = vmatpush3.bf16.msra.mxu0 %v4794_v49  ;;  %v4787_v40 = vunpack.c.l.s8.bf16 %v2883_v31  ;;  %v4803_v49 = vunpack.c.l.s8.bf16 %v2891_v32  ;;  %v2903_v31 = vld [vmem:[%s13677_s8 + $0x1c20] sm:$0xff] }
 0x75d   : > { %12789 = vmatpush3.bf16.msra.mxu1 %v4810_v27  ;;  %v12475_v41 = vpop.f32.mrf.mxu0  ;;  %12768 = vmatprep.subr.bf16.mxu0 %v4801_v28  ;;  %v4834_v27 = vunpack.c.h.s8.bf16 %v2906_v43  ;;  %v4850_v28 = vunpack.c.h.s8.bf16 %v2914_v44  ;;  %v2911_v32 = vld [vmem:[%s13677_s8 + $0x1c60] sm:$0xff] }
 0x75e   : > { %v12497_v5 = vpop.f32.mrf.mxu1  ;;  %12790 = vmatprep.subr.bf16.mxu1 %v4817_v57  ;;  %v12476_v7 = vadd.f32 %v12475_v41, %v12474_v35  ;;  %9508 = vmatprep.mubr.bf16.mxu0 %v1968_v8  ;;  %v2902_v57 = vld [vmem:[%s13677_s8 + $0x1c18] sm:$0xff]  ;;  %v1371_v8 = vcombine.high %v15580_v4, %v15580_v4  ;;  %v1969_v35 = vpack.c.bf16 %v15546_v53, %v15546_v53  ;;  %v4849_v41 = vunpack.c.l.s8.bf16 %v2914_v44  ;;  %v2907_v44 = vld [vmem:[%s13677_s8 + $0x1c40] sm:$0xff] }
 0x75f   : > { %v12498_v50 = vadd.f32 %v12497_v5, %v12496_v0  ;;  %9548 = vmatprep.mubr.bf16.mxu1 %v1970_v34  ;;  %v12477_v51 = vpop.f32.mrf.mxu0  ;;  %v1967_v34 = vpack.c.bf16 %v15543_v52, %v15543_v52  ;;  %v4826_v0 = vunpack.c.h.s8.bf16 %v2902_v57  ;;  %v2905_v5 = vld [vmem:[%s13677_s8 + $0x1c30] sm:$0xff]  ;;  %v4825_v52 = vunpack.c.l.s8.bf16 %v2902_v57 }
 0x760   : > { %v12499_v9 = vpop.f32.mrf.mxu1  ;;  %v8951_v17 = vadd.f32 %v12476_v7, %v15529_v16  ;;  %12769 = vmatpush3.bf16.msra.mxu0 %v4793_v36  ;;  %v4807_v16 = vunpack.c.l.s8.bf16 %v2893_v48  ;;  %v4842_v36 = vunpack.c.h.s8.bf16 %v2910_v58  ;;  %v1974_v47 = vpack.c.bf16 %v1371_v8, %v1371_v8 }
 0x761   : > { %12791 = vmatpush3.bf16.msra.mxu1 %v4809_v37  ;;  %v12478_v56 = vpop.f32.mrf.mxu0  ;;  %12770 = vmatprep.subr.bf16.mxu0 %v4800_v45  ;;  %v4833_v37 = vunpack.c.l.s8.bf16 %v2906_v43  ;;  %v2913_v45 = vld [vmem:[%s13677_s8 + $0x1c70] sm:$0xff]  ;;  %v4841_v53 = vunpack.c.l.s8.bf16 %v2910_v58  ;;  %v4832_v9 = vunpack.c.h.s8.bf16 %v2905_v5  ;;  %v2899_v43 = vld [vmem:[%s13677_s8 + $0x1c00] sm:$0xff]  ;;  %v4843_v57 = vunpack.c.l.s8.bf16 %v2911_v32  ;;  %v2922_v58 = vld [vmem:[%s13677_s8 + $0x1cb8] sm:$0xff] }
 0x762   : > { %v12500_v13 = vpop.f32.mrf.mxu1  ;;  %12792 = vmatprep.subr.bf16.mxu1 %v4816_v12  ;;  %v15563_v22 = vadd.f32 %v12498_v50, %v8951_v17  ;;  %v1972_v12 = vpack.c.bf16 %v1370_v59, %v1370_v59  ;;  %v4848_v17 = vunpack.c.h.s8.bf16 %v2913_v45  ;;  %v4847_v18 = vunpack.c.l.s8.bf16 %v2913_v45  ;;  %v2930_v59 = vld [vmem:[%s13677_s8 + $0x1cf8] sm:$0xff] }
 0x763   : > { %v15611_v8 = vrot.slane %v332_v54, %v13706_v38 }
 0x764   : > { %12771 = vmatpush3.bf16.msra.mxu0 %v4792_v62  ;;  %v2901_v62 = vld [vmem:[%s13677_s8 + $0x1c10] sm:$0xff] }
 0x765   : > { %12793 = vmatpush3.bf16.msra.mxu1 %v4808_v63  ;;  %12772 = vmatprep.subr.bf16.mxu0 %v4799_v14  ;;  %v2909_v63 = vld [vmem:[%s13677_s8 + $0x1c50] sm:$0xff]  ;;  %v4824_v46 = vunpack.c.h.s8.bf16 %v2901_v62  ;;  %v1387_v45 = vcombine.high %v15611_v8, %v15611_v8 }
 0x766   : > { %12794 = vmatprep.subr.bf16.mxu1 %v4815_v60 }
 0x768   : > { %12773 = vmatpush3.bf16.msra.mxu0 %v4791_v6  ;;  %v4840_v6 = vunpack.c.h.s8.bf16 %v2909_v63 }
 0x769   : > { %12795 = vmatpush3.bf16.msra.mxu1 %v4807_v16  ;;  %12774 = vmatprep.subr.bf16.mxu0 %v4798_v1 }
 0x76a   : > { %12796 = vmatprep.subr.bf16.mxu1 %v4814_v2  ;;  %v4831_v2 = vunpack.c.l.s8.bf16 %v2905_v5  ;;  %v2926_v5 = vld [vmem:[%s13677_s8 + $0x1cd8] sm:$0xff] }
 0x76c   : > { %12775 = vmatpush3.bf16.msra.mxu0 %v4790_v19  ;;  %v2904_v19 = vld [vmem:[%s13677_s8 + $0x1c28] sm:$0xff] }
 0x76d   : > { %12797 = vmatpush3.bf16.msra.mxu1 %v4806_v10  ;;  %12776 = vmatprep.subr.bf16.mxu0 %v4797_v55  ;;  %v2912_v10 = vld [vmem:[%s13677_s8 + $0x1c68] sm:$0xff]  ;;  %v4823_v55 = vunpack.c.l.s8.bf16 %v2901_v62 }
 0x76e   : > { %12798 = vmatprep.subr.bf16.mxu1 %v4813_v23  ;;  %v4830_v23 = vunpack.c.h.s8.bf16 %v2904_v19  ;;  %v4846_v24 = vunpack.c.h.s8.bf16 %v2912_v10 }
 0x770   : > { %12777 = vmatpush3.bf16.msra.mxu0 %v4789_v26  ;;  %v4822_v26 = vunpack.c.h.s8.bf16 %v2900_v25 }
 0x771   : > { %12799 = vmatpush3.bf16.msra.mxu1 %v4805_v61  ;;  %12778 = vmatprep.subr.bf16.mxu0 %v4796_v15  ;;  %v4838_v61 = vunpack.c.h.s8.bf16 %v2908_v39  ;;  %v4829_v15 = vunpack.c.l.s8.bf16 %v2904_v19 }
 0x772   : > { %12800 = vmatprep.subr.bf16.mxu1 %v4812_v30  ;;  %v4845_v30 = vunpack.c.l.s8.bf16 %v2912_v10 }
 0x774   : > { %12779 = vmatpush3.bf16.msra.mxu0 %v4788_v33  ;;  %v4821_v33 = vunpack.c.l.s8.bf16 %v2900_v25 }
 0x775   : > { %12801 = vmatpush3.bf16.msra.mxu1 %v4804_v20  ;;  %12780 = vmatprep.subr.bf16.mxu0 %v4795_v21  ;;  %v4837_v20 = vunpack.c.l.s8.bf16 %v2908_v39  ;;  %v4828_v21 = vunpack.c.h.s8.bf16 %v2903_v31 }
 0x776   : > { %12802 = vmatprep.subr.bf16.mxu1 %v4811_v42  ;;  %v4844_v42 = vunpack.c.h.s8.bf16 %v2911_v32  ;;  %v2916_v32 = vld [vmem:[%s13677_s8 + $0x1c88] sm:$0xff] }
 0x778   : > { %12781 = vmatpush3.bf16.msra.mxu0 %v4787_v40  ;;  %v1372_v40 = vcombine.high %v332_v54, %v332_v54  ;;  %v2924_v54 = vld [vmem:[%s13677_s8 + $0x1cc8] sm:$0xff] }
 0x779   : > { %12803 = vmatpush3.bf16.msra.mxu1 %v4803_v49  ;;  %12810 = vmatprep.subr.bf16.mxu0 %v4834_v27  ;;  %v4820_v49 = vunpack.c.h.s8.bf16 %v2899_v43  ;;  %v4836_v27 = vunpack.c.h.s8.bf16 %v2907_v44 }
 0x77a   : > { %12832 = vmatprep.subr.bf16.mxu1 %v4850_v28  ;;  %v4827_v28 = vunpack.c.l.s8.bf16 %v2903_v31 }
 0x77b   : > { %v12518_v48 = vpop.f32.mrf.mxu0  ;;  %9509 = vmatmul.mubr.bf16.vlgmr.msra.gmra.mxu0 %v1967_v34  ;;  %v15614_v34 = vrot.slane %v1372_v40, %v13706_v38  ;;  %v333_v40 = vld [vmem:[%s13670_s10 + $0x1d0] sm:$0xff] }
 0x77c   : > { %v12540_v7 = vpop.f32.mrf.mxu1  ;;  %9549 = vmatmul.mubr.bf16.vlgmr.msra.gmra.mxu1 %v1969_v35  ;;  %12811 = vmatpush3.bf16.msra.mxu0 %v4826_v0  ;;  %v4819_v35 = vunpack.c.l.s8.bf16 %v2899_v43  ;;  %v4835_v0 = vunpack.c.l.s8.bf16 %v2907_v44  ;;  %v2919_v43 = vld [vmem:[%s13677_s8 + $0x1ca0] sm:$0xff] }
 0x77d   : > { %12833 = vmatpush3.bf16.msra.mxu1 %v4842_v36  ;;  %v12519_v50 = vpop.f32.mrf.mxu0  ;;  %12812 = vmatprep.subr.bf16.mxu0 %v4833_v37  ;;  %v4866_v36 = vunpack.c.h.s8.bf16 %v2922_v58  ;;  %v4882_v37 = vunpack.c.h.s8.bf16 %v2930_v59  ;;  %v2927_v44 = vld [vmem:[%s13677_s8 + $0x1ce0] sm:$0xff] }
 0x77e   : > { %v12541_v51 = vpop.f32.mrf.mxu1  ;;  %12834 = vmatprep.subr.bf16.mxu1 %v4849_v41  ;;  %v12520_v56 = vadd.f32 %v12519_v50, %v12518_v48  ;;  %9588 = vmatprep.mubr.bf16.mxu0 %v1972_v12  ;;  %v2918_v41 = vld [vmem:[%s13677_s8 + $0x1c98] sm:$0xff]  ;;  %v1388_v12 = vcombine.high %v15614_v34, %v15614_v34  ;;  %v1973_v48 = vpack.c.bf16 %v15580_v4, %v15580_v4  ;;  %v4881_v50 = vunpack.c.l.s8.bf16 %v2930_v59  ;;  %v2923_v59 = vld [vmem:[%s13677_s8 + $0x1cc0] sm:$0xff] }
 0x77f   : > { %v12542_v13 = vadd.f32 %v12541_v51, %v12540_v7  ;;  %9628 = vmatprep.mubr.bf16.mxu1 %v1974_v47  ;;  %v12521_v14 = vpop.f32.mrf.mxu0  ;;  %v1971_v47 = vpack.c.bf16 %v15577_v3, %v15577_v3  ;;  %v4858_v7 = vunpack.c.h.s8.bf16 %v2918_v41  ;;  %v2921_v51 = vld [vmem:[%s13677_s8 + $0x1cb0] sm:$0xff]  ;;  %v4857_v3 = vunpack.c.l.s8.bf16 %v2918_v41 }
 0x780   : > { %v12543_v60 = vpop.f32.mrf.mxu1  ;;  %v9031_v11 = vadd.f32 %v12520_v56, %v15563_v22  ;;  %12813 = vmatpush3.bf16.msra.mxu0 %v4825_v52  ;;  %v4839_v22 = vunpack.c.l.s8.bf16 %v2909_v63  ;;  %v4874_v52 = vunpack.c.h.s8.bf16 %v2926_v5  ;;  %v1978_v62 = vpack.c.bf16 %v1388_v12, %v1388_v12 }
 0x781   : > { %12835 = vmatpush3.bf16.msra.mxu1 %v4841_v53  ;;  %v12522_v16 = vpop.f32.mrf.mxu0  ;;  %12814 = vmatprep.subr.bf16.mxu0 %v4832_v9  ;;  %v4865_v53 = vunpack.c.l.s8.bf16 %v2922_v58  ;;  %v2929_v9 = vld [vmem:[%s13677_s8 + $0x1cf0] sm:$0xff]  ;;  %v4873_v4 = vunpack.c.l.s8.bf16 %v2926_v5  ;;  %v4864_v60 = vunpack.c.h.s8.bf16 %v2921_v51  ;;  %v2915_v58 = vld [vmem:[%s13677_s8 + $0x1c80] sm:$0xff]  ;;  %v4875_v41 = vunpack.c.l.s8.bf16 %v2927_v44  ;;  %v2938_v5 = vld [vmem:[%s13677_s8 + $0x1d38] sm:$0xff] }
 0x782   : > { %v12544_v1 = vpop.f32.mrf.mxu1  ;;  %12836 = vmatprep.subr.bf16.mxu1 %v4848_v17  ;;  %v15597_v29 = vadd.f32 %v12542_v13, %v9031_v11  ;;  %v1976_v17 = vpack.c.bf16 %v1387_v45, %v1387_v45  ;;  %v4880_v11 = vunpack.c.h.s8.bf16 %v2929_v9  ;;  %v4879_v25 = vunpack.c.l.s8.bf16 %v2929_v9  ;;  %v2946_v45 = vld [vmem:[%s13677_s8 + $0x1d78] sm:$0xff] }
 0x783   : > { %v15645_v12 = vrot.slane %v333_v40, %v13706_v38 }
 0x784   : > { %12815 = vmatpush3.bf16.msra.mxu0 %v4824_v46  ;;  %v2917_v46 = vld [vmem:[%s13677_s8 + $0x1c90] sm:$0xff] }
 0x785   : > { %12837 = vmatpush3.bf16.msra.mxu1 %v4840_v6  ;;  %12816 = vmatprep.subr.bf16.mxu0 %v4831_v2  ;;  %v2925_v6 = vld [vmem:[%s13677_s8 + $0x1cd0] sm:$0xff]  ;;  %v4856_v10 = vunpack.c.h.s8.bf16 %v2917_v46  ;;  %v1404_v9 = vcombine.high %v15645_v12, %v15645_v12 }
 0x786   : > { %12838 = vmatprep.subr.bf16.mxu1 %v4847_v18 }
 0x788   : > { %12817 = vmatpush3.bf16.msra.mxu0 %v4823_v55  ;;  %v4872_v55 = vunpack.c.h.s8.bf16 %v2925_v6 }
 0x789   : > { %12839 = vmatpush3.bf16.msra.mxu1 %v4839_v22  ;;  %12818 = vmatprep.subr.bf16.mxu0 %v4830_v23 }
 0x78a   : > { %12840 = vmatprep.subr.bf16.mxu1 %v4846_v24  ;;  %v4863_v24 = vunpack.c.l.s8.bf16 %v2921_v51  ;;  %v2942_v51 = vld [vmem:[%s13677_s8 + $0x1d58] sm:$0xff] }
 0x78c   : > { %12819 = vmatpush3.bf16.msra.mxu0 %v4822_v26  ;;  %v2920_v26 = vld [vmem:[%s13677_s8 + $0x1ca8] sm:$0xff] }
 0x78d   : > { %12841 = vmatpush3.bf16.msra.mxu1 %v4838_v61  ;;  %12820 = vmatprep.subr.bf16.mxu0 %v4829_v15  ;;  %v2928_v61 = vld [vmem:[%s13677_s8 + $0x1ce8] sm:$0xff]  ;;  %v4855_v15 = vunpack.c.l.s8.bf16 %v2917_v46 }
 0x78e   : > { %12842 = vmatprep.subr.bf16.mxu1 %v4845_v30  ;;  %v4862_v30 = vunpack.c.h.s8.bf16 %v2920_v26  ;;  %v4878_v31 = vunpack.c.h.s8.bf16 %v2928_v61 }
 0x790   : > { %12821 = vmatpush3.bf16.msra.mxu0 %v4821_v33  ;;  %v4854_v33 = vunpack.c.h.s8.bf16 %v2916_v32 }
 0x791   : > { %12843 = vmatpush3.bf16.msra.mxu1 %v4837_v20  ;;  %12822 = vmatprep.subr.bf16.mxu0 %v4828_v21  ;;  %v4870_v20 = vunpack.c.h.s8.bf16 %v2924_v54  ;;  %v4861_v21 = vunpack.c.l.s8.bf16 %v2920_v26 }
 0x792   : > { %12844 = vmatprep.subr.bf16.mxu1 %v4844_v42  ;;  %v4877_v42 = vunpack.c.l.s8.bf16 %v2928_v61 }
 0x794   : > { %12823 = vmatpush3.bf16.msra.mxu0 %v4820_v49  ;;  %v4853_v49 = vunpack.c.l.s8.bf16 %v2916_v32 }
 0x795   : > { %12845 = vmatpush3.bf16.msra.mxu1 %v4836_v27  ;;  %12824 = vmatprep.subr.bf16.mxu0 %v4827_v28  ;;  %v4869_v27 = vunpack.c.l.s8.bf16 %v2924_v54  ;;  %v4860_v28 = vunpack.c.h.s8.bf16 %v2919_v43 }
 0x796   : > { %12846 = vmatprep.subr.bf16.mxu1 %v4843_v57  ;;  %v4876_v57 = vunpack.c.h.s8.bf16 %v2927_v44  ;;  %v2932_v44 = vld [vmem:[%s13677_s8 + $0x1d08] sm:$0xff] }
 0x798   : > { %12825 = vmatpush3.bf16.msra.mxu0 %v4819_v35  ;;  %v1389_v35 = vcombine.high %v333_v40, %v333_v40  ;;  %v2940_v40 = vld [vmem:[%s13677_s8 + $0x1d48] sm:$0xff] }
 0x799   : > { %12847 = vmatpush3.bf16.msra.mxu1 %v4835_v0  ;;  %12854 = vmatprep.subr.bf16.mxu0 %v4866_v36  ;;  %v4852_v0 = vunpack.c.h.s8.bf16 %v2915_v58  ;;  %v4868_v36 = vunpack.c.h.s8.bf16 %v2923_v59 }
 0x79a   : > { %12876 = vmatprep.subr.bf16.mxu1 %v4882_v37  ;;  %v4859_v37 = vunpack.c.l.s8.bf16 %v2919_v43 }
 0x79b   : > { %v12562_v63 = vpop.f32.mrf.mxu0  ;;  %9589 = vmatmul.mubr.bf16.vlgmr.msra.gmra.mxu0 %v1971_v47  ;;  %v15648_v47 = vrot.slane %v1389_v35, %v13706_v38  ;;  %v334_v35 = vld [vmem:[%s13670_s10 + $0x1d8] sm:$0xff] }
 0x79c   : > { %v12584_v56 = vpop.f32.mrf.mxu1  ;;  %9629 = vmatmul.mubr.bf16.vlgmr.msra.gmra.mxu1 %v1973_v48  ;;  %12855 = vmatpush3.bf16.msra.mxu0 %v4858_v7  ;;  %v4851_v48 = vunpack.c.l.s8.bf16 %v2915_v58  ;;  %v4867_v7 = vunpack.c.l.s8.bf16 %v2923_v59  ;;  %v2935_v58 = vld [vmem:[%s13677_s8 + $0x1d20] sm:$0xff] }
 0x79d   : > { %12877 = vmatpush3.bf16.msra.mxu1 %v4874_v52  ;;  %v12563_v13 = vpop.f32.mrf.mxu0  ;;  %12856 = vmatprep.subr.bf16.mxu0 %v4865_v53  ;;  %v4898_v52 = vunpack.c.h.s8.bf16 %v2938_v5  ;;  %v4914_v53 = vunpack.c.h.s8.bf16 %v2946_v45  ;;  %v2943_v59 = vld [vmem:[%s13677_s8 + $0x1d60] sm:$0xff] }
 0x79e   : > { %v12585_v14 = vpop.f32.mrf.mxu1  ;;  %12878 = vmatprep.subr.bf16.mxu1 %v4881_v50  ;;  %v12564_v16 = vadd.f32 %v12563_v13, %v12562_v63  ;;  %9668 = vmatprep.mubr.bf16.mxu0 %v1976_v17  ;;  %v2934_v50 = vld [vmem:[%s13677_s8 + $0x1d18] sm:$0xff]  ;;  %v1405_v17 = vcombine.high %v15648_v47, %v15648_v47  ;;  %v1977_v63 = vpack.c.bf16 %v15614_v34, %v15614_v34  ;;  %v4913_v13 = vunpack.c.l.s8.bf16 %v2946_v45  ;;  %v2939_v45 = vld [vmem:[%s13677_s8 + $0x1d40] sm:$0xff] }
 0x79f   : > { %v12586_v1 = vadd.f32 %v12585_v14, %v12584_v56  ;;  %9708 = vmatprep.mubr.bf16.mxu1 %v1978_v62  ;;  %v12565_v2 = vpop.f32.mrf.mxu0  ;;  %v1975_v62 = vpack.c.bf16 %v15611_v8, %v15611_v8  ;;  %v4890_v56 = vunpack.c.h.s8.bf16 %v2934_v50  ;;  %v2937_v14 = vld [vmem:[%s13677_s8 + $0x1d30] sm:$0xff]  ;;  %v4889_v8 = vunpack.c.l.s8.bf16 %v2934_v50 }
 0x7a0   : > { %v12587_v18 = vpop.f32.mrf.mxu1  ;;  %v9111_v19 = vadd.f32 %v12564_v16, %v15597_v29  ;;  %12857 = vmatpush3.bf16.msra.mxu0 %v4857_v3  ;;  %v4871_v29 = vunpack.c.l.s8.bf16 %v2925_v6  ;;  %v4906_v3 = vunpack.c.h.s8.bf16 %v2942_v51  ;;  %v1982_v46 = vpack.c.bf16 %v1405_v17, %v1405_v17 }
 0x7a1   : > { %12879 = vmatpush3.bf16.msra.mxu1 %v4873_v4  ;;  %v12566_v22 = vpop.f32.mrf.mxu0  ;;  %12858 = vmatprep.subr.bf16.mxu0 %v4864_v60  ;;  %v4897_v4 = vunpack.c.l.s8.bf16 %v2938_v5  ;;  %v2945_v60 = vld [vmem:[%s13677_s8 + $0x1d70] sm:$0xff]  ;;  %v4905_v34 = vunpack.c.l.s8.bf16 %v2942_v51  ;;  %v4896_v18 = vunpack.c.h.s8.bf16 %v2937_v14  ;;  %v2931_v5 = vld [vmem:[%s13677_s8 + $0x1d00] sm:$0xff]  ;;  %v4907_v50 = vunpack.c.l.s8.bf16 %v2943_v59  ;;  %v2954_v51 = vld [vmem:[%s13677_s8 + $0x1db8] sm:$0xff] }
 0x7a2   : > { %v12588_v23 = vpop.f32.mrf.mxu1  ;;  %12880 = vmatprep.subr.bf16.mxu1 %v4880_v11  ;;  %v15631_v39 = vadd.f32 %v12586_v1, %v9111_v19  ;;  %v1980_v11 = vpack.c.bf16 %v1404_v9, %v1404_v9  ;;  %v4912_v19 = vunpack.c.h.s8.bf16 %v2945_v60  ;;  %v4911_v32 = vunpack.c.l.s8.bf16 %v2945_v60  ;;  %v2962_v9 = vld [vmem:[%s13677_s8 + $0x1df8] sm:$0xff] }
 0x7a3   : > { %v15679_v17 = vrot.slane %v334_v35, %v13706_v38 }
 0x7a4   : > { %12859 = vmatpush3.bf16.msra.mxu0 %v4856_v10  ;;  %v2933_v10 = vld [vmem:[%s13677_s8 + $0x1d10] sm:$0xff] }
 0x7a5   : > { %12881 = vmatpush3.bf16.msra.mxu1 %v4872_v55  ;;  %12860 = vmatprep.subr.bf16.mxu0 %v4863_v24  ;;  %v2941_v55 = vld [vmem:[%s13677_s8 + $0x1d50] sm:$0xff]  ;;  %v4888_v61 = vunpack.c.h.s8.bf16 %v2933_v10  ;;  %v1421_v60 = vcombine.high %v15679_v17, %v15679_v17 }
 0x7a6   : > { %12882 = vmatprep.subr.bf16.mxu1 %v4879_v25 }
 0x7a8   : > { %12861 = vmatpush3.bf16.msra.mxu0 %v4855_v15  ;;  %v4904_v15 = vunpack.c.h.s8.bf16 %v2941_v55 }
 0x7a9   : > { %12883 = vmatpush3.bf16.msra.mxu1 %v4871_v29  ;;  %12862 = vmatprep.subr.bf16.mxu0 %v4862_v30 }
 0x7aa   : > { %12884 = vmatprep.subr.bf16.mxu1 %v4878_v31  ;;  %v4895_v31 = vunpack.c.l.s8.bf16 %v2937_v14  ;;  %v2958_v14 = vld [vmem:[%s13677_s8 + $0x1dd8] sm:$0xff] }
 0x7ac   : > { %12863 = vmatpush3.bf16.msra.mxu0 %v4854_v33  ;;  %v2936_v33 = vld [vmem:[%s13677_s8 + $0x1d28] sm:$0xff] }
 0x7ad   : > { %12885 = vmatpush3.bf16.msra.mxu1 %v4870_v20  ;;  %12864 = vmatprep.subr.bf16.mxu0 %v4861_v21  ;;  %v2944_v20 = vld [vmem:[%s13677_s8 + $0x1d68] sm:$0xff]  ;;  %v4887_v21 = vunpack.c.l.s8.bf16 %v2933_v10 }
 0x7ae   : > { %12886 = vmatprep.subr.bf16.mxu1 %v4877_v42  ;;  %v4894_v42 = vunpack.c.h.s8.bf16 %v2936_v33  ;;  %v4910_v43 = vunpack.c.h.s8.bf16 %v2944_v20 }
 0x7b0   : > { %12865 = vmatpush3.bf16.msra.mxu0 %v4853_v49  ;;  %v4886_v49 = vunpack.c.h.s8.bf16 %v2932_v44 }
 0x7b1   : > { %12887 = vmatpush3.bf16.msra.mxu1 %v4869_v27  ;;  %12866 = vmatprep.subr.bf16.mxu0 %v4860_v28  ;;  %v4902_v27 = vunpack.c.h.s8.bf16 %v2940_v40  ;;  %v4893_v28 = vunpack.c.l.s8.bf16 %v2936_v33 }
 0x7b2   : > { %12888 = vmatprep.subr.bf16.mxu1 %v4876_v57  ;;  %v4909_v57 = vunpack.c.l.s8.bf16 %v2944_v20 }
 0x7b4   : > { %12867 = vmatpush3.bf16.msra.mxu0 %v4852_v0  ;;  %v4885_v0 = vunpack.c.l.s8.bf16 %v2932_v44 }
 0x7b5   : > { %12889 = vmatpush3.bf16.msra.mxu1 %v4868_v36  ;;  %12868 = vmatprep.subr.bf16.mxu0 %v4859_v37  ;;  %v4901_v36 = vunpack.c.l.s8.bf16 %v2940_v40  ;;  %v4892_v37 = vunpack.c.h.s8.bf16 %v2935_v58 }
 0x7b6   : > { %12890 = vmatprep.subr.bf16.mxu1 %v4875_v41  ;;  %v4908_v41 = vunpack.c.h.s8.bf16 %v2943_v59  ;;  %v2948_v59 = vld [vmem:[%s13677_s8 + $0x1d88] sm:$0xff] }
 0x7b8   : > { %12869 = vmatpush3.bf16.msra.mxu0 %v4851_v48  ;;  %v1406_v48 = vcombine.high %v334_v35, %v334_v35  ;;  %v2956_v35 = vld [vmem:[%s13677_s8 + $0x1dc8] sm:$0xff] }
 0x7b9   : > { %12891 = vmatpush3.bf16.msra.mxu1 %v4867_v7  ;;  %12898 = vmatprep.subr.bf16.mxu0 %v4898_v52  ;;  %v4884_v7 = vunpack.c.h.s8.bf16 %v2931_v5  ;;  %v4900_v52 = vunpack.c.h.s8.bf16 %v2939_v45 }
 0x7ba   : > { %12920 = vmatprep.subr.bf16.mxu1 %v4914_v53  ;;  %v4891_v53 = vunpack.c.l.s8.bf16 %v2935_v58 }
 0x7bb   : > { %v12606_v6 = vpop.f32.mrf.mxu0  ;;  %9669 = vmatmul.mubr.bf16.vlgmr.msra.gmra.mxu0 %v1975_v62  ;;  %v15682_v62 = vrot.slane %v1406_v48, %v13706_v38  ;;  %v335_v48 = vld [vmem:[%s13670_s10 + $0x1e0] sm:$0xff] }
 0x7bc   : > { %v12628_v16 = vpop.f32.mrf.mxu1  ;;  %9709 = vmatmul.mubr.bf16.vlgmr.msra.gmra.mxu1 %v1977_v63  ;;  %12899 = vmatpush3.bf16.msra.mxu0 %v4890_v56  ;;  %v4883_v63 = vunpack.c.l.s8.bf16 %v2931_v5  ;;  %v4899_v56 = vunpack.c.l.s8.bf16 %v2939_v45  ;;  %v2951_v5 = vld [vmem:[%s13677_s8 + $0x1da0] sm:$0xff] }
 0x7bd   : > { %12921 = vmatpush3.bf16.msra.mxu1 %v4906_v3  ;;  %v12607_v1 = vpop.f32.mrf.mxu0  ;;  %12900 = vmatprep.subr.bf16.mxu0 %v4897_v4  ;;  %v4930_v3 = vunpack.c.h.s8.bf16 %v2954_v51  ;;  %v4946_v4 = vunpack.c.h.s8.bf16 %v2962_v9  ;;  %v2959_v45 = vld [vmem:[%s13677_s8 + $0x1de0] sm:$0xff] }
 0x7be   : > { %v12629_v2 = vpop.f32.mrf.mxu1  ;;  %12922 = vmatprep.subr.bf16.mxu1 %v4913_v13  ;;  %v12608_v22 = vadd.f32 %v12607_v1, %v12606_v6  ;;  %9748 = vmatprep.mubr.bf16.mxu0 %v1980_v11  ;;  %v2950_v13 = vld [vmem:[%s13677_s8 + $0x1d98] sm:$0xff]  ;;  %v1422_v11 = vcombine.high %v15682_v62, %v15682_v62  ;;  %v1981_v6 = vpack.c.bf16 %v15648_v47, %v15648_v47  ;;  %v4945_v1 = vunpack.c.l.s8.bf16 %v2962_v9  ;;  %v2955_v9 = vld [vmem:[%s13677_s8 + $0x1dc0] sm:$0xff] }
 0x7bf   : > { %v12630_v23 = vadd.f32 %v12629_v2, %v12628_v16  ;;  %9788 = vmatprep.mubr.bf16.mxu1 %v1982_v46  ;;  %v12609_v24 = vpop.f32.mrf.mxu0  ;;  %v1979_v46 = vpack.c.bf16 %v15645_v12, %v15645_v12  ;;  %v4922_v16 = vunpack.c.h.s8.bf16 %v2950_v13  ;;  %v2953_v2 = vld [vmem:[%s13677_s8 + $0x1db0] sm:$0xff]  ;;  %v4921_v12 = vunpack.c.l.s8.bf16 %v2950_v13 }
 0x7c0   : > { %v12631_v25 = vpop.f32.mrf.mxu1  ;;  %v9191_v26 = vadd.f32 %v12608_v22, %v15631_v39  ;;  %12901 = vmatpush3.bf16.msra.mxu0 %v4889_v8  ;;  %v4903_v39 = vunpack.c.l.s8.bf16 %v2941_v55  ;;  %v4938_v8 = vunpack.c.h.s8.bf16 %v2958_v14  ;;  %v1986_v10 = vpack.c.bf16 %v1422_v11, %v1422_v11 }
 0x7c1   : > { %12923 = vmatpush3.bf16.msra.mxu1 %v4905_v34  ;;  %v12610_v29 = vpop.f32.mrf.mxu0  ;;  %12902 = vmatprep.subr.bf16.mxu0 %v4896_v18  ;;  %v4929_v34 = vunpack.c.l.s8.bf16 %v2954_v51  ;;  %v2961_v18 = vld [vmem:[%s13677_s8 + $0x1df0] sm:$0xff]  ;;  %v4937_v47 = vunpack.c.l.s8.bf16 %v2958_v14  ;;  %v4928_v25 = vunpack.c.h.s8.bf16 %v2953_v2  ;;  %v2947_v51 = vld [vmem:[%s13677_s8 + $0x1d80] sm:$0xff]  ;;  %v4939_v13 = vunpack.c.l.s8.bf16 %v2959_v45  ;;  %v2970_v14 = vld [vmem:[%s13677_s8 + $0x1e38] sm:$0xff] }
 0x7c2   : > { %v12632_v30 = vpop.f32.mrf.mxu1  ;;  %12924 = vmatprep.subr.bf16.mxu1 %v4912_v19  ;;  %v15665_v54 = vadd.f32 %v12630_v23, %v9191_v26  ;;  %v1984_v19 = vpack.c.bf16 %v1421_v60, %v1421_v60  ;;  %v4944_v26 = vunpack.c.h.s8.bf16 %v2961_v18  ;;  %v4943_v44 = vunpack.c.l.s8.bf16 %v2961_v18  ;;  %v2978_v60 = vld [vmem:[%s13677_s8 + $0x1e78] sm:$0xff] }
 0x7c3   : > { %v15713_v11 = vrot.slane %v335_v48, %v13706_v38 }
 0x7c4   : > { %12903 = vmatpush3.bf16.msra.mxu0 %v4888_v61  ;;  %v2949_v61 = vld [vmem:[%s13677_s8 + $0x1d90] sm:$0xff] }
 0x7c5   : > { %12925 = vmatpush3.bf16.msra.mxu1 %v4904_v15  ;;  %12904 = vmatprep.subr.bf16.mxu0 %v4895_v31  ;;  %v2957_v15 = vld [vmem:[%s13677_s8 + $0x1dd0] sm:$0xff]  ;;  %v4920_v20 = vunpack.c.h.s8.bf16 %v2949_v61  ;;  %v1438_v18 = vcombine.high %v15713_v11, %v15713_v11 }
 0x7c6   : > { %12926 = vmatprep.subr.bf16.mxu1 %v4911_v32 }
 0x7c8   : > { %12905 = vmatpush3.bf16.msra.mxu0 %v4887_v21  ;;  %v4936_v21 = vunpack.c.h.s8.bf16 %v2957_v15 }
 0x7c9   : > { %12927 = vmatpush3.bf16.msra.mxu1 %v4903_v39  ;;  %12906 = vmatprep.subr.bf16.mxu0 %v4894_v42 }
 0x7ca   : > { %12928 = vmatprep.subr.bf16.mxu1 %v4910_v43  ;;  %v4927_v43 = vunpack.c.l.s8.bf16 %v2953_v2  ;;  %v2974_v2 = vld [vmem:[%s13677_s8 + $0x1e58] sm:$0xff] }
 0x7cc   : > { %12907 = vmatpush3.bf16.msra.mxu0 %v4886_v49  ;;  %v2952_v49 = vld [vmem:[%s13677_s8 + $0x1da8] sm:$0xff] }
 0x7cd   : > { %12929 = vmatpush3.bf16.msra.mxu1 %v4902_v27  ;;  %12908 = vmatprep.subr.bf16.mxu0 %v4893_v28  ;;  %v2960_v27 = vld [vmem:[%s13677_s8 + $0x1de8] sm:$0xff]  ;;  %v4919_v28 = vunpack.c.l.s8.bf16 %v2949_v61 }
 0x7ce   : > { %12930 = vmatprep.subr.bf16.mxu1 %v4909_v57  ;;  %v4926_v57 = vunpack.c.h.s8.bf16 %v2952_v49  ;;  %v4942_v58 = vunpack.c.h.s8.bf16 %v2960_v27 }
 0x7d0   : > { %12909 = vmatpush3.bf16.msra.mxu0 %v4885_v0  ;;  %v4918_v0 = vunpack.c.h.s8.bf16 %v2948_v59 }
 0x7d1   : > { %12931 = vmatpush3.bf16.msra.mxu1 %v4901_v36  ;;  %12910 = vmatprep.subr.bf16.mxu0 %v4892_v37  ;;  %v4934_v36 = vunpack.c.h.s8.bf16 %v2956_v35  ;;  %v4925_v37 = vunpack.c.l.s8.bf16 %v2952_v49 }
 0x7d2   : > { %12932 = vmatprep.subr.bf16.mxu1 %v4908_v41  ;;  %v4941_v41 = vunpack.c.l.s8.bf16 %v2960_v27 }
 0x7d4   : > { %12911 = vmatpush3.bf16.msra.mxu0 %v4884_v7  ;;  %v4917_v7 = vunpack.c.l.s8.bf16 %v2948_v59 }
 0x7d5   : > { %12933 = vmatpush3.bf16.msra.mxu1 %v4900_v52  ;;  %12912 = vmatprep.subr.bf16.mxu0 %v4891_v53  ;;  %v4933_v52 = vunpack.c.l.s8.bf16 %v2956_v35  ;;  %v4924_v53 = vunpack.c.h.s8.bf16 %v2951_v5 }
 0x7d6   : > { %12934 = vmatprep.subr.bf16.mxu1 %v4907_v50  ;;  %v4940_v50 = vunpack.c.h.s8.bf16 %v2959_v45  ;;  %v2964_v45 = vld [vmem:[%s13677_s8 + $0x1e08] sm:$0xff] }
 0x7d8   : > { %12913 = vmatpush3.bf16.msra.mxu0 %v4883_v63  ;;  %v1423_v63 = vcombine.high %v335_v48, %v335_v48  ;;  %v2972_v48 = vld [vmem:[%s13677_s8 + $0x1e48] sm:$0xff] }
 0x7d9   : > { %12935 = vmatpush3.bf16.msra.mxu1 %v4899_v56  ;;  %12942 = vmatprep.subr.bf16.mxu0 %v4930_v3  ;;  %v4916_v56 = vunpack.c.h.s8.bf16 %v2947_v51  ;;  %v4932_v3 = vunpack.c.h.s8.bf16 %v2955_v9 }
 0x7da   : > { %12964 = vmatprep.subr.bf16.mxu1 %v4946_v4  ;;  %v4923_v4 = vunpack.c.l.s8.bf16 %v2951_v5 }
 0x7db   : > { %v12650_v55 = vpop.f32.mrf.mxu0  ;;  %9749 = vmatmul.mubr.bf16.vlgmr.msra.gmra.mxu0 %v1979_v46  ;;  %v15716_v46 = vrot.slane %v1423_v63, %v13706_v38  ;;  %v336_v63 = vld [vmem:[%s13670_s10 + $0x1e8] sm:$0xff] }
 0x7dc   : > { %v12672_v22 = vpop.f32.mrf.mxu1  ;;  %9789 = vmatmul.mubr.bf16.vlgmr.msra.gmra.mxu1 %v1981_v6  ;;  %12943 = vmatpush3.bf16.msra.mxu0 %v4922_v16  ;;  %v4915_v6 = vunpack.c.l.s8.bf16 %v2947_v51  ;;  %v4931_v16 = vunpack.c.l.s8.bf16 %v2955_v9  ;;  %v2967_v51 = vld [vmem:[%s13677_s8 + $0x1e20] sm:$0xff] }
 0x7dd   : > { %12965 = vmatpush3.bf16.msra.mxu1 %v4938_v8  ;;  %v12651_v23 = vpop.f32.mrf.mxu0  ;;  %12944 = vmatprep.subr.bf16.mxu0 %v4929_v34  ;;  %v4962_v8 = vunpack.c.h.s8.bf16 %v2970_v14  ;;  %v4978_v34 = vunpack.c.h.s8.bf16 %v2978_v60  ;;  %v2975_v9 = vld [vmem:[%s13677_s8 + $0x1e60] sm:$0xff] }
 0x7de   : > { %v12673_v24 = vpop.f32.mrf.mxu1  ;;  %12966 = vmatprep.subr.bf16.mxu1 %v4945_v1  ;;  %v12652_v29 = vadd.f32 %v12651_v23, %v12650_v55  ;;  %9828 = vmatprep.mubr.bf16.mxu0 %v1984_v19  ;;  %v2966_v1 = vld [vmem:[%s13677_s8 + $0x1e18] sm:$0xff]  ;;  %v1439_v19 = vcombine.high %v15716_v46, %v15716_v46  ;;  %v1985_v55 = vpack.c.bf16 %v15682_v62, %v15682_v62  ;;  %v4977_v23 = vunpack.c.l.s8.bf16 %v2978_v60  ;;  %v2971_v60 = vld [vmem:[%s13677_s8 + $0x1e40] sm:$0xff] }
 0x7df   : > { %v12674_v30 = vadd.f32 %v12673_v24, %v12672_v22  ;;  %9868 = vmatprep.mubr.bf16.mxu1 %v1986_v10  ;;  %v12653_v31 = vpop.f32.mrf.mxu0  ;;  %v1983_v10 = vpack.c.bf16 %v15679_v17, %v15679_v17  ;;  %v4954_v22 = vunpack.c.h.s8.bf16 %v2966_v1  ;;  %v2969_v24 = vld [vmem:[%s13677_s8 + $0x1e30] sm:$0xff]  ;;  %v4953_v17 = vunpack.c.l.s8.bf16 %v2966_v1 }
 0x7e0   : > { %v12675_v32 = vpop.f32.mrf.mxu1  ;;  %v9271_v33 = vadd.f32 %v12652_v29, %v15665_v54  ;;  %12945 = vmatpush3.bf16.msra.mxu0 %v4921_v12  ;;  %v4935_v54 = vunpack.c.l.s8.bf16 %v2957_v15  ;;  %v4970_v12 = vunpack.c.h.s8.bf16 %v2974_v2  ;;  %v1990_v61 = vpack.c.bf16 %v1439_v19, %v1439_v19 }
 0x7e1   : > { %12967 = vmatpush3.bf16.msra.mxu1 %v4937_v47  ;;  %v12654_v39 = vpop.f32.mrf.mxu0  ;;  %12946 = vmatprep.subr.bf16.mxu0 %v4928_v25  ;;  %v4961_v47 = vunpack.c.l.s8.bf16 %v2970_v14  ;;  %v2977_v25 = vld [vmem:[%s13677_s8 + $0x1e70] sm:$0xff]  ;;  %v4969_v62 = vunpack.c.l.s8.bf16 %v2974_v2  ;;  %v4960_v32 = vunpack.c.h.s8.bf16 %v2969_v24  ;;  %v2963_v14 = vld [vmem:[%s13677_s8 + $0x1e00] sm:$0xff]  ;;  %v4971_v1 = vunpack.c.l.s8.bf16 %v2975_v9  ;;  %v2986_v2 = vld [vmem:[%s13677_s8 + $0x1eb8] sm:$0xff] }
 0x7e2   : > { %v12676_v42 = vpop.f32.mrf.mxu1  ;;  %12968 = vmatprep.subr.bf16.mxu1 %v4944_v26  ;;  %v15699_v40 = vadd.f32 %v12674_v30, %v9271_v33  ;;  %v1988_v26 = vpack.c.bf16 %v1438_v18, %v1438_v18  ;;  %v4976_v33 = vunpack.c.h.s8.bf16 %v2977_v25  ;;  %v4975_v59 = vunpack.c.l.s8.bf16 %v2977_v25  ;;  %v2994_v18 = vld [vmem:[%s13677_s8 + $0x1ef8] sm:$0xff] }
 0x7e3   : > { %v15747_v19 = vrot.slane %v336_v63, %v13706_v38 }
 0x7e4   : > { %12947 = vmatpush3.bf16.msra.mxu0 %v4920_v20  ;;  %v2965_v20 = vld [vmem:[%s13677_s8 + $0x1e10] sm:$0xff] }
 0x7e5   : > { %12969 = vmatpush3.bf16.msra.mxu1 %v4936_v21  ;;  %12948 = vmatprep.subr.bf16.mxu0 %v4927_v43  ;;  %v2973_v21 = vld [vmem:[%s13677_s8 + $0x1e50] sm:$0xff]  ;;  %v4952_v27 = vunpack.c.h.s8.bf16 %v2965_v20  ;;  %v1455_v25 = vcombine.high %v15747_v19, %v15747_v19 }
 0x7e6   : > { %12970 = vmatprep.subr.bf16.mxu1 %v4943_v44 }
 0x7e8   : > { %12949 = vmatpush3.bf16.msra.mxu0 %v4919_v28  ;;  %v4968_v28 = vunpack.c.h.s8.bf16 %v2973_v21 }
 0x7e9   : > { %12971 = vmatpush3.bf16.msra.mxu1 %v4935_v54  ;;  %12950 = vmatprep.subr.bf16.mxu0 %v4926_v57 }
 0x7ea   : > { %12972 = vmatprep.subr.bf16.mxu1 %v4942_v58  ;;  %v4959_v58 = vunpack.c.l.s8.bf16 %v2969_v24  ;;  %v2990_v24 = vld [vmem:[%s13677_s8 + $0x1ed8] sm:$0xff] }
 0x7ec   : > { %12951 = vmatpush3.bf16.msra.mxu0 %v4918_v0  ;;  %v2968_v0 = vld [vmem:[%s13677_s8 + $0x1e28] sm:$0xff] }
 0x7ed   : > { %12973 = vmatpush3.bf16.msra.mxu1 %v4934_v36  ;;  %12952 = vmatprep.subr.bf16.mxu0 %v4925_v37  ;;  %v2976_v36 = vld [vmem:[%s13677_s8 + $0x1e68] sm:$0xff]  ;;  %v4951_v37 = vunpack.c.l.s8.bf16 %v2965_v20 }
 0x7ee   : > { %12974 = vmatprep.subr.bf16.mxu1 %v4941_v41  ;;  %v4958_v41 = vunpack.c.h.s8.bf16 %v2968_v0  ;;  %v4974_v5 = vunpack.c.h.s8.bf16 %v2976_v36 }
 0x7f0   : > { %12953 = vmatpush3.bf16.msra.mxu0 %v4917_v7  ;;  %v4950_v7 = vunpack.c.h.s8.bf16 %v2964_v45 }
 0x7f1   : > { %12975 = vmatpush3.bf16.msra.mxu1 %v4933_v52  ;;  %12954 = vmatprep.subr.bf16.mxu0 %v4924_v53  ;;  %v4966_v52 = vunpack.c.h.s8.bf16 %v2972_v48  ;;  %v4957_v53 = vunpack.c.l.s8.bf16 %v2968_v0 }
 0x7f2   : > { %12976 = vmatprep.subr.bf16.mxu1 %v4940_v50  ;;  %v4973_v50 = vunpack.c.l.s8.bf16 %v2976_v36 }
 0x7f4   : > { %12955 = vmatpush3.bf16.msra.mxu0 %v4916_v56  ;;  %v4949_v56 = vunpack.c.l.s8.bf16 %v2964_v45 }
 0x7f5   : > { %12977 = vmatpush3.bf16.msra.mxu1 %v4932_v3  ;;  %12956 = vmatprep.subr.bf16.mxu0 %v4923_v4  ;;  %v4965_v3 = vunpack.c.l.s8.bf16 %v2972_v48  ;;  %v4956_v4 = vunpack.c.h.s8.bf16 %v2967_v51 }
 0x7f6   : > { %12978 = vmatprep.subr.bf16.mxu1 %v4939_v13  ;;  %v4972_v13 = vunpack.c.h.s8.bf16 %v2975_v9  ;;  %v2980_v9 = vld [vmem:[%s13677_s8 + $0x1e88] sm:$0xff] }
 0x7f8   : > { %12957 = vmatpush3.bf16.msra.mxu0 %v4915_v6  ;;  %v1440_v6 = vcombine.high %v336_v63, %v336_v63  ;;  %v2988_v63 = vld [vmem:[%s13677_s8 + $0x1ec8] sm:$0xff] }
 0x7f9   : > { %12979 = vmatpush3.bf16.msra.mxu1 %v4931_v16  ;;  %12986 = vmatprep.subr.bf16.mxu0 %v4962_v8  ;;  %v4948_v16 = vunpack.c.h.s8.bf16 %v2963_v14  ;;  %v4964_v8 = vunpack.c.h.s8.bf16 %v2971_v60 }
 0x7fa   : > { %13008 = vmatprep.subr.bf16.mxu1 %v4978_v34  ;;  %v4955_v34 = vunpack.c.l.s8.bf16 %v2967_v51 }
 0x7fb   : > { %v12694_v15 = vpop.f32.mrf.mxu0  ;;  %9829 = vmatmul.mubr.bf16.vlgmr.msra.gmra.mxu0 %v1983_v10  ;;  %v15750_v10 = vrot.slane %v1440_v6, %v13706_v38  ;;  %v337_v6 = vld [vmem:[%s13670_s10 + $0x1f0] sm:$0xff] }
 0x7fc   : > { %v12716_v29 = vpop.f32.mrf.mxu1  ;;  %9869 = vmatmul.mubr.bf16.vlgmr.msra.gmra.mxu1 %v1985_v55  ;;  %12987 = vmatpush3.bf16.msra.mxu0 %v4954_v22  ;;  %v4947_v55 = vunpack.c.l.s8.bf16 %v2963_v14  ;;  %v4963_v22 = vunpack.c.l.s8.bf16 %v2971_v60  ;;  %v2983_v14 = vld [vmem:[%s13677_s8 + $0x1ea0] sm:$0xff] }
 0x7fd   : > { %13009 = vmatpush3.bf16.msra.mxu1 %v4970_v12  ;;  %v12695_v30 = vpop.f32.mrf.mxu0  ;;  %12988 = vmatprep.subr.bf16.mxu0 %v4961_v47  ;;  %v4994_v12 = vunpack.c.h.s8.bf16 %v2986_v2  ;;  %v5010_v47 = vunpack.c.h.s8.bf16 %v2994_v18  ;;  %v2991_v60 = vld [vmem:[%s13677_s8 + $0x1ee0] sm:$0xff] }
 0x7fe   : > { %v12717_v31 = vpop.f32.mrf.mxu1  ;;  %13010 = vmatprep.subr.bf16.mxu1 %v4977_v23  ;;  %v12696_v39 = vadd.f32 %v12695_v30, %v12694_v15  ;;  %9908 = vmatprep.mubr.bf16.mxu0 %v1988_v26  ;;  %v2982_v23 = vld [vmem:[%s13677_s8 + $0x1e98] sm:$0xff]  ;;  %v1456_v26 = vcombine.high %v15750_v10, %v15750_v10  ;;  %v1989_v15 = vpack.c.bf16 %v15716_v46, %v15716_v46  ;;  %v5009_v30 = vunpack.c.l.s8.bf16 %v2994_v18  ;;  %v2987_v18 = vld [vmem:[%s13677_s8 + $0x1ec0] sm:$0xff] }
 0x7ff   : > { %v12718_v42 = vadd.f32 %v12717_v31, %v12716_v29  ;;  %9948 = vmatprep.mubr.bf16.mxu1 %v1990_v61  ;;  %v12697_v43 = vpop.f32.mrf.mxu0  ;;  %v1987_v61 = vpack.c.bf16 %v15713_v11, %v15713_v11  ;;  %v4986_v29 = vunpack.c.h.s8.bf16 %v2982_v23  ;;  %v2985_v31 = vld [vmem:[%s13677_s8 + $0x1eb0] sm:$0xff]  ;;  %v4985_v11 = vunpack.c.l.s8.bf16 %v2982_v23 }
 0x800   : > { %v12719_v44 = vpop.f32.mrf.mxu1  ;;  %v9351_v49 = vadd.f32 %v12696_v39, %v15699_v40  ;;  %12989 = vmatpush3.bf16.msra.mxu0 %v4953_v17  ;;  %v4967_v40 = vunpack.c.l.s8.bf16 %v2973_v21  ;;  %v5002_v17 = vunpack.c.h.s8.bf16 %v2990_v24  ;;  %v1994_v20 = vpack.c.bf16 %v1456_v26, %v1456_v26 }
 0x801   : > { %13011 = vmatpush3.bf16.msra.mxu1 %v4969_v62  ;;  %v12698_v54 = vpop.f32.mrf.mxu0  ;;  %12990 = vmatprep.subr.bf16.mxu0 %v4960_v32  ;;  %v4993_v62 = vunpack.c.l.s8.bf16 %v2986_v2  ;;  %v2993_v32 = vld [vmem:[%s13677_s8 + $0x1ef0] sm:$0xff]  ;;  %v5001_v46 = vunpack.c.l.s8.bf16 %v2990_v24  ;;  %v4992_v44 = vunpack.c.h.s8.bf16 %v2985_v31  ;;  %v2979_v2 = vld [vmem:[%s13677_s8 + $0x1e80] sm:$0xff]  ;;  %v5003_v23 = vunpack.c.l.s8.bf16 %v2991_v60  ;;  %v3002_v24 = vld [vmem:[%s13677_s8 + $0x1f38] sm:$0xff] }
 0x802   : > { %v12720_v57 = vpop.f32.mrf.mxu1  ;;  %13012 = vmatprep.subr.bf16.mxu1 %v4976_v33  ;;  %v15733_v35 = vadd.f32 %v12718_v42, %v9351_v49  ;;  %v1992_v33 = vpack.c.bf16 %v1455_v25, %v1455_v25  ;;  %v5008_v49 = vunpack.c.h.s8.bf16 %v2993_v32  ;;  %v5007_v45 = vunpack.c.l.s8.bf16 %v2993_v32  ;;  %v3010_v25 = vld [vmem:[%s13677_s8 + $0x1f78] sm:$0xff] }
 0x803   : > { %v15781_v26 = vrot.slane %v337_v6, %v13706_v38 }
 0x804   : > { %12991 = vmatpush3.bf16.msra.mxu0 %v4952_v27  ;;  %v2981_v27 = vld [vmem:[%s13677_s8 + $0x1e90] sm:$0xff] }
 0x805   : > { %13013 = vmatpush3.bf16.msra.mxu1 %v4968_v28  ;;  %12992 = vmatprep.subr.bf16.mxu0 %v4959_v58  ;;  %v2989_v28 = vld [vmem:[%s13677_s8 + $0x1ed0] sm:$0xff]  ;;  %v4984_v36 = vunpack.c.h.s8.bf16 %v2981_v27  ;;  %v1472_v32 = vcombine.high %v15781_v26, %v15781_v26 }
 0x806   : > { %13014 = vmatprep.subr.bf16.mxu1 %v4975_v59 }
 0x808   : > { %12993 = vmatpush3.bf16.msra.mxu0 %v4951_v37  ;;  %v5000_v37 = vunpack.c.h.s8.bf16 %v2989_v28 }
 0x809   : > { %13015 = vmatpush3.bf16.msra.mxu1 %v4967_v40  ;;  %12994 = vmatprep.subr.bf16.mxu0 %v4958_v41 }
 0x80a   : > { %13016 = vmatprep.subr.bf16.mxu1 %v4974_v5  ;;  %v4991_v5 = vunpack.c.l.s8.bf16 %v2985_v31  ;;  %v3006_v31 = vld [vmem:[%s13677_s8 + $0x1f58] sm:$0xff] }
 0x80c   : > { %12995 = vmatpush3.bf16.msra.mxu0 %v4950_v7  ;;  %v2984_v7 = vld [vmem:[%s13677_s8 + $0x1ea8] sm:$0xff] }
 0x80d   : > { %13017 = vmatpush3.bf16.msra.mxu1 %v4966_v52  ;;  %12996 = vmatprep.subr.bf16.mxu0 %v4957_v53  ;;  %v2992_v52 = vld [vmem:[%s13677_s8 + $0x1ee8] sm:$0xff]  ;;  %v4983_v53 = vunpack.c.l.s8.bf16 %v2981_v27 }
 0x80e   : > { %13018 = vmatprep.subr.bf16.mxu1 %v4973_v50  ;;  %v4990_v50 = vunpack.c.h.s8.bf16 %v2984_v7  ;;  %v5006_v51 = vunpack.c.h.s8.bf16 %v2992_v52 }
 0x810   : > { %12997 = vmatpush3.bf16.msra.mxu0 %v4949_v56  ;;  %v4982_v56 = vunpack.c.h.s8.bf16 %v2980_v9 }
 0x811   : > { %13019 = vmatpush3.bf16.msra.mxu1 %v4965_v3  ;;  %12998 = vmatprep.subr.bf16.mxu0 %v4956_v4  ;;  %v4998_v3 = vunpack.c.h.s8.bf16 %v2988_v63  ;;  %v4989_v4 = vunpack.c.l.s8.bf16 %v2984_v7 }
 0x812   : > { %13020 = vmatprep.subr.bf16.mxu1 %v4972_v13  ;;  %v5005_v13 = vunpack.c.l.s8.bf16 %v2992_v52 }
 0x814   : > { %12999 = vmatpush3.bf16.msra.mxu0 %v4948_v16  ;;  %v4981_v16 = vunpack.c.l.s8.bf16 %v2980_v9 }
 0x815   : > { %13021 = vmatpush3.bf16.msra.mxu1 %v4964_v8  ;;  %13000 = vmatprep.subr.bf16.mxu0 %v4955_v34  ;;  %v4997_v8 = vunpack.c.l.s8.bf16 %v2988_v63  ;;  %v4988_v34 = vunpack.c.h.s8.bf16 %v2983_v14 }
 0x816   : > { %13022 = vmatprep.subr.bf16.mxu1 %v4971_v1  ;;  %v5004_v1 = vunpack.c.h.s8.bf16 %v2991_v60  ;;  %v2996_v60 = vld [vmem:[%s13677_s8 + $0x1f08] sm:$0xff] }
 0x818   : > { %13001 = vmatpush3.bf16.msra.mxu0 %v4947_v55  ;;  %v1457_v55 = vcombine.high %v337_v6, %v337_v6  ;;  %v3004_v6 = vld [vmem:[%s13677_s8 + $0x1f48] sm:$0xff] }
 0x819   : > { %13023 = vmatpush3.bf16.msra.mxu1 %v4963_v22  ;;  %13030 = vmatprep.subr.bf16.mxu0 %v4994_v12  ;;  %v4980_v22 = vunpack.c.h.s8.bf16 %v2979_v2  ;;  %v4996_v12 = vunpack.c.h.s8.bf16 %v2987_v18 }
 0x81a   : > { %13052 = vmatprep.subr.bf16.mxu1 %v5010_v47  ;;  %v4987_v47 = vunpack.c.l.s8.bf16 %v2983_v14 }
 0x81b   : > { %v12738_v21 = vpop.f32.mrf.mxu0  ;;  %9909 = vmatmul.mubr.bf16.vlgmr.msra.gmra.mxu0 %v1987_v61  ;;  %v15784_v61 = vrot.slane %v1457_v55, %v13706_v38  ;;  %v338_v55 = vld [vmem:[%s13670_s10 + $0x1f8] sm:$0xff] }
 0x81c   : > { %v12760_v39 = vpop.f32.mrf.mxu1  ;;  %9949 = vmatmul.mubr.bf16.vlgmr.msra.gmra.mxu1 %v1989_v15  ;;  %13031 = vmatpush3.bf16.msra.mxu0 %v4986_v29  ;;  %v4979_v15 = vunpack.c.l.s8.bf16 %v2979_v2  ;;  %v4995_v29 = vunpack.c.l.s8.bf16 %v2987_v18  ;;  %v2999_v2 = vld [vmem:[%s13677_s8 + $0x1f20] sm:$0xff] }
 0x81d   : > { %13053 = vmatpush3.bf16.msra.mxu1 %v5002_v17  ;;  %v12739_v42 = vpop.f32.mrf.mxu0  ;;  %13032 = vmatprep.subr.bf16.mxu0 %v4993_v62  ;;  %v5026_v17 = vunpack.c.h.s8.bf16 %v3002_v24  ;;  %v5042_v62 = vunpack.c.h.s8.bf16 %v3010_v25  ;;  %v3007_v18 = vld [vmem:[%s13677_s8 + $0x1f60] sm:$0xff] }
 0x81e   : > { %v12761_v43 = vpop.f32.mrf.mxu1  ;;  %13054 = vmatprep.subr.bf16.mxu1 %v5009_v30  ;;  %v12740_v54 = vadd.f32 %v12739_v42, %v12738_v21  ;;  %9988 = vmatprep.mubr.bf16.mxu0 %v1992_v33  ;;  %v2998_v30 = vld [vmem:[%s13677_s8 + $0x1f18] sm:$0xff]  ;;  %v1473_v33 = vcombine.high %v15784_v61, %v15784_v61  ;;  %v1993_v21 = vpack.c.bf16 %v15750_v10, %v15750_v10  ;;  %v5041_v42 = vunpack.c.l.s8.bf16 %v3010_v25  ;;  %v3003_v25 = vld [vmem:[%s13677_s8 + $0x1f40] sm:$0xff] }
 0x81f   : > { %v12762_v57 = vadd.f32 %v12761_v43, %v12760_v39  ;;  %10028 = vmatprep.mubr.bf16.mxu1 %v1994_v20  ;;  %v12741_v58 = vpop.f32.mrf.mxu0  ;;  %v1991_v20 = vpack.c.bf16 %v15747_v19, %v15747_v19  ;;  %v5018_v39 = vunpack.c.h.s8.bf16 %v2998_v30  ;;  %v3001_v43 = vld [vmem:[%s13677_s8 + $0x1f30] sm:$0xff]  ;;  %v5017_v19 = vunpack.c.l.s8.bf16 %v2998_v30 }
 0x820   : > { %v12763_v59 = vpop.f32.mrf.mxu1  ;;  %v9431_v0 = vadd.f32 %v12740_v54, %v15733_v35  ;;  %13033 = vmatpush3.bf16.msra.mxu0 %v4985_v11  ;;  %v4999_v35 = vunpack.c.l.s8.bf16 %v2989_v28  ;;  %v5034_v11 = vunpack.c.h.s8.bf16 %v3006_v31  ;;  %v1998_v27 = vpack.c.bf16 %v1473_v33, %v1473_v33 }
 0x821   : > { %13055 = vmatpush3.bf16.msra.mxu1 %v5001_v46  ;;  %v12742_v40 = vpop.f32.mrf.mxu0  ;;  %13034 = vmatprep.subr.bf16.mxu0 %v4992_v44  ;;  %v5025_v46 = vunpack.c.l.s8.bf16 %v3002_v24  ;;  %v3009_v44 = vld [vmem:[%s13677_s8 + $0x1f70] sm:$0xff]  ;;  %v5033_v10 = vunpack.c.l.s8.bf16 %v3006_v31  ;;  %v5024_v59 = vunpack.c.h.s8.bf16 %v3001_v43  ;;  %v2995_v24 = vld [vmem:[%s13677_s8 + $0x1f00] sm:$0xff]  ;;  %v5035_v30 = vunpack.c.l.s8.bf16 %v3007_v18  ;;  %v3018_v31 = vld [vmem:[%s13677_s8 + $0x1fb8] sm:$0xff] }
 0x822   : > { %v12764_v41 = vpop.f32.mrf.mxu1  ;;  %13056 = vmatprep.subr.bf16.mxu1 %v5008_v49  ;;  %v15767_v48 = vadd.f32 %v12762_v57, %v9431_v0  ;;  %v1996_v49 = vpack.c.bf16 %v1472_v32, %v1472_v32  ;;  %v5040_v0 = vunpack.c.h.s8.bf16 %v3009_v44  ;;  %v5039_v9 = vunpack.c.l.s8.bf16 %v3009_v44  ;;  %v3026_v32 = vld [vmem:[%s13677_s8 + $0x1ff8] sm:$0xff] }
 0x823   : > { %v15815_v33 = vrot.slane %v338_v55, %v13706_v38 }
 0x824   : > { %13035 = vmatpush3.bf16.msra.mxu0 %v4984_v36  ;;  %v2997_v36 = vld [vmem:[%s13677_s8 + $0x1f10] sm:$0xff] }
 0x825   : > { %13057 = vmatpush3.bf16.msra.mxu1 %v5000_v37  ;;  %13036 = vmatprep.subr.bf16.mxu0 %v4991_v5  ;;  %v3005_v37 = vld [vmem:[%s13677_s8 + $0x1f50] sm:$0xff]  ;;  %v5016_v52 = vunpack.c.h.s8.bf16 %v2997_v36  ;;  %v1489_v44 = vcombine.high %v15815_v33, %v15815_v33 }
 0x826   : > { %13058 = vmatprep.subr.bf16.mxu1 %v5007_v45 }
 0x828   : > { %13037 = vmatpush3.bf16.msra.mxu0 %v4983_v53  ;;  %v5032_v53 = vunpack.c.h.s8.bf16 %v3005_v37 }
 0x829   : > { %13059 = vmatpush3.bf16.msra.mxu1 %v4999_v35  ;;  %13038 = vmatprep.subr.bf16.mxu0 %v4990_v50 }
 0x82a   : > { %13060 = vmatprep.subr.bf16.mxu1 %v5006_v51  ;;  %v5023_v51 = vunpack.c.l.s8.bf16 %v3001_v43  ;;  %v3022_v43 = vld [vmem:[%s13677_s8 + $0x1fd8] sm:$0xff] }
 0x82c   : > { %13039 = vmatpush3.bf16.msra.mxu0 %v4982_v56  ;;  %v3000_v56 = vld [vmem:[%s13677_s8 + $0x1f28] sm:$0xff] }
 0x82d   : > { %13061 = vmatpush3.bf16.msra.mxu1 %v4998_v3  ;;  %13040 = vmatprep.subr.bf16.mxu0 %v4989_v4  ;;  %v3008_v3 = vld [vmem:[%s13677_s8 + $0x1f68] sm:$0xff]  ;;  %v5015_v4 = vunpack.c.l.s8.bf16 %v2997_v36 }
 0x82e   : > { %13062 = vmatprep.subr.bf16.mxu1 %v5005_v13  ;;  %v5022_v13 = vunpack.c.h.s8.bf16 %v3000_v56  ;;  %v5038_v14 = vunpack.c.h.s8.bf16 %v3008_v3 }
 0x830   : > { %13041 = vmatpush3.bf16.msra.mxu0 %v4981_v16  ;;  %v5014_v16 = vunpack.c.h.s8.bf16 %v2996_v60 }
 0x831   : > { %13063 = vmatpush3.bf16.msra.mxu1 %v4997_v8  ;;  %13042 = vmatprep.subr.bf16.mxu0 %v4988_v34  ;;  %v5030_v8 = vunpack.c.h.s8.bf16 %v3004_v6  ;;  %v5021_v34 = vunpack.c.l.s8.bf16 %v3000_v56 }
 0x832   : > { %13064 = vmatprep.subr.bf16.mxu1 %v5004_v1  ;;  %v5037_v1 = vunpack.c.l.s8.bf16 %v3008_v3 }
 0x834   : > { %13043 = vmatpush3.bf16.msra.mxu0 %v4980_v22  ;;  %v5013_v22 = vunpack.c.l.s8.bf16 %v2996_v60 }
 0x835   : > { %13065 = vmatpush3.bf16.msra.mxu1 %v4996_v12  ;;  %13044 = vmatprep.subr.bf16.mxu0 %v4987_v47  ;;  %v5029_v12 = vunpack.c.l.s8.bf16 %v3004_v6  ;;  %v5020_v47 = vunpack.c.h.s8.bf16 %v2999_v2  ;;  %v3016_v6 = vld [vmem:[%s13677_s8 + $0x1fa8] sm:$0xff] }
 0x836   : > { %13066 = vmatprep.subr.bf16.mxu1 %v5003_v23  ;;  %v5036_v23 = vunpack.c.h.s8.bf16 %v3007_v18  ;;  %v3020_v18 = vld [vmem:[%s13677_s8 + $0x1fc8] sm:$0xff] }
 0x838   : > { %13045 = vmatpush3.bf16.msra.mxu0 %v4979_v15  ;;  %v1474_v15 = vcombine.high %v338_v55, %v338_v55 }
 0x839   : > { %13067 = vmatpush3.bf16.msra.mxu1 %v4995_v29  ;;  %13074 = vmatprep.subr.bf16.mxu0 %v5026_v17  ;;  %v5012_v29 = vunpack.c.h.s8.bf16 %v2995_v24  ;;  %v5028_v17 = vunpack.c.h.s8.bf16 %v3003_v25 }
 0x83a   : > { %13096 = vmatprep.subr.bf16.mxu1 %v5042_v62  ;;  %v5019_v62 = vunpack.c.l.s8.bf16 %v2999_v2  ;;  %v3012_v2 = vld [vmem:[%s13677_s8 + $0x1f88] sm:$0xff] }
 0x83b   : > { %v12782_v28 = vpop.f32.mrf.mxu0  ;;  %9989 = vmatmul.mubr.bf16.vlgmr.msra.gmra.mxu0 %v1991_v20  ;;  %v15818_v20 = vrot.slane %v1474_v15, %v13706_v38  ;;  %v1995_v38 = vpack.c.bf16 %v15781_v26, %v15781_v26  ;;  %v5046_v55 = vunpack.c.h.s8.bf16 %v3012_v2  ;;  %v5061_v15 = vunpack.c.l.s8.bf16 %v3020_v18 }
 0x83c   : > { %v12804_v54 = vpop.f32.mrf.mxu1  ;;  %10029 = vmatmul.mubr.bf16.vlgmr.msra.gmra.mxu1 %v1993_v21  ;;  %13075 = vmatpush3.bf16.msra.mxu0 %v5018_v39  ;;  %v5011_v21 = vunpack.c.l.s8.bf16 %v2995_v24  ;;  %v5027_v39 = vunpack.c.l.s8.bf16 %v3003_v25  ;;  %v3023_v24 = vld [vmem:[%s13677_s8 + $0x1fe0] sm:$0xff]  ;;  %v5045_v25 = vunpack.c.l.s8.bf16 %v3012_v2 }
 0x83d   : > { %13097 = vmatpush3.bf16.msra.mxu1 %v5034_v11  ;;  %v12783_v57 = vpop.f32.mrf.mxu0  ;;  %13076 = vmatprep.subr.bf16.mxu0 %v5025_v46  ;;  %v5058_v11 = vunpack.c.h.s8.bf16 %v3018_v31  ;;  %v5074_v46 = vunpack.c.h.s8.bf16 %v3026_v32 }
 0x83e   : > { %v12805_v58 = vpop.f32.mrf.mxu1  ;;  %13098 = vmatprep.subr.bf16.mxu1 %v5041_v42  ;;  %v12784_v40 = vadd.f32 %v12783_v57, %v12782_v28  ;;  %10068 = vmatprep.mubr.bf16.mxu0 %v1996_v49  ;;  %v3014_v42 = vld [vmem:[%s13677_s8 + $0x1f98] sm:$0xff]  ;;  %v1490_v49 = vcombine.high %v15818_v20, %v15818_v20  ;;  %v3017_v57 = vld [vmem:[%s13677_s8 + $0x1fb0] sm:$0xff] }
 0x83f   : > { %v12806_v41 = vadd.f32 %v12805_v58, %v12804_v54  ;;  %10108 = vmatprep.mubr.bf16.mxu1 %v1998_v27  ;;  %v12785_v5 = vpop.f32.mrf.mxu0  ;;  %v1997_v27 = vpack.c.bf16 %v15784_v61, %v15784_v61  ;;  %v5050_v28 = vunpack.c.h.s8.bf16 %v3014_v42  ;;  %v5066_v54 = vunpack.c.h.s8.bf16 %v3022_v43  ;;  %v3025_v58 = vld [vmem:[%s13677_s8 + $0x1ff0] sm:$0xff] }
 0x840   : > { %v12807_v45 = vpop.f32.mrf.mxu1  ;;  %v9511_v7 = vadd.f32 %v12784_v40, %v15767_v48  ;;  %13077 = vmatpush3.bf16.msra.mxu0 %v5017_v19  ;;  %v5031_v48 = vunpack.c.l.s8.bf16 %v3005_v37  ;;  %v5057_v19 = vunpack.c.l.s8.bf16 %v3018_v31  ;;  %v5049_v26 = vunpack.c.l.s8.bf16 %v3014_v42 }
 0x841   : > { %13099 = vmatpush3.bf16.msra.mxu1 %v5033_v10  ;;  %v12786_v35 = vpop.f32.mrf.mxu0  ;;  %13078 = vmatprep.subr.bf16.mxu0 %v5024_v59  ;;  %v5073_v10 = vunpack.c.l.s8.bf16 %v3026_v32  ;;  %v2000_v59 = vpack.c.bf16 %v1489_v44, %v1489_v44  ;;  %v5065_v61 = vunpack.c.l.s8.bf16 %v3022_v43  ;;  %v5056_v5 = vunpack.c.h.s8.bf16 %v3017_v57 }
 0x842   : > { %v12808_v50 = vpop.f32.mrf.mxu1  ;;  %13100 = vmatprep.subr.bf16.mxu1 %v5040_v0  ;;  %v15801_v63 = vadd.f32 %v12806_v41, %v9511_v7  ;;  %v2002_v0 = vpack.c.bf16 %v1490_v49, %v1490_v49  ;;  %v5072_v45 = vunpack.c.h.s8.bf16 %v3025_v58  ;;  %v3013_v7 = vld [vmem:[%s13677_s8 + $0x1f90] sm:$0xff]  ;;  %v1999_v42 = vpack.c.bf16 %v15815_v33, %v15815_v33 }
 0x843   : > { %v5048_v56 = vunpack.c.h.s8.bf16 %v3013_v7  ;;  %v2001_v43 = vpack.c.bf16 %v15818_v20, %v15818_v20 }
 0x844   : > { %13079 = vmatpush3.bf16.msra.mxu0 %v5016_v52  ;;  %v3021_v52 = vld [vmem:[%s13677_s8 + $0x1fd0] sm:$0xff] }
 0x845   : > { %13101 = vmatpush3.bf16.msra.mxu1 %v5032_v53  ;;  %13080 = vmatprep.subr.bf16.mxu0 %v5023_v51  ;;  %v5064_v3 = vunpack.c.h.s8.bf16 %v3021_v52 }
 0x846   : > { %13102 = vmatprep.subr.bf16.mxu1 %v5039_v9 }
 0x848   : > { %13081 = vmatpush3.bf16.msra.mxu0 %v5015_v4 }
 0x849   : > { %13103 = vmatpush3.bf16.msra.mxu1 %v5031_v48  ;;  %13082 = vmatprep.subr.bf16.mxu0 %v5022_v13  ;;  %v5055_v13 = vunpack.c.l.s8.bf16 %v3017_v57 }
 0x84a   : > { %13104 = vmatprep.subr.bf16.mxu1 %v5038_v14  ;;  %v5071_v14 = vunpack.c.l.s8.bf16 %v3025_v58 }
 0x84c   : > { %13083 = vmatpush3.bf16.msra.mxu0 %v5014_v16  ;;  %v3024_v16 = vld [vmem:[%s13677_s8 + $0x1fe8] sm:$0xff] }
 0x84d   : > { %13105 = vmatpush3.bf16.msra.mxu1 %v5030_v8  ;;  %13084 = vmatprep.subr.bf16.mxu0 %v5021_v34  ;;  %v5047_v8 = vunpack.c.l.s8.bf16 %v3013_v7  ;;  %v5054_v34 = vunpack.c.h.s8.bf16 %v3016_v6 }
 0x84e   : > { %13106 = vmatprep.subr.bf16.mxu1 %v5037_v1  ;;  %v5070_v1 = vunpack.c.h.s8.bf16 %v3024_v16 }
 0x850   : > { %13085 = vmatpush3.bf16.msra.mxu0 %v5013_v22  ;;  %v5062_v22 = vunpack.c.h.s8.bf16 %v3020_v18 }
 0x851   : > { %13107 = vmatpush3.bf16.msra.mxu1 %v5029_v12  ;;  %13086 = vmatprep.subr.bf16.mxu0 %v5020_v47  ;;  %v5053_v12 = vunpack.c.l.s8.bf16 %v3016_v6  ;;  %v5069_v47 = vunpack.c.l.s8.bf16 %v3024_v16 }
 0x852   : > { %13108 = vmatprep.subr.bf16.mxu1 %v5036_v23  ;;  %v3015_v23 = vld [vmem:[%s13677_s8 + $0x1fa0] sm:$0xff] }
 0x854   : > { %13087 = vmatpush3.bf16.msra.mxu0 %v5012_v29  ;;  %v5052_v29 = vunpack.c.h.s8.bf16 %v3015_v23 }
 0x855   : > { %13109 = vmatpush3.bf16.msra.mxu1 %v5028_v17  ;;  %13088 = vmatprep.subr.bf16.mxu0 %v5019_v62  ;;  %v5068_v17 = vunpack.c.h.s8.bf16 %v3023_v24  ;;  %v3011_v62 = vld [vmem:[%s13677_s8 + $0x1f80] sm:$0xff] }
 0x856   : > { %13110 = vmatprep.subr.bf16.mxu1 %v5035_v30  ;;  %v3019_v30 = vld [vmem:[%s13677_s8 + $0x1fc0] sm:$0xff]  ;;  %v5044_v31 = vunpack.c.h.s8.bf16 %v3011_v62 }
 0x857   : > { %v5060_v32 = vunpack.c.h.s8.bf16 %v3019_v30 }
 0x858   : > { %13089 = vmatpush3.bf16.msra.mxu0 %v5011_v21  ;;  %v5051_v21 = vunpack.c.l.s8.bf16 %v3015_v23 }
 0x859   : > { %13111 = vmatpush3.bf16.msra.mxu1 %v5027_v39  ;;  %13118 = vmatprep.subr.bf16.mxu0 %v5058_v11  ;;  %v5067_v39 = vunpack.c.l.s8.bf16 %v3023_v24  ;;  %v5043_v11 = vunpack.c.l.s8.bf16 %v3011_v62 }
 0x85a   : > { %13140 = vmatprep.subr.bf16.mxu1 %v5074_v46  ;;  %v5059_v46 = vunpack.c.l.s8.bf16 %v3019_v30 }
 0x85b   : > { %v12826_v36 = vpop.f32.mrf.mxu0  ;;  %10069 = vmatmul.mubr.bf16.vlgmr.msra.gmra.mxu0 %v1995_v38 }
 0x85c   : > { %v12848_v37 = vpop.f32.mrf.mxu1  ;;  %10109 = vmatmul.mubr.bf16.vlgmr.msra.gmra.mxu1 %v1997_v27  ;;  %13119 = vmatpush3.bf16.msra.mxu0 %v5050_v28 }
 0x85d   : > { %13141 = vmatpush3.bf16.msra.mxu1 %v5066_v54  ;;  %v12827_v40 = vpop.f32.mrf.mxu0  ;;  %13120 = vmatprep.subr.bf16.mxu0 %v5057_v19 }
 0x85e   : > { %v12849_v41 = vpop.f32.mrf.mxu1  ;;  %13142 = vmatprep.subr.bf16.mxu1 %v5073_v10  ;;  %v12828_v53 = vadd.f32 %v12827_v40, %v12826_v36  ;;  %10148 = vmatprep.mubr.bf16.mxu0 %v2000_v59 }
 0x85f   : > { %v12850_v35 = vadd.f32 %v12849_v41, %v12848_v37  ;;  %10188 = vmatprep.mubr.bf16.mxu1 %v2002_v0  ;;  %v12829_v50 = vpop.f32.mrf.mxu0 }
 0x860   : > { %v12851_v51 = vpop.f32.mrf.mxu1  ;;  %v9591_v9 = vadd.f32 %v12828_v53, %v15801_v63  ;;  %13121 = vmatpush3.bf16.msra.mxu0 %v5049_v26  ;;  %v5063_v63 = vunpack.c.l.s8.bf16 %v3021_v52 }
 0x861   : > { %13143 = vmatpush3.bf16.msra.mxu1 %v5065_v61  ;;  %v12830_v4 = vpop.f32.mrf.mxu0  ;;  %13122 = vmatprep.subr.bf16.mxu0 %v5056_v5 }
 0x862   : > { %v12852_v48 = vpop.f32.mrf.mxu1  ;;  %13144 = vmatprep.subr.bf16.mxu1 %v5072_v45  ;;  %v9631_v60 = vadd.f32 %v12850_v35, %v9591_v9 }
 0x864   : > { %13123 = vmatpush3.bf16.msra.mxu0 %v5048_v56 }
 0x865   : > { %13145 = vmatpush3.bf16.msra.mxu1 %v5064_v3  ;;  %13124 = vmatprep.subr.bf16.mxu0 %v5055_v13 }
 0x866   : > { %13146 = vmatprep.subr.bf16.mxu1 %v5071_v14 }
 0x868   : > { %13125 = vmatpush3.bf16.msra.mxu0 %v5047_v8 }
 0x869   : > { %13147 = vmatpush3.bf16.msra.mxu1 %v5063_v63  ;;  %13126 = vmatprep.subr.bf16.mxu0 %v5054_v34 }
 0x86a   : > { %13148 = vmatprep.subr.bf16.mxu1 %v5070_v1 }
 0x86c   : > { %13127 = vmatpush3.bf16.msra.mxu0 %v5046_v55 }
 0x86d   : > { %13149 = vmatpush3.bf16.msra.mxu1 %v5062_v22  ;;  %13128 = vmatprep.subr.bf16.mxu0 %v5053_v12 }
 0x86e   : > { %13150 = vmatprep.subr.bf16.mxu1 %v5069_v47 }
 0x870   : > { %13129 = vmatpush3.bf16.msra.mxu0 %v5045_v25 }
 0x871   : > { %13151 = vmatpush3.bf16.msra.mxu1 %v5061_v15  ;;  %13130 = vmatprep.subr.bf16.mxu0 %v5052_v29 }
 0x872   : > { %13152 = vmatprep.subr.bf16.mxu1 %v5068_v17 }
 0x874   : > { %13131 = vmatpush3.bf16.msra.mxu0 %v5044_v31 }
 0x875   : > { %13153 = vmatpush3.bf16.msra.mxu1 %v5060_v32  ;;  %13132 = vmatprep.subr.bf16.mxu0 %v5051_v21 }
 0x876   : > { %13154 = vmatprep.subr.bf16.mxu1 %v5067_v39 }
 0x878   : > { %13133 = vmatpush3.bf16.msra.mxu0 %v5043_v11 }
 0x879   : > { %13155 = vmatpush3.bf16.msra.mxu1 %v5059_v46 }
 0x87b   : > { %v12870_v44 = vpop.f32.mrf.mxu0  ;;  %10149 = vmatmul.mubr.bf16.vlgmr.msra.gmra.mxu0 %v1999_v42 }
 0x87c   : > { %v12892_v49 = vpop.f32.mrf.mxu1  ;;  %10189 = vmatmul.mubr.bf16.vlgmr.msra.gmra.mxu1 %v2001_v43 }
 0x87d   : > { %v12871_v38 = vpop.f32.mrf.mxu0 }
 0x87e   : > { %v12893_v27 = vpop.f32.mrf.mxu1  ;;  %v12872_v28 = vadd.f32 %v12871_v38, %v12870_v44 }
 0x87f   : > { %v12894_v54 = vadd.f32 %v12893_v27, %v12892_v49  ;;  %v12873_v19 = vpop.f32.mrf.mxu0 }
 0x880   : > { %v12895_v10 = vpop.f32.mrf.mxu1  ;;  %v9671_v57 = vadd.f32 %v12872_v28, %v9631_v60 }
 0x881   : > { %v12874_v58 = vpop.f32.mrf.mxu0 }
 0x882   : > { %v12896_v59 = vpop.f32.mrf.mxu1  ;;  %v9711_v0 = vadd.f32 %v12894_v54, %v9671_v57 }
 0x89b   : > { %v12914_v33 = vpop.f32.mrf.mxu0 }
 0x89c   : > { %v12936_v36 = vpop.f32.mrf.mxu1 }
 0x89d   : > { %v12915_v37 = vpop.f32.mrf.mxu0 }
 0x89e   : > { %v12937_v20 = vpop.f32.mrf.mxu1  ;;  %v12916_v26 = vadd.f32 %v12915_v37, %v12914_v33 }
 0x89f   : > { %v12938_v61 = vadd.f32 %v12937_v20, %v12936_v36  ;;  %v12917_v40 = vpop.f32.mrf.mxu0 }
 0x8a0   : > { %v12939_v41 = vpop.f32.mrf.mxu1  ;;  %v9751_v5 = vadd.f32 %v12916_v26, %v9711_v0 }
 0x8a1   : > { %v12918_v45 = vpop.f32.mrf.mxu0 }
 0x8a2   : > { %v12940_v7 = vpop.f32.mrf.mxu1  ;;  %v9791_v52 = vadd.f32 %v12938_v61, %v9751_v5  ;;  %v5075_v61 = vld [vmem:[#allocation10] sm:$0x3] }
 0x8bb   : > { %v12958_v53 = vpop.f32.mrf.mxu0 }
 0x8bc   : > { %v12980_v35 = vpop.f32.mrf.mxu1 }
 0x8bd   : > { %v12959_v50 = vpop.f32.mrf.mxu0 }
 0x8be   : > { %v12981_v51 = vpop.f32.mrf.mxu1  ;;  %v12960_v9 = vadd.f32 %v12959_v50, %v12958_v53 }
 0x8bf   : > { %v12982_v56 = vadd.f32 %v12981_v51, %v12980_v35  ;;  %v12961_v3 = vpop.f32.mrf.mxu0 }
 0x8c0   : > { %v12983_v4 = vpop.f32.mrf.mxu1  ;;  %v9831_v48 = vadd.f32 %v12960_v9, %v9791_v52 }
 0x8c1   : > { %v12962_v13 = vpop.f32.mrf.mxu0 }
 0x8c2   : > { %v12984_v14 = vpop.f32.mrf.mxu1  ;;  %v9871_v60 = vadd.f32 %v12982_v56, %v9831_v48 }
 0x8db   : > { %v13002_v6 = vpop.f32.mrf.mxu0 }
 0x8dc   : > { %v13024_v16 = vpop.f32.mrf.mxu1 }
 0x8dd   : > { %v13003_v8 = vpop.f32.mrf.mxu0 }
 0x8de   : > { %v13025_v63 = vpop.f32.mrf.mxu1  ;;  %v13004_v34 = vadd.f32 %v13003_v8, %v13002_v6 }
 0x8df   : > { %v13026_v1 = vadd.f32 %v13025_v63, %v13024_v16  ;;  %v13005_v2 = vpop.f32.mrf.mxu0 }
 0x8e0   : > { %v13027_v18 = vpop.f32.mrf.mxu1  ;;  %v9911_v55 = vadd.f32 %v13004_v34, %v9871_v60 }
 0x8e1   : > { %v13006_v22 = vpop.f32.mrf.mxu0 }
 0x8e2   : > { %v13028_v12 = vpop.f32.mrf.mxu1  ;;  %v9951_v47 = vadd.f32 %v13026_v1, %v9911_v55 }
 0x8fb   : > { %v13046_v23 = vpop.f32.mrf.mxu0 }
 0x8fc   : > { %v13068_v24 = vpop.f32.mrf.mxu1 }
 0x8fd   : > { %v13047_v25 = vpop.f32.mrf.mxu0 }
 0x8fe   : > { %v13069_v15 = vpop.f32.mrf.mxu1  ;;  %v13048_v44 = vadd.f32 %v13047_v25, %v13046_v23 }
 0x8ff   : > { %v13049_v29 = vpop.f32.mrf.mxu0  ;;  %v13070_v38 = vadd.f32 %v13069_v15, %v13068_v24 }
 0x900   : > { %v13071_v17 = vpop.f32.mrf.mxu1  ;;  %v9991_v49 = vadd.f32 %v13048_v44, %v9951_v47 }
 0x901   : > { %v13050_v62 = vpop.f32.mrf.mxu0 }
 0x902   : > { %v13072_v30 = vpop.f32.mrf.mxu1  ;;  %v10031_v28 = vadd.f32 %v13070_v38, %v9991_v49 }
 0x91b   : > { %v13090_v31 = vpop.f32.mrf.mxu0 }
 0x91c   : > { %v13112_v32 = vpop.f32.mrf.mxu1 }
 0x91d   : > { %v13091_v21 = vpop.f32.mrf.mxu0 }
 0x91e   : > { %v13113_v39 = vpop.f32.mrf.mxu1  ;;  %v13092_v27 = vadd.f32 %v13091_v21, %v13090_v31 }
 0x91f   : > { %v13093_v11 = vpop.f32.mrf.mxu0  ;;  %v13114_v19 = vadd.f32 %v13113_v39, %v13112_v32 }
 0x920   : > { %v13115_v46 = vpop.f32.mrf.mxu1  ;;  %v10071_v54 = vadd.f32 %v13092_v27, %v10031_v28 }
 0x921   : > { %v13094_v42 = vpop.f32.mrf.mxu0 }
 0x922   : > { %v13116_v43 = vpop.f32.mrf.mxu1  ;;  %v10111_v0 = vadd.f32 %v13114_v19, %v10071_v54 }
 0x93b   : > { %v13134_v10 = vpop.f32.mrf.mxu0 }
 0x93c   : > { %v13156_v57 = vpop.f32.mrf.mxu1 }
 0x93d   : > { %v13135_v58 = vpop.f32.mrf.mxu0 }
 0x93e   : > { %v13157_v59 = vpop.f32.mrf.mxu1  ;;  %v13136_v33 = vadd.f32 %v13135_v58, %v13134_v10 }
 0x93f   : > { %v13137_v36 = vpop.f32.mrf.mxu0  ;;  %v13158_v26 = vadd.f32 %v13157_v59, %v13156_v57 }
 0x940   : > { %v13159_v37 = vpop.f32.mrf.mxu1  ;;  %v10151_v20 = vadd.f32 %v13136_v33, %v10111_v0 }
 0x941   : > { %v13138_v40 = vpop.f32.mrf.mxu0 }
 0x942   : > { %v13160_v41 = vpop.f32.mrf.mxu1  ;;  %v10191_v5 = vadd.f32 %v13158_v26, %v10151_v20  ;;  %10201 = sbr.rel (%p10337_p1) target bundleno = 2401 (0x961), region = 60 }
 0x944   : > { %v10196_v45 = vadd.f32 %v10191_v5, %v5075_v61 }
 0x946   : > { %10197 = vst [vmem:[#allocation10] sm:$0x3] %v10196_v45 }
 0x947   : > { %v10338_v52 = vld [vmem:[#allocation7] ss:$0 sm:$0xff]  ;;  %v10339_v53 = vld [vmem:[#allocation8] ss:$0 sm:$0xff] }
 0x94d   : > { %v10202_v7 = vld [vmem:[#allocation10] sm:$0x3] }
 0x94e   : > { %v10210_v35 = vmul.f32 %v10338_v52, %v10202_v7 }
 0x950   : > { %v10218_v50 = vadd.f32 %v10339_v53, %v10210_v35 }
 0x952   : > { %13302 = vtanh.f32 %v10218_v50 }
 0x95f   : > { %v13303_v51 = vpop.eup %13302 }
 0x960   : > { %10220 = vst [vmem:[#allocation10] sm:$0x3] %v13303_v51 }
 0x961 PF: > { %p13197_p5 = scmp.eq.s32.totalorder %s13541_s19, 5  ;;  %s13496_s20 = smov [#allocation10]  }
 0x962   : > { %s10228_s21 = sshll.u32 %s13496_s20, 4  ;;  %s10229_s21 = int_to_ptr.vmem [resolvable:$true] %s10228_s21 }
 0x963   : > { %s13412_s9 = scalar_lea.vmem %s10229_s21, 32  ;;  %p13419_p6 = scmp.lt.s32.totalorder %s10229_s21, %s10229_s21 }
 0x964   : > { %p13413_p12 = scmp.ne.s32.totalorder %s10229_s21, %s13412_s9  ;;  %p13420_p7 = scmp.lt.s32.totalorder %s13412_s9, %s13412_s9 }
 0x966   : > { %p13414_p0 = pnand %p13413_p12, %p13197_p5  ;;  %p13421_p2 = por %p13420_p7, %p13419_p6 }
 0x968   : > { %p13415_p3 = pneg %p13414_p0 }
 0x96a   : > { %p13422_p10 = pnand %p13421_p2, %p13415_p3 }
 0x96c   : > { %13425 = shalt.err (!%p13422_p10)
}
 0x96d   : > { %13175 = dma.vmem_to_hbm [thread:$0]  (%p13197_p5), %s10229_s21, 32, %s15877_s4, [#allocation4]  }
 0x96e   : > { %13469 = dma.done.wait (%p13197_p5), [#allocation4], 32  }
 0x96f   : > { %13471 = vsyncadd (%p13197_p5), [#allocation4], 4294967264 }
 0x970 PF: > { %p19_p8 = scmp.ge.s32.totalorder %s13567_s27, 8   ;;  %s15892_s15 = smov %s13478_s16 }
 0x971   : > { %s15893_s16 = smov %s13482_s17  ;;  %s15894_s17 = smov %s13594_s12 }
 0x972   : > { %s15895_s18 = smov %s13567_s27  ;;  %21 = sbr.rel (!%p19_p8) target bundleno = 7 (0x7), region = 102 }
 0x977   :  { %10241 = vsyncpa [#allocation3], 1 }
 0x978   :  { %10243 = vsyncpa [#allocation3 + $0x1], 1 }
 0x979   :  { %10244 = vsyncpa [#allocation6], 1 }
 0x97a   :  { %10246 = vsyncpa [#allocation6 + $0x1], 1 }
 0x97b   :  { %10247 = vsyncpa [#allocation9], 1 }
 0x97c   :  { %10248 = vsyncpa [#allocation4], 1 }
 0x97d   :  { %10250 = vsyncpa [#allocation4 + $0x1], 1 }

</bundles_post_ra>
